<compile_context>
chip_gen: v7x
topology: tpu7x:2x2x1
jax: 0.10.0
libtpu: 0.0.40
codegen_flags: <defaults>
</compile_context>

<pallas_src>
import functools

import jax
import jax.numpy as jnp
import numpy as np
from jax import lax
from jax.experimental import pallas as pl
from jax.experimental.pallas import tpu as pltpu

EPS = 1e-5  # torch.nn.BatchNorm2d default eps


def split_layer(total_channels, num_groups):
    split = [int(np.ceil(total_channels / num_groups)) for _ in range(num_groups)]
    split[num_groups - 1] += total_channels - sum(split)
    return split


def _bottle2neck_kernel(B, H, W, C, ks,
                        x_ref, pac0_ref, w2w0_ref, pac1_ref, w2w1_ref,
                        o_ref,
                        xpad_ref, taps_ref, fold_ref):
    """Fused Bottle2neck forward.

    x_ref    : (2, B, H, W*C)        the two channel splits, lane-dense (c minor within w)
    pacX_ref : (C+4, C)              packed [w1^T | gamma1 | beta1 | gamma2 | beta2]
    w2wX_ref : (C//4, k*k*W*C)       conv2 weight, tap-major, W-replication folded in
    o_ref    : (2, B, H, W*C)        branch outputs (lane-dense)
    xpad_ref : (B, H+2pmax, (W+2pmax)*C)  shared zero-padded-input scratch
    taps_ref : (B, max(k*k)*W*C)     conv2 taps (already replicated across W)
    fold_ref : (W*C, C)              fold[j,c] = (j mod C == c), generated in-kernel
    """
    WC = W * C
    r = C // 4
    inv_hw = 1.0 / (H * W)
    inv_n = 1.0 / (B * H * W)
    cmask = C - 1  # C is a power of two (asserted in the wrapper)

    # ---- fold constant generated from iota (no HBM DMA), parked in VMEM scratch ----
    jj = lax.broadcasted_iota(jnp.int32, (WC, C), 0)
    cc = lax.broadcasted_iota(jnp.int32, (WC, C), 1)
    fold_ref[...] = jnp.where((jj & cmask) == cc, 1.0, 0.0)

    def run_branch(i, k, sp, pac_ref, w2w_ref):
        p = (k - 1) // 2
        kk = k * k
        Hp, Wp = H + 2 * p, W + 2 * p

        # ---- padded input: write interior, zero only the halo frame ----
        xpad_ref[:, p:p + H, p * C:p * C + WC] = sp
        zrow = jnp.zeros((B, p, Wp * C), jnp.float32)
        zcol = jnp.zeros((B, H, p * C), jnp.float32)
        xpad_ref[:, 0:p, 0:Wp * C] = zrow
        xpad_ref[:, p + H:Hp, 0:Wp * C] = zrow
        xpad_ref[:, p:p + H, 0:p * C] = zcol
        xpad_ref[:, p:p + H, p * C + WC:Wp * C] = zcol

        # ---- adaptive average pool -> (B, C): sublane reduce over H, fold W via MXU ----
        pooled = jnp.dot(jnp.sum(sp, axis=1), fold_ref[...],
                         preferred_element_type=jnp.float32) * inv_hw

        # ---- conv1 (1x1) -> BatchNorm (training, biased stats over B) -> ReLU ----
        w1t = pac_ref[0:C, 0:r]
        g1 = pac_ref[C:C + 1, 0:r]
        b1 = pac_ref[C + 1:C + 2, 0:r]
        h1 = jnp.dot(pooled, w1t, preferred_element_type=jnp.float32)          # (B, r)
        mu1 = jnp.sum(h1, axis=0, keepdims=True) * (1.0 / B)
        var1 = jnp.sum((h1 - mu1) ** 2, axis=0, keepdims=True) * (1.0 / B)
        h1 = jnp.maximum((h1 - mu1) * lax.rsqrt(var1 + EPS) * g1 + b1, 0.0)

        # ---- conv2 (1x1): ONE dot -> all taps, already replicated across W ----
        taps_ref[:, 0:kk * WC] = jnp.dot(h1, w2w_ref[...],
                                         preferred_element_type=jnp.float32)

        # ---- dynamic depthwise conv, accumulated in lane-dense (B, H, W*C) ----
        acc = None
        for kj in range(k):
            xkj = xpad_ref[:, 0:Hp, kj * C:kj * C + WC]        # one lane realignment per kj
            for ki in range(k):
                t = ki * k + kj
                tap_w = taps_ref[:, t * WC:(t + 1) * WC]        # 128-lane-aligned load
                term = xkj[:, ki:ki + H, :] * tap_w[:, None, :]
                acc = term if acc is None else acc + term

        # ---- outer BatchNorm: one-pass stats, mean folded into bias, then ReLU ----
        g2 = pac_ref[C + 2:C + 3, 0:C]
        b2 = pac_ref[C + 3:C + 4, 0:C]
        rows = jnp.concatenate([jnp.sum(acc, axis=1),
                                jnp.sum(acc * acc, axis=1)], axis=0)            # (2B, WC)
        sums = jnp.dot(rows, fold_ref[...], preferred_element_type=jnp.float32)  # (2B, C)
        mu = jnp.sum(sums[0:B], axis=0, keepdims=True) * inv_n                  # (1, C)
        ex2 = jnp.sum(sums[B:2 * B], axis=0, keepdims=True) * inv_n             # (1, C)
        var = jnp.maximum(ex2 - mu * mu, 0.0)
        scale_c = g2 * lax.rsqrt(var + EPS)                                     # (1, C)
        bias_c = b2 - mu * scale_c                                              # (1, C)

        # broadcast (2, C) -> (2, W*C) with one small matmul against an iota-generated rep
        c_ids = lax.broadcasted_iota(jnp.int32, (C, WC), 0)
        j_ids = lax.broadcasted_iota(jnp.int32, (C, WC), 1)
        rep = jnp.where((j_ids & cmask) == c_ids, 1.0, 0.0)                     # (C, WC)
        sb_w = jnp.dot(jnp.concatenate([scale_c, bias_c], axis=0), rep,
                       preferred_element_type=jnp.float32)                      # (2, WC)

        y = jnp.maximum(acc * sb_w[0:1][:, None, :] + sb_w[1:2][:, None, :], 0.0)
        o_ref[i] = y
        return y

    # branch 0 (k=3), then branch 1 on (branch0_out + split1) — residual add in-kernel.
    y0 = run_branch(0, ks[0], x_ref[0], pac0_ref, w2w0_ref)
    run_branch(1, ks[1], x_ref[1] + y0, pac1_ref, w2w1_ref)


def init_branch_params(key, dim, k, W, reduction=4):
    """Deterministic params for one DynamicDWConv branch + its outer BN."""
    r = dim // reduction
    kk = k * k
    k1, k2 = jax.random.split(key)
    w1 = jax.random.normal(k1, (r, dim), jnp.float32) * 0.1        # conv1.weight[:,:,0,0]
    w2 = jax.random.normal(k2, (dim * kk, r), jnp.float32) * 0.1   # conv2.weight[:,:,0,0]
    g1 = jnp.ones((r,), jnp.float32)
    b1 = jnp.zeros((r,), jnp.float32)
    g2 = jnp.ones((dim,), jnp.float32)
    b2 = jnp.zeros((dim,), jnp.float32)

    # packed small params: rows [0:dim]=w1^T (cols 0:r), dim=g1, dim+1=b1, dim+2=g2, dim+3=b2
    pac = jnp.zeros((dim + 4, dim), jnp.float32)
    pac = pac.at[0:dim, 0:r].set(w1.T)
    pac = pac.at[dim, 0:r].set(g1)
    pac = pac.at[dim + 1, 0:r].set(b1)
    pac = pac.at[dim + 2, :].set(g2)
    pac = pac.at[dim + 3, :].set(b2)

    # conv2 weight, tap-major, with the W replication folded in:
    #   w2w[rho, t*W*dim + w*dim + c] = w2[c*kk + t, rho]   (same value for every w)
    w2t = jnp.transpose(w2.reshape(dim, kk, r), (2, 1, 0))                      # (r, kk, dim)
    w2w = jnp.broadcast_to(w2t[:, :, None, :], (r, kk, W, dim)).reshape(r, kk * W * dim)

    return dict(k=k, w1=w1, w2=w2, g1=g1, b1=b1, g2=g2, b2=b2, pac=pac, w2w=w2w)


@functools.partial(jax.jit, static_argnums=(5, 6))
def _forward_impl(x_nchw, pac0, w2w0, pac1, w2w1, ks, C):
    B, Ctot, H, W = x_nchw.shape
    scale = Ctot // C
    WC = W * C
    pmax = max((k - 1) // 2 for k in ks)
    kkmax = max(k * k for k in ks)

    # wrapper glue (fused by XLA under jit): NCHW -> two lane-dense (B, H, W*C) slabs.
    xh = jnp.transpose(x_nchw, (0, 2, 3, 1))                                    # (B,H,W,Ctot)
    x_stacked = jnp.stack(
        [xh[..., i * C:(i + 1) * C].reshape(B, H, WC) for i in range(scale)], axis=0)

    kernel = functools.partial(_bottle2neck_kernel, B, H, W, C, ks)
    vmem = pl.BlockSpec(memory_space=pltpu.MemorySpace.VMEM)

    conv2_flops = 2 * B * (C // 4) * WC * sum(k * k for k in ks)
    tap_flops = 2 * B * H * WC * sum(k * k for k in ks)
    cost = pl.CostEstimate(
        flops=conv2_flops + tap_flops + 8 * B * H * WC,
        transcendentals=4 * len(ks),
        bytes_accessed=4 * (x_stacked.size + pac0.size + w2w0.size + pac1.size
                            + w2w1.size + scale * B * H * WC))

    out = pl.pallas_call(
        kernel,
        out_shape=jax.ShapeDtypeStruct((scale, B, H, WC), jnp.float32),
        in_specs=[vmem] * 5,
        out_specs=vmem,
        scratch_shapes=[
            pltpu.VMEM((B, H + 2 * pmax, (W + 2 * pmax) * C), jnp.float32),  # shared padded input
            pltpu.VMEM((B, kkmax * WC), jnp.float32),                        # W-replicated conv2 taps
            pltpu.VMEM((WC, C), jnp.float32),                                # fold constant
        ],
        cost_estimate=cost,
    )(x_stacked, pac0, w2w0, pac1, w2w1)
    # TODO(synk): at production Res2Net sizes (e.g. 56x56, B>=16) add a grid over B with
    # two-pass BN partials (and shard it across the 2 TensorCores on v7x); the fully
    # resident grid=() design is fine here (<1 MiB VMEM) but will not scale.

    # wrapper glue: (scale, B, H, W*C) -> NCHW concat.
    out = out.reshape(scale, B, H, W, C)
    return jnp.transpose(out, (1, 0, 4, 2, 3)).reshape(B, scale * C, H, W)


def bottle2neck_forward(x_nchw, params, inplanes=64, scale=2):
    """Bottle2neck(inplanes, stride=1, scale=2).forward — NCHW in / NCHW out."""
    splits = split_layer(inplanes, scale)
    assert scale == 2 and splits[0] == splits[1], "kernel is specialized to scale=2 equal splits"
    C = splits[0]
    assert (C & (C - 1)) == 0, "per-split channel count must be a power of two"
    ks = tuple(int(p["k"]) for p in params)
    return _forward_impl(x_nchw, params[0]["pac"], params[0]["w2w"],
                         params[1]["pac"], params[1]["w2w"], ks, C)


def _reference(x_nchw, params):
    """Pure-JAX reference (training-mode BN, biased stats), NCHW in / NCHW out."""
    B, Ctot, H, W = x_nchw.shape
    C = Ctot // len(params)
    xs = [x_nchw[:, i * C:(i + 1) * C] for i in range(len(params))]
    hi = lax.Precision.HIGHEST
    outs = []
    sp = None
    for i, prm in enumerate(params):
        k = prm["k"]
        p = (k - 1) // 2
        sp = xs[i] if i == 0 else sp + xs[i]
        pooled = jnp.mean(sp, axis=(2, 3))                                      # (B, C)
        h1 = jnp.dot(pooled, prm["w1"].T, precision=hi)                         # (B, r)
        mu1 = jnp.mean(h1, axis=0, keepdims=True)
        var1 = jnp.mean((h1 - mu1) ** 2, axis=0, keepdims=True)
        h1 = jnp.maximum((h1 - mu1) / jnp.sqrt(var1 + EPS) * prm["g1"] + prm["b1"], 0.0)
        taps = jnp.dot(h1, prm["w2"].T, precision=hi).reshape(B, C, k, k)       # (B,C,k,k)
        xpad = jnp.pad(sp, ((0, 0), (0, 0), (p, p), (p, p)))
        conv = jnp.zeros_like(sp)
        for ki in range(k):
            for kj in range(k):
                conv = conv + xpad[:, :, ki:ki + H, kj:kj + W] * taps[:, :, ki, kj][:, :, None, None]
        mu2 = jnp.mean(conv, axis=(0, 2, 3), keepdims=True)
        var2 = jnp.mean((conv - mu2) ** 2, axis=(0, 2, 3), keepdims=True)
        sp = jnp.maximum((conv - mu2) / jnp.sqrt(var2 + EPS)
                         * prm["g2"][None, :, None, None] + prm["b2"][None, :, None, None], 0.0)
        outs.append(sp)
    return jnp.concatenate(outs, axis=1)


if __name__ == "__main__":
    key = jax.random.PRNGKey(0)
    kx, kp0, kp1 = jax.random.split(key, 3)

    B, Ctot, H, W = 2, 64, 12, 12                          # matches torch.randn(2, 64, 12, 12)
    x = jax.random.normal(kx, (B, Ctot, H, W), jnp.float32)

    params = [
        init_branch_params(kp0, dim=32, k=3, W=W),
        init_branch_params(kp1, dim=32, k=5, W=W),
    ]

    out = bottle2neck_forward(x, params)
    out = jax.block_until_ready(out)
    assert out.shape == (B, Ctot, H, W), out.shape
    assert bool(jnp.all(jnp.isfinite(out)))
    assert bool(jnp.all(out >= 0.0))                       # ReLU output is non-negative

    ref = jax.block_until_ready(_reference(x, params))
    np.testing.assert_allclose(np.asarray(out), np.asarray(ref), rtol=2e-3, atol=2e-3)
    print("KERNEL_OK")
</pallas_src>

<mosaic_0001>
module attributes {stable_mosaic.version = 11 : i64} {
  func.func @_bottle2neck_kernel(%arg0: memref<2x2x12x384xf32, #tpu.memory_space<vmem>>, %arg1: memref<36x32xf32, #tpu.memory_space<vmem>>, %arg2: memref<8x3456xf32, #tpu.memory_space<vmem>>, %arg3: memref<36x32xf32, #tpu.memory_space<vmem>>, %arg4: memref<8x9600xf32, #tpu.memory_space<vmem>>, %arg5: memref<2x2x12x384xf32, #tpu.memory_space<vmem>>, %arg6: memref<2x16x512xf32, #tpu.memory_space<vmem>>, %arg7: memref<2x9600xf32, #tpu.memory_space<vmem>>, %arg8: memref<384x32xf32, #tpu.memory_space<vmem>>) attributes {dimension_semantics = [], scalar_prefetch = 0 : i64, scratch_operands = 3 : i64, tpu.core_type = #tpu.core_type<tc>} {
    %0 = tpu.iota {dimensions = array<i32: 0>} : vector<384x32xi32>
    %1 = tpu.iota {dimensions = array<i32: 1>} : vector<384x32xi32>
    %c31_i32 = arith.constant 31 : i32
    %2 = vector.broadcast %c31_i32 : i32 to vector<384x32xi32>
    %3 = arith.andi %0, %2 : vector<384x32xi32>
    %4 = arith.cmpi eq, %3, %1 : vector<384x32xi32>
    %cst = arith.constant 1.000000e+00 : f32
    %cst_0 = arith.constant 0.000000e+00 : f32
    %5 = vector.broadcast %cst : f32 to vector<384x32xf32>
    %6 = vector.broadcast %cst_0 : f32 to vector<384x32xf32>
    %7 = arith.select %4, %5, %6 : vector<384x32xi1>, vector<384x32xf32>
    %c0 = arith.constant 0 : index
    %c0_1 = arith.constant 0 : index
    %8 = vector.load %arg8[%c0, %c0_1] : memref<384x32xf32, #tpu.memory_space<vmem>>, vector<384x32xf32>
    tpu.vector_store %arg8[%c0, %c0_1], %7 {strides = array<i32>} : memref<384x32xf32, #tpu.memory_space<vmem>>, vector<384x32xf32>,
    %c0_2 = arith.constant 0 : index
    %c0_3 = arith.constant 0 : index
    %c0_4 = arith.constant 0 : index
    %c0_5 = arith.constant 0 : index
    %9 = vector.load %arg0[%c0_2, %c0_3, %c0_4, %c0_5] : memref<2x2x12x384xf32, #tpu.memory_space<vmem>>, vector<1x2x12x384xf32>
    %10 = vector.shape_cast %9 : vector<1x2x12x384xf32> to vector<2x12x384xf32>
    %c0_6 = arith.constant 0 : index
    %c1 = arith.constant 1 : index
    %c32 = arith.constant 32 : index
    %11 = vector.load %arg6[%c0_6, %c1, %c32] : memref<2x16x512xf32, #tpu.memory_space<vmem>>, vector<2x12x384xf32>
    tpu.vector_store %arg6[%c0_6, %c1, %c32], %10 {strides = array<i32>} : memref<2x16x512xf32, #tpu.memory_space<vmem>>, vector<2x12x384xf32>,
    %cst_7 = arith.constant 0.000000e+00 : f32
    %12 = vector.broadcast %cst_7 : f32 to vector<2x1x448xf32>
    %cst_8 = arith.constant 0.000000e+00 : f32
    %13 = vector.broadcast %cst_8 : f32 to vector<2x12x32xf32>
    %c0_9 = arith.constant 0 : index
    %c0_10 = arith.constant 0 : index
    %c0_11 = arith.constant 0 : index
    %14 = vector.load %arg6[%c0_9, %c0_10, %c0_11] : memref<2x16x512xf32, #tpu.memory_space<vmem>>, vector<2x1x448xf32>
    tpu.vector_store %arg6[%c0_9, %c0_10, %c0_11], %12 {strides = array<i32>} : memref<2x16x512xf32, #tpu.memory_space<vmem>>, vector<2x1x448xf32>,
    %c0_12 = arith.constant 0 : index
    %c13 = arith.constant 13 : index
    %c0_13 = arith.constant 0 : index
    %15 = vector.load %arg6[%c0_12, %c13, %c0_13] : memref<2x16x512xf32, #tpu.memory_space<vmem>>, vector<2x1x448xf32>
    tpu.vector_store %arg6[%c0_12, %c13, %c0_13], %12 {strides = array<i32>} : memref<2x16x512xf32, #tpu.memory_space<vmem>>, vector<2x1x448xf32>,
    %c0_14 = arith.constant 0 : index
    %c1_15 = arith.constant 1 : index
    %c0_16 = arith.constant 0 : index
    %16 = vector.load %arg6[%c0_14, %c1_15, %c0_16] : memref<2x16x512xf32, #tpu.memory_space<vmem>>, vector<2x12x32xf32>
    tpu.vector_store %arg6[%c0_14, %c1_15, %c0_16], %13 {strides = array<i32>} : memref<2x16x512xf32, #tpu.memory_space<vmem>>, vector<2x12x32xf32>,
    %c0_17 = arith.constant 0 : index
    %c1_18 = arith.constant 1 : index
    %c416 = arith.constant 416 : index
    %17 = vector.load %arg6[%c0_17, %c1_18, %c416] : memref<2x16x512xf32, #tpu.memory_space<vmem>>, vector<2x12x32xf32>
    tpu.vector_store %arg6[%c0_17, %c1_18, %c416], %13 {strides = array<i32>} : memref<2x16x512xf32, #tpu.memory_space<vmem>>, vector<2x12x32xf32>,
    %cst_19 = arith.constant dense<0.000000e+00> : vector<2x384xf32>
    %18 = vector.multi_reduction <add>, %10, %cst_19 [1] : vector<2x12x384xf32> to vector<2x384xf32>
    %c0_20 = arith.constant 0 : index
    %c0_21 = arith.constant 0 : index
    %19 = vector.load %arg8[%c0_20, %c0_21] : memref<384x32xf32, #tpu.memory_space<vmem>>, vector<384x32xf32>
    %cst_22 = arith.constant dense<0.000000e+00> : vector<2x32xf32>
    %20 = tpu.matmul %18, %19, %cst_22 {dimension_numbers = #tpu.dot_dimension_numbers<[1], [0], [0], [1], [0, 0, 1, 1], [], []>} : vector<2x384xf32>, vector<384x32xf32>, vector<2x32xf32> -> vector<2x32xf32>
    %cst_23 = arith.constant 0.0069444445 : f32
    %21 = vector.broadcast %cst_23 : f32 to vector<2x32xf32>
    %22 = arith.mulf %20, %21 : vector<2x32xf32>
    %c0_24 = arith.constant 0 : index
    %c0_25 = arith.constant 0 : index
    %23 = vector.load %arg1[%c0_24, %c0_25] : memref<36x32xf32, #tpu.memory_space<vmem>>, vector<32x8xf32>
    %c32_26 = arith.constant 32 : index
    %c0_27 = arith.constant 0 : index
    %24 = vector.load %arg1[%c32_26, %c0_27] : memref<36x32xf32, #tpu.memory_space<vmem>>, vector<1x8xf32>
    %c33 = arith.constant 33 : index
    %c0_28 = arith.constant 0 : index
    %25 = vector.load %arg1[%c33, %c0_28] : memref<36x32xf32, #tpu.memory_space<vmem>>, vector<1x8xf32>
    %cst_29 = arith.constant dense<0.000000e+00> : vector<2x8xf32>
    %26 = tpu.matmul %22, %23, %cst_29 {dimension_numbers = #tpu.dot_dimension_numbers<[1], [0], [0], [1], [0, 0, 1, 1], [], []>} : vector<2x32xf32>, vector<32x8xf32>, vector<2x8xf32> -> vector<2x8xf32>
    %cst_30 = arith.constant dense<0.000000e+00> : vector<8xf32>
    %27 = vector.multi_reduction <add>, %26, %cst_30 [0] : vector<2x8xf32> to vector<8xf32>
    %28 = vector.shape_cast %27 : vector<8xf32> to vector<1x8xf32>
    %cst_31 = arith.constant 5.000000e-01 : f32
    %29 = vector.broadcast %cst_31 : f32 to vector<1x8xf32>
    %30 = arith.mulf %28, %29 : vector<1x8xf32>
    %31 = vector.broadcast %30 : vector<1x8xf32> to vector<2x8xf32>
    %32 = arith.subf %26, %31 : vector<2x8xf32>
    %33 = arith.mulf %32, %32 : vector<2x8xf32>
    %cst_32 = arith.constant dense<0.000000e+00> : vector<8xf32>
    %34 = vector.multi_reduction <add>, %33, %cst_32 [0] : vector<2x8xf32> to vector<8xf32>
    %35 = vector.shape_cast %34 : vector<8xf32> to vector<1x8xf32>
    %cst_33 = arith.constant 5.000000e-01 : f32
    %36 = vector.broadcast %cst_33 : f32 to vector<1x8xf32>
    %37 = arith.mulf %35, %36 : vector<1x8xf32>
    %38 = vector.broadcast %30 : vector<1x8xf32> to vector<2x8xf32>
    %39 = arith.subf %26, %38 : vector<2x8xf32>
    %cst_34 = arith.constant 9.99999974E-6 : f32
    %40 = vector.broadcast %cst_34 : f32 to vector<1x8xf32>
    %41 = arith.addf %37, %40 : vector<1x8xf32>
    %42 = math.rsqrt %41 : vector<1x8xf32>
    %43 = vector.broadcast %42 : vector<1x8xf32> to vector<2x8xf32>
    %44 = arith.mulf %39, %43 : vector<2x8xf32>
    %45 = vector.broadcast %24 : vector<1x8xf32> to vector<2x8xf32>
    %46 = arith.mulf %44, %45 : vector<2x8xf32>
    %47 = vector.broadcast %25 : vector<1x8xf32> to vector<2x8xf32>
    %48 = arith.addf %46, %47 : vector<2x8xf32>
    %cst_35 = arith.constant 0.000000e+00 : f32
    %49 = vector.broadcast %cst_35 : f32 to vector<2x8xf32>
    %50 = arith.maximumf %48, %49 : vector<2x8xf32>
    %c0_36 = arith.constant 0 : index
    %c0_37 = arith.constant 0 : index
    %51 = vector.load %arg2[%c0_36, %c0_37] : memref<8x3456xf32, #tpu.memory_space<vmem>>, vector<8x3456xf32>
    %cst_38 = arith.constant dense<0.000000e+00> : vector<2x3456xf32>
    %52 = tpu.matmul %50, %51, %cst_38 {dimension_numbers = #tpu.dot_dimension_numbers<[1], [0], [0], [1], [0, 0, 1, 1], [], []>} : vector<2x8xf32>, vector<8x3456xf32>, vector<2x3456xf32> -> vector<2x3456xf32>
    %c0_39 = arith.constant 0 : index
    %c0_40 = arith.constant 0 : index
    %53 = vector.load %arg7[%c0_39, %c0_40] : memref<2x9600xf32, #tpu.memory_space<vmem>>, vector<2x3456xf32>
    tpu.vector_store %arg7[%c0_39, %c0_40], %52 {strides = array<i32>} : memref<2x9600xf32, #tpu.memory_space<vmem>>, vector<2x3456xf32>,
    %c0_41 = arith.constant 0 : index
    %c0_42 = arith.constant 0 : index
    %c0_43 = arith.constant 0 : index
    %54 = vector.load %arg6[%c0_41, %c0_42, %c0_43] : memref<2x16x512xf32, #tpu.memory_space<vmem>>, vector<2x14x384xf32>
    %c0_44 = arith.constant 0 : index
    %c0_45 = arith.constant 0 : index
    %55 = vector.load %arg7[%c0_44, %c0_45] : memref<2x9600xf32, #tpu.memory_space<vmem>>, vector<2x384xf32>
    %56 = vector.extract_strided_slice %54 {offsets = [0, 0, 0], sizes = [2, 12, 384], strides = [1, 1, 1]} : vector<2x14x384xf32> to vector<2x12x384xf32>
    %57 = vector.shape_cast %55 : vector<2x384xf32> to vector<2x1x384xf32>
    %58 = vector.broadcast %57 : vector<2x1x384xf32> to vector<2x12x384xf32>
    %59 = arith.mulf %56, %58 : vector<2x12x384xf32>
    %c0_46 = arith.constant 0 : index
    %c1152 = arith.constant 1152 : index
    %60 = vector.load %arg7[%c0_46, %c1152] : memref<2x9600xf32, #tpu.memory_space<vmem>>, vector<2x384xf32>
    %61 = vector.extract_strided_slice %54 {offsets = [0, 1, 0], sizes = [2, 12, 384], strides = [1, 1, 1]} : vector<2x14x384xf32> to vector<2x12x384xf32>
    %62 = vector.shape_cast %60 : vector<2x384xf32> to vector<2x1x384xf32>
    %63 = vector.broadcast %62 : vector<2x1x384xf32> to vector<2x12x384xf32>
    %64 = arith.mulf %61, %63 : vector<2x12x384xf32>
    %65 = arith.addf %59, %64 : vector<2x12x384xf32>
    %c0_47 = arith.constant 0 : index
    %c2304 = arith.constant 2304 : index
    %66 = vector.load %arg7[%c0_47, %c2304] : memref<2x9600xf32, #tpu.memory_space<vmem>>, vector<2x384xf32>
    %67 = vector.extract_strided_slice %54 {offsets = [0, 2, 0], sizes = [2, 12, 384], strides = [1, 1, 1]} : vector<2x14x384xf32> to vector<2x12x384xf32>
    %68 = vector.shape_cast %66 : vector<2x384xf32> to vector<2x1x384xf32>
    %69 = vector.broadcast %68 : vector<2x1x384xf32> to vector<2x12x384xf32>
    %70 = arith.mulf %67, %69 : vector<2x12x384xf32>
    %71 = arith.addf %65, %70 : vector<2x12x384xf32>
    %c0_48 = arith.constant 0 : index
    %c0_49 = arith.constant 0 : index
    %c32_50 = arith.constant 32 : index
    %72 = vector.load %arg6[%c0_48, %c0_49, %c32_50] : memref<2x16x512xf32, #tpu.memory_space<vmem>>, vector<2x14x384xf32>
    %c0_51 = arith.constant 0 : index
    %c384 = arith.constant 384 : index
    %73 = vector.load %arg7[%c0_51, %c384] : memref<2x9600xf32, #tpu.memory_space<vmem>>, vector<2x384xf32>
    %74 = vector.extract_strided_slice %72 {offsets = [0, 0, 0], sizes = [2, 12, 384], strides = [1, 1, 1]} : vector<2x14x384xf32> to vector<2x12x384xf32>
    %75 = vector.shape_cast %73 : vector<2x384xf32> to vector<2x1x384xf32>
    %76 = vector.broadcast %75 : vector<2x1x384xf32> to vector<2x12x384xf32>
    %77 = arith.mulf %74, %76 : vector<2x12x384xf32>
    %78 = arith.addf %71, %77 : vector<2x12x384xf32>
    %c0_52 = arith.constant 0 : index
    %c1536 = arith.constant 1536 : index
    %79 = vector.load %arg7[%c0_52, %c1536] : memref<2x9600xf32, #tpu.memory_space<vmem>>, vector<2x384xf32>
    %80 = vector.extract_strided_slice %72 {offsets = [0, 1, 0], sizes = [2, 12, 384], strides = [1, 1, 1]} : vector<2x14x384xf32> to vector<2x12x384xf32>
    %81 = vector.shape_cast %79 : vector<2x384xf32> to vector<2x1x384xf32>
    %82 = vector.broadcast %81 : vector<2x1x384xf32> to vector<2x12x384xf32>
    %83 = arith.mulf %80, %82 : vector<2x12x384xf32>
    %84 = arith.addf %78, %83 : vector<2x12x384xf32>
    %c0_53 = arith.constant 0 : index
    %c2688 = arith.constant 2688 : index
    %85 = vector.load %arg7[%c0_53, %c2688] : memref<2x9600xf32, #tpu.memory_space<vmem>>, vector<2x384xf32>
    %86 = vector.extract_strided_slice %72 {offsets = [0, 2, 0], sizes = [2, 12, 384], strides = [1, 1, 1]} : vector<2x14x384xf32> to vector<2x12x384xf32>
    %87 = vector.shape_cast %85 : vector<2x384xf32> to vector<2x1x384xf32>
    %88 = vector.broadcast %87 : vector<2x1x384xf32> to vector<2x12x384xf32>
    %89 = arith.mulf %86, %88 : vector<2x12x384xf32>
    %90 = arith.addf %84, %89 : vector<2x12x384xf32>
    %c0_54 = arith.constant 0 : index
    %c0_55 = arith.constant 0 : index
    %c64 = arith.constant 64 : index
    %91 = vector.load %arg6[%c0_54, %c0_55, %c64] : memref<2x16x512xf32, #tpu.memory_space<vmem>>, vector<2x14x384xf32>
    %c0_56 = arith.constant 0 : index
    %c768 = arith.constant 768 : index
    %92 = vector.load %arg7[%c0_56, %c768] : memref<2x9600xf32, #tpu.memory_space<vmem>>, vector<2x384xf32>
    %93 = vector.extract_strided_slice %91 {offsets = [0, 0, 0], sizes = [2, 12, 384], strides = [1, 1, 1]} : vector<2x14x384xf32> to vector<2x12x384xf32>
    %94 = vector.shape_cast %92 : vector<2x384xf32> to vector<2x1x384xf32>
    %95 = vector.broadcast %94 : vector<2x1x384xf32> to vector<2x12x384xf32>
    %96 = arith.mulf %93, %95 : vector<2x12x384xf32>
    %97 = arith.addf %90, %96 : vector<2x12x384xf32>
    %c0_57 = arith.constant 0 : index
    %c1920 = arith.constant 1920 : index
    %98 = vector.load %arg7[%c0_57, %c1920] : memref<2x9600xf32, #tpu.memory_space<vmem>>, vector<2x384xf32>
    %99 = vector.extract_strided_slice %91 {offsets = [0, 1, 0], sizes = [2, 12, 384], strides = [1, 1, 1]} : vector<2x14x384xf32> to vector<2x12x384xf32>
    %100 = vector.shape_cast %98 : vector<2x384xf32> to vector<2x1x384xf32>
    %101 = vector.broadcast %100 : vector<2x1x384xf32> to vector<2x12x384xf32>
    %102 = arith.mulf %99, %101 : vector<2x12x384xf32>
    %103 = arith.addf %97, %102 : vector<2x12x384xf32>
    %c0_58 = arith.constant 0 : index
    %c3072 = arith.constant 3072 : index
    %104 = vector.load %arg7[%c0_58, %c3072] : memref<2x9600xf32, #tpu.memory_space<vmem>>, vector<2x384xf32>
    %105 = vector.extract_strided_slice %91 {offsets = [0, 2, 0], sizes = [2, 12, 384], strides = [1, 1, 1]} : vector<2x14x384xf32> to vector<2x12x384xf32>
    %106 = vector.shape_cast %104 : vector<2x384xf32> to vector<2x1x384xf32>
    %107 = vector.broadcast %106 : vector<2x1x384xf32> to vector<2x12x384xf32>
    %108 = arith.mulf %105, %107 : vector<2x12x384xf32>
    %109 = arith.addf %103, %108 : vector<2x12x384xf32>
    %c34 = arith.constant 34 : index
    %c0_59 = arith.constant 0 : index
    %110 = vector.load %arg1[%c34, %c0_59] : memref<36x32xf32, #tpu.memory_space<vmem>>, vector<1x32xf32>
    %c35 = arith.constant 35 : index
    %c0_60 = arith.constant 0 : index
    %111 = vector.load %arg1[%c35, %c0_60] : memref<36x32xf32, #tpu.memory_space<vmem>>, vector<1x32xf32>
    %cst_61 = arith.constant dense<0.000000e+00> : vector<2x384xf32>
    %112 = vector.multi_reduction <add>, %109, %cst_61 [1] : vector<2x12x384xf32> to vector<2x384xf32>
    %113 = arith.mulf %109, %109 : vector<2x12x384xf32>
    %cst_62 = arith.constant dense<0.000000e+00> : vector<2x384xf32>
    %114 = vector.multi_reduction <add>, %113, %cst_62 [1] : vector<2x12x384xf32> to vector<2x384xf32>
    %115 = tpu.concatenate %112, %114 in 0 : vector<2x384xf32>, vector<2x384xf32> -> vector<4x384xf32>
    %c0_63 = arith.constant 0 : index
    %c0_64 = arith.constant 0 : index
    %116 = vector.load %arg8[%c0_63, %c0_64] : memref<384x32xf32, #tpu.memory_space<vmem>>, vector<384x32xf32>
    %cst_65 = arith.constant dense<0.000000e+00> : vector<4x32xf32>
    %117 = tpu.matmul %115, %116, %cst_65 {dimension_numbers = #tpu.dot_dimension_numbers<[1], [0], [0], [1], [0, 0, 1, 1], [], []>} : vector<4x384xf32>, vector<384x32xf32>, vector<4x32xf32> -> vector<4x32xf32>
    %118 = vector.extract_strided_slice %117 {offsets = [0, 0], sizes = [2, 32], strides = [1, 1]} : vector<4x32xf32> to vector<2x32xf32>
    %cst_66 = arith.constant dense<0.000000e+00> : vector<32xf32>
    %119 = vector.multi_reduction <add>, %118, %cst_66 [0] : vector<2x32xf32> to vector<32xf32>
    %120 = vector.shape_cast %119 : vector<32xf32> to vector<1x32xf32>
    %cst_67 = arith.constant 0.00347222225 : f32
    %121 = vector.broadcast %cst_67 : f32 to vector<1x32xf32>
    %122 = arith.mulf %120, %121 : vector<1x32xf32>
    %123 = vector.extract_strided_slice %117 {offsets = [2, 0], sizes = [2, 32], strides = [1, 1]} : vector<4x32xf32> to vector<2x32xf32>
    %cst_68 = arith.constant dense<0.000000e+00> : vector<32xf32>
    %124 = vector.multi_reduction <add>, %123, %cst_68 [0] : vector<2x32xf32> to vector<32xf32>
    %125 = vector.shape_cast %124 : vector<32xf32> to vector<1x32xf32>
    %cst_69 = arith.constant 0.00347222225 : f32
    %126 = vector.broadcast %cst_69 : f32 to vector<1x32xf32>
    %127 = arith.mulf %125, %126 : vector<1x32xf32>
    %128 = arith.mulf %122, %122 : vector<1x32xf32>
    %129 = arith.subf %127, %128 : vector<1x32xf32>
    %cst_70 = arith.constant 0.000000e+00 : f32
    %130 = vector.broadcast %cst_70 : f32 to vector<1x32xf32>
    %131 = arith.maximumf %129, %130 : vector<1x32xf32>
    %cst_71 = arith.constant 9.99999974E-6 : f32
    %132 = vector.broadcast %cst_71 : f32 to vector<1x32xf32>
    %133 = arith.addf %131, %132 : vector<1x32xf32>
    %134 = math.rsqrt %133 : vector<1x32xf32>
    %135 = arith.mulf %110, %134 : vector<1x32xf32>
    %136 = arith.mulf %122, %135 : vector<1x32xf32>
    %137 = arith.subf %111, %136 : vector<1x32xf32>
    %138 = tpu.iota {dimensions = array<i32: 0>} : vector<32x384xi32>
    %139 = tpu.iota {dimensions = array<i32: 1>} : vector<32x384xi32>
    %c31_i32_72 = arith.constant 31 : i32
    %140 = vector.broadcast %c31_i32_72 : i32 to vector<32x384xi32>
    %141 = arith.andi %139, %140 : vector<32x384xi32>
    %142 = arith.cmpi eq, %141, %138 : vector<32x384xi32>
    %cst_73 = arith.constant 1.000000e+00 : f32
    %cst_74 = arith.constant 0.000000e+00 : f32
    %143 = vector.broadcast %cst_73 : f32 to vector<32x384xf32>
    %144 = vector.broadcast %cst_74 : f32 to vector<32x384xf32>
    %145 = arith.select %142, %143, %144 : vector<32x384xi1>, vector<32x384xf32>
    %146 = tpu.concatenate %135, %137 in 0 : vector<1x32xf32>, vector<1x32xf32> -> vector<2x32xf32>
    %cst_75 = arith.constant dense<0.000000e+00> : vector<2x384xf32>
    %147 = tpu.matmul %146, %145, %cst_75 {dimension_numbers = #tpu.dot_dimension_numbers<[1], [0], [0], [1], [0, 0, 1, 1], [], []>} : vector<2x32xf32>, vector<32x384xf32>, vector<2x384xf32> -> vector<2x384xf32>
    %148 = vector.extract_strided_slice %147 {offsets = [0, 0], sizes = [1, 384], strides = [1, 1]} : vector<2x384xf32> to vector<1x384xf32>
    %149 = vector.shape_cast %148 : vector<1x384xf32> to vector<1x1x384xf32>
    %150 = vector.broadcast %149 : vector<1x1x384xf32> to vector<2x12x384xf32>
    %151 = arith.mulf %109, %150 : vector<2x12x384xf32>
    %152 = vector.extract_strided_slice %147 {offsets = [1, 0], sizes = [1, 384], strides = [1, 1]} : vector<2x384xf32> to vector<1x384xf32>
    %153 = vector.shape_cast %152 : vector<1x384xf32> to vector<1x1x384xf32>
    %154 = vector.broadcast %153 : vector<1x1x384xf32> to vector<2x12x384xf32>
    %155 = arith.addf %151, %154 : vector<2x12x384xf32>
    %cst_76 = arith.constant 0.000000e+00 : f32
    %156 = vector.broadcast %cst_76 : f32 to vector<2x12x384xf32>
    %157 = arith.maximumf %155, %156 : vector<2x12x384xf32>
    %c0_77 = arith.constant 0 : index
    %c0_78 = arith.constant 0 : index
    %c0_79 = arith.constant 0 : index
    %c0_80 = arith.constant 0 : index
    %158 = vector.load %arg5[%c0_77, %c0_78, %c0_79, %c0_80] : memref<2x2x12x384xf32, #tpu.memory_space<vmem>>, vector<1x2x12x384xf32>
    %159 = vector.shape_cast %158 : vector<1x2x12x384xf32> to vector<2x12x384xf32>
    %160 = vector.shape_cast %157 : vector<2x12x384xf32> to vector<1x2x12x384xf32>
    tpu.vector_store %arg5[%c0_77, %c0_78, %c0_79, %c0_80], %160 {strides = array<i32>} : memref<2x2x12x384xf32, #tpu.memory_space<vmem>>, vector<1x2x12x384xf32>,
    %c1_81 = arith.constant 1 : index
    %c0_82 = arith.constant 0 : index
    %c0_83 = arith.constant 0 : index
    %c0_84 = arith.constant 0 : index
    %161 = vector.load %arg0[%c1_81, %c0_82, %c0_83, %c0_84] : memref<2x2x12x384xf32, #tpu.memory_space<vmem>>, vector<1x2x12x384xf32>
    %162 = vector.shape_cast %161 : vector<1x2x12x384xf32> to vector<2x12x384xf32>
    %163 = arith.addf %162, %157 : vector<2x12x384xf32>
    %c0_85 = arith.constant 0 : index
    %c2 = arith.constant 2 : index
    %c64_86 = arith.constant 64 : index
    %164 = vector.load %arg6[%c0_85, %c2, %c64_86] : memref<2x16x512xf32, #tpu.memory_space<vmem>>, vector<2x12x384xf32>
    tpu.vector_store %arg6[%c0_85, %c2, %c64_86], %163 {strides = array<i32>} : memref<2x16x512xf32, #tpu.memory_space<vmem>>, vector<2x12x384xf32>,
    %cst_87 = arith.constant 0.000000e+00 : f32
    %165 = vector.broadcast %cst_87 : f32 to vector<2x2x512xf32>
    %cst_88 = arith.constant 0.000000e+00 : f32
    %166 = vector.broadcast %cst_88 : f32 to vector<2x12x64xf32>
    %c0_89 = arith.constant 0 : index
    %c0_90 = arith.constant 0 : index
    %c0_91 = arith.constant 0 : index
    %167 = vector.load %arg6[%c0_89, %c0_90, %c0_91] : memref<2x16x512xf32, #tpu.memory_space<vmem>>, vector<2x2x512xf32>
    tpu.vector_store %arg6[%c0_89, %c0_90, %c0_91], %165 {strides = array<i32>} : memref<2x16x512xf32, #tpu.memory_space<vmem>>, vector<2x2x512xf32>,
    %c0_92 = arith.constant 0 : index
    %c14 = arith.constant 14 : index
    %c0_93 = arith.constant 0 : index
    %168 = vector.load %arg6[%c0_92, %c14, %c0_93] : memref<2x16x512xf32, #tpu.memory_space<vmem>>, vector<2x2x512xf32>
    tpu.vector_store %arg6[%c0_92, %c14, %c0_93], %165 {strides = array<i32>} : memref<2x16x512xf32, #tpu.memory_space<vmem>>, vector<2x2x512xf32>,
    %c0_94 = arith.constant 0 : index
    %c2_95 = arith.constant 2 : index
    %c0_96 = arith.constant 0 : index
    %169 = vector.load %arg6[%c0_94, %c2_95, %c0_96] : memref<2x16x512xf32, #tpu.memory_space<vmem>>, vector<2x12x64xf32>
    tpu.vector_store %arg6[%c0_94, %c2_95, %c0_96], %166 {strides = array<i32>} : memref<2x16x512xf32, #tpu.memory_space<vmem>>, vector<2x12x64xf32>,
    %c0_97 = arith.constant 0 : index
    %c2_98 = arith.constant 2 : index
    %c448 = arith.constant 448 : index
    %170 = vector.load %arg6[%c0_97, %c2_98, %c448] : memref<2x16x512xf32, #tpu.memory_space<vmem>>, vector<2x12x64xf32>
    tpu.vector_store %arg6[%c0_97, %c2_98, %c448], %166 {strides = array<i32>} : memref<2x16x512xf32, #tpu.memory_space<vmem>>, vector<2x12x64xf32>,
    %cst_99 = arith.constant dense<0.000000e+00> : vector<2x384xf32>
    %171 = vector.multi_reduction <add>, %163, %cst_99 [1] : vector<2x12x384xf32> to vector<2x384xf32>
    %c0_100 = arith.constant 0 : index
    %c0_101 = arith.constant 0 : index
    %172 = vector.load %arg8[%c0_100, %c0_101] : memref<384x32xf32, #tpu.memory_space<vmem>>, vector<384x32xf32>
    %cst_102 = arith.constant dense<0.000000e+00> : vector<2x32xf32>
    %173 = tpu.matmul %171, %172, %cst_102 {dimension_numbers = #tpu.dot_dimension_numbers<[1], [0], [0], [1], [0, 0, 1, 1], [], []>} : vector<2x384xf32>, vector<384x32xf32>, vector<2x32xf32> -> vector<2x32xf32>
    %cst_103 = arith.constant 0.0069444445 : f32
    %174 = vector.broadcast %cst_103 : f32 to vector<2x32xf32>
    %175 = arith.mulf %173, %174 : vector<2x32xf32>
    %c0_104 = arith.constant 0 : index
    %c0_105 = arith.constant 0 : index
    %176 = vector.load %arg3[%c0_104, %c0_105] : memref<36x32xf32, #tpu.memory_space<vmem>>, vector<32x8xf32>
    %c32_106 = arith.constant 32 : index
    %c0_107 = arith.constant 0 : index
    %177 = vector.load %arg3[%c32_106, %c0_107] : memref<36x32xf32, #tpu.memory_space<vmem>>, vector<1x8xf32>
    %c33_108 = arith.constant 33 : index
    %c0_109 = arith.constant 0 : index
    %178 = vector.load %arg3[%c33_108, %c0_109] : memref<36x32xf32, #tpu.memory_space<vmem>>, vector<1x8xf32>
    %cst_110 = arith.constant dense<0.000000e+00> : vector<2x8xf32>
    %179 = tpu.matmul %175, %176, %cst_110 {dimension_numbers = #tpu.dot_dimension_numbers<[1], [0], [0], [1], [0, 0, 1, 1], [], []>} : vector<2x32xf32>, vector<32x8xf32>, vector<2x8xf32> -> vector<2x8xf32>
    %cst_111 = arith.constant dense<0.000000e+00> : vector<8xf32>
    %180 = vector.multi_reduction <add>, %179, %cst_111 [0] : vector<2x8xf32> to vector<8xf32>
    %181 = vector.shape_cast %180 : vector<8xf32> to vector<1x8xf32>
    %cst_112 = arith.constant 5.000000e-01 : f32
    %182 = vector.broadcast %cst_112 : f32 to vector<1x8xf32>
    %183 = arith.mulf %181, %182 : vector<1x8xf32>
    %184 = vector.broadcast %183 : vector<1x8xf32> to vector<2x8xf32>
    %185 = arith.subf %179, %184 : vector<2x8xf32>
    %186 = arith.mulf %185, %185 : vector<2x8xf32>
    %cst_113 = arith.constant dense<0.000000e+00> : vector<8xf32>
    %187 = vector.multi_reduction <add>, %186, %cst_113 [0] : vector<2x8xf32> to vector<8xf32>
    %188 = vector.shape_cast %187 : vector<8xf32> to vector<1x8xf32>
    %cst_114 = arith.constant 5.000000e-01 : f32
    %189 = vector.broadcast %cst_114 : f32 to vector<1x8xf32>
    %190 = arith.mulf %188, %189 : vector<1x8xf32>
    %191 = vector.broadcast %183 : vector<1x8xf32> to vector<2x8xf32>
    %192 = arith.subf %179, %191 : vector<2x8xf32>
    %cst_115 = arith.constant 9.99999974E-6 : f32
    %193 = vector.broadcast %cst_115 : f32 to vector<1x8xf32>
    %194 = arith.addf %190, %193 : vector<1x8xf32>
    %195 = math.rsqrt %194 : vector<1x8xf32>
    %196 = vector.broadcast %195 : vector<1x8xf32> to vector<2x8xf32>
    %197 = arith.mulf %192, %196 : vector<2x8xf32>
    %198 = vector.broadcast %177 : vector<1x8xf32> to vector<2x8xf32>
    %199 = arith.mulf %197, %198 : vector<2x8xf32>
    %200 = vector.broadcast %178 : vector<1x8xf32> to vector<2x8xf32>
    %201 = arith.addf %199, %200 : vector<2x8xf32>
    %cst_116 = arith.constant 0.000000e+00 : f32
    %202 = vector.broadcast %cst_116 : f32 to vector<2x8xf32>
    %203 = arith.maximumf %201, %202 : vector<2x8xf32>
    %c0_117 = arith.constant 0 : index
    %c0_118 = arith.constant 0 : index
    %204 = vector.load %arg4[%c0_117, %c0_118] : memref<8x9600xf32, #tpu.memory_space<vmem>>, vector<8x9600xf32>
    %cst_119 = arith.constant dense<0.000000e+00> : vector<2x9600xf32>
    %205 = tpu.matmul %203, %204, %cst_119 {dimension_numbers = #tpu.dot_dimension_numbers<[1], [0], [0], [1], [0, 0, 1, 1], [], []>} : vector<2x8xf32>, vector<8x9600xf32>, vector<2x9600xf32> -> vector<2x9600xf32>
    %c0_120 = arith.constant 0 : index
    %c0_121 = arith.constant 0 : index
    %206 = vector.load %arg7[%c0_120, %c0_121] : memref<2x9600xf32, #tpu.memory_space<vmem>>, vector<2x9600xf32>
    tpu.vector_store %arg7[%c0_120, %c0_121], %205 {strides = array<i32>} : memref<2x9600xf32, #tpu.memory_space<vmem>>, vector<2x9600xf32>,
    %c0_122 = arith.constant 0 : index
    %c0_123 = arith.constant 0 : index
    %c0_124 = arith.constant 0 : index
    %207 = vector.load %arg6[%c0_122, %c0_123, %c0_124] : memref<2x16x512xf32, #tpu.memory_space<vmem>>, vector<2x16x384xf32>
    %c0_125 = arith.constant 0 : index
    %c0_126 = arith.constant 0 : index
    %208 = vector.load %arg7[%c0_125, %c0_126] : memref<2x9600xf32, #tpu.memory_space<vmem>>, vector<2x384xf32>
    %209 = vector.extract_strided_slice %207 {offsets = [0, 0, 0], sizes = [2, 12, 384], strides = [1, 1, 1]} : vector<2x16x384xf32> to vector<2x12x384xf32>
    %210 = vector.shape_cast %208 : vector<2x384xf32> to vector<2x1x384xf32>
    %211 = vector.broadcast %210 : vector<2x1x384xf32> to vector<2x12x384xf32>
    %212 = arith.mulf %209, %211 : vector<2x12x384xf32>
    %c0_127 = arith.constant 0 : index
    %c1920_128 = arith.constant 1920 : index
    %213 = vector.load %arg7[%c0_127, %c1920_128] : memref<2x9600xf32, #tpu.memory_space<vmem>>, vector<2x384xf32>
    %214 = vector.extract_strided_slice %207 {offsets = [0, 1, 0], sizes = [2, 12, 384], strides = [1, 1, 1]} : vector<2x16x384xf32> to vector<2x12x384xf32>
    %215 = vector.shape_cast %213 : vector<2x384xf32> to vector<2x1x384xf32>
    %216 = vector.broadcast %215 : vector<2x1x384xf32> to vector<2x12x384xf32>
    %217 = arith.mulf %214, %216 : vector<2x12x384xf32>
    %218 = arith.addf %212, %217 : vector<2x12x384xf32>
    %c0_129 = arith.constant 0 : index
    %c3840 = arith.constant 3840 : index
    %219 = vector.load %arg7[%c0_129, %c3840] : memref<2x9600xf32, #tpu.memory_space<vmem>>, vector<2x384xf32>
    %220 = vector.extract_strided_slice %207 {offsets = [0, 2, 0], sizes = [2, 12, 384], strides = [1, 1, 1]} : vector<2x16x384xf32> to vector<2x12x384xf32>
    %221 = vector.shape_cast %219 : vector<2x384xf32> to vector<2x1x384xf32>
    %222 = vector.broadcast %221 : vector<2x1x384xf32> to vector<2x12x384xf32>
    %223 = arith.mulf %220, %222 : vector<2x12x384xf32>
    %224 = arith.addf %218, %223 : vector<2x12x384xf32>
    %c0_130 = arith.constant 0 : index
    %c5760 = arith.constant 5760 : index
    %225 = vector.load %arg7[%c0_130, %c5760] : memref<2x9600xf32, #tpu.memory_space<vmem>>, vector<2x384xf32>
    %226 = vector.extract_strided_slice %207 {offsets = [0, 3, 0], sizes = [2, 12, 384], strides = [1, 1, 1]} : vector<2x16x384xf32> to vector<2x12x384xf32>
    %227 = vector.shape_cast %225 : vector<2x384xf32> to vector<2x1x384xf32>
    %228 = vector.broadcast %227 : vector<2x1x384xf32> to vector<2x12x384xf32>
    %229 = arith.mulf %226, %228 : vector<2x12x384xf32>
    %230 = arith.addf %224, %229 : vector<2x12x384xf32>
    %c0_131 = arith.constant 0 : index
    %c7680 = arith.constant 7680 : index
    %231 = vector.load %arg7[%c0_131, %c7680] : memref<2x9600xf32, #tpu.memory_space<vmem>>, vector<2x384xf32>
    %232 = vector.extract_strided_slice %207 {offsets = [0, 4, 0], sizes = [2, 12, 384], strides = [1, 1, 1]} : vector<2x16x384xf32> to vector<2x12x384xf32>
    %233 = vector.shape_cast %231 : vector<2x384xf32> to vector<2x1x384xf32>
    %234 = vector.broadcast %233 : vector<2x1x384xf32> to vector<2x12x384xf32>
    %235 = arith.mulf %232, %234 : vector<2x12x384xf32>
    %236 = arith.addf %230, %235 : vector<2x12x384xf32>
    %c0_132 = arith.constant 0 : index
    %c0_133 = arith.constant 0 : index
    %c32_134 = arith.constant 32 : index
    %237 = vector.load %arg6[%c0_132, %c0_133, %c32_134] : memref<2x16x512xf32, #tpu.memory_space<vmem>>, vector<2x16x384xf32>
    %c0_135 = arith.constant 0 : index
    %c384_136 = arith.constant 384 : index
    %238 = vector.load %arg7[%c0_135, %c384_136] : memref<2x9600xf32, #tpu.memory_space<vmem>>, vector<2x384xf32>
    %239 = vector.extract_strided_slice %237 {offsets = [0, 0, 0], sizes = [2, 12, 384], strides = [1, 1, 1]} : vector<2x16x384xf32> to vector<2x12x384xf32>
    %240 = vector.shape_cast %238 : vector<2x384xf32> to vector<2x1x384xf32>
    %241 = vector.broadcast %240 : vector<2x1x384xf32> to vector<2x12x384xf32>
    %242 = arith.mulf %239, %241 : vector<2x12x384xf32>
    %243 = arith.addf %236, %242 : vector<2x12x384xf32>
    %c0_137 = arith.constant 0 : index
    %c2304_138 = arith.constant 2304 : index
    %244 = vector.load %arg7[%c0_137, %c2304_138] : memref<2x9600xf32, #tpu.memory_space<vmem>>, vector<2x384xf32>
    %245 = vector.extract_strided_slice %237 {offsets = [0, 1, 0], sizes = [2, 12, 384], strides = [1, 1, 1]} : vector<2x16x384xf32> to vector<2x12x384xf32>
    %246 = vector.shape_cast %244 : vector<2x384xf32> to vector<2x1x384xf32>
    %247 = vector.broadcast %246 : vector<2x1x384xf32> to vector<2x12x384xf32>
    %248 = arith.mulf %245, %247 : vector<2x12x384xf32>
    %249 = arith.addf %243, %248 : vector<2x12x384xf32>
    %c0_139 = arith.constant 0 : index
    %c4224 = arith.constant 4224 : index
    %250 = vector.load %arg7[%c0_139, %c4224] : memref<2x9600xf32, #tpu.memory_space<vmem>>, vector<2x384xf32>
    %251 = vector.extract_strided_slice %237 {offsets = [0, 2, 0], sizes = [2, 12, 384], strides = [1, 1, 1]} : vector<2x16x384xf32> to vector<2x12x384xf32>
    %252 = vector.shape_cast %250 : vector<2x384xf32> to vector<2x1x384xf32>
    %253 = vector.broadcast %252 : vector<2x1x384xf32> to vector<2x12x384xf32>
    %254 = arith.mulf %251, %253 : vector<2x12x384xf32>
    %255 = arith.addf %249, %254 : vector<2x12x384xf32>
    %c0_140 = arith.constant 0 : index
    %c6144 = arith.constant 6144 : index
    %256 = vector.load %arg7[%c0_140, %c6144] : memref<2x9600xf32, #tpu.memory_space<vmem>>, vector<2x384xf32>
    %257 = vector.extract_strided_slice %237 {offsets = [0, 3, 0], sizes = [2, 12, 384], strides = [1, 1, 1]} : vector<2x16x384xf32> to vector<2x12x384xf32>
    %258 = vector.shape_cast %256 : vector<2x384xf32> to vector<2x1x384xf32>
    %259 = vector.broadcast %258 : vector<2x1x384xf32> to vector<2x12x384xf32>
    %260 = arith.mulf %257, %259 : vector<2x12x384xf32>
    %261 = arith.addf %255, %260 : vector<2x12x384xf32>
    %c0_141 = arith.constant 0 : index
    %c8064 = arith.constant 8064 : index
    %262 = vector.load %arg7[%c0_141, %c8064] : memref<2x9600xf32, #tpu.memory_space<vmem>>, vector<2x384xf32>
    %263 = vector.extract_strided_slice %237 {offsets = [0, 4, 0], sizes = [2, 12, 384], strides = [1, 1, 1]} : vector<2x16x384xf32> to vector<2x12x384xf32>
    %264 = vector.shape_cast %262 : vector<2x384xf32> to vector<2x1x384xf32>
    %265 = vector.broadcast %264 : vector<2x1x384xf32> to vector<2x12x384xf32>
    %266 = arith.mulf %263, %265 : vector<2x12x384xf32>
    %267 = arith.addf %261, %266 : vector<2x12x384xf32>
    %c0_142 = arith.constant 0 : index
    %c0_143 = arith.constant 0 : index
    %c64_144 = arith.constant 64 : index
    %268 = vector.load %arg6[%c0_142, %c0_143, %c64_144] : memref<2x16x512xf32, #tpu.memory_space<vmem>>, vector<2x16x384xf32>
    %c0_145 = arith.constant 0 : index
    %c768_146 = arith.constant 768 : index
    %269 = vector.load %arg7[%c0_145, %c768_146] : memref<2x9600xf32, #tpu.memory_space<vmem>>, vector<2x384xf32>
    %270 = vector.extract_strided_slice %268 {offsets = [0, 0, 0], sizes = [2, 12, 384], strides = [1, 1, 1]} : vector<2x16x384xf32> to vector<2x12x384xf32>
    %271 = vector.shape_cast %269 : vector<2x384xf32> to vector<2x1x384xf32>
    %272 = vector.broadcast %271 : vector<2x1x384xf32> to vector<2x12x384xf32>
    %273 = arith.mulf %270, %272 : vector<2x12x384xf32>
    %274 = arith.addf %267, %273 : vector<2x12x384xf32>
    %c0_147 = arith.constant 0 : index
    %c2688_148 = arith.constant 2688 : index
    %275 = vector.load %arg7[%c0_147, %c2688_148] : memref<2x9600xf32, #tpu.memory_space<vmem>>, vector<2x384xf32>
    %276 = vector.extract_strided_slice %268 {offsets = [0, 1, 0], sizes = [2, 12, 384], strides = [1, 1, 1]} : vector<2x16x384xf32> to vector<2x12x384xf32>
    %277 = vector.shape_cast %275 : vector<2x384xf32> to vector<2x1x384xf32>
    %278 = vector.broadcast %277 : vector<2x1x384xf32> to vector<2x12x384xf32>
    %279 = arith.mulf %276, %278 : vector<2x12x384xf32>
    %280 = arith.addf %274, %279 : vector<2x12x384xf32>
    %c0_149 = arith.constant 0 : index
    %c4608 = arith.constant 4608 : index
    %281 = vector.load %arg7[%c0_149, %c4608] : memref<2x9600xf32, #tpu.memory_space<vmem>>, vector<2x384xf32>
    %282 = vector.extract_strided_slice %268 {offsets = [0, 2, 0], sizes = [2, 12, 384], strides = [1, 1, 1]} : vector<2x16x384xf32> to vector<2x12x384xf32>
    %283 = vector.shape_cast %281 : vector<2x384xf32> to vector<2x1x384xf32>
    %284 = vector.broadcast %283 : vector<2x1x384xf32> to vector<2x12x384xf32>
    %285 = arith.mulf %282, %284 : vector<2x12x384xf32>
    %286 = arith.addf %280, %285 : vector<2x12x384xf32>
    %c0_150 = arith.constant 0 : index
    %c6528 = arith.constant 6528 : index
    %287 = vector.load %arg7[%c0_150, %c6528] : memref<2x9600xf32, #tpu.memory_space<vmem>>, vector<2x384xf32>
    %288 = vector.extract_strided_slice %268 {offsets = [0, 3, 0], sizes = [2, 12, 384], strides = [1, 1, 1]} : vector<2x16x384xf32> to vector<2x12x384xf32>
    %289 = vector.shape_cast %287 : vector<2x384xf32> to vector<2x1x384xf32>
    %290 = vector.broadcast %289 : vector<2x1x384xf32> to vector<2x12x384xf32>
    %291 = arith.mulf %288, %290 : vector<2x12x384xf32>
    %292 = arith.addf %286, %291 : vector<2x12x384xf32>
    %c0_151 = arith.constant 0 : index
    %c8448 = arith.constant 8448 : index
    %293 = vector.load %arg7[%c0_151, %c8448] : memref<2x9600xf32, #tpu.memory_space<vmem>>, vector<2x384xf32>
    %294 = vector.extract_strided_slice %268 {offsets = [0, 4, 0], sizes = [2, 12, 384], strides = [1, 1, 1]} : vector<2x16x384xf32> to vector<2x12x384xf32>
    %295 = vector.shape_cast %293 : vector<2x384xf32> to vector<2x1x384xf32>
    %296 = vector.broadcast %295 : vector<2x1x384xf32> to vector<2x12x384xf32>
    %297 = arith.mulf %294, %296 : vector<2x12x384xf32>
    %298 = arith.addf %292, %297 : vector<2x12x384xf32>
    %c0_152 = arith.constant 0 : index
    %c0_153 = arith.constant 0 : index
    %c96 = arith.constant 96 : index
    %299 = vector.load %arg6[%c0_152, %c0_153, %c96] : memref<2x16x512xf32, #tpu.memory_space<vmem>>, vector<2x16x384xf32>
    %c0_154 = arith.constant 0 : index
    %c1152_155 = arith.constant 1152 : index
    %300 = vector.load %arg7[%c0_154, %c1152_155] : memref<2x9600xf32, #tpu.memory_space<vmem>>, vector<2x384xf32>
    %301 = vector.extract_strided_slice %299 {offsets = [0, 0, 0], sizes = [2, 12, 384], strides = [1, 1, 1]} : vector<2x16x384xf32> to vector<2x12x384xf32>
    %302 = vector.shape_cast %300 : vector<2x384xf32> to vector<2x1x384xf32>
    %303 = vector.broadcast %302 : vector<2x1x384xf32> to vector<2x12x384xf32>
    %304 = arith.mulf %301, %303 : vector<2x12x384xf32>
    %305 = arith.addf %298, %304 : vector<2x12x384xf32>
    %c0_156 = arith.constant 0 : index
    %c3072_157 = arith.constant 3072 : index
    %306 = vector.load %arg7[%c0_156, %c3072_157] : memref<2x9600xf32, #tpu.memory_space<vmem>>, vector<2x384xf32>
    %307 = vector.extract_strided_slice %299 {offsets = [0, 1, 0], sizes = [2, 12, 384], strides = [1, 1, 1]} : vector<2x16x384xf32> to vector<2x12x384xf32>
    %308 = vector.shape_cast %306 : vector<2x384xf32> to vector<2x1x384xf32>
    %309 = vector.broadcast %308 : vector<2x1x384xf32> to vector<2x12x384xf32>
    %310 = arith.mulf %307, %309 : vector<2x12x384xf32>
    %311 = arith.addf %305, %310 : vector<2x12x384xf32>
    %c0_158 = arith.constant 0 : index
    %c4992 = arith.constant 4992 : index
    %312 = vector.load %arg7[%c0_158, %c4992] : memref<2x9600xf32, #tpu.memory_space<vmem>>, vector<2x384xf32>
    %313 = vector.extract_strided_slice %299 {offsets = [0, 2, 0], sizes = [2, 12, 384], strides = [1, 1, 1]} : vector<2x16x384xf32> to vector<2x12x384xf32>
    %314 = vector.shape_cast %312 : vector<2x384xf32> to vector<2x1x384xf32>
    %315 = vector.broadcast %314 : vector<2x1x384xf32> to vector<2x12x384xf32>
    %316 = arith.mulf %313, %315 : vector<2x12x384xf32>
    %317 = arith.addf %311, %316 : vector<2x12x384xf32>
    %c0_159 = arith.constant 0 : index
    %c6912 = arith.constant 6912 : index
    %318 = vector.load %arg7[%c0_159, %c6912] : memref<2x9600xf32, #tpu.memory_space<vmem>>, vector<2x384xf32>
    %319 = vector.extract_strided_slice %299 {offsets = [0, 3, 0], sizes = [2, 12, 384], strides = [1, 1, 1]} : vector<2x16x384xf32> to vector<2x12x384xf32>
    %320 = vector.shape_cast %318 : vector<2x384xf32> to vector<2x1x384xf32>
    %321 = vector.broadcast %320 : vector<2x1x384xf32> to vector<2x12x384xf32>
    %322 = arith.mulf %319, %321 : vector<2x12x384xf32>
    %323 = arith.addf %317, %322 : vector<2x12x384xf32>
    %c0_160 = arith.constant 0 : index
    %c8832 = arith.constant 8832 : index
    %324 = vector.load %arg7[%c0_160, %c8832] : memref<2x9600xf32, #tpu.memory_space<vmem>>, vector<2x384xf32>
    %325 = vector.extract_strided_slice %299 {offsets = [0, 4, 0], sizes = [2, 12, 384], strides = [1, 1, 1]} : vector<2x16x384xf32> to vector<2x12x384xf32>
    %326 = vector.shape_cast %324 : vector<2x384xf32> to vector<2x1x384xf32>
    %327 = vector.broadcast %326 : vector<2x1x384xf32> to vector<2x12x384xf32>
    %328 = arith.mulf %325, %327 : vector<2x12x384xf32>
    %329 = arith.addf %323, %328 : vector<2x12x384xf32>
    %c0_161 = arith.constant 0 : index
    %c0_162 = arith.constant 0 : index
    %c128 = arith.constant 128 : index
    %330 = vector.load %arg6[%c0_161, %c0_162, %c128] : memref<2x16x512xf32, #tpu.memory_space<vmem>>, vector<2x16x384xf32>
    %c0_163 = arith.constant 0 : index
    %c1536_164 = arith.constant 1536 : index
    %331 = vector.load %arg7[%c0_163, %c1536_164] : memref<2x9600xf32, #tpu.memory_space<vmem>>, vector<2x384xf32>
    %332 = vector.extract_strided_slice %330 {offsets = [0, 0, 0], sizes = [2, 12, 384], strides = [1, 1, 1]} : vector<2x16x384xf32> to vector<2x12x384xf32>
    %333 = vector.shape_cast %331 : vector<2x384xf32> to vector<2x1x384xf32>
    %334 = vector.broadcast %333 : vector<2x1x384xf32> to vector<2x12x384xf32>
    %335 = arith.mulf %332, %334 : vector<2x12x384xf32>
    %336 = arith.addf %329, %335 : vector<2x12x384xf32>
    %c0_165 = arith.constant 0 : index
    %c3456 = arith.constant 3456 : index
    %337 = vector.load %arg7[%c0_165, %c3456] : memref<2x9600xf32, #tpu.memory_space<vmem>>, vector<2x384xf32>
    %338 = vector.extract_strided_slice %330 {offsets = [0, 1, 0], sizes = [2, 12, 384], strides = [1, 1, 1]} : vector<2x16x384xf32> to vector<2x12x384xf32>
    %339 = vector.shape_cast %337 : vector<2x384xf32> to vector<2x1x384xf32>
    %340 = vector.broadcast %339 : vector<2x1x384xf32> to vector<2x12x384xf32>
    %341 = arith.mulf %338, %340 : vector<2x12x384xf32>
    %342 = arith.addf %336, %341 : vector<2x12x384xf32>
    %c0_166 = arith.constant 0 : index
    %c5376 = arith.constant 5376 : index
    %343 = vector.load %arg7[%c0_166, %c5376] : memref<2x9600xf32, #tpu.memory_space<vmem>>, vector<2x384xf32>
    %344 = vector.extract_strided_slice %330 {offsets = [0, 2, 0], sizes = [2, 12, 384], strides = [1, 1, 1]} : vector<2x16x384xf32> to vector<2x12x384xf32>
    %345 = vector.shape_cast %343 : vector<2x384xf32> to vector<2x1x384xf32>
    %346 = vector.broadcast %345 : vector<2x1x384xf32> to vector<2x12x384xf32>
    %347 = arith.mulf %344, %346 : vector<2x12x384xf32>
    %348 = arith.addf %342, %347 : vector<2x12x384xf32>
    %c0_167 = arith.constant 0 : index
    %c7296 = arith.constant 7296 : index
    %349 = vector.load %arg7[%c0_167, %c7296] : memref<2x9600xf32, #tpu.memory_space<vmem>>, vector<2x384xf32>
    %350 = vector.extract_strided_slice %330 {offsets = [0, 3, 0], sizes = [2, 12, 384], strides = [1, 1, 1]} : vector<2x16x384xf32> to vector<2x12x384xf32>
    %351 = vector.shape_cast %349 : vector<2x384xf32> to vector<2x1x384xf32>
    %352 = vector.broadcast %351 : vector<2x1x384xf32> to vector<2x12x384xf32>
    %353 = arith.mulf %350, %352 : vector<2x12x384xf32>
    %354 = arith.addf %348, %353 : vector<2x12x384xf32>
    %c0_168 = arith.constant 0 : index
    %c9216 = arith.constant 9216 : index
    %355 = vector.load %arg7[%c0_168, %c9216] : memref<2x9600xf32, #tpu.memory_space<vmem>>, vector<2x384xf32>
    %356 = vector.extract_strided_slice %330 {offsets = [0, 4, 0], sizes = [2, 12, 384], strides = [1, 1, 1]} : vector<2x16x384xf32> to vector<2x12x384xf32>
    %357 = vector.shape_cast %355 : vector<2x384xf32> to vector<2x1x384xf32>
    %358 = vector.broadcast %357 : vector<2x1x384xf32> to vector<2x12x384xf32>
    %359 = arith.mulf %356, %358 : vector<2x12x384xf32>
    %360 = arith.addf %354, %359 : vector<2x12x384xf32>
    %c34_169 = arith.constant 34 : index
    %c0_170 = arith.constant 0 : index
    %361 = vector.load %arg3[%c34_169, %c0_170] : memref<36x32xf32, #tpu.memory_space<vmem>>, vector<1x32xf32>
    %c35_171 = arith.constant 35 : index
    %c0_172 = arith.constant 0 : index
    %362 = vector.load %arg3[%c35_171, %c0_172] : memref<36x32xf32, #tpu.memory_space<vmem>>, vector<1x32xf32>
    %cst_173 = arith.constant dense<0.000000e+00> : vector<2x384xf32>
    %363 = vector.multi_reduction <add>, %360, %cst_173 [1] : vector<2x12x384xf32> to vector<2x384xf32>
    %364 = arith.mulf %360, %360 : vector<2x12x384xf32>
    %cst_174 = arith.constant dense<0.000000e+00> : vector<2x384xf32>
    %365 = vector.multi_reduction <add>, %364, %cst_174 [1] : vector<2x12x384xf32> to vector<2x384xf32>
    %366 = tpu.concatenate %363, %365 in 0 : vector<2x384xf32>, vector<2x384xf32> -> vector<4x384xf32>
    %c0_175 = arith.constant 0 : index
    %c0_176 = arith.constant 0 : index
    %367 = vector.load %arg8[%c0_175, %c0_176] : memref<384x32xf32, #tpu.memory_space<vmem>>, vector<384x32xf32>
    %cst_177 = arith.constant dense<0.000000e+00> : vector<4x32xf32>
    %368 = tpu.matmul %366, %367, %cst_177 {dimension_numbers = #tpu.dot_dimension_numbers<[1], [0], [0], [1], [0, 0, 1, 1], [], []>} : vector<4x384xf32>, vector<384x32xf32>, vector<4x32xf32> -> vector<4x32xf32>
    %369 = vector.extract_strided_slice %368 {offsets = [0, 0], sizes = [2, 32], strides = [1, 1]} : vector<4x32xf32> to vector<2x32xf32>
    %cst_178 = arith.constant dense<0.000000e+00> : vector<32xf32>
    %370 = vector.multi_reduction <add>, %369, %cst_178 [0] : vector<2x32xf32> to vector<32xf32>
    %371 = vector.shape_cast %370 : vector<32xf32> to vector<1x32xf32>
    %cst_179 = arith.constant 0.00347222225 : f32
    %372 = vector.broadcast %cst_179 : f32 to vector<1x32xf32>
    %373 = arith.mulf %371, %372 : vector<1x32xf32>
    %374 = vector.extract_strided_slice %368 {offsets = [2, 0], sizes = [2, 32], strides = [1, 1]} : vector<4x32xf32> to vector<2x32xf32>
    %cst_180 = arith.constant dense<0.000000e+00> : vector<32xf32>
    %375 = vector.multi_reduction <add>, %374, %cst_180 [0] : vector<2x32xf32> to vector<32xf32>
    %376 = vector.shape_cast %375 : vector<32xf32> to vector<1x32xf32>
    %cst_181 = arith.constant 0.00347222225 : f32
    %377 = vector.broadcast %cst_181 : f32 to vector<1x32xf32>
    %378 = arith.mulf %376, %377 : vector<1x32xf32>
    %379 = arith.mulf %373, %373 : vector<1x32xf32>
    %380 = arith.subf %378, %379 : vector<1x32xf32>
    %cst_182 = arith.constant 0.000000e+00 : f32
    %381 = vector.broadcast %cst_182 : f32 to vector<1x32xf32>
    %382 = arith.maximumf %380, %381 : vector<1x32xf32>
    %cst_183 = arith.constant 9.99999974E-6 : f32
    %383 = vector.broadcast %cst_183 : f32 to vector<1x32xf32>
    %384 = arith.addf %382, %383 : vector<1x32xf32>
    %385 = math.rsqrt %384 : vector<1x32xf32>
    %386 = arith.mulf %361, %385 : vector<1x32xf32>
    %387 = arith.mulf %373, %386 : vector<1x32xf32>
    %388 = arith.subf %362, %387 : vector<1x32xf32>
    %389 = tpu.iota {dimensions = array<i32: 0>} : vector<32x384xi32>
    %390 = tpu.iota {dimensions = array<i32: 1>} : vector<32x384xi32>
    %c31_i32_184 = arith.constant 31 : i32
    %391 = vector.broadcast %c31_i32_184 : i32 to vector<32x384xi32>
    %392 = arith.andi %390, %391 : vector<32x384xi32>
    %393 = arith.cmpi eq, %392, %389 : vector<32x384xi32>
    %cst_185 = arith.constant 1.000000e+00 : f32
    %cst_186 = arith.constant 0.000000e+00 : f32
    %394 = vector.broadcast %cst_185 : f32 to vector<32x384xf32>
    %395 = vector.broadcast %cst_186 : f32 to vector<32x384xf32>
    %396 = arith.select %393, %394, %395 : vector<32x384xi1>, vector<32x384xf32>
    %397 = tpu.concatenate %386, %388 in 0 : vector<1x32xf32>, vector<1x32xf32> -> vector<2x32xf32>
    %cst_187 = arith.constant dense<0.000000e+00> : vector<2x384xf32>
    %398 = tpu.matmul %397, %396, %cst_187 {dimension_numbers = #tpu.dot_dimension_numbers<[1], [0], [0], [1], [0, 0, 1, 1], [], []>} : vector<2x32xf32>, vector<32x384xf32>, vector<2x384xf32> -> vector<2x384xf32>
    %399 = vector.extract_strided_slice %398 {offsets = [0, 0], sizes = [1, 384], strides = [1, 1]} : vector<2x384xf32> to vector<1x384xf32>
    %400 = vector.shape_cast %399 : vector<1x384xf32> to vector<1x1x384xf32>
    %401 = vector.broadcast %400 : vector<1x1x384xf32> to vector<2x12x384xf32>
    %402 = arith.mulf %360, %401 : vector<2x12x384xf32>
    %403 = vector.extract_strided_slice %398 {offsets = [1, 0], sizes = [1, 384], strides = [1, 1]} : vector<2x384xf32> to vector<1x384xf32>
    %404 = vector.shape_cast %403 : vector<1x384xf32> to vector<1x1x384xf32>
    %405 = vector.broadcast %404 : vector<1x1x384xf32> to vector<2x12x384xf32>
    %406 = arith.addf %402, %405 : vector<2x12x384xf32>
    %cst_188 = arith.constant 0.000000e+00 : f32
    %407 = vector.broadcast %cst_188 : f32 to vector<2x12x384xf32>
    %408 = arith.maximumf %406, %407 : vector<2x12x384xf32>
    %c1_189 = arith.constant 1 : index
    %c0_190 = arith.constant 0 : index
    %c0_191 = arith.constant 0 : index
    %c0_192 = arith.constant 0 : index
    %409 = vector.load %arg5[%c1_189, %c0_190, %c0_191, %c0_192] : memref<2x2x12x384xf32, #tpu.memory_space<vmem>>, vector<1x2x12x384xf32>
    %410 = vector.shape_cast %409 : vector<1x2x12x384xf32> to vector<2x12x384xf32>
    %411 = vector.shape_cast %408 : vector<2x12x384xf32> to vector<1x2x12x384xf32>
    tpu.vector_store %arg5[%c1_189, %c0_190, %c0_191, %c0_192], %411 {strides = array<i32>} : memref<2x2x12x384xf32, #tpu.memory_space<vmem>>, vector<1x2x12x384xf32>,
    return
  }
}

</mosaic_0001>

<bundles_post_ra>
// kernel: _forward_impl.1
= control target key start
LH: loop header
LB: loop body
LE: loop exit
PB: predicated region body
PF: predicated region fallthrough
CT: control target
= control target key end

     0   :  { %v20_v0 = vlaneseq  ;;  %v18936_v1 = vmov 0.0   ;;  %v18938_v2 = vmov 0.0|0.0   ;;  %vm19019_vm0 = vcmask 1043456   ;;  %s12724_s12 = smov 32   ;;  %s12727_s10 = smov 96   ;;  %s18930_s0 = inlined_call_operand.vmem [shape: f32[2,2,12,384], index: 0, kind: input, shape index: {}]   ;;  %s18931_s1 = inlined_call_operand.vmem [shape: f32[36,32], index: 1, kind: input, shape index: {}]   ;;  %s18932_s2 = inlined_call_operand.vmem [shape: f32[8,3456], index: 2, kind: input, shape index: {}]   ;;  %s18933_s5 = inlined_call_operand.vmem [shape: f32[2,2,12,384], index: 5, kind: output, shape index: {}]   ;;  %s18934_s3 = inlined_call_operand.vmem [shape: f32[36,32], index: 3, kind: input, shape index: {}]   ;;  %s18935_s4 = inlined_call_operand.vmem [shape: f32[8,9600], index: 4, kind: input, shape index: {}]  }
   0x1   :  { %4021 = vst [vmem:[#allocation2 + $0x20] sm:$0xc0] %v18936_v1  ;;  %4022 = vst [vmem:[#allocation2 + $0x28] sm:$0xc0] %v18936_v1  ;;  %12437 = vmatprep.subr.bf16.mxu1 %v18938_v2  ;;  %v12771_v3 = vld [vmem:[%s18930_s0 + $0x8] sm:$0xff]  ;;  %vm215_vm1 = vcmask 261120  }
   0x2   :  { %4023 = vst [vmem:[#allocation2 + $0x30] sm:$0xc0] %v18936_v1  ;;  %4024 = vst [vmem:[#allocation2 + $0x38] sm:$0xc0] %v18936_v1  ;;  %v12776_v4 = vld [vmem:[%s18930_s0 + $0x20] sm:$0xf] }
   0x3   :  { %4025 = vst [vmem:[#allocation2 + $0x60] sm:$0xc0] %v18936_v1  ;;  %4026 = vst [vmem:[#allocation2 + $0x68] sm:$0xc0] %v18936_v1  ;;  %v12779_v5 = vshrl.u32 %v20_v0, 7  ;;  %v12782_v6 = vand.u32 127, %v20_v0 }
   0x4   :  { %4027 = vst [vmem:[#allocation2 + $0x70] sm:$0xc0] %v18936_v1  ;;  %4028 = vst [vmem:[#allocation2 + $0x78] sm:$0xc0] %v18936_v1  ;;  %v12787_v7 = vld [vmem:[%s18930_s0 + $0x50] sm:$0xf] }
   0x5   :  { %19251 = vst [vmem:[#allocation5_spill] sm:$0xff] %v12779_v5  ;;  %19252 = vst [vmem:[#allocation6_spill] sm:$0xff] %v12782_v6  ;;  %v409_v8 = vsel %vm19019_vm0, %v12776_v4, 0.0  ;;  %v12796_v10 = vsel %vm19019_vm0, %v12787_v7, 0.0  ;;  %v37_v11 = vadd.s32 128, %v12779_v5  ;;  %v38_v12 = vadd.s32 136, %v12779_v5 }
   0x6   :  { %v12792_v9 = vadd.f32 %v409_v8, %v12771_v3  ;;  %v12801_v13 = vadd.s32 8, %v12779_v5  ;;  %v71_v14 = vand.u32 31, %v12779_v5  ;;  %v53_v15 = vadd.s32 256, %v12779_v5 }
   0x7   :  { %v54_v16 = vadd.s32 264, %v12779_v5  ;;  %v39_v17 = vadd.s32 144, %v12779_v5  ;;  %v40_v18 = vadd.s32 152, %v12779_v5  ;;  %v87_v19 = vand.u32 31, %v37_v11 }
   0x8   :  { %19253 = vst [vmem:[#allocation7_spill] sm:$0xff] %v12801_v13  ;;  %v88_v20 = vand.u32 31, %v38_v12  ;;  %v72_v21 = vand.u32 31, %v12801_v13  ;;  %vm119_vm2 = vcmp.eq.s32.totalorder %v71_v14, %v12782_v6  ;;  %v103_v23 = vand.u32 31, %v53_v15 }
   0x9   :  { %v167_v22 = vsel %vm119_vm2, 1.0, %v18936_v1  ;;  %v104_v24 = vand.u32 31, %v54_v16  ;;  %v89_v25 = vand.u32 31, %v39_v17  ;;  %vm135_vm3 = vcmp.eq.s32.totalorder %v87_v19, %v12782_v6 }
   0xa   :  { %vm136_vm4 = vcmp.eq.s32.totalorder %v88_v20, %v12782_v6  ;;  %vm120_vm5 = vcmp.eq.s32.totalorder %v72_v21, %v12782_v6  ;;  %216 = vst.msk [vmem:[#allocation4] sm:$0xff] %vm215_vm1, %v167_v22  ;;  %v90_v26 = vand.u32 31, %v40_v18  ;;  %v183_v27 = vsel %vm135_vm3, 1.0, %v18936_v1 }
   0xb   :  { %v184_v28 = vsel %vm136_vm4, 1.0, %v18936_v1  ;;  %v168_v29 = vsel %vm120_vm5, 1.0, %v18936_v1  ;;  %vm151_vm6 = vcmp.eq.s32.totalorder %v103_v23, %v12782_v6  ;;  %232 = vst.msk [vmem:[#allocation4 + $0x80] sm:$0xff] %vm215_vm1, %v183_v27  ;;  %vm152_vm7 = vcmp.eq.s32.totalorder %v104_v24, %v12782_v6 }
   0xc   :  { %233 = vst.msk [vmem:[#allocation4 + $0x88] sm:$0xff] %vm215_vm1, %v184_v28  ;;  %217 = vst.msk [vmem:[#allocation4 + $0x8] sm:$0xff] %vm215_vm1, %v168_v29  ;;  %v199_v30 = vsel %vm151_vm6, 1.0, %v18936_v1  ;;  %vm137_vm8 = vcmp.eq.s32.totalorder %v89_v25, %v12782_v6  ;;  %vm138_vm9 = vcmp.eq.s32.totalorder %v90_v26, %v12782_v6  ;;  %v200_v31 = vsel %vm152_vm7, 1.0, %v18936_v1 }
   0xd   :  { %248 = vst.msk [vmem:[#allocation4 + $0x100] sm:$0xff] %vm215_vm1, %v199_v30  ;;  %v185_v32 = vsel %vm137_vm8, 1.0, %v18936_v1  ;;  %v186_v33 = vsel %vm138_vm9, 1.0, %v18936_v1  ;;  %v12831_v34 = vadd.s32 16, %v12779_v5  ;;  %249 = vst.msk [vmem:[#allocation4 + $0x108] sm:$0xff] %vm215_vm1, %v200_v31  ;;  %v12837_v35 = vadd.s32 24, %v12779_v5 }
   0xe   :  { %234 = vst.msk [vmem:[#allocation4 + $0x90] sm:$0xff] %vm215_vm1, %v185_v32  ;;  %235 = vst.msk [vmem:[#allocation4 + $0x98] sm:$0xff] %vm215_vm1, %v186_v33  ;;  %v55_v36 = vadd.s32 272, %v12779_v5  ;;  %v56_v37 = vadd.s32 280, %v12779_v5  ;;  %v41_v38 = vadd.s32 160, %v12779_v5  ;;  %v42_v40 = vadd.s32 168, %v12779_v5 }
   0xf   :  { %19254 = vst [vmem:[#allocation8_spill] sm:$0xff] %v12831_v34  ;;  %19255 = vst [vmem:[#allocation9_spill] sm:$0xff] %v12837_v35  ;;  %v73_v39 = vand.u32 31, %v12831_v34  ;;  %v25_v41 = vadd.s32 32, %v12779_v5  ;;  %v26_v42 = vadd.s32 40, %v12779_v5  ;;  %v74_v43 = vand.u32 31, %v12837_v35 }
  0x10   :  { %v105_v44 = vand.u32 31, %v55_v36  ;;  %v106_v45 = vand.u32 31, %v56_v37  ;;  %v91_v46 = vand.u32 31, %v41_v38  ;;  %v92_v48 = vand.u32 31, %v42_v40 }
  0x11   :  { %v449_v47 = vld [vmem:[#allocation4] sm:$0xff]  ;;  %vm121_vm10 = vcmp.eq.s32.totalorder %v73_v39, %v12782_v6  ;;  %v75_v49 = vand.u32 31, %v25_v41  ;;  %v76_v50 = vand.u32 31, %v26_v42  ;;  %vm122_vm11 = vcmp.eq.s32.totalorder %v74_v43, %v12782_v6 }
  0x12   :  { %v169_v51 = vsel %vm121_vm10, 1.0, %v18936_v1  ;;  %vm153_vm12 = vcmp.eq.s32.totalorder %v105_v44, %v12782_v6  ;;  %vm154_vm13 = vcmp.eq.s32.totalorder %v106_v45, %v12782_v6  ;;  %v465_v52 = vld [vmem:[#allocation4 + $0x80] sm:$0xff]  ;;  %v170_v55 = vsel %vm122_vm11, 1.0, %v18936_v1 }
  0x13   :  { %v466_v53 = vld [vmem:[#allocation4 + $0x88] sm:$0xff]  ;;  %218 = vst.msk [vmem:[#allocation4 + $0x10] sm:$0xff] %vm215_vm1, %v169_v51  ;;  %v201_v56 = vsel %vm153_vm12, 1.0, %v18936_v1  ;;  %v202_v57 = vsel %vm154_vm13, 1.0, %v18936_v1  ;;  %vm139_vm14 = vcmp.eq.s32.totalorder %v91_v46, %v12782_v6  ;;  %219 = vst.msk [vmem:[#allocation4 + $0x18] sm:$0xff] %vm215_vm1, %v170_v55  ;;  %vm140_vm15 = vcmp.eq.s32.totalorder %v92_v48, %v12782_v6 }
  0x14   :  { %v450_v54 = vld [vmem:[#allocation4 + $0x8] sm:$0xff]  ;;  %v12405_v58 = vpack.c.bf16 %v466_v53, %v465_v52  ;;  %v481_v60 = vld [vmem:[#allocation4 + $0x100] sm:$0xff]  ;;  %250 = vst.msk [vmem:[#allocation4 + $0x110] sm:$0xff] %vm215_vm1, %v201_v56  ;;  %251 = vst.msk [vmem:[#allocation4 + $0x118] sm:$0xff] %vm215_vm1, %v202_v57  ;;  %v187_v61 = vsel %vm139_vm14, 1.0, %v18936_v1  ;;  %v188_v11 = vsel %vm140_vm15, 1.0, %v18936_v1  ;;  %vm123_vm2 = vcmp.eq.s32.totalorder %v75_v49, %v12782_v6 }
  0x15   :  { %v12407_v59 = vpack.c.bf16 %v450_v54, %v449_v47  ;;  %v482_v62 = vld [vmem:[#allocation4 + $0x108] sm:$0xff]  ;;  %v467_v63 = vld [vmem:[#allocation4 + $0x90] sm:$0xff]  ;;  %v468_v8 = vld [vmem:[#allocation4 + $0x98] sm:$0xff]  ;;  %236 = vst.msk [vmem:[#allocation4 + $0xa0] sm:$0xff] %vm215_vm1, %v187_v61  ;;  %vm124_vm3 = vcmp.eq.s32.totalorder %v76_v50, %v12782_v6  ;;  %v57_v12 = vadd.s32 288, %v12779_v5  ;;  %v171_v16 = vsel %vm123_vm2, 1.0, %v18936_v1 }
  0x16   :  { %12406 = vmatprep.subr.bf16.mxu0 %v12405_v58  ;;  %v12438_v14 = vpack.c.bf16 %v482_v62, %v481_v60  ;;  %v12409_v15 = vpack.c.bf16 %v468_v8, %v467_v63  ;;  %237 = vst.msk [vmem:[#allocation4 + $0xa8] sm:$0xff] %vm215_vm1, %v188_v11  ;;  %v172_v17 = vsel %vm124_vm3, 1.0, %v18936_v1  ;;  %220 = vst.msk [vmem:[#allocation4 + $0x20] sm:$0xff] %vm215_vm1, %v171_v16  ;;  %v58_v18 = vadd.s32 296, %v12779_v5 }
  0x17   :  { %12408 = vmatpush3.bf16.msra.mxu0 %v12407_v59  ;;  %221 = vst.msk [vmem:[#allocation4 + $0x28] sm:$0xff] %vm215_vm1, %v172_v17  ;;  %v107_v19 = vand.u32 31, %v57_v12  ;;  %v43_v20 = vadd.s32 176, %v12779_v5  ;;  %v44_v21 = vadd.s32 184, %v12779_v5  ;;  %v27_v22 = vadd.s32 48, %v12779_v5 }
  0x18   :  { %12439 = vmatpush3.bf16.msra.mxu1 %v12438_v14  ;;  %12410 = vmatprep.subr.bf16.mxu0 %v12409_v15  ;;  %v28_v23 = vadd.s32 56, %v12779_v5  ;;  %v59_v24 = vadd.s32 304, %v12779_v5  ;;  %v60_v25 = vadd.s32 312, %v12779_v5  ;;  %v108_v26 = vand.u32 31, %v58_v18 }
  0x19   :  { %12440 = vmatprep.subr.bf16.mxu1 %v18938_v2  ;;  %vm155_vm4 = vcmp.eq.s32.totalorder %v107_v19, %v12782_v6  ;;  %v93_v27 = vand.u32 31, %v43_v20  ;;  %v94_v28 = vand.u32 31, %v44_v21  ;;  %v77_v31 = vand.u32 31, %v27_v22 }
  0x1a   :  { %v451_v29 = vld [vmem:[#allocation4 + $0x10] sm:$0xff]  ;;  %v203_v30 = vsel %vm155_vm4, 1.0, %v18936_v1  ;;  %v78_v32 = vand.u32 31, %v28_v23  ;;  %v109_v33 = vand.u32 31, %v59_v24  ;;  %v452_v36 = vld [vmem:[#allocation4 + $0x18] sm:$0xff]  ;;  %vm156_vm5 = vcmp.eq.s32.totalorder %v108_v26, %v12782_v6 }
  0x1b   :  { %v483_v37 = vld [vmem:[#allocation4 + $0x110] sm:$0xff]  ;;  %v484_v38 = vld [vmem:[#allocation4 + $0x118] sm:$0xff]  ;;  %252 = vst.msk [vmem:[#allocation4 + $0x120] sm:$0xff] %vm215_vm1, %v203_v30  ;;  %vm141_vm6 = vcmp.eq.s32.totalorder %v93_v27, %v12782_v6  ;;  %vm142_vm7 = vcmp.eq.s32.totalorder %v94_v28, %v12782_v6  ;;  %v110_v39 = vand.u32 31, %v60_v25  ;;  %v12411_v40 = vpack.c.bf16 %v452_v36, %v451_v29 }
  0x1c   :  { %v12441_v41 = vpack.c.bf16 %v484_v38, %v483_v37  ;;  %v469_v42 = vld [vmem:[#allocation4 + $0xa0] sm:$0xff]  ;;  %v204_v43 = vsel %vm156_vm5, 1.0, %v18936_v1  ;;  %v189_v44 = vsel %vm141_vm6, 1.0, %v18936_v1  ;;  %v190_v46 = vsel %vm142_vm7, 1.0, %v18936_v1 }
  0x1d   :  { %v470_v45 = vld [vmem:[#allocation4 + $0xa8] sm:$0xff]  ;;  %253 = vst.msk [vmem:[#allocation4 + $0x128] sm:$0xff] %vm215_vm1, %v204_v43  ;;  %238 = vst.msk [vmem:[#allocation4 + $0xb0] sm:$0xff] %vm215_vm1, %v189_v44  ;;  %vm125_vm8 = vcmp.eq.s32.totalorder %v77_v31, %v12782_v6  ;;  %vm126_vm9 = vcmp.eq.s32.totalorder %v78_v32, %v12782_v6  ;;  %vm157_vm10 = vcmp.eq.s32.totalorder %v109_v33, %v12782_v6  ;;  %12412 = vmatpush3.bf16.msra.mxu0 %v12411_v40  ;;  %v453_v48 = vld [vmem:[#allocation4 + $0x20] sm:$0xff] }
  0x1e   :  { %12442 = vmatpush3.bf16.msra.mxu1 %v12441_v41  ;;  %v12413_v47 = vpack.c.bf16 %v470_v45, %v469_v42  ;;  %v454_v49 = vld [vmem:[#allocation4 + $0x28] sm:$0xff]  ;;  %239 = vst.msk [vmem:[#allocation4 + $0xb8] sm:$0xff] %vm215_vm1, %v190_v46  ;;  %v173_v50 = vsel %vm125_vm8, 1.0, %v18936_v1  ;;  %v174_v51 = vsel %vm126_vm9, 1.0, %v18936_v1  ;;  %vm158_vm11 = vcmp.eq.s32.totalorder %v110_v39, %v12782_v6 }
  0x1f   :  { %v12415_v52 = vpack.c.bf16 %v454_v49, %v453_v48  ;;  %12443 = vmatprep.subr.bf16.mxu1 %v18938_v2  ;;  %222 = vst.msk [vmem:[#allocation4 + $0x30] sm:$0xff] %vm215_vm1, %v173_v50  ;;  %223 = vst.msk [vmem:[#allocation4 + $0x38] sm:$0xff] %vm215_vm1, %v174_v51  ;;  %v205_v53 = vsel %vm157_vm10, 1.0, %v18936_v1  ;;  %v206_v54 = vsel %vm158_vm11, 1.0, %v18936_v1  ;;  %v45_v55 = vadd.s32 192, %v12779_v5 }
  0x20   :  { %12414 = vmatprep.subr.bf16.mxu0 %v12413_v47  ;;  %254 = vst.msk [vmem:[#allocation4 + $0x130] sm:$0xff] %vm215_vm1, %v205_v53  ;;  %255 = vst.msk [vmem:[#allocation4 + $0x138] sm:$0xff] %vm215_vm1, %v206_v54  ;;  %v46_v56 = vadd.s32 200, %v12779_v5  ;;  %v29_v57 = vadd.s32 64, %v12779_v5  ;;  %v30_v58 = vadd.s32 72, %v12779_v5  ;;  %v61_v59 = vadd.s32 320, %v12779_v5 }
  0x21   :  { %v95_v60 = vand.u32 31, %v45_v55  ;;  %v62_v61 = vadd.s32 328, %v12779_v5  ;;  %v47_v62 = vadd.s32 208, %v12779_v5  ;;  %v48_v63 = vadd.s32 216, %v12779_v5  ;;  %12416 = vmatpush3.bf16.msra.mxu0 %v12415_v52 }
  0x22   :  { %v485_v8 = vld [vmem:[#allocation4 + $0x120] sm:$0xff]  ;;  %v96_v11 = vand.u32 31, %v46_v56  ;;  %v79_v12 = vand.u32 31, %v29_v57  ;;  %v80_v14 = vand.u32 31, %v30_v58  ;;  %v111_v15 = vand.u32 31, %v61_v59 }
  0x23   :  { %vm143_vm12 = vcmp.eq.s32.totalorder %v95_v60, %v12782_v6  ;;  %v112_v16 = vand.u32 31, %v62_v61  ;;  %v97_v17 = vand.u32 31, %v47_v62  ;;  %v98_v18 = vand.u32 31, %v48_v63 }
  0x24   :  { %v486_v19 = vld [vmem:[#allocation4 + $0x128] sm:$0xff]  ;;  %v471_v20 = vld [vmem:[#allocation4 + $0xb0] sm:$0xff]  ;;  %vm144_vm13 = vcmp.eq.s32.totalorder %v96_v11, %v12782_v6  ;;  %v191_v21 = vsel %vm143_vm12, 1.0, %v18936_v1  ;;  %vm127_vm14 = vcmp.eq.s32.totalorder %v79_v12, %v12782_v6  ;;  %vm128_vm15 = vcmp.eq.s32.totalorder %v80_v14, %v12782_v6 }
  0x25   :  { %v12444_v22 = vpack.c.bf16 %v486_v19, %v485_v8  ;;  %v472_v23 = vld [vmem:[#allocation4 + $0xb8] sm:$0xff]  ;;  %v192_v24 = vsel %vm144_vm13, 1.0, %v18936_v1  ;;  %240 = vst.msk [vmem:[#allocation4 + $0xc0] sm:$0xff] %vm215_vm1, %v191_v21  ;;  %v175_v25 = vsel %vm127_vm14, 1.0, %v18936_v1  ;;  %v176_v26 = vsel %vm128_vm15, 1.0, %v18936_v1 }
  0x26   :  { %v12417_v27 = vpack.c.bf16 %v472_v23, %v471_v20  ;;  %v455_v28 = vld [vmem:[#allocation4 + $0x30] sm:$0xff]  ;;  %v456_v29 = vld [vmem:[#allocation4 + $0x38] sm:$0xff]  ;;  %241 = vst.msk [vmem:[#allocation4 + $0xc8] sm:$0xff] %vm215_vm1, %v192_v24  ;;  %224 = vst.msk [vmem:[#allocation4 + $0x40] sm:$0xff] %vm215_vm1, %v175_v25  ;;  %vm159_vm2 = vcmp.eq.s32.totalorder %v111_v15, %v12782_v6  ;;  %vm160_vm3 = vcmp.eq.s32.totalorder %v112_v16, %v12782_v6  ;;  %v31_v40 = vadd.s32 80, %v12779_v5 }
  0x27   :  { %225 = vst.msk [vmem:[#allocation4 + $0x48] sm:$0xff] %vm215_vm1, %v176_v26  ;;  %vm145_vm4 = vcmp.eq.s32.totalorder %v97_v17, %v12782_v6  ;;  %12445 = vmatpush3.bf16.msra.mxu1 %v12444_v22  ;;  %v12419_v30 = vpack.c.bf16 %v456_v29, %v455_v28  ;;  %v487_v31 = vld [vmem:[#allocation4 + $0x130] sm:$0xff]  ;;  %v488_v32 = vld [vmem:[#allocation4 + $0x138] sm:$0xff]  ;;  %v207_v33 = vsel %vm159_vm2, 1.0, %v18936_v1  ;;  %v208_v36 = vsel %vm160_vm3, 1.0, %v18936_v1  ;;  %v12968_v20 = vld [vmem:[%s18930_s0 + $0x38] sm:$0xff] }
  0x28   :  { %vm146_vm5 = vcmp.eq.s32.totalorder %v98_v18, %v12782_v6  ;;  %12418 = vmatprep.subr.bf16.mxu0 %v12417_v27  ;;  %12446 = vmatprep.subr.bf16.mxu1 %v18938_v2  ;;  %v12447_v37 = vpack.c.bf16 %v488_v32, %v487_v31  ;;  %256 = vst.msk [vmem:[#allocation4 + $0x140] sm:$0xff] %vm215_vm1, %v207_v33  ;;  %257 = vst.msk [vmem:[#allocation4 + $0x148] sm:$0xff] %vm215_vm1, %v208_v36  ;;  %v193_v38 = vsel %vm145_vm4, 1.0, %v18936_v1 }
  0x29   :  { %v194_v39 = vsel %vm146_vm5, 1.0, %v18936_v1  ;;  %12420 = vmatpush3.bf16.msra.mxu0 %v12419_v30  ;;  %242 = vst.msk [vmem:[#allocation4 + $0xd0] sm:$0xff] %vm215_vm1, %v193_v38  ;;  %v32_v41 = vadd.s32 88, %v12779_v5  ;;  %v63_v42 = vadd.s32 336, %v12779_v5  ;;  %v64_v43 = vadd.s32 344, %v12779_v5 }
  0x2a   :  { %243 = vst.msk [vmem:[#allocation4 + $0xd8] sm:$0xff] %vm215_vm1, %v194_v39  ;;  %v49_v44 = vadd.s32 224, %v12779_v5  ;;  %v81_v45 = vand.u32 31, %v31_v40  ;;  %v50_v46 = vadd.s32 232, %v12779_v5  ;;  %v33_v47 = vadd.s32 96, %v12779_v5 }
  0x2b   :  { %v34_v48 = vadd.s32 104, %v12779_v5  ;;  %12448 = vmatpush3.bf16.msra.mxu1 %v12447_v37  ;;  %v82_v49 = vand.u32 31, %v32_v41  ;;  %v113_v50 = vand.u32 31, %v63_v42  ;;  %v114_v51 = vand.u32 31, %v64_v43 }
  0x2c   :  { %v99_v52 = vand.u32 31, %v49_v44  ;;  %v473_v53 = vld [vmem:[#allocation4 + $0xc0] sm:$0xff]  ;;  %12449 = vmatprep.subr.bf16.mxu1 %v18938_v2  ;;  %vm129_vm6 = vcmp.eq.s32.totalorder %v81_v45, %v12782_v6  ;;  %v100_v54 = vand.u32 31, %v50_v46  ;;  %v83_v55 = vand.u32 31, %v33_v47 }
  0x2d   :  { %v84_v56 = vand.u32 31, %v34_v48  ;;  %v474_v57 = vld [vmem:[#allocation4 + $0xc8] sm:$0xff]  ;;  %v457_v58 = vld [vmem:[#allocation4 + $0x40] sm:$0xff]  ;;  %vm130_vm7 = vcmp.eq.s32.totalorder %v82_v49, %v12782_v6  ;;  %v177_v60 = vsel %vm129_vm6, 1.0, %v18936_v1  ;;  %vm161_vm8 = vcmp.eq.s32.totalorder %v113_v50, %v12782_v6 }
  0x2e   :  { %v458_v59 = vld [vmem:[#allocation4 + $0x48] sm:$0xff]  ;;  %vm162_vm9 = vcmp.eq.s32.totalorder %v114_v51, %v12782_v6  ;;  %v12421_v61 = vpack.c.bf16 %v474_v57, %v473_v53  ;;  %v178_v63 = vsel %vm130_vm7, 1.0, %v18936_v1  ;;  %226 = vst.msk [vmem:[#allocation4 + $0x50] sm:$0xff] %vm215_vm1, %v177_v60  ;;  %v209_v8 = vsel %vm161_vm8, 1.0, %v18936_v1  ;;  %v13004_v50 = vld [vmem:[%s18930_s0 + $0x18] sm:$0xf] }
  0x2f   :  { %v12423_v62 = vpack.c.bf16 %v458_v59, %v457_v58  ;;  %v489_v11 = vld [vmem:[#allocation4 + $0x140] sm:$0xff]  ;;  %v490_v12 = vld [vmem:[#allocation4 + $0x148] sm:$0xff]  ;;  %227 = vst.msk [vmem:[#allocation4 + $0x58] sm:$0xff] %vm215_vm1, %v178_v63  ;;  %v210_v14 = vsel %vm162_vm9, 1.0, %v18936_v1  ;;  %258 = vst.msk [vmem:[#allocation4 + $0x150] sm:$0xff] %vm215_vm1, %v209_v8  ;;  %vm147_vm10 = vcmp.eq.s32.totalorder %v99_v52, %v12782_v6  ;;  %vm148_vm11 = vcmp.eq.s32.totalorder %v100_v54, %v12782_v6 }
  0x30   :  { %vm131_vm12 = vcmp.eq.s32.totalorder %v83_v55, %v12782_v6  ;;  %12422 = vmatprep.subr.bf16.mxu0 %v12421_v61  ;;  %v12450_v15 = vpack.c.bf16 %v490_v12, %v489_v11  ;;  %v475_v16 = vld [vmem:[#allocation4 + $0xd0] sm:$0xff]  ;;  %259 = vst.msk [vmem:[#allocation4 + $0x158] sm:$0xff] %vm215_vm1, %v210_v14  ;;  %v195_v18 = vsel %vm147_vm10, 1.0, %v18936_v1  ;;  %v196_v19 = vsel %vm148_vm11, 1.0, %v18936_v1 }
  0x31   :  { %v476_v17 = vld [vmem:[#allocation4 + $0xd8] sm:$0xff]  ;;  %vm132_vm13 = vcmp.eq.s32.totalorder %v84_v56, %v12782_v6  ;;  %12424 = vmatpush3.bf16.msra.mxu0 %v12423_v62  ;;  %244 = vst.msk [vmem:[#allocation4 + $0xe0] sm:$0xff] %vm215_vm1, %v195_v18  ;;  %245 = vst.msk [vmem:[#allocation4 + $0xe8] sm:$0xff] %vm215_vm1, %v196_v19  ;;  %v179_v22 = vsel %vm131_vm12, 1.0, %v18936_v1  ;;  %v65_v24 = vadd.s32 352, %v12779_v5  ;;  %v66_v25 = vadd.s32 360, %v12779_v5 }
  0x32   :  { %v12425_v21 = vpack.c.bf16 %v476_v17, %v475_v16  ;;  %v180_v23 = vsel %vm132_vm13, 1.0, %v18936_v1  ;;  %12451 = vmatpush3.bf16.msra.mxu1 %v12450_v15  ;;  %228 = vst.msk [vmem:[#allocation4 + $0x60] sm:$0xff] %vm215_vm1, %v179_v22  ;;  %v51_v26 = vadd.s32 240, %v12779_v5  ;;  %v52_v27 = vadd.s32 248, %v12779_v5  ;;  %v12999_v49 = vld [vmem:[%s18930_s0] sm:$0xff]  ;;  %v13021_v62 = vld [vmem:[%s18930_s0 + $0x30] sm:$0xff] }
  0x33   :  { %229 = vst.msk [vmem:[#allocation4 + $0x68] sm:$0xff] %vm215_vm1, %v180_v23  ;;  %v35_v28 = vadd.s32 112, %v12779_v5  ;;  %12452 = vmatprep.subr.bf16.mxu1 %v18938_v2  ;;  %v115_v29 = vand.u32 31, %v65_v24  ;;  %v36_v30 = vadd.s32 120, %v12779_v5  ;;  %v411_v31 = vrot.slane %v12792_v9, 4  ;;  %v13048_v24 = vld [vmem:[%s18930_s0 + $0x10] sm:$0xff] }
  0x34   :  { %12426 = vmatprep.subr.bf16.mxu0 %v12425_v21  ;;  %v434_v32 = vadd.f32 %v12796_v10, %v12968_v20  ;;  %v116_v33 = vand.u32 31, %v66_v25  ;;  %v101_v36 = vand.u32 31, %v51_v26  ;;  %v102_v37 = vand.u32 31, %v52_v27  ;;  %v13014_v55 = vld [vmem:[%s18930_s0 + $0x48] sm:$0xf] }
  0x35   :  { %v85_v38 = vand.u32 31, %v35_v28  ;;  %v459_v39 = vld [vmem:[#allocation4 + $0x50] sm:$0xff]  ;;  %vm163_vm14 = vcmp.eq.s32.totalorder %v115_v29, %v12782_v6  ;;  %v86_v40 = vand.u32 31, %v36_v30  ;;  %v412_v41 = vadd.f32 %v411_v31, %v12792_v9  ;;  %v13035_v15 = vld [vmem:[%s18930_s0 + $0x58] sm:$0xf] }
  0x36   :  { %v435_v42 = vrot.slane %v434_v32, 4  ;;  %v460_v43 = vld [vmem:[#allocation4 + $0x58] sm:$0xff]  ;;  %v491_v44 = vld [vmem:[#allocation4 + $0x150] sm:$0xff]  ;;  %vm164_vm15 = vcmp.eq.s32.totalorder %v116_v33, %v12782_v6  ;;  %v211_v45 = vsel %vm163_vm14, 1.0, %v18936_v1  ;;  %vm149_vm2 = vcmp.eq.s32.totalorder %v101_v36, %v12782_v6 }
  0x37   :  { %vm150_vm3 = vcmp.eq.s32.totalorder %v102_v37, %v12782_v6  ;;  %v12427_v10 = vpack.c.bf16 %v460_v43, %v459_v39  ;;  %v492_v46 = vld [vmem:[#allocation4 + $0x158] sm:$0xff]  ;;  %v212_v47 = vsel %vm164_vm15, 1.0, %v18936_v1  ;;  %260 = vst.msk [vmem:[#allocation4 + $0x160] sm:$0xff] %vm215_vm1, %v211_v45  ;;  %v197_v48 = vsel %vm149_vm2, 1.0, %v18936_v1  ;;  %v13030_v14 = vld [vmem:[%s18930_s0 + $0x28] sm:$0xf] }
  0x38   :  { %v198_v9 = vsel %vm150_vm3, 1.0, %v18936_v1  ;;  %v12453_v51 = vpack.c.bf16 %v492_v46, %v491_v44  ;;  %v477_v52 = vld [vmem:[#allocation4 + $0xe0] sm:$0xff]  ;;  %v478_v53 = vld [vmem:[#allocation4 + $0xe8] sm:$0xff]  ;;  %261 = vst.msk [vmem:[#allocation4 + $0x168] sm:$0xff] %vm215_vm1, %v212_v47  ;;  %246 = vst.msk [vmem:[#allocation4 + $0xf0] sm:$0xff] %vm215_vm1, %v197_v48  ;;  %vm133_vm4 = vcmp.eq.s32.totalorder %v85_v38, %v12782_v6  ;;  %vm134_vm5 = vcmp.eq.s32.totalorder %v86_v40, %v12782_v6 }
  0x39   :  { %247 = vst.msk [vmem:[#allocation4 + $0xf8] sm:$0xff] %vm215_vm1, %v198_v9  ;;  %v413_v54 = vrot.slane %v412_v41, 2  ;;  %vm19017_vm6 = vcmask 1041409   ;;  %12428 = vmatpush3.bf16.msra.mxu0 %v12427_v10  ;;  %v12429_v56 = vpack.c.bf16 %v478_v53, %v477_v52  ;;  %v461_v57 = vld [vmem:[#allocation4 + $0x60] sm:$0xff]  ;;  %v181_v59 = vsel %vm133_vm4, 1.0, %v18936_v1 }
  0x3a   :  { %v462_v58 = vld [vmem:[#allocation4 + $0x68] sm:$0xff]  ;;  %v182_v60 = vsel %vm134_vm5, 1.0, %v18936_v1  ;;  %v436_v61 = vadd.f32 %v435_v42, %v434_v32  ;;  %12454 = vmatpush3.bf16.msra.mxu1 %v12453_v51  ;;  %230 = vst.msk [vmem:[#allocation4 + $0x70] sm:$0xff] %vm215_vm1, %v181_v59  ;;  %v67_v11 = vadd.s32 368, %v12779_v5  ;;  %v68_v12 = vadd.s32 376, %v12779_v5 }
  0x3b   :  { %v12431_v63 = vpack.c.bf16 %v462_v58, %v461_v57  ;;  %231 = vst.msk [vmem:[#allocation4 + $0x78] sm:$0xff] %vm215_vm1, %v182_v60  ;;  %v414_v8 = vadd.f32 %v413_v54, %v412_v41  ;;  %12430 = vmatprep.subr.bf16.mxu0 %v12429_v56  ;;  %12455 = vmatprep.subr.bf16.mxu1 %v18938_v2  ;;  %v401_v17 = vsel %vm19019_vm0, %v13004_v50, 0.0  ;;  %v425_v18 = vsel %vm19019_vm0, %v13014_v55, 0.0  ;;  %v13060_v32 = vld [vmem:[%s18930_s0 + $0x40] sm:$0xff] }
  0x3c   :  { %v437_v16 = vrot.slane %v436_v61, 2  ;;  %v117_v21 = vand.u32 31, %v67_v11  ;;  %v118_v22 = vand.u32 31, %v68_v12  ;;  %v402_v23 = vadd.f32 %v401_v17, %v12999_v49 }
  0x3d   :  { %v415_v19 = vrot.slane %v414_v8, 1  ;;  %vm12723_vm7 = vmmov 0   ;;  %12432 = vmatpush3.bf16.msra.mxu0 %v12431_v63  ;;  %v426_v26 = vadd.f32 %v425_v18, %v13021_v62  ;;  %v417_v27 = vsel %vm19019_vm0, %v13030_v14, 0.0 }
  0x3e   :  { %12243 = vmatprep.mubr.msk.f32.mxu1 %vm12723_vm7, %v18936_v1  ;;  %v438_v25 = vadd.f32 %v437_v16, %v436_v61  ;;  %v441_v28 = vsel %vm19019_vm0, %v13035_v15, 0.0  ;;  %v493_v29 = vld [vmem:[#allocation4 + $0x160] sm:$0xff]  ;;  %vm165_vm8 = vcmp.eq.s32.totalorder %v117_v21, %v12782_v6  ;;  %vm166_vm9 = vcmp.eq.s32.totalorder %v118_v22, %v12782_v6 }
  0x3f   :  { %v416_v30 = vadd.f32 %v415_v19, %v414_v8  ;;  %v403_v31 = vrot.slane %v402_v23, 4  ;;  %v494_v33 = vld [vmem:[#allocation4 + $0x168] sm:$0xff]  ;;  %v479_v36 = vld [vmem:[#allocation4 + $0xf0] sm:$0xff]  ;;  %v213_v39 = vsel %vm165_vm8, 1.0, %v18936_v1  ;;  %v214_v40 = vsel %vm166_vm9, 1.0, %v18936_v1 }
  0x40   :  { %v480_v37 = vld [vmem:[#allocation4 + $0xf8] sm:$0xff]  ;;  %v439_v38 = vrot.slane %v438_v25, 1  ;;  %v418_v41 = vadd.f32 %v417_v27, %v13048_v24  ;;  %v12456_v42 = vpack.c.bf16 %v494_v33, %v493_v29  ;;  %262 = vst.msk [vmem:[#allocation4 + $0x170] sm:$0xff] %vm215_vm1, %v213_v39  ;;  %263 = vst.msk [vmem:[#allocation4 + $0x178] sm:$0xff] %vm215_vm1, %v214_v40  ;;  %v427_v45 = vrot.slane %v426_v26, 4 }
  0x41   :  { %v12433_v43 = vpack.c.bf16 %v480_v37, %v479_v36  ;;  %v404_v44 = vadd.f32 %v403_v31, %v402_v23  ;;  %v463_v10 = vld [vmem:[#allocation4 + $0x70] sm:$0xff]  ;;  %v442_v9 = vadd.f32 %v441_v28, %v13060_v32  ;;  %v653_v37 = vld [vmem:[%s18931_s1 + $0x10] sm:$0xff]  ;;  %vm19020_vm10 = vcmask 1040384  }
  0x42   :  { %v464_v46 = vld [vmem:[#allocation4 + $0x78] sm:$0xff]  ;;  %v440_v47 = vadd.f32 %v439_v38, %v438_v25  ;;  %v419_v48 = vrot.slane %v418_v41, 4  ;;  %12457 = vmatpush3.bf16.msra.mxu1 %v12456_v42  ;;  %v428_v53 = vadd.f32 %v427_v45, %v426_v26  ;;  %v651_v31 = vld [vmem:[%s18931_s1] sm:$0xff]  ;;  %v654_v38 = vld [vmem:[%s18931_s1 + $0x18] sm:$0xff]  ;;  %vm377_vm11 = vcmp.lt.s32.totalorder %v20_v0, 448 }
  0x43   :  { %12434 = vmatprep.subr.bf16.mxu0 %v12433_v43  ;;  %v12435_v51 = vpack.c.bf16 %v464_v46, %v463_v10  ;;  %v405_v52 = vrot.slane %v404_v44, 2  ;;  %12458 = vmatprep.subr.bf16.mxu1 %v18938_v2  ;;  %v443_v57 = vrot.slane %v442_v9, 4  ;;  %v652_v33 = vld [vmem:[%s18931_s1 + $0x8] sm:$0xff]  ;;  %v12465_v39 = vpack.c.bf16 %v654_v38, %v653_v37  ;;  %379 = vst.msk [vmem:[#allocation2] ss:$8 sm:$0xf] %vm377_vm11, %v18936_v1 }
  0x44   :  { %v505_v54 = vsel %vm19017_vm6, %v440_v47, %v416_v30  ;;  %v420_v56 = vadd.f32 %v419_v48, %v418_v41  ;;  %v429_v59 = vrot.slane %v428_v53, 2  ;;  %v12462_v36 = vpack.c.bf16 %v652_v33, %v651_v31  ;;  %v764_v46 = vld [vmem:[%s18932_s2 + $0x8] sm:$0xff]  ;;  %v763_v47 = vld [vmem:[%s18932_s2] sm:$0xff]  ;;  %382 = vst.msk [vmem:[#allocation2 + $0x40] ss:$8 sm:$0xf] %vm377_vm11, %v18936_v1 }
  0x45   :  { %12436 = vmatpush3.bf16.msra.mxu0 %v12435_v51  ;;  %574 = vmatprep.mubr.f32.mxu0 %v505_v54  ;;  %v406_v58 = vadd.f32 %v405_v52, %v404_v44  ;;  %v444_v61 = vadd.f32 %v443_v57, %v442_v9  ;;  %v768_v48 = vld [vmem:[%s18932_s2 + $0x28] sm:$0xff]  ;;  %v766_v9 = vld [vmem:[%s18932_s2 + $0x18] sm:$0xff]  ;;  %v767_v51 = vld [vmem:[%s18932_s2 + $0x20] sm:$0xff]  ;;  %v289_v54 = vrot.slane %v12999_v49, 7  ;;  %v290_v57 = vrot.slane %v12771_v3, 7 }
  0x46   :  { %v421_v60 = vrot.slane %v420_v56, 2  ;;  %12461 = vmatprep.subr.bf16.mxu0 %v18938_v2  ;;  %v430_v8 = vadd.f32 %v429_v59, %v428_v53  ;;  %v772_v52 = vld [vmem:[%s18932_s2 + $0x48] sm:$0xff]  ;;  %v291_v53 = vrot.slane %v13048_v24, 7  ;;  %v294_v59 = vrot.slane %v12776_v4, 7  ;;  %v11837_v38 = vld [vmem:[%s18931_s1 + $0x21] ss:$0 sm:$0xff] }
  0x47   :  { %v407_v63 = vrot.slane %v406_v58, 1  ;;  %v495_v11 = vld [vmem:[#allocation4 + $0x170] sm:$0xff]  ;;  %v496_v12 = vld [vmem:[#allocation4 + $0x178] sm:$0xff]  ;;  %v445_v17 = vrot.slane %v444_v61, 2  ;;  %307 = vrot.lane.b32.xlu0 %v289_v54, %s12724_s12  ;;  %v298_v0 = vrot.slane %v13021_v62, 7  ;;  %v299_v49 = vrot.slane %v12968_v20, 7 }
  0x48   :  { %v422_v16 = vadd.f32 %v421_v60, %v420_v56  ;;  %v12459_v18 = vpack.c.bf16 %v496_v12, %v495_v11  ;;  %v431_v21 = vrot.slane %v430_v8, 1  ;;  %v292_v56 = vrot.slane %v13004_v50, 7  ;;  %311 = vrot.lane.b32.xlu1 %v291_v53, %s12724_s12  ;;  %385 = vst.msk [vmem:[#allocation2 + $0x25] ss:$8 sm:$0xf] %vm377_vm11, %v18936_v1 }
  0x49   :  { %v408_v19 = vadd.f32 %v407_v63, %v406_v58  ;;  %v446_v23 = vadd.f32 %v445_v17, %v444_v61  ;;  %v296_v60 = vrot.slane %v13030_v14, 7  ;;  %388 = vst.msk [vmem:[#allocation2 + $0x65] ss:$8 sm:$0xf] %vm377_vm11, %v18936_v1  ;;  %v295_v3 = vsel %vm19020_vm10, %v290_v57, %v294_v59  ;;  %v781_v59 = vld [vmem:[%s18932_s2 + $0x90] sm:$0xff] }
  0x4a   :  { %v423_v22 = vrot.slane %v422_v16, 1  ;;  %12460 = vmatpush3.bf16.msra.mxu1 %v12459_v18  ;;  %v432_v25 = vadd.f32 %v431_v21, %v430_v8  ;;  %v293_v58 = vsel %vm19020_vm10, %v289_v54, %v292_v56  ;;  %v301_v50 = vrot.slane %v13014_v55, 7  ;;  %v777_v54 = vld [vmem:[%s18932_s2 + $0x70] sm:$0xff]  ;;  %v783_v56 = vld [vmem:[%s18932_s2 + $0xa0] sm:$0xff] }
  0x4b   :  { %v447_v27 = vrot.slane %v446_v23, 1  ;;  %794 = vmatprep.subr.mxu1 %v764_v46  ;;  %309 = vrot.lane.b32.xlu0 %v290_v57, %s12724_s12  ;;  %v297_v4 = vsel %vm19020_vm10, %v291_v53, %v296_v60  ;;  %v300_v14 = vrot.slane %v13060_v32, 7  ;;  %v303_v61 = vrot.slane %v12787_v7, 7  ;;  %v775_v46 = vld [vmem:[%s18932_s2 + $0x60] sm:$0xff]  ;;  %v784_v53 = vld [vmem:[%s18932_s2 + $0xa8] sm:$0xff]  ;;  %v782_v57 = vld [vmem:[%s18932_s2 + $0x98] sm:$0xff] }
  0x4c   :  { %v424_v26 = vadd.f32 %v423_v22, %v422_v16  ;;  %v504_v28 = vsel %vm19017_vm6, %v432_v25, %v408_v19  ;;  %313 = vrot.lane.b32.xlu1 %v293_v58, %s12724_s12  ;;  %v302_v24 = vsel %vm19020_vm10, %v298_v0, %v301_v50  ;;  %v305_v63 = vrot.slane %v13035_v15, 7  ;;  %v788_v58 = vld [vmem:[%s18932_s2 + $0xc8] sm:$0xff]  ;;  %v787_v60 = vld [vmem:[%s18932_s2 + $0xc0] sm:$0xff] }
  0x4d   :  { %575 = vmatmul.mubr.f32.vlgmr.msra.gmra.mrb[0].mxu0 %v504_v28  ;;  %v448_v29 = vadd.f32 %v447_v27, %v446_v23  ;;  %v304_v20 = vsel %vm19020_vm10, %v299_v49, %v303_v61  ;;  %vm19015_vm12 = vcmask 58368   ;;  %vm19014_vm13 = vcmask 64512  }
  0x4e   :  { %12254 = vmatprep.mubr.msk.f32.mxu0 %vm12723_vm7, %v18936_v1  ;;  %12463 = vmatpush3.bf16.msra.mxu0 %v12462_v36  ;;  %v306_v55 = vsel %vm19020_vm10, %v300_v14, %v305_v63  ;;  %v11836_v36 = vld [vmem:[%s18931_s1 + $0x20] ss:$0 sm:$0xff]  ;;  %vm355_vm14 = vcmask 1047809   ;;  %vm359_vm15 = vcmask 261121   ;;  %vm394_vm2 = vcmask 523521   ;;  %v789_v63 = vld [vmem:[%s18932_s2 + $0xd0] sm:$0xff] }
  0x4f   :  { %v506_v30 = vsel %vm19017_vm6, %v448_v29, %v424_v26  ;;  %12464 = vmatprep.subr.bf16.mxu0 %v18938_v2  ;;  %315 = vrot.lane.b32.xlu0 %v295_v3, %s12724_s12  ;;  %v786_v3 = vld [vmem:[%s18932_s2 + $0xb8] sm:$0xff]  ;;  %vm361_vm3 = vcmask 1044736   ;;  %vm365_vm4 = vcmask 258048   ;;  %vm396_vm5 = vcmask 520448  }
  0x50   :  { %12244 = vmatmul.mubr.f32.vlgmr.msra.gmra.mrb[0].mxu1 %v506_v30  ;;  %317 = vrot.lane.b32.xlu1 %v297_v4, %s12724_s12  ;;  %vm19016_vm8 = vcmask 523264   ;;  %vm19012_vm9 = vcmask 1046528   ;;  %vm19011_vm11 = vcmask 1045504  }
  0x51   :  { %858 = vmatprep.mubr.f32.mxu1 %v18936_v1  ;;  %795 = vmatpush1.msra.mxu1 %v763_v47  ;;  %v774_v47 = vld [vmem:[%s18932_s2 + $0x58] sm:$0xff] }
  0x52   :  { %12466 = vmatpush3.bf16.msra.mxu0 %v12465_v39  ;;  %865 = vmatprep.subr.mxu1 %v766_v9  ;;  %v773_v9 = vld [vmem:[%s18932_s2 + $0x50] sm:$0xff] }
  0x53   :  { %936 = vmatprep.subr.mxu0 %v768_v48  ;;  %319 = vrot.lane.b32.xlu0 %v298_v0, %s12724_s12  ;;  %v780_v48 = vld [vmem:[%s18932_s2 + $0x88] sm:$0xff] }
  0x54   :  { %321 = vrot.lane.b32.xlu1 %v299_v49, %s12724_s12  ;;  %v785_v49 = vld [vmem:[%s18932_s2 + $0xb0] sm:$0xff] }
  0x57   :  { %323 = vrot.lane.b32.xlu0 %v300_v14, %s12724_s12 }
  0x58   :  { %325 = vrot.lane.b32.xlu1 %v302_v24, %s12724_s12 }
  0x5b   :  { %327 = vrot.lane.b32.xlu0 %v304_v20, %s12724_s12 }
  0x5c   :  { %329 = vrot.lane.b32.xlu1 %v306_v55, %s12724_s12 }
  0xb9   :  { %v308_v0 = vpop.permute.xlu0 %307 }
  0xba   :  { %v312_v4 = vpop.permute.xlu1 %311  ;;  %356 = vst.msk [vmem:[#allocation2] sm:$0xfe] %vm355_vm14, %v308_v0 }
  0xbb   :  { %360 = vst.msk [vmem:[#allocation2 + $0x18] sm:$0xfe] %vm359_vm15, %v312_v4  ;;  %390 = vst.msk [vmem:[#allocation2] sm:$0xfe] %vm359_vm15, %v18936_v1 }
  0xbc   :  { %395 = vst.msk [vmem:[#allocation2 + $0x18] sm:$0xfe] %vm394_vm2, %v18936_v1 }
  0xbd   :  { %v310_v50 = vpop.permute.xlu0 %309 }
  0xbe   :  { %v314_v14 = vpop.permute.xlu1 %313  ;;  %v331_v24 = vsel %vm215_vm1, %v308_v0, %v310_v50  ;;  %v332_v61 = vsel %vm215_vm1, %v310_v50, %v312_v4 }
  0xbf   :  { %362 = vst.msk [vmem:[#allocation2 + $0x20] sm:$0x1f] %vm361_vm3, %v314_v14  ;;  %357 = vst [vmem:[#allocation2 + $0x8] sm:$0xfe] %v331_v24 }
  0xc0   :  { %358 = vst [vmem:[#allocation2 + $0x10] sm:$0xfe] %v332_v61  ;;  %391 = vst.msk [vmem:[#allocation2 + $0x20] sm:$0x1f] %vm365_vm4, %v18936_v1 }
  0xc2   :  { %v13270_v55 = vld [vmem:[#allocation2] sm:$0xff] }
  0xc3   :  { %v13268_v20 = vld [vmem:[#allocation2 + $0x18] sm:$0xff]  ;;  %4013 = vst [vmem:[#allocation2] sm:$0x3] %v18936_v1 }
  0xc4   :  { %4016 = vst [vmem:[#allocation2 + $0x18] sm:$0x3] %v18936_v1 }
 0x120   :  { %v12011_v40 = vpop.f32.mrb[0].mxu0 }
 0x121   :  { %v12012_v41 = vpop.f32.mrb[1].mxu0 }
 0x122   :  { %v12013_v42 = vadd.f32 %v12012_v41, %v12011_v40 }
 0x123   :  { %v646_v43 = vpop.f32.mrb[0].mxu1 }
 0x124   :  { %v647_v44 = vadd.f32 %v12013_v42, %v646_v43  ;;  %v12245_v45 = vpop.f32.mrb[1].mxu1  ;;  %v765_v42 = vld [vmem:[%s18932_s2 + $0x10] sm:$0xff]  ;;  %v770_v43 = vld [vmem:[%s18932_s2 + $0x38] sm:$0xff] }
 0x125   :  { %v776_v45 = vld [vmem:[%s18932_s2 + $0x68] sm:$0xff] }
 0x126   :  { %v650_v10 = vmul.f32 0.0069444445, %v647_v44  ;;  %v771_v44 = vld [vmem:[%s18932_s2 + $0x40] sm:$0xff] }
 0x128   :  { %12255 = vmatmul.mubr.msk.f32.vlgmr.msra.gmra.mrb[2].mxu0 %vm215_vm1, %v650_v10  ;;  %v769_v10 = vld [vmem:[%s18932_s2 + $0x30] sm:$0xff] }
 0x129   :  { %1000 = vmatprep.mubr.f32.mxu0 %v18936_v1  ;;  %937 = vmatpush1.msra.mxu0 %v767_v51  ;;  %v779_v51 = vld [vmem:[%s18932_s2 + $0x80] sm:$0xff] }
 0x12a   :  { %1078 = vmatprep.subr.mxu0 %v772_v52  ;;  %v778_v52 = vld [vmem:[%s18932_s2 + $0x78] sm:$0xff]  ;;  %s12726_s2 = smov 64  }
 0x1fb   :  { %v726_v62 = vpop.f32.mrb[2].mxu0 }
 0x1fc   :  { %v731_v32 = vsel %vm19015_vm12, %v726_v62, 0.0  ;;  %v12256_v8 = vpop.f32.mrb[3].mxu0 }
 0x1fd   :  { %v732_v7 = vrot.slane %v731_v32, 4  ;;  %v316_v8 = vpop.permute.xlu0 %315 }
 0x1ff   :  { %v733_v11 = vadd.f32 %v732_v7, %v731_v32  ;;  %v13279_v32 = vld [vmem:[#allocation2 + $0x10] sm:$0xff]  ;;  %v318_v7 = vpop.permute.xlu1 %317 }
 0x200   :  { %4015 = vst [vmem:[#allocation2 + $0x10] sm:$0x3] %v18936_v1  ;;  %366 = vst.msk [vmem:[#allocation2 + $0x38] sm:$0x1f] %vm365_vm4, %v318_v7 }
 0x201   :  { %v734_v15 = vrot.slane %v733_v11, 2  ;;  %397 = vst.msk [vmem:[#allocation2 + $0x38] sm:$0x1f] %vm396_vm5, %v18936_v1 }
 0x203   :  { %v735_v12 = vadd.f32 %v734_v15, %v733_v11  ;;  %v333_v11 = vsel %vm215_vm1, %v314_v14, %v316_v8  ;;  %v334_v15 = vsel %vm215_vm1, %v316_v8, %v318_v7 }
 0x204   :  { %363 = vst [vmem:[#allocation2 + $0x28] sm:$0x1f] %v333_v11  ;;  %364 = vst [vmem:[#allocation2 + $0x30] sm:$0x1f] %v334_v15 }
 0x205   :  { %v736_v16 = vrot.slane %v735_v12, 1 }
 0x207   :  { %v737_v17 = vadd.f32 %v736_v16, %v735_v12  ;;  %v320_v12 = vpop.permute.xlu0 %319  ;;  %v322_v16 = vpop.permute.xlu1 %321 }
 0x208   :  { %367 = vst.msk [vmem:[#allocation2 + $0x40] sm:$0xfe] %vm355_vm14, %v320_v12  ;;  %vm19013_vm14 = vcmask 785408  }
 0x209   :  { %v738_v18 = vmul.f32 0.5, %v737_v17  ;;  %392 = vst.msk [vmem:[#allocation2 + $0x40] sm:$0xfe] %vm359_vm15, %v18936_v1 }
 0x20b   :  { %v739_v19 = vsub.f32 %v726_v62, %v738_v18  ;;  %v13277_v62 = vld [vmem:[#allocation2 + $0x8] sm:$0xff]  ;;  %v324_v17 = vpop.permute.xlu0 %323  ;;  %v326_v18 = vpop.permute.xlu1 %325 }
 0x20c   :  { %4014 = vst [vmem:[#allocation2 + $0x8] sm:$0x3] %v18936_v1  ;;  %370 = vst.msk [vmem:[#allocation2 + $0x58] sm:$0xfe] %vm359_vm15, %v324_v17  ;;  %vm19010_vm15 = vcmask 1043459  }
 0x20d   :  { %v740_v21 = vmul.f32 %v739_v19, %v739_v19  ;;  %371 = vst.msk [vmem:[#allocation2 + $0x60] sm:$0x1f] %vm361_vm3, %v326_v18 }
 0x20e   :  { %398 = vst.msk [vmem:[#allocation2 + $0x58] sm:$0xfe] %vm394_vm2, %v18936_v1  ;;  %vm19018_vm2 = vcmask 1041408  }
 0x20f   :  { %v741_v22 = vsel %vm19015_vm12, %v740_v21, 0.0  ;;  %393 = vst.msk [vmem:[#allocation2 + $0x60] sm:$0x1f] %vm365_vm4, %v18936_v1  ;;  %v328_v21 = vpop.permute.xlu0 %327 }
 0x210   :  { %v742_v23 = vrot.slane %v741_v22, 4 }
 0x212   :  { %v743_v25 = vadd.f32 %v742_v23, %v741_v22  ;;  %v330_v22 = vpop.permute.xlu1 %329  ;;  %v13300_v23 = vld [vmem:[#allocation2 + $0x40] sm:$0xff] }
 0x213   :  { %374 = vst.msk [vmem:[#allocation2 + $0x78] sm:$0x1f] %vm365_vm4, %v330_v22  ;;  %4017 = vst [vmem:[#allocation2 + $0x40] sm:$0x3] %v18936_v1 }
 0x214   :  { %v744_v26 = vrot.slane %v743_v25, 2  ;;  %399 = vst.msk [vmem:[#allocation2 + $0x78] sm:$0x1f] %vm396_vm5, %v18936_v1 }
 0x216   :  { %v745_v27 = vadd.f32 %v744_v26, %v743_v25  ;;  %v336_v25 = vsel %vm215_vm1, %v322_v16, %v324_v17  ;;  %v337_v26 = vsel %vm215_vm1, %v326_v18, %v328_v21 }
 0x217   :  { %369 = vst [vmem:[#allocation2 + $0x50] sm:$0xfe] %v336_v25  ;;  %372 = vst [vmem:[#allocation2 + $0x68] sm:$0x1f] %v337_v26 }
 0x218   :  { %v746_v28 = vrot.slane %v745_v27, 1 }
 0x21a   :  { %v747_v29 = vadd.f32 %v746_v28, %v745_v27  ;;  %v338_v27 = vsel %vm215_vm1, %v328_v21, %v330_v22 }
 0x21b   :  { %373 = vst [vmem:[#allocation2 + $0x70] sm:$0x1f] %v338_v27 }
 0x21c   :  { %v748_v30 = vmul.f32 0.5, %v747_v29  ;;  %v13311_v29 = vld [vmem:[#allocation2 + $0x58] sm:$0xff] }
 0x21d   :  { %4020 = vst [vmem:[#allocation2 + $0x58] sm:$0x3] %v18936_v1 }
 0x21e   :  { %v749_v31 = vadd.f32 1e-05, %v748_v30  ;;  %v13315_v30 = vld [vmem:[#allocation2 + $0x50] sm:$0xff] }
 0x21f   :  { %4019 = vst [vmem:[#allocation2 + $0x50] sm:$0x3] %v18936_v1 }
 0x220   :  { %12677 = vrsqrt.f32 %v749_v31  ;;  %v12725_v31 = vmov 1983009808  }
 0x22a   :  { %v12678_v33 = vpop.eup %12677 }
 0x22b   :  { %v751_v37 = vmul.f32 %v12678_v33, %v739_v19  ;;  %v335_v19 = vsel %vm215_vm1, %v320_v12, %v322_v16  ;;  %v1817_v33 = vunpack.c.l.s4 %v12725_v31  ;;  %v13330_v31 = vsub.s32 0, %v12779_v5 }
 0x22c   :  { %368 = vst [vmem:[#allocation2 + $0x48] sm:$0xfe] %v335_v19 }
 0x22d   :  { %v756_v39 = vmul.f32 %v11836_v36, %v751_v37  ;;  %19257 = vst [vmem:[#allocation11_spill] sm:$0xff] %v13330_v31 }
 0x22f   :  { %v761_v40 = vadd.f32 %v11837_v38, %v756_v39  ;;  %v1818_v38 = vunpack.c.0.s8 %v1817_v33 }
 0x231   :  { %v13152_v41 = vmax.f32 %v761_v40, 0.0 }
 0x233   :  { %11838 = vmatmul.mubr.msk.f32.vlgmr.msra.gmra.mrb[2].mxu1 %vm19014_vm13, %v13152_v41  ;;  %11840 = vmatmul.mubr.msk.f32.vlgmr.msra.gmra.mrb[4].mxu0 %vm19014_vm13, %v13152_v41  ;;  %v13309_v28 = vld [vmem:[#allocation2 + $0x48] sm:$0xff] }
 0x234   :  { %866 = vmatpush1.msra.mxu1 %v765_v42  ;;  %929 = vmatprep.mubr.f32.mxu1 %v18936_v1  ;;  %4018 = vst [vmem:[#allocation2 + $0x48] sm:$0x3] %v18936_v1 }
 0x235   :  { %1007 = vmatprep.subr.mxu1 %v770_v43  ;;  %1079 = vmatpush1.msra.mxu0 %v771_v44  ;;  %v13319_v43 = vsub.s32 %v1818_v38, %v12779_v5  ;;  %v13333_v38 = vsub.s32 1, %v12779_v5 }
 0x236   :  { %1142 = vmatprep.mubr.f32.mxu0 %v18936_v1  ;;  %1220 = vmatprep.subr.mxu0 %v776_v45 }
 0x237   :  { %11839 = vmatmul.mubr.msk.f32.vlgmr.msra.gmra.mrb[4].mxu1 %vm19014_vm13, %v13152_v41  ;;  %11842 = vmatmul.mubr.msk.f32.vlgmr.msra.gmra.mrb[6].mxu0 %vm19014_vm13, %v13152_v41  ;;  %19256 = vst [vmem:[#allocation10_spill] sm:$0xff] %v13319_v43  ;;  %19258 = vst [vmem:[#allocation12_spill] sm:$0xff] %v13333_v38 }
 0x238   :  { %1008 = vmatpush1.msra.mxu1 %v769_v10  ;;  %1071 = vmatprep.mubr.f32.mxu1 %v18936_v1 }
 0x239   :  { %1221 = vmatpush1.msra.mxu0 %v775_v46  ;;  %1284 = vmatprep.mubr.f32.mxu0 %v18936_v1 }
 0x23a   :  { %1149 = vmatprep.subr.mxu1 %v774_v47  ;;  %1362 = vmatprep.subr.mxu0 %v780_v48 }
 0x23b   :  { %11841 = vmatmul.mubr.msk.f32.vlgmr.msra.gmra.mrb[6].mxu1 %vm19014_vm13, %v13152_v41  ;;  %11844 = vmatmul.mubr.msk.f32.vlgmr.msra.gmra.mrb[8].mxu0 %vm19014_vm13, %v13152_v41 }
 0x23c   :  { %1150 = vmatpush1.msra.mxu1 %v773_v9  ;;  %1213 = vmatprep.mubr.f32.mxu1 %v18936_v1 }
 0x23d   :  { %1363 = vmatpush1.msra.mxu0 %v779_v51  ;;  %1426 = vmatprep.mubr.f32.mxu0 %v18936_v1 }
 0x23e   :  { %1291 = vmatprep.subr.mxu1 %v778_v52  ;;  %1504 = vmatprep.subr.mxu0 %v784_v53 }
 0x23f   :  { %11843 = vmatmul.mubr.msk.f32.vlgmr.msra.gmra.mrb[8].mxu1 %vm19014_vm13, %v13152_v41  ;;  %11846 = vmatmul.mubr.msk.f32.vlgmr.msra.gmra.mrb[10].mxu0 %vm19014_vm13, %v13152_v41 }
 0x240   :  { %1292 = vmatpush1.msra.mxu1 %v777_v54  ;;  %1355 = vmatprep.mubr.f32.mxu1 %v18936_v1 }
 0x241   :  { %1505 = vmatpush1.msra.mxu0 %v783_v56  ;;  %1568 = vmatprep.mubr.f32.mxu0 %v18936_v1 }
 0x242   :  { %1433 = vmatprep.subr.mxu1 %v782_v57  ;;  %1646 = vmatprep.subr.mxu0 %v788_v58 }
 0x243   :  { %11845 = vmatmul.mubr.msk.f32.vlgmr.msra.gmra.mrb[10].mxu1 %vm19014_vm13, %v13152_v41  ;;  %11848 = vmatmul.mubr.msk.f32.vlgmr.msra.gmra.mrb[12].mxu0 %vm19014_vm13, %v13152_v41 }
 0x244   :  { %1434 = vmatpush1.msra.mxu1 %v781_v59  ;;  %1497 = vmatprep.mubr.f32.mxu1 %v18936_v1 }
 0x245   :  { %1647 = vmatpush1.msra.mxu0 %v787_v60  ;;  %1710 = vmatprep.mubr.f32.mxu0 %v18936_v1 }
 0x246   :  { %1575 = vmatprep.subr.mxu1 %v786_v3 }
 0x247   :  { %11847 = vmatmul.mubr.msk.f32.vlgmr.msra.gmra.mrb[12].mxu1 %vm19014_vm13, %v13152_v41  ;;  %11850 = vmatmul.mubr.msk.f32.vlgmr.msra.gmra.mrb[14].mxu0 %vm19014_vm13, %v13152_v41 }
 0x248   :  { %1576 = vmatpush1.msra.mxu1 %v785_v49  ;;  %1639 = vmatprep.mubr.f32.mxu1 %v18936_v1 }
 0x249   :  { %12257 = vmatprep.subr.mxu1 %v18936_v1 }
 0x24b   :  { %11849 = vmatmul.mubr.msk.f32.vlgmr.msra.gmra.mrb[14].mxu1 %vm19014_vm13, %v13152_v41 }
 0x24c   :  { %12258 = vmatpush3.msra.mxu1 %v789_v63  ;;  %12259 = vmatprep.mubr.msk.f32.mxu1 %vm12723_vm7, %v18936_v1 }
 0x24d   :  { %12499 = vmatprep.subr.bf16.mxu1 %v18938_v2 }
 0x24f   :  { %12260 = vmatmul.mubr.msk.f32.vlgmr.msra.gmra.mrb[16].mxu1 %vm19014_vm13, %v13152_v41 }
 0x250   :  { %12294 = vmatprep.mubr.msk.f32.mxu1 %vm12723_vm7, %v18936_v1 }
 0x306   :  { %v860_v36 = vpop.f32.mrb[2].mxu1  ;;  %v1002_v37 = vpop.f32.mrb[4].mxu0 }
 0x307   :  { %v862_v39 = vpop.f32.mrb[3].mxu1  ;;  %v1004_v40 = vpop.f32.mrb[5].mxu0 }
 0x308   :  { %v1814_v41 = vcombine.low %v860_v36, %v862_v39  ;;  %v1831_v42 = vcombine.low %v1002_v37, %v1004_v40 }
 0x30a   :  { %v931_v44 = vpop.f32.mrb[4].mxu1  ;;  %v1144_v45 = vpop.f32.mrb[6].mxu0  ;;  %v1822_v9 = vrot.slane %v1814_v41, %v13319_v43  ;;  %v1839_v60 = vrot.slane %v1831_v42, %v13319_v43 }
 0x30b   :  { %v933_v10 = vpop.f32.mrb[5].mxu1  ;;  %v1146_v46 = vpop.f32.mrb[7].mxu0 }
 0x30c   :  { %v1815_v47 = vcombine.low %v931_v44, %v933_v10  ;;  %v1848_v48 = vcombine.low %v1144_v45, %v1146_v46 }
 0x30e   :  { %v1829_v51 = vrot.slane %v1815_v47, %v13319_v43  ;;  %v1073_v52 = vpop.f32.mrb[6].mxu1  ;;  %v1286_v53 = vpop.f32.mrb[8].mxu0  ;;  %v1856_v63 = vrot.slane %v1848_v48, %v13319_v43 }
 0x30f   :  { %v1075_v54 = vpop.f32.mrb[7].mxu1  ;;  %v1288_v56 = vpop.f32.mrb[9].mxu0 }
 0x310   :  { %v1830_v57 = vcombine.low %v1822_v9, %v1829_v51  ;;  %v1832_v58 = vcombine.low %v1073_v52, %v1075_v54  ;;  %v1865_v59 = vcombine.low %v1286_v53, %v1288_v56  ;;  %v13342_v9 = vsub.s32 2, %v12779_v5 }
 0x312   :  { %1939 = vst [vmem:[#allocation3] sm:$0xff] %v1830_v57  ;;  %v1846_v3 = vrot.slane %v1832_v58, %v13319_v43  ;;  %v1215_v4 = vpop.f32.mrb[8].mxu1  ;;  %v1428_v0 = vpop.f32.mrb[10].mxu0  ;;  %v1873_v19 = vrot.slane %v1865_v59, %v13319_v43  ;;  %19259 = vst [vmem:[#allocation13_spill] sm:$0xff] %v13342_v9 }
 0x313   :  { %v1217_v49 = vpop.f32.mrb[9].mxu1  ;;  %v1430_v50 = vpop.f32.mrb[11].mxu0 }
 0x314   :  { %v1847_v14 = vcombine.low %v1839_v60, %v1846_v3  ;;  %v1849_v24 = vcombine.low %v1215_v4, %v1217_v49  ;;  %v1882_v61 = vcombine.low %v1428_v0, %v1430_v50 }
 0x316   :  { %1940 = vst [vmem:[#allocation3 + $0x8] sm:$0xff] %v1847_v14  ;;  %v1863_v8 = vrot.slane %v1849_v24, %v13319_v43  ;;  %v1357_v7 = vpop.f32.mrb[10].mxu1  ;;  %v1570_v11 = vpop.f32.mrb[12].mxu0  ;;  %v1890_v40 = vrot.slane %v1882_v61, %v13319_v43 }
 0x317   :  { %v1359_v15 = vpop.f32.mrb[11].mxu1  ;;  %v1572_v12 = vpop.f32.mrb[13].mxu0 }
 0x318   :  { %v1864_v16 = vcombine.low %v1856_v63, %v1863_v8  ;;  %v1866_v17 = vcombine.low %v1357_v7, %v1359_v15  ;;  %v1899_v18 = vcombine.low %v1570_v11, %v1572_v12 }
 0x31a   :  { %1941 = vst [vmem:[#allocation3 + $0x10] sm:$0xff] %v1864_v16  ;;  %v1880_v21 = vrot.slane %v1866_v17, %v13319_v43  ;;  %v1499_v22 = vpop.f32.mrb[12].mxu1  ;;  %v1712_v25 = vpop.f32.mrb[14].mxu0  ;;  %v1907_v51 = vrot.slane %v1899_v18, %v13319_v43 }
 0x31b   :  { %v1501_v26 = vpop.f32.mrb[13].mxu1  ;;  %v1714_v27 = vpop.f32.mrb[15].mxu0 }
 0x31c   :  { %v1881_v33 = vcombine.low %v1873_v19, %v1880_v21  ;;  %v1883_v36 = vcombine.low %v1499_v22, %v1501_v26  ;;  %v1916_v37 = vcombine.low %v1712_v25, %v1714_v27 }
 0x31d   :  { %v11855_v39 = vld.sshfl [vmem:[#allocation3 + $0x6] sm:$0x77 pattern:$0x75316420] }
 0x31e   :  { %1942 = vst [vmem:[#allocation3 + $0x18] sm:$0xff] %v1881_v33  ;;  %v1897_v41 = vrot.slane %v1883_v36, %v13319_v43  ;;  %v1641_v42 = vpop.f32.mrb[14].mxu1  ;;  %v2253_v44 = vrot.slane %v11855_v39, %v13330_v31  ;;  %v2257_v45 = vrot.slane %v11855_v39, %v13333_v38  ;;  %v2249_v46 = vcombine.high %v11855_v39, %v11855_v39 }
 0x31f   :  { %v1643_v10 = vpop.f32.mrb[15].mxu1  ;;  %v2261_v54 = vrot.slane %v11855_v39, %v13342_v9  ;;  %v1923_v57 = vrot.slane %v1916_v37, %v13319_v43 }
 0x320   :  { %v1898_v47 = vcombine.low %v1890_v40, %v1897_v41  ;;  %v1900_v48 = vcombine.low %v1641_v42, %v1643_v10  ;;  %2274 = vrot.lane.b32.xlu0 %v2253_v44, %s12724_s12  ;;  %2276 = vrot.lane.b32.xlu1 %v2257_v45, %s12724_s12  ;;  %v2265_v56 = vrot.slane %v2249_v46, %v13330_v31 }
 0x321   :  { %v2269_v4 = vrot.slane %v2249_v46, %v13333_v38  ;;  %v2273_v0 = vrot.slane %v2249_v46, %v13342_v9  ;;  %v11858_v49 = vld.sshfl [vmem:[#allocation3 + $0xc] sm:$0x77 pattern:$0x75316420] }
 0x322   :  { %1943 = vst [vmem:[#allocation3 + $0x20] sm:$0xff] %v1898_v47  ;;  %v1914_v52 = vrot.slane %v1900_v48, %v13319_v43  ;;  %v1783_v53 = vpop.f32.mrb[16].mxu1  ;;  %v2776_v50 = vrot.slane %v11858_v49, %v13330_v31  ;;  %v2780_v14 = vrot.slane %v11858_v49, %v13333_v38  ;;  %v2772_v24 = vcombine.high %v11858_v49, %v11858_v49 }
 0x323   :  { %v1930_v58 = vrot.slane %v1783_v53, %v13319_v43  ;;  %v12261_v59 = vpop.f32.mrb[17].mxu1  ;;  %v2784_v61 = vrot.slane %v11858_v49, %v13342_v9 }
 0x324   :  { %v1915_v60 = vcombine.low %v1907_v51, %v1914_v52  ;;  %2278 = vrot.lane.b32.xlu0 %v2261_v54, %s12724_s12  ;;  %2280 = vrot.lane.b32.xlu1 %v2265_v56, %s12724_s12  ;;  %v2788_v63 = vrot.slane %v2772_v24, %v13330_v31  ;;  %v2792_v8 = vrot.slane %v2772_v24, %v13333_v38  ;;  %v13416_v59 = vld [vmem:[#allocation2 + $0x20] sm:$0x3f] }
 0x325   :  { %v1931_v3 = vcombine.low %v1923_v57, %v1930_v58  ;;  %v2796_v7 = vrot.slane %v2772_v24, %v13342_v9  ;;  %v11856_v11 = vld.sshfl [vmem:[#allocation3 + $0x18] sm:$0x77 pattern:$0x75316420] }
 0x326   :  { %1944 = vst [vmem:[#allocation3 + $0x28] sm:$0xff] %v1915_v60  ;;  %v2412_v15 = vrot.slane %v11856_v11, %v13330_v31  ;;  %v2416_v12 = vrot.slane %v11856_v11, %v13333_v38  ;;  %v2408_v16 = vcombine.high %v11856_v11, %v11856_v11  ;;  %v2420_v17 = vrot.slane %v11856_v11, %v13342_v9  ;;  %v13432_v11 = vld [vmem:[#allocation2 + $0x60] sm:$0x3f] }
 0x327   :  { %1945 = vst [vmem:[#allocation3 + $0x30] sm:$0x3f] %v1931_v3 }
 0x328   :  { %2282 = vrot.lane.b32.xlu0 %v2269_v4, %s12724_s12  ;;  %2284 = vrot.lane.b32.xlu1 %v2273_v0, %s12724_s12  ;;  %v2424_v18 = vrot.slane %v2408_v16, %v13330_v31  ;;  %v2428_v19 = vrot.slane %v2408_v16, %v13333_v38  ;;  %v2432_v21 = vrot.slane %v2408_v16, %v13342_v9 }
 0x329   :  { %v11859_v22 = vld.sshfl [vmem:[#allocation3 + $0x1e] sm:$0x77 pattern:$0x75316420] }
 0x32a   :  { %v2935_v25 = vrot.slane %v11859_v22, %v13330_v31  ;;  %v2939_v26 = vrot.slane %v11859_v22, %v13333_v38  ;;  %v2931_v27 = vcombine.high %v11859_v22, %v11859_v22  ;;  %v2943_v33 = vrot.slane %v11859_v22, %v13342_v9 }
 0x32c   :  { %2797 = vrot.lane.b32.xlu0 %v2776_v50, %s12726_s2  ;;  %2799 = vrot.lane.b32.xlu1 %v2780_v14, %s12726_s2  ;;  %v2947_v36 = vrot.slane %v2931_v27, %v13330_v31  ;;  %v2951_v37 = vrot.slane %v2931_v27, %v13333_v38  ;;  %v2955_v39 = vrot.slane %v2931_v27, %v13342_v9  ;;  %v13421_v50 = vld [vmem:[#allocation2 + $0x30] sm:$0x3f] }
 0x32d   :  { %v11857_v40 = vld.sshfl [vmem:[#allocation3 + $0x2a] sm:$0x77 pattern:$0x75316420] }
 0x32e   :  { %v2594_v41 = vrot.slane %v11857_v40, %v13330_v31  ;;  %v2598_v42 = vrot.slane %v11857_v40, %v13333_v38  ;;  %v11860_v44 = vld.sshfl [vmem:[#allocation3 + $0x30] sm:$0x77 pattern:$0x75316420]  ;;  %v2602_v45 = vrot.slane %v11857_v40, %v13342_v9  ;;  %v2590_v46 = vcombine.high %v11857_v40, %v11857_v40 }
 0x32f   :  { %v3121_v10 = vrot.slane %v11860_v44, %v13333_v38  ;;  %v3117_v47 = vrot.slane %v11860_v44, %v13330_v31  ;;  %v3125_v51 = vrot.slane %v11860_v44, %v13342_v9  ;;  %v3113_v53 = vcombine.high %v11860_v44, %v11860_v44  ;;  %v13461_v44 = vld [vmem:[#allocation2 + $0x70] sm:$0x3f] }
 0x330   :  { %2801 = vrot.lane.b32.xlu0 %v2784_v61, %s12726_s2  ;;  %2803 = vrot.lane.b32.xlu1 %v2788_v63, %s12726_s2  ;;  %v2606_v48 = vrot.slane %v2590_v46, %v13330_v31  ;;  %v2614_v52 = vrot.slane %v2590_v46, %v13342_v9  ;;  %v2610_v54 = vrot.slane %v2590_v46, %v13333_v38  ;;  %v13425_v61 = vld [vmem:[#allocation2 + $0x38] sm:$0x3f] }
 0x331   :  { %v3129_v56 = vrot.slane %v3113_v53, %v13330_v31  ;;  %v3133_v57 = vrot.slane %v3113_v53, %v13333_v38  ;;  %v3137_v58 = vrot.slane %v3113_v53, %v13342_v9 }
 0x334   :  { %2805 = vrot.lane.b32.xlu0 %v2792_v8, %s12726_s2  ;;  %2807 = vrot.lane.b32.xlu1 %v2796_v7, %s12726_s2 }
 0x338   :  { %2433 = vrot.lane.b32.xlu0 %v2412_v15, %s12724_s12  ;;  %2435 = vrot.lane.b32.xlu1 %v2416_v12, %s12724_s12 }
 0x33c   :  { %2437 = vrot.lane.b32.xlu0 %v2420_v17, %s12724_s12  ;;  %2439 = vrot.lane.b32.xlu1 %v2424_v18, %s12724_s12  ;;  %v13440_v17 = vld [vmem:[#allocation2 + $0x28] sm:$0x3f] }
 0x340   :  { %2441 = vrot.lane.b32.xlu0 %v2428_v19, %s12724_s12  ;;  %2443 = vrot.lane.b32.xlu1 %v2432_v21, %s12724_s12 }
 0x344   :  { %2956 = vrot.lane.b32.xlu0 %v2935_v25, %s12726_s2  ;;  %2958 = vrot.lane.b32.xlu1 %v2939_v26, %s12726_s2  ;;  %v13445_v25 = vld [vmem:[#allocation2 + $0x78] sm:$0x3f] }
 0x348   :  { %2960 = vrot.lane.b32.xlu0 %v2943_v33, %s12726_s2  ;;  %2962 = vrot.lane.b32.xlu1 %v2947_v36, %s12726_s2  ;;  %v13453_v36 = vld [vmem:[#allocation2 + $0x68] sm:$0x3f] }
 0x34c   :  { %2964 = vrot.lane.b32.xlu0 %v2951_v37, %s12726_s2  ;;  %2966 = vrot.lane.b32.xlu1 %v2955_v39, %s12726_s2 }
 0x350   :  { %2615 = vrot.lane.b32.xlu0 %v2594_v41, %s12724_s12  ;;  %2617 = vrot.lane.b32.xlu1 %v2598_v42, %s12724_s12 }
 0x354   :  { %2619 = vrot.lane.b32.xlu0 %v2602_v45, %s12724_s12  ;;  %3140 = vrot.lane.b32.xlu1 %v3121_v10, %s12726_s2 }
 0x358   :  { %3138 = vrot.lane.b32.xlu0 %v3117_v47, %s12726_s2  ;;  %2621 = vrot.lane.b32.xlu1 %v2606_v48, %s12724_s12 }
 0x35c   :  { %3142 = vrot.lane.b32.xlu0 %v3125_v51, %s12726_s2  ;;  %2625 = vrot.lane.b32.xlu1 %v2614_v52, %s12724_s12 }
 0x360   :  { %2623 = vrot.lane.b32.xlu0 %v2610_v54, %s12724_s12  ;;  %3144 = vrot.lane.b32.xlu1 %v3129_v56, %s12726_s2 }
 0x364   :  { %3146 = vrot.lane.b32.xlu0 %v3133_v57, %s12726_s2  ;;  %3148 = vrot.lane.b32.xlu1 %v3137_v58, %s12726_s2 }
 0x392   :  { %v2275_v60 = vpop.permute.xlu0 %2274  ;;  %v2277_v4 = vpop.permute.xlu1 %2276 }
 0x393   :  { %v2302_v3 = vmul.f32 %v2275_v60, %v13416_v59  ;;  %v2298_v49 = vmul.f32 %v2275_v60, %v13270_v55  ;;  %v2286_v12 = vsel %vm215_vm1, %v2275_v60, %v2277_v4 }
 0x394   :  { %v2303_v18 = vmul.f32 %v2286_v12, %v13440_v17  ;;  %v2299_v26 = vmul.f32 %v2286_v12, %v13277_v62 }
 0x395   :  { %2338 = vrot.lane.b32.xlu0 %v2302_v3, %s12727_s10 }
 0x396   :  { %v2279_v0 = vpop.permute.xlu0 %2278  ;;  %v2281_v7 = vpop.permute.xlu1 %2280 }
 0x397   :  { %v2287_v14 = vsel %vm215_vm1, %v2277_v4, %v2279_v0  ;;  %v2305_v63 = vmul.f32 %v2279_v0, %v13425_v61  ;;  %v2301_v15 = vmul.f32 %v2279_v0, %v13268_v20  ;;  %v2310_v16 = vmul.f32 %v2281_v7, %v13432_v11 }
 0x398   :  { %v2304_v24 = vmul.f32 %v2287_v14, %v13421_v50  ;;  %v2300_v8 = vmul.f32 %v2287_v14, %v13279_v32  ;;  %v2306_v19 = vmul.f32 %v2281_v7, %v13300_v23 }
 0x399   :  { %2330 = vrot.lane.b32.xlu0 %v2298_v49, %s12727_s10 }
 0x39a   :  { %2342 = vrot.lane.b32.xlu1 %v2304_v24, %s12727_s10  ;;  %v2283_v21 = vpop.permute.xlu0 %2282  ;;  %v2285_v22 = vpop.permute.xlu1 %2284 }
 0x39b   :  { %v2288_v27 = vsel %vm215_vm1, %v2281_v7, %v2283_v21  ;;  %v2313_v33 = vmul.f32 %v2285_v22, %v13445_v25  ;;  %v2309_v40 = vmul.f32 %v2285_v22, %v13311_v29  ;;  %v2289_v41 = vsel %vm215_vm1, %v2283_v21, %v2285_v22 }
 0x39c   :  { %v2311_v37 = vmul.f32 %v2288_v27, %v13453_v36  ;;  %v2308_v42 = vmul.f32 %v2289_v41, %v13315_v30  ;;  %v2312_v45 = vmul.f32 %v2289_v41, %v13461_v44  ;;  %v2307_v48 = vmul.f32 %v2288_v27, %v13309_v28 }
 0x39d   :  { %2344 = vrot.lane.b32.xlu0 %v2305_v63, %s12727_s10 }
 0x39e   :  { %2334 = vrot.lane.b32.xlu1 %v2300_v8, %s12727_s10  ;;  %v2798_v39 = vpop.permute.xlu0 %2797  ;;  %v2800_v47 = vpop.permute.xlu1 %2799 }
 0x39f   :  { %v2826_v46 = vmul.f32 %v2798_v39, %v13416_v59  ;;  %v2822_v52 = vmul.f32 %v2798_v39, %v13270_v55  ;;  %v2810_v3 = vsel %vm19016_vm8, %v2798_v39, %v2800_v47 }
 0x3a0   :  { %v2827_v14 = vmul.f32 %v2810_v3, %v13440_v17  ;;  %v2823_v7 = vmul.f32 %v2810_v3, %v13277_v62 }
 0x3a1   :  { %2336 = vrot.lane.b32.xlu0 %v2301_v15, %s12727_s10 }
 0x3a2   :  { %2354 = vrot.lane.b32.xlu1 %v2310_v16, %s12727_s10  ;;  %v2802_v10 = vpop.permute.xlu0 %2801  ;;  %v2804_v54 = vpop.permute.xlu1 %2803 }
 0x3a3   :  { %v2811_v51 = vsel %vm19016_vm8, %v2800_v47, %v2802_v10  ;;  %v2829_v57 = vmul.f32 %v2802_v10, %v13425_v61  ;;  %v2825_v60 = vmul.f32 %v2802_v10, %v13268_v20  ;;  %v2834_v0 = vmul.f32 %v2804_v54, %v13432_v11 }
 0x3a4   :  { %v2828_v53 = vmul.f32 %v2811_v51, %v13421_v50  ;;  %v2824_v58 = vmul.f32 %v2811_v51, %v13279_v32  ;;  %v2830_v24 = vmul.f32 %v2804_v54, %v13300_v23 }
 0x3a5   :  { %2340 = vrot.lane.b32.xlu0 %v2303_v18, %s12727_s10 }
 0x3a6   :  { %2346 = vrot.lane.b32.xlu1 %v2306_v19, %s12727_s10  ;;  %v2806_v56 = vpop.permute.xlu0 %2805  ;;  %v2808_v4 = vpop.permute.xlu1 %2807 }
 0x3a7   :  { %v2812_v15 = vsel %vm19016_vm8, %v2804_v54, %v2806_v56  ;;  %v2837_v12 = vmul.f32 %v2808_v4, %v13445_v25  ;;  %v2833_v19 = vmul.f32 %v2808_v4, %v13311_v29  ;;  %v2813_v21 = vsel %vm19016_vm8, %v2806_v56, %v2808_v4 }
 0x3a8   :  { %v2835_v16 = vmul.f32 %v2812_v15, %v13453_v36  ;;  %v2831_v10 = vmul.f32 %v2812_v15, %v13309_v28 }
 0x3a9   :  { %2332 = vrot.lane.b32.xlu0 %v2299_v26, %s12727_s10  ;;  %v2832_v26 = vmul.f32 %v2813_v21, %v13315_v30 }
 0x3aa   :  { %2360 = vrot.lane.b32.xlu1 %v2313_v33, %s12727_s10  ;;  %v2434_v49 = vpop.permute.xlu0 %2433  ;;  %v2436_v63 = vpop.permute.xlu1 %2435  ;;  %v2836_v33 = vmul.f32 %v2813_v21, %v13461_v44 }
 0x3ab   :  { %v2461_v27 = vmul.f32 %v2434_v49, %v13416_v59 }
 0x3ad   :  { %2356 = vrot.lane.b32.xlu0 %v2311_v37, %s12727_s10  ;;  %v2490_v41 = vrot.slane %v2461_v27, 1 }
 0x3ae   :  { %2352 = vrot.lane.b32.xlu1 %v2309_v40, %s12727_s10  ;;  %v2438_v8 = vpop.permute.xlu0 %2437  ;;  %v2440_v18 = vpop.permute.xlu1 %2439 }
 0x3af   :  { %v2446_v37 = vsel %vm215_vm1, %v2436_v63, %v2438_v8  ;;  %v2469_v4 = vmul.f32 %v2440_v18, %v13432_v11 }
 0x3b0   :  { %v2459_v47 = vmul.f32 %v2446_v37, %v13279_v32 }
 0x3b1   :  { %2350 = vrot.lane.b32.xlu0 %v2308_v42, %s12727_s10  ;;  %v2464_v42 = vmul.f32 %v2438_v8, %v13425_v61 }
 0x3b2   :  { %2358 = vrot.lane.b32.xlu1 %v2312_v45, %s12727_s10  ;;  %v2442_v22 = vpop.permute.xlu0 %2441  ;;  %v2444_v39 = vpop.permute.xlu1 %2443  ;;  %v2445_v45 = vsel %vm215_vm1, %v2434_v49, %v2436_v63 }
 0x3b3   :  { %v2462_v51 = vmul.f32 %v2445_v45, %v13440_v17  ;;  %v2472_v15 = vmul.f32 %v2444_v39, %v13445_v25 }
 0x3b5   :  { %2862 = vrot.lane.b32.xlu0 %v2826_v46, %s12726_s2  ;;  %v2463_v46 = vmul.f32 %v2446_v37, %v13421_v50  ;;  %v2511_v27 = vrot.slane %v2472_v15, 1  ;;  %v2465_v37 = vmul.f32 %v2440_v18, %v13300_v23 }
 0x3b6   :  { %2348 = vrot.lane.b32.xlu1 %v2307_v48, %s12727_s10  ;;  %v13504_v40 = vpop.permute.xlu0 %2956  ;;  %v2499_v48 = vrot.slane %v2464_v42, 1 }
 0x3b7   :  { %v2496_v54 = vrot.slane %v2463_v46, 1  ;;  %v2468_v46 = vmul.f32 %v2444_v39, %v13311_v29 }
 0x3b9   :  { %2854 = vrot.lane.b32.xlu0 %v2822_v52, %s12726_s2  ;;  %v2457_v52 = vmul.f32 %v2434_v49, %v13270_v55 }
 0x3ba   :  { %2866 = vrot.lane.b32.xlu1 %v2828_v53, %s12726_s2  ;;  %v13515_v53 = vpop.permute.xlu1 %2958  ;;  %v13517_v56 = vpop.permute.xlu0 %2960 }
 0x3bb   :  { %v2489_v3 = vrot.slane %v2457_v52, 1  ;;  %v2968_v15 = vsel %vm19016_vm8, %v13504_v40, %v13515_v53 }
 0x3bd   :  { %2868 = vrot.lane.b32.xlu0 %v2829_v57, %s12726_s2  ;;  %v2495_v57 = vrot.slane %v2459_v47, 1  ;;  %v2491_v63 = vsel %vm19012_vm9, %v2489_v3, %v2490_v41  ;;  %v2501_v47 = vrot.slane %v2465_v37, 1 }
 0x3be   :  { %2858 = vrot.lane.b32.xlu1 %v2824_v58, %s12726_s2  ;;  %v2493_v58 = vrot.slane %v2462_v51, 1  ;;  %v13525_v49 = vpop.permute.xlu1 %2962 }
 0x3c1   :  { %2860 = vrot.lane.b32.xlu0 %v2825_v60, %s12726_s2  ;;  %v2460_v60 = vmul.f32 %v2438_v8, %v13268_v20 }
 0x3c2   :  { %2878 = vrot.lane.b32.xlu1 %v2834_v0, %s12726_s2  ;;  %v2497_v0 = vsel %vm19012_vm9, %v2495_v57, %v2496_v54  ;;  %v13537_v21 = vpop.permute.xlu1 %2966 }
 0x3c3   :  { %v2498_v8 = vrot.slane %v2460_v60, 1 }
 0x3c5   :  { %2864 = vrot.lane.b32.xlu0 %v2827_v14, %s12726_s2  ;;  %v2458_v14 = vmul.f32 %v2445_v45, %v13277_v62 }
 0x3c6   :  { %2870 = vrot.lane.b32.xlu1 %v2830_v24, %s12726_s2  ;;  %v13529_v24 = vpop.permute.xlu0 %2964 }
 0x3c9   :  { %2856 = vrot.lane.b32.xlu0 %v2823_v7, %s12726_s2  ;;  %v2502_v7 = vrot.slane %v2469_v4, 1 }
 0x3ca   :  { %2884 = vrot.lane.b32.xlu1 %v2837_v12, %s12726_s2  ;;  %v2448_v12 = vsel %vm215_vm1, %v2442_v22, %v2444_v39  ;;  %v2984_v39 = vmul.f32 %v13504_v40, %v13416_v59 }
 0x3cb   :  { %v2503_v57 = vsel %vm19012_vm9, %v2501_v47, %v2502_v7  ;;  %v2992_v47 = vmul.f32 %v13525_v49, %v13432_v11 }
 0x3cd   :  { %2880 = vrot.lane.b32.xlu0 %v2835_v16, %s12726_s2  ;;  %v2492_v16 = vrot.slane %v2458_v14, 1 }
 0x3ce   :  { %2876 = vrot.lane.b32.xlu1 %v2833_v19, %s12726_s2  ;;  %v2447_v19 = vsel %vm215_vm1, %v2440_v18, %v2442_v22 }
 0x3cf   :  { %v2470_v42 = vmul.f32 %v2447_v19, %v13453_v36  ;;  %v2494_v45 = vsel %vm19012_vm9, %v2492_v16, %v2493_v58 }
 0x3d1   :  { %2874 = vrot.lane.b32.xlu0 %v2832_v26, %s12726_s2  ;;  %v2500_v26 = vsel %vm19012_vm9, %v2498_v8, %v2499_v48  ;;  %v2505_v51 = vrot.slane %v2470_v42, 1  ;;  %v3013_v8 = vrot.slane %v2984_v39, 1 }
 0x3d2   :  { %2882 = vrot.lane.b32.xlu1 %v2836_v33, %s12726_s2  ;;  %v2471_v33 = vmul.f32 %v2448_v12, %v13461_v44 }
 0x3d4   :  { %v2508_v22 = vrot.slane %v2471_v33, 1 }
 0x3d5   :  { %2521 = vrot.lane.b32.xlu0 %v2490_v41, %s12727_s10  ;;  %v13542_v41 = vpop.permute.xlu0 %2615 }
 0x3d6   :  { %2872 = vrot.lane.b32.xlu1 %v2831_v10, %s12726_s2  ;;  %v2467_v10 = vmul.f32 %v2448_v12, %v13315_v30 }
 0x3d8   :  { %v2507_v52 = vrot.slane %v2467_v10, 1 }
 0x3d9   :  { %2527 = vrot.lane.b32.xlu0 %v2499_v48, %s12727_s10  ;;  %v13551_v48 = vpop.permute.xlu1 %2617  ;;  %v13554_v18 = vpop.permute.xlu0 %2619 }
 0x3da   :  { %2525 = vrot.lane.b32.xlu1 %v2496_v54, %s12727_s10  ;;  %v2466_v54 = vmul.f32 %v2447_v19, %v13309_v28  ;;  %v2509_v3 = vsel %vm19012_vm9, %v2507_v52, %v2508_v22 }
 0x3dc   :  { %v2504_v4 = vrot.slane %v2466_v54, 1  ;;  %v2981_v54 = vmul.f32 %v2968_v15, %v13277_v62 }
 0x3dd   :  { %2523 = vrot.lane.b32.xlu0 %v2493_v58, %s12727_s10  ;;  %v2510_v58 = vrot.slane %v2468_v46, 1  ;;  %v13562_v60 = vpop.permute.xlu1 %3140  ;;  %v2983_v46 = vmul.f32 %v13517_v56, %v13268_v20 }
 0x3de   :  { %2517 = vrot.lane.b32.xlu1 %v2497_v0, %s12727_s10  ;;  %v13565_v0 = vpop.permute.xlu0 %3138  ;;  %v2506_v16 = vsel %vm19012_vm9, %v2504_v4, %v2505_v51 }
 0x3df   :  { %v2512_v14 = vsel %vm19012_vm9, %v2510_v58, %v2511_v27  ;;  %v3025_v58 = vrot.slane %v2992_v47, 1 }
 0x3e1   :  { %2513 = vrot.lane.b32.xlu0 %v2491_v63, %s12727_s10  ;;  %v2969_v63 = vsel %vm19016_vm8, %v13515_v53, %v13517_v56  ;;  %v2980_v53 = vmul.f32 %v13504_v40, %v13270_v55 }
 0x3e2   :  { %2537 = vrot.lane.b32.xlu1 %v2502_v7, %s12727_s10  ;;  %v2987_v7 = vmul.f32 %v13517_v56, %v13425_v61  ;;  %v2986_v12 = vmul.f32 %v2969_v63, %v13421_v50  ;;  %v2982_v19 = vmul.f32 %v2969_v63, %v13279_v32  ;;  %v13586_v37 = vpop.permute.xlu0 %3142  ;;  %v2995_v56 = vmul.f32 %v13537_v21, %v13445_v25 }
 0x3e3   :  { %v3012_v10 = vrot.slane %v2980_v53, 1 }
 0x3e4   :  { %v3022_v33 = vrot.slane %v2987_v7, 1  ;;  %v3019_v42 = vrot.slane %v2986_v12, 1  ;;  %v2970_v7 = vsel %vm19016_vm8, %v13525_v49, %v13529_v24 }
 0x3e5   :  { %2519 = vrot.lane.b32.xlu0 %v2500_v26, %s12727_s10  ;;  %v13582_v26 = vpop.permute.xlu1 %2621  ;;  %v3014_v39 = vsel %vm19012_vm9, %v3012_v10, %v3013_v8  ;;  %v2643_v10 = vmul.f32 %v13542_v41, %v13416_v59 }
 0x3e6   :  { %2543 = vrot.lane.b32.xlu1 %v2511_v27, %s12727_s10  ;;  %v2985_v27 = vmul.f32 %v2968_v15, %v13440_v17  ;;  %v13598_v52 = vpop.permute.xlu0 %2623 }
 0x3e9   :  { %2515 = vrot.lane.b32.xlu0 %v2494_v45, %s12727_s10  ;;  %v3018_v45 = vrot.slane %v2982_v19, 1  ;;  %v2993_v19 = vmul.f32 %v2970_v7, %v13453_v36 }
 0x3ea   :  { %2541 = vrot.lane.b32.xlu1 %v2508_v22, %s12727_s10  ;;  %v3016_v22 = vrot.slane %v2985_v27, 1  ;;  %v13614_v63 = vpop.permute.xlu0 %3146 }
 0x3eb   :  { %v3020_v40 = vsel %vm19012_vm9, %v3018_v45, %v3019_v42 }
 0x3ed   :  { %2539 = vrot.lane.b32.xlu0 %v2505_v51, %s12727_s10  ;;  %v13596_v51 = vpop.permute.xlu1 %2625 }
 0x3ee   :  { %2529 = vrot.lane.b32.xlu1 %v2503_v57, %s12727_s10  ;;  %v3021_v57 = vrot.slane %v2983_v46, 1  ;;  %v2650_v34 = vmul.f32 %v13596_v51, %v13311_v29 }
 0x3f0   :  { %v3023_v12 = vsel %vm19012_vm9, %v3021_v57, %v3022_v33  ;;  %v2646_v57 = vmul.f32 %v13554_v18, %v13425_v61  ;;  %v2692_v6 = vrot.slane %v2650_v34, 2 }
 0x3f1   :  { %2533 = vrot.lane.b32.xlu0 %v2509_v3, %s12727_s10  ;;  %v2971_v3 = vsel %vm19016_vm8, %v13529_v24, %v13537_v21  ;;  %v13611_v4 = vpop.permute.xlu1 %3144 }
 0x3f2   :  { %2535 = vrot.lane.b32.xlu1 %v2512_v14, %s12727_s10  ;;  %v3015_v14 = vrot.slane %v2981_v54, 1  ;;  %v2994_v15 = vmul.f32 %v2971_v3, %v13461_v44 }
 0x3f4   :  { %v3031_v53 = vrot.slane %v2994_v15, 1  ;;  %v3017_v24 = vsel %vm19012_vm9, %v3015_v14, %v3016_v22 }
 0x3f5   :  { %3044 = vrot.lane.b32.xlu0 %v3013_v8, %s12726_s2  ;;  %v3034_v8 = vrot.slane %v2995_v56, 1 }
 0x3f6   :  { %2531 = vrot.lane.b32.xlu1 %v2506_v16, %s12727_s10  ;;  %v2988_v16 = vmul.f32 %v13525_v49, %v13300_v23  ;;  %v3028_v49 = vrot.slane %v2993_v19, 1 }
 0x3f8   :  { %v3024_v45 = vrot.slane %v2988_v16, 1 }
 0x3f9   :  { %3050 = vrot.lane.b32.xlu0 %v3022_v33, %s12726_s2  ;;  %v2991_v33 = vmul.f32 %v13537_v21, %v13311_v29  ;;  %v2672_v21 = vrot.slane %v2643_v10, 2 }
 0x3fa   :  { %3048 = vrot.lane.b32.xlu1 %v3019_v42, %s12726_s2  ;;  %v13628_v42 = vpop.permute.xlu1 %3148 }
 0x3fb   :  { %v3033_v54 = vrot.slane %v2991_v33, 1 }
 0x3fd   :  { %3046 = vrot.lane.b32.xlu0 %v3016_v22, %s12726_s2  ;;  %v3026_v22 = vsel %vm19012_vm9, %v3024_v45, %v3025_v58 }
 0x3fe   :  { %3040 = vrot.lane.b32.xlu1 %v3020_v40, %s12726_s2  ;;  %v2989_v40 = vmul.f32 %v2970_v7, %v13309_v28  ;;  %v2628_v7 = vsel %vm215_vm1, %v13551_v48, %v13554_v18 }
 0x3ff   :  { %v2641_v33 = vmul.f32 %v2628_v7, %v13279_v32 }
 0x400   :  { %v3027_v15 = vrot.slane %v2989_v40, 1 }
 0x401   :  { %3036 = vrot.lane.b32.xlu0 %v3014_v39, %s12726_s2  ;;  %v2990_v39 = vmul.f32 %v2971_v3, %v13315_v30  ;;  %v2627_v3 = vsel %vm215_vm1, %v13542_v41, %v13551_v48  ;;  %v2639_v48 = vmul.f32 %v13542_v41, %v13270_v55  ;;  %v2651_v41 = vmul.f32 %v13582_v26, %v13432_v11 }
 0x402   :  { %3060 = vrot.lane.b32.xlu1 %v3025_v58, %s12726_s2  ;;  %v3035_v58 = vsel %vm19012_vm9, %v3033_v54, %v3034_v8  ;;  %v13671_v10 = vmul.f32 %v2627_v3, %v13440_v17 }
 0x403   :  { %v3030_v19 = vrot.slane %v2990_v39, 1  ;;  %v2677_v39 = vrot.slane %v2641_v33, 2 }
 0x405   :  { %3042 = vrot.lane.b32.xlu0 %v3023_v12, %s12726_s2  ;;  %v2681_v12 = vrot.slane %v2646_v57, 2  ;;  %v3032_v57 = vsel %vm19012_vm9, %v3030_v19, %v3031_v53 }
 0x406   :  { %3066 = vrot.lane.b32.xlu1 %v3034_v8, %s12726_s2  ;;  %v3029_v8 = vsel %vm19012_vm9, %v3027_v15, %v3028_v49 }
 0x407   :  { %v13626_v27 = vpop.permute.xlu0 %2338 }
 0x409   :  { %3038 = vrot.lane.b32.xlu0 %v3017_v24, %s12726_s2  ;;  %v2645_v24 = vmul.f32 %v2628_v7, %v13421_v50  ;;  %v2671_v7 = vrot.slane %v2639_v48, 2 }
 0x40a   :  { %3064 = vrot.lane.b32.xlu1 %v3031_v53, %s12726_s2 }
 0x40b   :  { %v13637_v46 = vpop.permute.xlu0 %2330  ;;  %v2678_v54 = vrot.slane %v2645_v24, 2  ;;  %v2673_v48 = vsel %vm19011_vm11, %v2671_v7, %v2672_v21  ;;  %v2630_v7 = vsel %vm215_vm1, %v13598_v52, %v13596_v51 }
 0x40c   :  { %v13639_v47 = vpop.permute.xlu1 %2342 }
 0x40d   :  { %3062 = vrot.lane.b32.xlu0 %v3028_v49, %s12726_s2  ;;  %v2675_v49 = vrot.slane %v13671_v10, 2  ;;  %v2679_v53 = vsel %vm19011_vm11, %v2677_v39, %v2678_v54  ;;  %v2654_v10 = vmul.f32 %v13596_v51, %v13445_v25 }
 0x40e   :  { %3052 = vrot.lane.b32.xlu1 %v3026_v22, %s12726_s2 }
 0x40f   :  { %v13647_v56 = vpop.permute.xlu0 %2344 }
 0x410   :  { %v13650_v14 = vpop.permute.xlu1 %2334 }
 0x411   :  { %2703 = vrot.lane.b32.xlu0 %v2672_v21, %s12727_s10 }
 0x412   :  { %3058 = vrot.lane.b32.xlu1 %v3035_v58, %s12726_s2  ;;  %v2642_v58 = vmul.f32 %v13554_v18, %v13268_v20 }
 0x413   :  { %v13658_v16 = vpop.permute.xlu0 %2336 }
 0x414   :  { %v13664_v45 = vpop.permute.xlu1 %2354  ;;  %v2680_v33 = vrot.slane %v2642_v58, 2 }
 0x415   :  { %2709 = vrot.lane.b32.xlu0 %v2681_v12, %s12727_s10 }
 0x416   :  { %3054 = vrot.lane.b32.xlu1 %v3029_v8, %s12726_s2  ;;  %v2684_v8 = vrot.slane %v2651_v41, 2  ;;  %v2693_v41 = vrot.slane %v2654_v10, 2  ;;  %v2682_v21 = vsel %vm19011_vm11, %v2680_v33, %v2681_v12  ;;  %v13727_v12 = vmul.f32 %v2630_v7, %v13461_v44 }
 0x417   :  { %v13673_v40 = vpop.permute.xlu0 %2340 }
 0x418   :  { %v13677_v22 = vpop.permute.xlu1 %2346  ;;  %v2694_v34 = vsel %vm19011_vm11, %v2692_v6, %v2693_v41 }
 0x419   :  { %3056 = vrot.lane.b32.xlu0 %v3032_v57, %s12726_s2  ;;  %v3151_v57 = vsel %vm19016_vm8, %v13562_v60, %v13586_v37 }
 0x41a   :  { %2707 = vrot.lane.b32.xlu1 %v2678_v54, %s12727_s10  ;;  %v3166_v54 = vmul.f32 %v13565_v0, %v13416_v59  ;;  %v3168_v58 = vmul.f32 %v3151_v57, %v13421_v50  ;;  %v13721_v59 = vmul.f32 %v13586_v37, %v13425_v61  ;;  %v2640_v50 = vmul.f32 %v2627_v3, %v13277_v62 }
 0x41b   :  { %v13683_v15 = vpop.permute.xlu0 %2332  ;;  %v3150_v3 = vsel %vm19016_vm8, %v13565_v0, %v13562_v60  ;;  %v3162_v60 = vmul.f32 %v13565_v0, %v13270_v55  ;;  %v3164_v51 = vmul.f32 %v3151_v57, %v13279_v32  ;;  %v2629_v0 = vsel %vm215_vm1, %v13582_v26, %v13598_v52 }
 0x41c   :  { %v13689_v24 = vpop.permute.xlu1 %2360  ;;  %v3201_v10 = vrot.slane %v3168_v58, 2  ;;  %v18952_v61 = vrot.slane %v13721_v59, 2  ;;  %v2674_v2 = vrot.slane %v2640_v50, 2  ;;  %v18953_v58 = vrot.slane %v13727_v12, 2 }
 0x41d   :  { %2705 = vrot.lane.b32.xlu0 %v2675_v49, %s12727_s10  ;;  %v3167_v50 = vmul.f32 %v3150_v3, %v13440_v17  ;;  %v13780_v57 = vmul.f32 %v13611_v4, %v13432_v11  ;;  %v13794_v11 = vmul.f32 %v13628_v42, %v13445_v25 }
 0x41e   :  { %2699 = vrot.lane.b32.xlu1 %v2679_v53, %s12727_s10 }
 0x41f   :  { %v13694_v19 = vpop.permute.xlu0 %2356 }
 0x420   :  { %v13698_v18 = vpop.permute.xlu1 %2352 }
 0x421   :  { %2695 = vrot.lane.b32.xlu0 %v2673_v48, %s12727_s10  ;;  %v3195_v48 = vrot.slane %v3166_v54, 2 }
 0x422   :  { %2719 = vrot.lane.b32.xlu1 %v2684_v8, %s12727_s10 }
 0x423   :  { %v13708_v39 = vpop.permute.xlu0 %2350 }
 0x424   :  { %v13711_v53 = vpop.permute.xlu1 %2358 }
 0x425   :  { %2701 = vrot.lane.b32.xlu0 %v2682_v21, %s12727_s10  ;;  %v2647_v21 = vmul.f32 %v13582_v26, %v13300_v23 }
 0x426   :  { %2725 = vrot.lane.b32.xlu1 %v2693_v41, %s12727_s10 }
 0x427   :  { %v13723_v1 = vpop.permute.xlu0 %2862  ;;  %v2683_v35 = vrot.slane %v2647_v21, 2  ;;  %v2676_v21 = vsel %vm19011_vm11, %v2674_v2, %v2675_v49  ;;  %v3200_v2 = vrot.slane %v3164_v51, 2  ;;  %v2652_v49 = vmul.f32 %v2629_v0, %v13453_v36 }
 0x428   :  { %19260 = vst [vmem:[#allocation14_spill] sm:$0xff] %v13723_v1  ;;  %v13729_v33 = vpop.permute.xlu1 %2348 }
 0x429   :  { %3226 = vrot.lane.b32.xlu0 %v3195_v48, %s12726_s2  ;;  %v3202_v6 = vsel %vm19011_vm11, %v3200_v2, %v3201_v10 }
 0x42a   :  { %3230 = vrot.lane.b32.xlu1 %v3201_v10, %s12726_s2  ;;  %v3441_v10 = vld [vmem:[#allocation4 + $0x80] sm:$0xff] }
 0x42b   :  { %v13736_v54 = vpop.permute.xlu0 %2854 }
 0x42c   :  { %19261 = vst [vmem:[#allocation15_spill] sm:$0xff] %v13736_v54  ;;  %v13742_v43 = vpop.permute.xlu1 %2866  ;;  %v3194_v54 = vrot.slane %v3162_v60, 2  ;;  %v18954_v60 = vrot.slane %v13780_v57, 2 }
 0x42d   :  { %19262 = vst [vmem:[#allocation16_spill] sm:$0xff] %v13742_v43  ;;  %3232 = vrot.lane.b32.xlu0 %v18952_v61, %s12726_s2  ;;  %v2685_v61 = vsel %vm19011_vm11, %v2683_v35, %v2684_v8  ;;  %v3163_v35 = vmul.f32 %v3150_v3, %v13277_v62 }
 0x42e   :  { %2723 = vrot.lane.b32.xlu1 %v18953_v58, %s12727_s10  ;;  %v3198_v58 = vrot.slane %v3167_v50, 2  ;;  %v3196_v52 = vsel %vm19011_vm11, %v3194_v54, %v3195_v48  ;;  %v2649_v50 = vmul.f32 %v2630_v7, %v13315_v30  ;;  %v2648_v48 = vmul.f32 %v2629_v0, %v13309_v28  ;;  %v3442_v54 = vld [vmem:[#allocation4 + $0x88] sm:$0xff] }
 0x42f   :  { %v13753_v13 = vpop.permute.xlu0 %2868  ;;  %v3197_v41 = vrot.slane %v3163_v35, 2  ;;  %v13806_v2 = vpack.c.bf16 %v3442_v54, %v3441_v10  ;;  %v3153_v0 = vsel %vm19016_vm8, %v13614_v63, %v13628_v42  ;;  %v18956_v35 = vrot.slane %v13794_v11, 2  ;;  %v3444_v10 = vld [vmem:[#allocation4 + $0x98] sm:$0xff] }
 0x430   :  { %19263 = vst [vmem:[#allocation17_spill] sm:$0xff] %v13753_v13  ;;  %v13757_v5 = vpop.permute.xlu1 %2858  ;;  %v2689_v25 = vrot.slane %v2649_v50, 2  ;;  %v3443_v50 = vld [vmem:[#allocation4 + $0x90] sm:$0xff] }
 0x431   :  { %19264 = vst [vmem:[#allocation18_spill] sm:$0xff] %v13757_v5  ;;  %2697 = vrot.lane.b32.xlu0 %v2676_v21, %s12727_s10  ;;  %v3199_v7 = vsel %vm19011_vm11, %v3197_v41, %v3198_v58  ;;  %19272 = vst [vmem:[#allocation26_spill] sm:$0xff] %v13806_v2  ;;  %12468 = vmatprep.subr.bf16.mxu0 %v13806_v2  ;;  %v3458_v2 = vld [vmem:[#allocation4 + $0x108] sm:$0xff] }
 0x432   :  { %2711 = vrot.lane.b32.xlu1 %v2685_v61, %s12727_s10  ;;  %v2687_v61 = vrot.slane %v2652_v49, 2 }
 0x433   :  { %v13764_v17 = vpop.permute.xlu0 %2860 }
 0x434   :  { %19265 = vst [vmem:[#allocation19_spill] sm:$0xff] %v13764_v17  ;;  %v13769_v1 = vpop.permute.xlu1 %2878 }
 0x435   :  { %19266 = vst [vmem:[#allocation20_spill] sm:$0xff] %v13769_v1  ;;  %3228 = vrot.lane.b32.xlu0 %v3198_v58, %s12726_s2  ;;  %v3425_v58 = vld [vmem:[#allocation4] sm:$0xff] }
 0x436   :  { %2717 = vrot.lane.b32.xlu1 %v2694_v34, %s12727_s10  ;;  %v3152_v34 = vsel %vm19016_vm8, %v13611_v4, %v13614_v63  ;;  %v3457_v63 = vld [vmem:[#allocation4 + $0x100] sm:$0xff] }
 0x437   :  { %v13776_v8 = vpop.permute.xlu0 %2864  ;;  %v13825_v54 = vmul.f32 %v3152_v34, %v13453_v36  ;;  %v13839_v36 = vpack.c.bf16 %v3458_v2, %v3457_v63 }
 0x438   :  { %19267 = vst [vmem:[#allocation21_spill] sm:$0xff] %v13776_v8  ;;  %v13782_v26 = vpop.permute.xlu1 %2870 }
 0x439   :  { %19268 = vst [vmem:[#allocation22_spill] sm:$0xff] %v13782_v26  ;;  %3218 = vrot.lane.b32.xlu0 %v3196_v52, %s12726_s2  ;;  %v2686_v52 = vrot.slane %v2648_v48, 2  ;;  %v3172_v48 = vmul.f32 %v3153_v0, %v13315_v30  ;;  %v3427_v26 = vld [vmem:[#allocation4 + $0x10] sm:$0xff]  ;;  %19279 = vst [vmem:[#allocation32_spill] sm:$0xff] %v13839_v36  ;;  %12501 = vmatpush3.bf16.msra.mxu1 %v13839_v36 }
 0x43a   :  { %3222 = vrot.lane.b32.xlu1 %v3202_v6, %s12726_s2  ;;  %v3426_v6 = vld [vmem:[#allocation4 + $0x8] sm:$0xff] }
 0x43b   :  { %v13788_v3 = vpop.permute.xlu0 %2856  ;;  %v13822_v41 = vpack.c.bf16 %v3426_v6, %v3425_v58  ;;  %v19278_v58 = vrot.slane %v13727_v12, 2 }
 0x43c   :  { %19269 = vst [vmem:[#allocation23_spill] sm:$0xff] %v13788_v3  ;;  %v13796_v21 = vpop.permute.xlu1 %2884 }
 0x43d   :  { %19270 = vst [vmem:[#allocation24_spill] sm:$0xff] %v13796_v21  ;;  %2721 = vrot.lane.b32.xlu0 %v2687_v61, %s12727_s10  ;;  %19274 = vst [vmem:[#allocation28_spill] sm:$0xff] %v13822_v41  ;;  %v3428_v21 = vld [vmem:[#allocation4 + $0x18] sm:$0xff]  ;;  %v2691_v6 = vsel %vm19011_vm11, %v2689_v25, %v19278_v58  ;;  %12470 = vmatpush3.bf16.msra.mxu0 %v13822_v41  ;;  %v3171_v58 = vmul.f32 %v3152_v34, %v13309_v28 }
 0x43e   :  { %3242 = vrot.lane.b32.xlu1 %v18954_v60, %s12726_s2  ;;  %v13841_v1 = vpack.c.bf16 %v3428_v21, %v3427_v26  ;;  %v3460_v25 = vld [vmem:[#allocation4 + $0x118] sm:$0xff]  ;;  %v3210_v21 = vrot.slane %v13825_v54, 2  ;;  %v3173_v34 = vmul.f32 %v13628_v42, %v13311_v29 }
 0x43f   :  { %v13803_v51 = vpop.permute.xlu0 %2880  ;;  %v3448_v42 = vld [vmem:[#allocation4 + $0xb8] sm:$0xff] }
 0x440   :  { %19271 = vst [vmem:[#allocation25_spill] sm:$0xff] %v13803_v51  ;;  %v13815_v49 = vpop.permute.xlu1 %2876  ;;  %19280 = vst [vmem:[#allocation33_spill] sm:$0xff] %v13841_v1  ;;  %v3170_v51 = vmul.f32 %v13611_v4, %v13300_v23  ;;  %v19284_v4 = vmov 0.0|0.0  }
 0x441   :  { %19273 = vst [vmem:[#allocation27_spill] sm:$0xff] %v13815_v49  ;;  %3220 = vrot.lane.b32.xlu0 %v3199_v7, %s12726_s2  ;;  %v13830_v7 = vpack.c.bf16 %v3444_v10, %v3443_v50  ;;  %v3176_v49 = vmul.f32 %v3153_v0, %v13461_v44  ;;  %v3446_v50 = vld [vmem:[#allocation4 + $0xa8] sm:$0xff]  ;;  %v3459_v10 = vld [vmem:[#allocation4 + $0x110] sm:$0xff]  ;;  %v2688_v44 = vsel %vm19011_vm11, %v2686_v52, %v2687_v61  ;;  %v3212_v0 = vrot.slane %v3172_v48, 2 }
 0x442   :  { %3248 = vrot.lane.b32.xlu1 %v18956_v35, %s12726_s2  ;;  %v13852_v26 = vpack.c.bf16 %v3460_v25, %v3459_v10  ;;  %12502 = vmatprep.subr.bf16.mxu1 %v19284_v4  ;;  %v3165_v61 = vmul.f32 %v13586_v37, %v13268_v20  ;;  %v3206_v63 = vrot.slane %v3170_v51, 2  ;;  %v3209_v51 = vrot.slane %v3171_v58, 2  ;;  %v3429_v10 = vld [vmem:[#allocation4 + $0x20] sm:$0xff]  ;;  %v3447_v25 = vld [vmem:[#allocation4 + $0xb0] sm:$0xff] }
 0x443   :  { %v13828_v60 = vpop.permute.xlu0 %2874  ;;  %19276 = vst [vmem:[#allocation30_spill] sm:$0xff] %v13830_v7  ;;  %12472 = vmatprep.subr.bf16.mxu0 %v13830_v7  ;;  %v3213_v52 = vrot.slane %v3176_v49, 2  ;;  %v19288_v48 = vrot.slane %v13780_v57, 2  ;;  %v3461_v58 = vld [vmem:[#allocation4 + $0x120] sm:$0xff]  ;;  %v3462_v57 = vld [vmem:[#allocation4 + $0x128] sm:$0xff]  ;;  %v3440_v7 = vld [vmem:[#allocation4 + $0x78] sm:$0xff] }
 0x444   :  { %19275 = vst [vmem:[#allocation29_spill] sm:$0xff] %v13828_v60  ;;  %v13833_v35 = vpop.permute.xlu1 %2882  ;;  %v3445_v60 = vld [vmem:[#allocation4 + $0xa0] sm:$0xff]  ;;  %19282 = vst [vmem:[#allocation35_spill] sm:$0xff] %v13852_v26  ;;  %12474 = vmatpush3.bf16.msra.mxu0 %v13841_v1  ;;  %12504 = vmatpush3.bf16.msra.mxu1 %v13852_v26  ;;  %v3203_v20 = vrot.slane %v3165_v61, 2  ;;  %v3432_v1 = vld [vmem:[#allocation4 + $0x38] sm:$0xff] }
 0x445   :  { %19277 = vst [vmem:[#allocation31_spill] sm:$0xff] %v13833_v35  ;;  %2715 = vrot.lane.b32.xlu0 %v2691_v6, %s12727_s10  ;;  %v13848_v12 = vpack.c.bf16 %v3446_v50, %v3445_v60  ;;  %12505 = vmatprep.subr.bf16.mxu1 %v19284_v4  ;;  %v3214_v49 = vsel %vm19011_vm11, %v3212_v0, %v3213_v52  ;;  %v19291_v0 = vrot.slane %v13721_v59, 2  ;;  %v3439_v26 = vld [vmem:[#allocation4 + $0x70] sm:$0xff] }
 0x446   :  { %2713 = vrot.lane.b32.xlu1 %v2688_v44, %s12727_s10  ;;  %v3208_v6 = vsel %vm19011_vm11, %v3206_v63, %v19288_v48  ;;  %v3430_v44 = vld [vmem:[#allocation4 + $0x28] sm:$0xff]  ;;  %v3211_v63 = vsel %vm19011_vm11, %v3209_v51, %v3210_v21  ;;  %v13892_v48 = vpack.c.bf16 %v3448_v42, %v3447_v25  ;;  %v3463_v25 = vld [vmem:[#allocation4 + $0x130] sm:$0xff] }
 0x447   :  { %19281 = vst [vmem:[#allocation34_spill] sm:$0xff] %v13848_v12  ;;  %v13855_v2 = vpop.permute.xlu0 %2521  ;;  %12476 = vmatprep.subr.bf16.mxu0 %v13848_v12  ;;  %v13888_v29 = vpack.c.bf16 %v3430_v44, %v3429_v10  ;;  %v3431_v12 = vld [vmem:[#allocation4 + $0x30] sm:$0xff]  ;;  %v3449_v10 = vld [vmem:[#allocation4 + $0xc0] sm:$0xff]  ;;  %v3450_v44 = vld [vmem:[#allocation4 + $0xc8] sm:$0xff] }
 0x448   :  { %19283 = vst [vmem:[#allocation36_spill] sm:$0xff] %v13855_v2  ;;  %v13860_v60 = vpop.permute.xlu1 %2872  ;;  %19293 = vst [vmem:[#allocation43_spill] sm:$0xff] %v13892_v48  ;;  %v13898_v59 = vpack.c.bf16 %v3432_v1, %v3431_v12  ;;  %v13912_v1 = vpack.c.bf16 %v3450_v44, %v3449_v10  ;;  %v3464_v12 = vld [vmem:[#allocation4 + $0x138] sm:$0xff]  ;;  %v3466_v10 = vld [vmem:[#allocation4 + $0x148] sm:$0xff] }
 0x449   :  { %19285 = vst [vmem:[#allocation37_spill] sm:$0xff] %v13860_v60  ;;  %3244 = vrot.lane.b32.xlu0 %v3210_v21, %s12726_s2  ;;  %19292 = vst [vmem:[#allocation42_spill] sm:$0xff] %v13888_v29  ;;  %12478 = vmatpush3.bf16.msra.mxu0 %v13888_v29  ;;  %v19298_v21 = vrot.slane %v13794_v11, 2  ;;  %v3451_v11 = vld [vmem:[#allocation4 + $0xd0] sm:$0xff]  ;;  %v3468_v29 = vld [vmem:[#allocation4 + $0x158] sm:$0xff] }
 0x44a   :  { %3246 = vrot.lane.b32.xlu1 %v3213_v52, %s12726_s2  ;;  %v3205_v52 = vsel %vm19011_vm11, %v3203_v20, %v19291_v0  ;;  %19295 = vst [vmem:[#allocation45_spill] sm:$0xff] %v13898_v59  ;;  %12480 = vmatprep.subr.bf16.mxu0 %v13892_v48  ;;  %19299 = vst [vmem:[#allocation48_spill] sm:$0xff] %v13912_v1  ;;  %v3433_v0 = vld [vmem:[#allocation4 + $0x40] sm:$0xff]  ;;  %v3435_v44 = vld [vmem:[#allocation4 + $0x50] sm:$0xff] }
 0x44b   :  { %v13868_v54 = vpop.permute.xlu0 %2527 }
 0x44c   :  { %19286 = vst [vmem:[#allocation38_spill] sm:$0xff] %v13868_v54  ;;  %v13871_v37 = vpop.permute.xlu1 %2525 }
 0x44d   :  { %19287 = vst [vmem:[#allocation39_spill] sm:$0xff] %v13871_v37  ;;  %3238 = vrot.lane.b32.xlu0 %v3214_v49, %s12726_s2  ;;  %v3215_v49 = vrot.slane %v3173_v34, 2  ;;  %12482 = vmatpush3.bf16.msra.mxu0 %v13898_v59  ;;  %v3436_v59 = vld [vmem:[#allocation4 + $0x58] sm:$0xff] }
 0x44e   :  { %3234 = vrot.lane.b32.xlu1 %v3208_v6, %s12726_s2  ;;  %v13894_v6 = vpack.c.bf16 %v3462_v57, %v3461_v58  ;;  %v13916_v58 = vpack.c.bf16 %v3464_v12, %v3463_v25  ;;  %12484 = vmatprep.subr.bf16.mxu0 %v13912_v1  ;;  %v3453_v25 = vld [vmem:[#allocation4 + $0xe0] sm:$0xff]  ;;  %v3454_v12 = vld [vmem:[#allocation4 + $0xe8] sm:$0xff] }
 0x44f   :  { %v13881_v50 = vpop.permute.xlu0 %2523  ;;  %v3217_v51 = vsel %vm19011_vm11, %v3215_v49, %v19298_v21  ;;  %v3452_v49 = vld [vmem:[#allocation4 + $0xd8] sm:$0xff] }
 0x450   :  { %19289 = vst [vmem:[#allocation40_spill] sm:$0xff] %v13881_v50  ;;  %v13883_v61 = vpop.permute.xlu1 %2517  ;;  %19294 = vst [vmem:[#allocation44_spill] sm:$0xff] %v13894_v6  ;;  %12507 = vmatpush3.bf16.msra.mxu1 %v13894_v6  ;;  %v3456_v6 = vld [vmem:[#allocation4 + $0xf8] sm:$0xff] }
 0x451   :  { %19290 = vst [vmem:[#allocation41_spill] sm:$0xff] %v13883_v61  ;;  %3224 = vrot.lane.b32.xlu0 %v3205_v52, %s12726_s2  ;;  %12508 = vmatprep.subr.bf16.mxu1 %v19284_v4  ;;  %v3434_v52 = vld [vmem:[#allocation4 + $0x48] sm:$0xff]  ;;  %19301 = vst [vmem:[#allocation50_spill] sm:$0xff] %v13916_v58 }
 0x452   :  { %3236 = vrot.lane.b32.xlu1 %v3211_v63, %s12726_s2  ;;  %v13918_v57 = vpack.c.bf16 %v3434_v52, %v3433_v0  ;;  %v3465_v63 = vld [vmem:[#allocation4 + $0x140] sm:$0xff]  ;;  %v13930_v0 = vpack.c.bf16 %v3436_v59, %v3435_v44  ;;  %v3467_v52 = vld [vmem:[#allocation4 + $0x150] sm:$0xff] }
 0x453   :  { %v13900_v20 = vpop.permute.xlu0 %2513  ;;  %v13926_v48 = vpack.c.bf16 %v3466_v10, %v3465_v63  ;;  %v3455_v10 = vld [vmem:[#allocation4 + $0xf0] sm:$0xff]  ;;  %v3469_v44 = vld [vmem:[#allocation4 + $0x160] sm:$0xff] }
 0x454   :  { %19296 = vst [vmem:[#allocation46_spill] sm:$0xff] %v13900_v20  ;;  %v13904_v34 = vpop.permute.xlu1 %2537  ;;  %19302 = vst [vmem:[#allocation51_spill] sm:$0xff] %v13918_v57  ;;  %12510 = vmatpush3.bf16.msra.mxu1 %v13916_v58  ;;  %12486 = vmatpush3.bf16.msra.mxu0 %v13918_v57  ;;  %v3438_v58 = vld [vmem:[#allocation4 + $0x68] sm:$0xff]  ;;  %v13940_v57 = vpack.c.bf16 %v3468_v29, %v3467_v52  ;;  %v3471_v52 = vld [vmem:[#allocation4 + $0x170] sm:$0xff] }
 0x455   :  { %19297 = vst [vmem:[#allocation47_spill] sm:$0xff] %v13904_v34  ;;  %19305 = vst [vmem:[#allocation54_spill] sm:$0xff] %v13926_v48  ;;  %12511 = vmatprep.subr.bf16.mxu1 %v19284_v4 }
 0x456   :  { %3240 = vrot.lane.b32.xlu1 %v3217_v51, %s12726_s2  ;;  %v13923_v51 = vpack.c.bf16 %v3452_v49, %v3451_v11  ;;  %19306 = vst [vmem:[#allocation55_spill] sm:$0xff] %v13930_v0  ;;  %v13935_v11 = vpack.c.bf16 %v3454_v12, %v3453_v25  ;;  %v3437_v49 = vld [vmem:[#allocation4 + $0x60] sm:$0xff]  ;;  %19310 = vst [vmem:[#allocation59_spill] sm:$0xff] %v13940_v57  ;;  %v13949_v12 = vpack.c.bf16 %v3456_v6, %v3455_v10 }
 0x457   :  { %v13914_v42 = vpop.permute.xlu0 %2519  ;;  %v13944_v59 = vpack.c.bf16 %v3438_v58, %v3437_v49  ;;  %v13958_v58 = vpack.c.bf16 %v3440_v7, %v3439_v26  ;;  %v3472_v49 = vld [vmem:[#allocation4 + $0x178] sm:$0xff] }
 0x458   :  { %19300 = vst [vmem:[#allocation49_spill] sm:$0xff] %v13914_v42  ;;  %v13920_v21 = vpop.permute.xlu1 %2543  ;;  %19304 = vst [vmem:[#allocation53_spill] sm:$0xff] %v13923_v51  ;;  %12488 = vmatprep.subr.bf16.mxu0 %v13923_v51  ;;  %12513 = vmatpush3.bf16.msra.mxu1 %v13926_v48  ;;  %v3470_v51 = vld [vmem:[#allocation4 + $0x168] sm:$0xff]  ;;  %v13966_v10 = vpack.c.bf16 %v3472_v49, %v3471_v52 }
 0x459   :  { %19303 = vst [vmem:[#allocation52_spill] sm:$0xff] %v13920_v21  ;;  %19308 = vst [vmem:[#allocation57_spill] sm:$0xff] %v13935_v11  ;;  %12490 = vmatpush3.bf16.msra.mxu0 %v13930_v0  ;;  %12514 = vmatprep.subr.bf16.mxu1 %v19284_v4  ;;  %v13954_v29 = vpack.c.bf16 %v3470_v51, %v3469_v44 }
 0x45a   :  { %19311 = vst [vmem:[#allocation60_spill] sm:$0xff] %v13944_v59  ;;  %12492 = vmatprep.subr.bf16.mxu0 %v13935_v11  ;;  %19313 = vst [vmem:[#allocation62_spill] sm:$0xff] %v13949_v12 }
 0x45b   :  { %v13932_v1 = vpop.permute.xlu0 %2515  ;;  %19315 = vst [vmem:[#allocation64_spill] sm:$0xff] %v13954_v29  ;;  %19316 = vst [vmem:[#allocation65_spill] sm:$0xff] %v13958_v58 }
 0x45c   :  { %19307 = vst [vmem:[#allocation56_spill] sm:$0xff] %v13932_v1  ;;  %v13937_v63 = vpop.permute.xlu1 %2541  ;;  %12516 = vmatpush3.bf16.msra.mxu1 %v13940_v57  ;;  %19319 = vst [vmem:[#allocation68_spill] sm:$0xff] %v13966_v10  ;;  %v11852_v57 = vld.sshfl [vmem:[#allocation3] sm:$0x77 pattern:$0x75316420] }
 0x45d   :  { %19309 = vst [vmem:[#allocation58_spill] sm:$0xff] %v13937_v63  ;;  %12494 = vmatpush3.bf16.msra.mxu0 %v13944_v59  ;;  %12517 = vmatprep.subr.bf16.mxu1 %v19284_v4  ;;  %v11853_v59 = vld.sshfl [vmem:[#allocation3 + $0x12] sm:$0x77 pattern:$0x75316420]  ;;  %v1975_v21 = vrot.slane %v11852_v57, %v13333_v38 }
 0x45e   :  { %12496 = vmatprep.subr.bf16.mxu0 %v13949_v12  ;;  %v2031_v11 = vrot.slane %v11853_v59, %v13342_v9  ;;  %v2023_v48 = vrot.slane %v11853_v59, %v13330_v31  ;;  %v2027_v36 = vrot.slane %v11853_v59, %v13333_v38  ;;  %v2019_v54 = vcombine.high %v11853_v59, %v11853_v59 }
 0x45f   :  { %v13946_v25 = vpop.permute.xlu0 %2539 }
 0x460   :  { %19312 = vst [vmem:[#allocation61_spill] sm:$0xff] %v13946_v25  ;;  %v13951_v41 = vpop.permute.xlu1 %2529  ;;  %12519 = vmatpush3.bf16.msra.mxu1 %v13954_v29  ;;  %v2035_v17 = vrot.slane %v2019_v54, %v13330_v31 }
 0x461   :  { %19314 = vst [vmem:[#allocation63_spill] sm:$0xff] %v13951_v41  ;;  %12498 = vmatpush3.bf16.msra.mxu0 %v13958_v58  ;;  %12520 = vmatprep.subr.bf16.mxu1 %v19284_v4 }
 0x463   :  { %v13960_v0 = vpop.permute.xlu0 %2533 }
 0x464   :  { %19317 = vst [vmem:[#allocation66_spill] sm:$0xff] %v13960_v0  ;;  %v13963_v6 = vpop.permute.xlu1 %2535  ;;  %12522 = vmatpush3.bf16.msra.mxu1 %v13966_v10  ;;  %v2051_v0 = vmul.f32 %v2027_v36, %v13277_v62 }
 0x465   :  { %19318 = vst [vmem:[#allocation67_spill] sm:$0xff] %v13963_v6  ;;  %12531 = vmatprep.subr.bf16.mxu1 %v19284_v4  ;;  %v11854_v4 = vld.sshfl [vmem:[#allocation3 + $0x24] sm:$0x77 pattern:$0x75316420]  ;;  %v1979_v6 = vrot.slane %v11852_v57, %v13342_v9 }
 0x466   :  { %v2138_v34 = vrot.slane %v11854_v4, %v13342_v9  ;;  %v2078_v60 = vrot.slane %v2051_v0, 1  ;;  %v2134_v37 = vrot.slane %v11854_v4, %v13333_v38  ;;  %v2126_v50 = vcombine.high %v11854_v4, %v11854_v4 }
 0x467   :  { %v13970_v51 = vpop.permute.xlu0 %3044 }
 0x468   :  { %19320 = vst [vmem:[#allocation69_spill] sm:$0xff] %v13970_v51  ;;  %v13972_v7 = vpop.permute.xlu1 %2531  ;;  %v1951_v51 = vld [vmem:[#allocation2 + $0x30] sm:$0x3f]  ;;  %v2159_v42 = vmul.f32 %v2138_v34, %v13279_v32 }
 0x469   :  { %19321 = vst [vmem:[#allocation70_spill] sm:$0xff] %v13972_v7  ;;  %v2050_v7 = vmul.f32 %v2023_v48, %v13270_v55  ;;  %v2003_v35 = vmul.f32 %v1979_v6, %v1951_v51  ;;  %v2162_v61 = vmul.f32 %v2138_v34, %v1951_v51 }
 0x46b   :  { %v13976_v26 = vpop.permute.xlu0 %3050  ;;  %v2075_v1 = vrot.slane %v2050_v7, 1 }
 0x46c   :  { %19322 = vst [vmem:[#allocation71_spill] sm:$0xff] %v13976_v26  ;;  %v13978_v44 = vpop.permute.xlu1 %3048  ;;  %v13998_v26 = vcombine.high %v11852_v57, %v11852_v57 }
 0x46d   :  { %19323 = vst [vmem:[#allocation72_spill] sm:$0xff] %v13978_v44  ;;  %v1950_v44 = vld [vmem:[#allocation2 + $0x28] sm:$0x3f] }
 0x46e   :  { %v14034_v59 = vrot.slane %v13998_v26, %v13342_v9 }
 0x46f   :  { %v13980_v12 = vpop.permute.xlu0 %3046 }
 0x470   :  { %19324 = vst [vmem:[#allocation73_spill] sm:$0xff] %v13980_v12  ;;  %v13982_v52 = vpop.permute.xlu1 %3040 }
 0x471   :  { %19325 = vst [vmem:[#allocation74_spill] sm:$0xff] %v13982_v52  ;;  %v2055_v52 = vmul.f32 %v2031_v11, %v1951_v51  ;;  %v1999_v51 = vmul.f32 %v1975_v21, %v13277_v62 }
 0x473   :  { %v13984_v49 = vpop.permute.xlu0 %3036 }
 0x474   :  { %19326 = vst [vmem:[#allocation75_spill] sm:$0xff] %v13984_v49  ;;  %v13986_v58 = vpop.permute.xlu1 %3060  ;;  %v2052_v49 = vmul.f32 %v2031_v11, %v13279_v32  ;;  %v2082_v11 = vrot.slane %v2055_v52, 1  ;;  %v1955_v52 = vld [vmem:[#allocation2 + $0x60] sm:$0x3f] }
 0x475   :  { %19327 = vst [vmem:[#allocation76_spill] sm:$0xff] %v13986_v58  ;;  %v1949_v58 = vld [vmem:[#allocation2 + $0x20] sm:$0x3f] }
 0x476   :  { %v2053_v41 = vmul.f32 %v2023_v48, %v1949_v58  ;;  %v2081_v63 = vrot.slane %v2052_v49, 1  ;;  %v2000_v49 = vmul.f32 %v1979_v6, %v13279_v32  ;;  %v2189_v6 = vrot.slane %v2162_v61, 2 }
 0x477   :  { %v13988_v29 = vpop.permute.xlu0 %3042 }
 0x478   :  { %19328 = vst [vmem:[#allocation77_spill] sm:$0xff] %v13988_v29  ;;  %v13991_v10 = vpop.permute.xlu1 %3066  ;;  %v2076_v48 = vrot.slane %v2053_v41, 1  ;;  %v2083_v41 = vsel %vm19012_vm9, %v2081_v63, %v2082_v11  ;;  %v2188_v63 = vrot.slane %v2159_v42, 2 }
 0x479   :  { %19329 = vst [vmem:[#allocation78_spill] sm:$0xff] %v13991_v10  ;;  %v2054_v10 = vmul.f32 %v2027_v36, %v1950_v44  ;;  %v2107_v3 = vadd.f32 %v2083_v41, %v2000_v49  ;;  %v2146_v49 = vrot.slane %v2126_v50, %v13333_v38 }
 0x47a   :  { %v2077_v34 = vsel %vm19012_vm9, %v2075_v1, %v2076_v48  ;;  %v2190_v42 = vsel %vm19011_vm11, %v2188_v63, %v2189_v6 }
 0x47b   :  { %v13995_v12 = vpop.permute.xlu0 %3038  ;;  %v2079_v36 = vrot.slane %v2054_v10, 1  ;;  %v2002_v10 = vmul.f32 %v1975_v21, %v1950_v44  ;;  %v2161_v21 = vmul.f32 %v2134_v37, %v1950_v44  ;;  %v2142_v44 = vrot.slane %v2126_v50, %v13330_v31 }
 0x47c   :  { %19330 = vst [vmem:[#allocation79_spill] sm:$0xff] %v13995_v12  ;;  %v14000_v29 = vpop.permute.xlu1 %3064  ;;  %v1971_v12 = vrot.slane %v11852_v57, %v13330_v31 }
 0x47d   :  { %19331 = vst [vmem:[#allocation80_spill] sm:$0xff] %v14000_v29  ;;  %v14012_v29 = vrot.slane %v13998_v26, %v13330_v31 }
 0x47e   :  { %v2001_v57 = vmul.f32 %v1971_v12, %v1949_v58  ;;  %v1998_v0 = vmul.f32 %v1971_v12, %v13270_v55  ;;  %v2110_v12 = vadd.f32 %v2082_v11, %v2003_v35  ;;  %v2158_v35 = vmul.f32 %v2134_v37, %v13277_v62  ;;  %v1957_v11 = vld [vmem:[#allocation2 + $0x70] sm:$0x3f]  ;;  %v1956_v37 = vld [vmem:[#allocation2 + $0x68] sm:$0x3f] }
 0x47f   :  { %v14007_v25 = vpop.permute.xlu0 %3062  ;;  %v14030_v32 = vmul.f32 %v14012_v29, %v1955_v52 }
 0x480   :  { %19332 = vst [vmem:[#allocation81_spill] sm:$0xff] %v14007_v25  ;;  %v14014_v20 = vpop.permute.xlu1 %3052  ;;  %v2130_v25 = vrot.slane %v11854_v4, %v13330_v31  ;;  %v2108_v1 = vadd.f32 %v2076_v48, %v2001_v57  ;;  %v14043_v13 = vadd.f32 %v2077_v34, %v1998_v0  ;;  %v2039_v4 = vrot.slane %v2019_v54, %v13333_v38 }
 0x481   :  { %19333 = vst [vmem:[#allocation82_spill] sm:$0xff] %v14014_v20  ;;  %v2080_v20 = vsel %vm19012_vm9, %v2078_v60, %v2079_v36  ;;  %v2109_v60 = vadd.f32 %v2079_v36, %v2002_v10  ;;  %v14056_v57 = vadd.f32 %v2189_v6, %v2110_v12  ;;  %v14061_v10 = vadd.f32 %v2190_v42, %v2107_v3 }
 0x482   :  { %v2157_v5 = vmul.f32 %v2130_v25, %v13270_v55  ;;  %v14045_v61 = vadd.f32 %v2080_v20, %v1999_v51  ;;  %v2150_v55 = vrot.slane %v2126_v50, %v13342_v9  ;;  %v2185_v0 = vrot.slane %v2158_v35, 2 }
 0x483   :  { %v14020_v2 = vpop.permute.xlu0 %2703  ;;  %v2060_v51 = vmul.f32 %v2039_v4, %v1956_v37  ;;  %v2057_v34 = vmul.f32 %v2039_v4, %v13309_v28  ;;  %v2163_v6 = vmul.f32 %v2142_v44, %v13300_v23  ;;  %v1987_v4 = vrot.slane %v13998_v26, %v13333_v38 }
 0x484   :  { %19334 = vst [vmem:[#allocation83_spill] sm:$0xff] %v14020_v2  ;;  %v14025_v7 = vpop.permute.xlu1 %3058  ;;  %v2160_v2 = vmul.f32 %v2130_v25, %v1949_v58  ;;  %v2186_v25 = vrot.slane %v2161_v21, 2  ;;  %v2182_v62 = vrot.slane %v2157_v5, 2  ;;  %v2165_v50 = vmul.f32 %v2150_v55, %v13315_v30 }
 0x485   :  { %19335 = vst [vmem:[#allocation84_spill] sm:$0xff] %v14025_v7  ;;  %v2043_v7 = vrot.slane %v2019_v54, %v13342_v9  ;;  %v2059_v54 = vmul.f32 %v2035_v17, %v1955_v52  ;;  %v2168_v63 = vmul.f32 %v2150_v55, %v1957_v11  ;;  %v2167_v21 = vmul.f32 %v2146_v49, %v1956_v37 }
 0x486   :  { %v2183_v58 = vrot.slane %v2160_v2, 2  ;;  %v2056_v2 = vmul.f32 %v2035_v17, %v13300_v23  ;;  %v2164_v9 = vmul.f32 %v2146_v49, %v13309_v28  ;;  %v14069_v3 = vadd.f32 %v2186_v25, %v2109_v60 }
 0x487   :  { %v14037_v8 = vpop.permute.xlu0 %2709  ;;  %v2058_v48 = vmul.f32 %v2043_v7, %v13315_v30  ;;  %v2061_v36 = vmul.f32 %v2043_v7, %v1957_v11  ;;  %v2166_v7 = vmul.f32 %v2142_v44, %v1955_v52  ;;  %v2085_v35 = vrot.slane %v2059_v54, 1 }
 0x488   :  { %19336 = vst [vmem:[#allocation85_spill] sm:$0xff] %v14037_v8  ;;  %v14041_v43 = vpop.permute.xlu1 %3054  ;;  %v2215_v31 = vadd.f32 %v2183_v58, %v2108_v1  ;;  %v2084_v42 = vrot.slane %v2056_v2, 1  ;;  %v2184_v52 = vsel %vm19011_vm11, %v2182_v62, %v2183_v58  ;;  %v2088_v44 = vrot.slane %v2060_v51, 1 }
 0x489   :  { %19337 = vst [vmem:[#allocation86_spill] sm:$0xff] %v14041_v43  ;;  %v2090_v12 = vrot.slane %v2058_v48, 1  ;;  %v2091_v5 = vrot.slane %v2061_v36, 1  ;;  %v2087_v55 = vrot.slane %v2057_v34, 1  ;;  %v2192_v48 = vrot.slane %v2166_v7, 2 }
 0x48a   :  { %v2197_v36 = vrot.slane %v2165_v50, 2  ;;  %v2198_v43 = vrot.slane %v2168_v63, 2  ;;  %v2191_v49 = vrot.slane %v2163_v6, 2  ;;  %v2009_v1 = vmul.f32 %v14034_v59, %v1957_v11 }
 0x48b   :  { %v14054_v20 = vpop.permute.xlu0 %3056  ;;  %v2092_v8 = vsel %vm19012_vm9, %v2090_v12, %v2091_v5  ;;  %v2195_v60 = vrot.slane %v2167_v21, 2  ;;  %v2194_v54 = vrot.slane %v2164_v9, 2  ;;  %v2114_v58 = vadd.f32 %v2085_v35, %v14030_v32 }
 0x48c   :  { %19338 = vst [vmem:[#allocation87_spill] sm:$0xff] %v14054_v20  ;;  %v14059_v41 = vpop.permute.xlu1 %2707  ;;  %v2006_v26 = vmul.f32 %v14034_v59, %v13315_v30  ;;  %v2086_v62 = vsel %vm19012_vm9, %v2084_v42, %v2085_v35  ;;  %v2008_v34 = vmul.f32 %v1987_v4, %v1956_v37  ;;  %v2116_v7 = vadd.f32 %v2091_v5, %v2009_v1 }
 0x48d   :  { %v2004_v11 = vmul.f32 %v14012_v29, %v13300_v23  ;;  %v2089_v9 = vsel %vm19012_vm9, %v2087_v55, %v2088_v44  ;;  %v2199_v63 = vsel %vm19011_vm11, %v2197_v36, %v2198_v43  ;;  %v2193_v32 = vsel %vm19011_vm11, %v2191_v49, %v2192_v48 }
 0x48e   :  { %v2113_v50 = vadd.f32 %v2092_v8, %v2006_v26  ;;  %v2115_v30 = vadd.f32 %v2088_v44, %v2008_v34  ;;  %v2212_v37 = vadd.f32 %v2184_v52, %v14043_v13  ;;  %v2221_v29 = vadd.f32 %v2192_v48, %v2114_v58  ;;  %v19343_v58 = vld [vmem:[#allocation18_spill] sm:$0xff] }
 0x48f   :  { %v14067_v17 = vpop.permute.xlu0 %2705  ;;  %v2111_v59 = vadd.f32 %v2086_v62, %v2004_v11  ;;  %v2368_v42 = vsel %vm19013_vm14, %v13639_v47, %v13647_v56  ;;  %v2366_v13 = vsel %vm19013_vm14, %v13626_v27, %v13673_v40  ;;  %v2364_v56 = vsel %vm19013_vm14, %v13683_v15, %v13650_v14  ;;  %v19347_v11 = vld [vmem:[#allocation15_spill] sm:$0xff] }
 0x490   :  { %v14071_v20 = vpop.permute.xlu1 %2699  ;;  %v2220_v5 = vadd.f32 %v2199_v63, %v2113_v50  ;;  %v2222_v21 = vadd.f32 %v2195_v60, %v2115_v30  ;;  %v2371_v27 = vsel %vm19013_vm14, %v13708_v39, %v13698_v18  ;;  %v2390_v44 = vadd.f32 %v2366_v13, %v2215_v31  ;;  %v19348_v63 = vld [vmem:[#allocation40_spill] sm:$0xff]  ;;  %v19350_v30 = vld [vmem:[#allocation25_spill] sm:$0xff]  ;;  %v19358_v13 = vld [vmem:[#allocation31_spill] sm:$0xff] }
 0x491   :  { %19339 = vst [vmem:[#allocation88_spill] sm:$0xff] %v14071_v20  ;;  %v2187_v20 = vsel %vm19011_vm11, %v2185_v0, %v2186_v25  ;;  %v2005_v25 = vmul.f32 %v1987_v4, %v13309_v28  ;;  %v2196_v0 = vsel %vm19011_vm11, %v2194_v54, %v2195_v60  ;;  %v2223_v28 = vadd.f32 %v2198_v43, %v2116_v7  ;;  %v19341_v54 = vld [vmem:[#allocation16_spill] sm:$0xff]  ;;  %v19346_v7 = vld [vmem:[#allocation23_spill] sm:$0xff] }
 0x492   :  { %v2213_v23 = vadd.f32 %v2187_v20, %v14045_v61  ;;  %v2218_v35 = vadd.f32 %v2193_v32, %v2111_v59  ;;  %v2365_v4 = vsel %vm19013_vm14, %v13650_v14, %v13658_v16  ;;  %v2367_v20 = vsel %vm19013_vm14, %v13673_v40, %v13639_v47  ;;  %v19351_v59 = vld [vmem:[#allocation20_spill] sm:$0xff] }
 0x493   :  { %v14078_v2 = vpop.permute.xlu0 %2695  ;;  %v2112_v12 = vadd.f32 %v2089_v9, %v2005_v25  ;;  %v2363_v43 = vsel %vm19013_vm14, %v13637_v46, %v13683_v15  ;;  %v2372_v16 = vsel %vm19013_vm14, %v13664_v45, %v13694_v19  ;;  %v2373_v47 = vsel %vm19013_vm14, %v13694_v19, %v13711_v53  ;;  %v19349_v25 = vld [vmem:[#allocation36_spill] sm:$0xff] }
 0x494   :  { %v14085_v51 = vpop.permute.xlu1 %2719  ;;  %v2374_v46 = vsel %vm19013_vm14, %v13711_v53, %v13689_v24  ;;  %v2369_v14 = vsel %vm19013_vm14, %v13677_v22, %v13729_v33  ;;  %v2392_v45 = vadd.f32 %v2368_v42, %v14056_v57  ;;  %v2389_v15 = vadd.f32 %v2365_v4, %v14061_v10  ;;  %v19340_v57 = vld [vmem:[#allocation17_spill] sm:$0xff]  ;;  %v19342_v10 = vld [vmem:[#allocation19_spill] sm:$0xff] }
 0x495   :  { %v2219_v61 = vadd.f32 %v2196_v0, %v2112_v12  ;;  %v2370_v18 = vsel %vm19013_vm14, %v13729_v33, %v13708_v39  ;;  %v2391_v19 = vadd.f32 %v2367_v20, %v14069_v3  ;;  %v2387_v55 = vadd.f32 %v2363_v43, %v2212_v37  ;;  %v19344_v33 = vld [vmem:[#allocation21_spill] sm:$0xff]  ;;  %v19345_v3 = vld [vmem:[#allocation14_spill] sm:$0xff]  ;;  %v19359_v20 = vld [vmem:[#allocation24_spill] sm:$0xff] }
 0x496   :  { %v2388_v48 = vadd.f32 %v2364_v56, %v2213_v23  ;;  %v2396_v24 = vadd.f32 %v2372_v16, %v2221_v29  ;;  %v2395_v53 = vadd.f32 %v2371_v27, %v2220_v5  ;;  %v2397_v36 = vadd.f32 %v2373_v47, %v2222_v21  ;;  %v19352_v37 = vld [vmem:[#allocation38_spill] sm:$0xff]  ;;  %v19353_v23 = vld [vmem:[#allocation39_spill] sm:$0xff]  ;;  %v19354_v5 = vld [vmem:[#allocation49_spill] sm:$0xff] }
 0x497   :  { %v14094_v6 = vpop.permute.xlu0 %2701  ;;  %v2398_v49 = vadd.f32 %v2374_v46, %v2223_v28  ;;  %v2393_v22 = vadd.f32 %v2369_v14, %v2218_v35  ;;  %v2394_v60 = vadd.f32 %v2370_v18, %v2219_v61  ;;  %v14148_v31 = vsel %vm19016_vm8, %v19341_v54, %v19340_v57  ;;  %v19355_v21 = vld [vmem:[#allocation41_spill] sm:$0xff]  ;;  %v19356_v35 = vld [vmem:[#allocation27_spill] sm:$0xff]  ;;  %v19362_v46 = vld [vmem:[#allocation22_spill] sm:$0xff] }
 0x498   :  { %v14098_v8 = vpop.permute.xlu1 %2725  ;;  %v14153_v39 = vsel %vm19016_vm8, %v19343_v58, %v19342_v10  ;;  %v2889_v26 = vsel %vm19016_vm8, %v19345_v3, %v19344_v33  ;;  %v2890_v34 = vsel %vm19016_vm8, %v19344_v33, %v19341_v54  ;;  %v14166_v9 = vsel %vm19016_vm8, %v19347_v11, %v19346_v7  ;;  %v19357_v42 = vld [vmem:[#allocation29_spill] sm:$0xff]  ;;  %v19360_v56 = vld [vmem:[#allocation83_spill] sm:$0xff]  ;;  %v19364_v11 = vld [vmem:[#allocation46_spill] sm:$0xff] }
 0x499   :  { %v2887_v50 = vsel %vm19016_vm8, %v19346_v7, %v19343_v58  ;;  %v2548_v32 = vsel %vm19013_vm14, %v19349_v25, %v19348_v63  ;;  %v14177_v0 = vsel %vm19016_vm8, %v19351_v59, %v19350_v30  ;;  %v2550_v29 = vsel %vm19013_vm14, %v19353_v23, %v19352_v37  ;;  %v19361_v47 = vld [vmem:[#allocation37_spill] sm:$0xff]  ;;  %v19363_v7 = vld [vmem:[#allocation56_spill] sm:$0xff]  ;;  %v19366_v59 = vld [vmem:[#allocation58_spill] sm:$0xff] }
 0x49a   :  { %v2549_v12 = vsel %vm19013_vm14, %v19348_v63, %v19353_v23  ;;  %v2547_v28 = vsel %vm19013_vm14, %v19355_v21, %v19354_v5  ;;  %v14191_v4 = vsel %vm19016_vm8, %v19357_v42, %v19356_v35  ;;  %v14196_v61 = vsel %vm19016_vm8, %v19350_v30, %v19358_v13  ;;  %v19365_v30 = vld [vmem:[#allocation52_spill] sm:$0xff]  ;;  %v19368_v37 = vld [vmem:[#allocation47_spill] sm:$0xff] }
 0x49b   :  { %v14121_v52 = vpop.permute.xlu0 %3226  ;;  %v14201_v43 = vsel %vm19016_vm8, %v19358_v13, %v19359_v20  ;;  %v2730_v16 = vsel %vm19013_vm14, %v19360_v56, %v14067_v17  ;;  %v14209_v14 = vsel %vm19016_vm8, %v19362_v46, %v19361_v47  ;;  %v14214_v18 = vsel %vm19016_vm8, %v19361_v47, %v19357_v42  ;;  %v19372_v42 = vld [vmem:[#allocation70_spill] sm:$0xff]  ;;  %v19373_v13 = vld [vmem:[#allocation63_spill] sm:$0xff] }
 0x49c   :  { %v14135_v40 = vpop.permute.xlu1 %3230  ;;  %v2572_v57 = vadd.f32 %v2548_v32, %v2390_v44  ;;  %v2731_v54 = vsel %vm19013_vm14, %v14067_v17, %v14059_v41  ;;  %v2574_v58 = vadd.f32 %v2550_v29, %v2392_v45  ;;  %v2573_v33 = vadd.f32 %v2549_v12, %v2391_v19  ;;  %v19367_v32 = vld [vmem:[#allocation61_spill] sm:$0xff]  ;;  %v19370_v19 = vld [vmem:[#allocation66_spill] sm:$0xff] }
 0x49d   :  { %v2571_v3 = vadd.f32 %v2547_v28, %v2389_v15  ;;  %v2545_v63 = vsel %vm19013_vm14, %v19364_v11, %v19363_v7  ;;  %v2546_v25 = vsel %vm19013_vm14, %v19363_v7, %v19355_v21  ;;  %v2556_v44 = vsel %vm19013_vm14, %v19366_v59, %v19365_v30  ;;  %v19369_v15 = vld [vmem:[#allocation67_spill] sm:$0xff]  ;;  %v19371_v12 = vld [vmem:[#allocation85_spill] sm:$0xff] }
 0x49e   :  { %v2554_v17 = vsel %vm19013_vm14, %v19368_v37, %v19367_v32  ;;  %v2754_v23 = vadd.f32 %v2730_v16, %v2572_v57  ;;  %v2555_v45 = vsel %vm19013_vm14, %v19367_v32, %v19366_v59  ;;  %v2553_v29 = vsel %vm19013_vm14, %v19370_v19, %v19369_v15  ;;  %v19374_v16 = vld [vmem:[#allocation88_spill] sm:$0xff] }
 0x49f   :  { %v14143_v1 = vpop.permute.xlu0 %3232  ;;  %v2732_v5 = vsel %vm19013_vm14, %v14059_v41, %v19371_v12  ;;  %v2755_v21 = vadd.f32 %v2731_v54, %v2573_v33  ;;  %v2569_v35 = vadd.f32 %v2545_v63, %v2387_v55  ;;  %v2551_v20 = vsel %vm19013_vm14, %v19373_v13, %v19372_v42 }
 0x4a0   :  { %v14158_v62 = vpop.permute.xlu1 %2723  ;;  %v2570_v57 = vadd.f32 %v2546_v25, %v2388_v48  ;;  %v2580_v7 = vadd.f32 %v2556_v44, %v2398_v49  ;;  %v2578_v11 = vadd.f32 %v2554_v17, %v2396_v24  ;;  %v2552_v41 = vsel %vm19013_vm14, %v19372_v42, %v19370_v19  ;;  %v19375_v48 = vld [vmem:[#allocation71_spill] sm:$0xff]  ;;  %v19376_v49 = vld [vmem:[#allocation72_spill] sm:$0xff]  ;;  %v19377_v25 = vld [vmem:[#allocation73_spill] sm:$0xff] }
 0x4a1   :  { %v2579_v55 = vadd.f32 %v2555_v45, %v2397_v36  ;;  %v14254_v54 = vadd.f32 %v2553_v29, %v2395_v53  ;;  %v2756_v33 = vadd.f32 %v2732_v5, %v2574_v58  ;;  %v2913_v63 = vadd.f32 %v2889_v26, %v2754_v23  ;;  %v19378_v44 = vld [vmem:[#allocation69_spill] sm:$0xff]  ;;  %v19382_v17 = vld [vmem:[#allocation75_spill] sm:$0xff]  ;;  %v19383_v19 = vld [vmem:[#allocation78_spill] sm:$0xff] }
 0x4a2   :  { %v14256_v30 = vadd.f32 %v2551_v20, %v2393_v22  ;;  %v14258_v37 = vadd.f32 %v2552_v41, %v2394_v60  ;;  %v3073_v24 = vsel %vm19016_vm8, %v19376_v49, %v19375_v48  ;;  %v3071_v36 = vsel %vm19016_vm8, %v19378_v44, %v19377_v25  ;;  %v19379_v26 = vld [vmem:[#allocation77_spill] sm:$0xff]  ;;  %v19381_v60 = vld [vmem:[#allocation79_spill] sm:$0xff]  ;;  %v19384_v29 = vld [vmem:[#allocation80_spill] sm:$0xff] }
 0x4a3   :  { %v2698_v27 = vpop.permute.xlu0 %2697  ;;  %v3072_v53 = vsel %vm19016_vm8, %v19377_v25, %v19376_v49  ;;  %v3068_v23 = vsel %vm19016_vm8, %v19382_v17, %v19381_v60  ;;  %v3079_v12 = vsel %vm19016_vm8, %v19384_v29, %v19383_v19  ;;  %v2915_v5 = vadd.f32 %v14148_v31, %v2756_v33 }
 0x4a4   :  { %v14219_v10 = vpop.permute.xlu1 %2711  ;;  %v2727_v56 = vsel %vm19013_vm14, %v14078_v2, %v2698_v27  ;;  %v2728_v47 = vsel %vm19013_vm14, %v2698_v27, %v19374_v16  ;;  %v2914_v2 = vadd.f32 %v2890_v34, %v2755_v21  ;;  %v19380_v34 = vld [vmem:[#allocation74_spill] sm:$0xff]  ;;  %v3095_v21 = vadd.f32 %v3071_v36, %v2913_v63 }
 0x4a5   :  { %v2751_v59 = vadd.f32 %v2727_v56, %v2569_v35  ;;  %v2752_v32 = vadd.f32 %v2728_v47, %v2570_v57  ;;  %v14274_v58 = vsel %vm19016_vm8, %v19380_v34, %v19379_v26  ;;  %v3069_v45 = vsel %vm19016_vm8, %v19381_v60, %v19380_v34  ;;  %v19386_v57 = vld [vmem:[#allocation76_spill] sm:$0xff] }
 0x4a6   :  { %v2738_v42 = vsel %vm19013_vm14, %v14158_v62, %v14098_v8  ;;  %v3096_v56 = vadd.f32 %v3072_v53, %v2914_v2  ;;  %v2729_v31 = vsel %vm19013_vm14, %v19374_v16, %v14094_v6  ;;  %v19389_v16 = vld [vmem:[#allocation87_spill] sm:$0xff]  ;;  %v3097_v44 = vadd.f32 %v3073_v24, %v2915_v5 }
 0x4a7   :  { %v3229_v28 = vpop.permute.xlu0 %3228  ;;  %v2910_v13 = vadd.f32 %v14166_v9, %v2751_v59  ;;  %v2911_v20 = vadd.f32 %v2887_v50, %v2752_v32  ;;  %v19387_v9 = vld [vmem:[#allocation86_spill] sm:$0xff]  ;;  %v2762_v48 = vadd.f32 %v2738_v42, %v2580_v7  ;;  %v2753_v25 = vadd.f32 %v2729_v31, %v2571_v3 }
 0x4a8   :  { %v14249_v46 = vpop.permute.xlu1 %2717  ;;  %v3253_v15 = vsel %vm19016_vm8, %v14121_v52, %v3229_v28  ;;  %v3254_v35 = vsel %vm19016_vm8, %v3229_v28, %v14135_v40  ;;  %v19385_v52 = vld [vmem:[#allocation81_spill] sm:$0xff]  ;;  %v19388_v50 = vld [vmem:[#allocation82_spill] sm:$0xff]  ;;  %v14319_v32 = vsel %vm19016_vm8, %v19387_v9, %v19389_v16 }
 0x4a9   :  { %v3077_v41 = vsel %vm19016_vm8, %v19386_v57, %v19385_v52  ;;  %v14300_v33 = vadd.f32 %v3253_v15, %v3095_v21  ;;  %v3078_v8 = vsel %vm19016_vm8, %v19385_v52, %v19384_v29  ;;  %v14310_v2 = vsel %vm19016_vm8, %v19388_v50, %v19387_v9 }
 0x4aa   :  { %v14312_v59 = vadd.f32 %v3254_v35, %v3096_v56  ;;  %v3092_v36 = vadd.f32 %v3068_v23, %v2910_v13  ;;  %v3093_v26 = vadd.f32 %v3069_v45, %v2911_v20  ;;  %v2921_v7 = vadd.f32 %v14201_v43, %v2762_v48 }
 0x4ab   :  { %v3219_v27 = vpop.permute.xlu0 %3218  ;;  %v3339_v34 = vmul.f32 %v14300_v33, %v14300_v33  ;;  %v2912_v43 = vadd.f32 %v14153_v39, %v2753_v25 }
 0x4ac   :  { %v14269_v22 = vpop.permute.xlu1 %3222  ;;  %v3103_v50 = vadd.f32 %v3079_v12, %v2921_v7 }
 0x4ad   :  { %v3348_v21 = vsel %vm19019_vm0, %v3339_v34, 0.0 }
 0x4af   :  { %v2722_v47 = vpop.permute.xlu0 %2721 }
 0x4b0   :  { %v2736_v28 = vsel %vm19013_vm14, %v14085_v51, %v2722_v47  ;;  %v3243_v63 = vpop.permute.xlu1 %3242  ;;  %v2737_v6 = vsel %vm19013_vm14, %v2722_v47, %v14158_v62  ;;  %v3255_v51 = vsel %vm19016_vm8, %v14135_v40, %v14143_v1  ;;  %v3340_v40 = vmul.f32 %v14312_v59, %v14312_v59 }
 0x4b1   :  { %v2760_v49 = vadd.f32 %v2736_v28, %v2578_v11  ;;  %v2761_v62 = vadd.f32 %v2737_v6, %v2579_v55  ;;  %v14329_v19 = vadd.f32 %v3255_v51, %v3097_v44  ;;  %v3288_v11 = vsel %vm19019_vm0, %v14300_v33, 0.0 }
 0x4b2   :  { %v3296_v55 = vsel %vm19019_vm0, %v14312_v59, 0.0  ;;  %v3356_v13 = vsel %vm19019_vm0, %v3340_v40, 0.0  ;;  %v3094_v40 = vadd.f32 %v14274_v58, %v2912_v43 }
 0x4b3   :  { %v3221_v53 = vpop.permute.xlu0 %3220  ;;  %v2920_v35 = vadd.f32 %v14196_v61, %v2761_v62  ;;  %v3341_v61 = vmul.f32 %v14329_v19, %v14329_v19  ;;  %v19390_v62 = vld [vmem:[#allocation84_spill] sm:$0xff] }
 0x4b4   :  { %v3250_v60 = vsel %vm19016_vm8, %v3219_v27, %v3221_v53  ;;  %v3251_v17 = vsel %vm19016_vm8, %v3221_v53, %v14269_v22  ;;  %v3249_v15 = vpop.permute.xlu1 %3248  ;;  %v2919_v27 = vadd.f32 %v14177_v0, %v2760_v49 }
 0x4b5   :  { %v14333_v1 = vadd.f32 %v3250_v60, %v3092_v36  ;;  %v14335_v3 = vadd.f32 %v3251_v17, %v3093_v26  ;;  %v3102_v49 = vadd.f32 %v3078_v8, %v2920_v35  ;;  %v3076_v60 = vsel %vm19016_vm8, %v19389_v16, %v19390_v62 }
 0x4b7   :  { %v3289_v24 = vadd.f32 %v3288_v11, %v14333_v1  ;;  %v3297_v23 = vadd.f32 %v3296_v55, %v14335_v3  ;;  %v3336_v45 = vmul.f32 %v14333_v1, %v14333_v1  ;;  %v3337_v29 = vmul.f32 %v14335_v3, %v14335_v3  ;;  %v2716_v5 = vpop.permute.xlu0 %2715 }
 0x4b8   :  { %v2735_v0 = vsel %vm19013_vm14, %v2716_v5, %v14249_v46  ;;  %v2714_v42 = vpop.permute.xlu1 %2713  ;;  %v3101_v46 = vadd.f32 %v3077_v41, %v2919_v27 }
 0x4b9   :  { %v3290_v20 = vrot.slane %v3289_v24, 4  ;;  %v3298_v56 = vrot.slane %v3297_v23, 4  ;;  %v3349_v47 = vadd.f32 %v3348_v21, %v3336_v45  ;;  %v3357_v52 = vadd.f32 %v3356_v13, %v3337_v29 }
 0x4ba   :  { %v2759_v57 = vadd.f32 %v2735_v0, %v14254_v54  ;;  %v2733_v31 = vsel %vm19013_vm14, %v14219_v10, %v2714_v42  ;;  %v2734_v39 = vsel %vm19013_vm14, %v2714_v42, %v2716_v5 }
 0x4bb   :  { %v3291_v28 = vadd.f32 %v3290_v20, %v3289_v24  ;;  %v3245_v9 = vpop.permute.xlu0 %3244  ;;  %v2757_v6 = vadd.f32 %v2733_v31, %v14256_v30  ;;  %v2758_v51 = vadd.f32 %v2734_v39, %v14258_v37  ;;  %v3299_v25 = vadd.f32 %v3298_v56, %v3297_v23 }
 0x4bc   :  { %v3259_v48 = vsel %vm19016_vm8, %v3243_v63, %v3245_v9  ;;  %v3247_v54 = vpop.permute.xlu1 %3246  ;;  %v3350_v44 = vrot.slane %v3349_v47, 4  ;;  %v3358_v53 = vrot.slane %v3357_v52, 4  ;;  %v2918_v26 = vadd.f32 %v14191_v4, %v2759_v57 }
 0x4bd   :  { %v14364_v10 = vadd.f32 %v3259_v48, %v3101_v46  ;;  %v3260_v36 = vsel %vm19016_vm8, %v3245_v9, %v3247_v54  ;;  %v3261_v41 = vsel %vm19016_vm8, %v3247_v54, %v3249_v15  ;;  %v3292_v30 = vrot.slane %v3291_v28, 2 }
 0x4be   :  { %v14369_v12 = vadd.f32 %v3260_v36, %v3102_v49  ;;  %v2916_v37 = vadd.f32 %v14209_v14, %v2757_v6  ;;  %v2917_v63 = vadd.f32 %v14214_v18, %v2758_v51  ;;  %v14373_v8 = vadd.f32 %v3261_v41, %v3103_v50 }
 0x4bf   :  { %v3239_v34 = vpop.permute.xlu0 %3238  ;;  %v3345_v17 = vmul.f32 %v14364_v10, %v14364_v10  ;;  %v3304_v14 = vsel %vm19019_vm0, %v14329_v19, 0.0  ;;  %v3364_v18 = vsel %vm19019_vm0, %v3341_v61, 0.0  ;;  %v3351_v7 = vadd.f32 %v3350_v44, %v3349_v47 }
 0x4c0   :  { %v3346_v4 = vmul.f32 %v14369_v12, %v14369_v12  ;;  %v3235_v15 = vpop.permute.xlu1 %3234  ;;  %v3312_v11 = vsel %vm19019_vm0, %v14364_v10, 0.0  ;;  %v3320_v16 = vsel %vm19019_vm0, %v14369_v12, 0.0  ;;  %v3347_v55 = vmul.f32 %v14373_v8, %v14373_v8 }
 0x4c1   :  { %v3100_v27 = vadd.f32 %v3076_v60, %v2918_v26  ;;  %v3300_v24 = vrot.slane %v3299_v25, 2  ;;  %v3098_v58 = vadd.f32 %v14310_v2, %v2916_v37  ;;  %v3099_v45 = vadd.f32 %v14319_v32, %v2917_v63 }
 0x4c2   :  { %v3359_v29 = vadd.f32 %v3358_v53, %v3357_v52  ;;  %v14394_v5 = vadd.f32 %v3292_v30, %v3291_v28  ;;  %v3372_v43 = vsel %vm19019_vm0, %v3345_v17, 0.0  ;;  %v3380_v21 = vsel %vm19019_vm0, %v3346_v4, 0.0 }
 0x4c3   :  { %v3225_v23 = vpop.permute.xlu0 %3224  ;;  %v3328_v42 = vsel %vm19019_vm0, %v14373_v8, 0.0  ;;  %v3352_v20 = vrot.slane %v3351_v7, 2  ;;  %v3388_v52 = vsel %vm19019_vm0, %v3347_v55, 0.0  ;;  %v3301_v57 = vadd.f32 %v3300_v24, %v3299_v25 }
 0x4c4   :  { %v3252_v35 = vsel %vm19016_vm8, %v14269_v22, %v3225_v23  ;;  %v3237_v0 = vpop.permute.xlu1 %3236  ;;  %v3360_v39 = vrot.slane %v3359_v29, 2  ;;  %v3294_v61 = vrot.slane %v14394_v5, 1 }
 0x4c5   :  { %v14402_v13 = vadd.f32 %v3252_v35, %v3094_v40  ;;  %v3256_v2 = vsel %vm19016_vm8, %v3235_v15, %v3237_v0  ;;  %v3257_v32 = vsel %vm19016_vm8, %v3237_v0, %v3239_v34  ;;  %v3353_v54 = vadd.f32 %v3352_v20, %v3351_v7 }
 0x4c6   :  { %v14406_v56 = vadd.f32 %v3256_v2, %v3098_v58  ;;  %v14408_v47 = vadd.f32 %v3257_v32, %v3099_v45  ;;  %v3361_v37 = vadd.f32 %v3360_v39, %v3359_v29  ;;  %v3302_v24 = vrot.slane %v3301_v57, 1 }
 0x4c7   :  { %v3305_v22 = vadd.f32 %v3304_v14, %v14402_v13  ;;  %v3338_v31 = vmul.f32 %v14402_v13, %v14402_v13  ;;  %v3354_v29 = vrot.slane %v3353_v54, 1 }
 0x4c8   :  { %v3313_v28 = vadd.f32 %v3312_v11, %v14406_v56  ;;  %v3321_v9 = vadd.f32 %v3320_v16, %v14408_v47  ;;  %v3342_v46 = vmul.f32 %v14406_v56, %v14406_v56  ;;  %v3343_v50 = vmul.f32 %v14408_v47, %v14408_v47  ;;  %v3241_v6 = vpop.permute.xlu1 %3240 }
 0x4c9   :  { %v3306_v51 = vrot.slane %v3305_v22, 4  ;;  %v3365_v48 = vadd.f32 %v3364_v18, %v3338_v31  ;;  %v3258_v49 = vsel %vm19016_vm8, %v3239_v34, %v3241_v6  ;;  %v3362_v35 = vrot.slane %v3361_v37, 1 }
 0x4ca   :  { %v3314_v25 = vrot.slane %v3313_v28, 4  ;;  %v3322_v44 = vrot.slane %v3321_v9, 4  ;;  %v3373_v36 = vadd.f32 %v3372_v43, %v3342_v46  ;;  %v3381_v53 = vadd.f32 %v3380_v21, %v3343_v50 }
 0x4cb   :  { %v3307_v26 = vadd.f32 %v3306_v51, %v3305_v22  ;;  %v3366_v41 = vrot.slane %v3365_v48, 4  ;;  %v14422_v30 = vadd.f32 %v3258_v49, %v3100_v27 }
 0x4cc   :  { %v3315_v63 = vadd.f32 %v3314_v25, %v3313_v28  ;;  %v3323_v62 = vadd.f32 %v3322_v44, %v3321_v9  ;;  %v3374_v60 = vrot.slane %v3373_v36, 4  ;;  %v3382_v17 = vrot.slane %v3381_v53, 4 }
 0x4cd   :  { %v3308_v4 = vrot.slane %v3307_v26, 2  ;;  %v3367_v15 = vadd.f32 %v3366_v41, %v3365_v48  ;;  %v3329_v40 = vadd.f32 %v3328_v42, %v14422_v30  ;;  %v3344_v34 = vmul.f32 %v14422_v30, %v14422_v30 }
 0x4ce   :  { %v3316_v14 = vrot.slane %v3315_v63, 2  ;;  %v3375_v18 = vadd.f32 %v3374_v60, %v3373_v36  ;;  %v3324_v7 = vrot.slane %v3323_v62, 2  ;;  %v3383_v11 = vadd.f32 %v3382_v17, %v3381_v53 }
 0x4cf   :  { %v3368_v16 = vrot.slane %v3367_v15, 2  ;;  %v3330_v55 = vrot.slane %v3329_v40, 4  ;;  %v3389_v27 = vadd.f32 %v3388_v52, %v3344_v34  ;;  %v3309_v42 = vadd.f32 %v3308_v4, %v3307_v26 }
 0x4d0   :  { %v3325_v23 = vadd.f32 %v3324_v7, %v3323_v62  ;;  %v3384_v58 = vrot.slane %v3383_v11, 2  ;;  %v3317_v45 = vadd.f32 %v3316_v14, %v3315_v63  ;;  %v3376_v0 = vrot.slane %v3375_v18, 2 }
 0x4d1   :  { %v3331_v43 = vadd.f32 %v3330_v55, %v3329_v40  ;;  %v3390_v21 = vrot.slane %v3389_v27, 4  ;;  %v3369_v28 = vadd.f32 %v3368_v16, %v3367_v15  ;;  %v3295_v52 = vadd.f32 %v3294_v61, %v14394_v5  ;;  %v19392_v16 = vld [vmem:[#allocation6_spill] sm:$0xff] }
 0x4d2   :  { %v3326_v2 = vrot.slane %v3325_v23, 1  ;;  %v3385_v32 = vadd.f32 %v3384_v58, %v3383_v11  ;;  %v3318_v20 = vrot.slane %v3317_v45, 1  ;;  %v3377_v39 = vadd.f32 %v3376_v0, %v3375_v18  ;;  %v19393_v58 = vld [vmem:[#allocation5_spill] sm:$0xff] }
 0x4d3   :  { %v3332_v22 = vrot.slane %v3331_v43, 2  ;;  %v3391_v31 = vadd.f32 %v3390_v21, %v3389_v27  ;;  %v3303_v48 = vadd.f32 %v3302_v24, %v3301_v57  ;;  %v3363_v25 = vadd.f32 %v3362_v35, %v3361_v37  ;;  %v19398_v21 = vld [vmem:[#allocation8_spill] sm:$0xff]  ;;  %v19399_v35 = vld [vmem:[#allocation9_spill] sm:$0xff] }
 0x4d4   :  { %v3327_v9 = vadd.f32 %v3326_v2, %v3325_v23  ;;  %v3386_v46 = vrot.slane %v3385_v32, 1  ;;  %v3319_v50 = vadd.f32 %v3318_v20, %v3317_v45  ;;  %v3378_v49 = vrot.slane %v3377_v39, 1  ;;  %v19394_v45 = vld [vmem:[#allocation7_spill] sm:$0xff] }
 0x4d5   :  { %v3333_v6 = vadd.f32 %v3332_v22, %v3331_v43  ;;  %v3392_v51 = vrot.slane %v3391_v31, 2  ;;  %v3355_v36 = vadd.f32 %v3354_v29, %v3353_v54  ;;  %v3310_v53 = vrot.slane %v3309_v42, 1 }
 0x4d6   :  { %v3387_v44 = vadd.f32 %v3386_v46, %v3385_v32  ;;  %v3379_v26 = vadd.f32 %v3378_v49, %v3377_v39  ;;  %v3370_v63 = vrot.slane %v3369_v28, 1  ;;  %v3403_v60 = vsel %vm19017_vm6, %v3327_v9, %v3303_v48  ;;  %v19416_v39 = vld [vmem:[#allocation26_spill] sm:$0xff] }
 0x4d7   :  { %v3334_v41 = vrot.slane %v3333_v6, 1  ;;  %v3393_v62 = vadd.f32 %v3392_v51, %v3391_v31  ;;  %v3402_v4 = vsel %vm19017_vm6, %v3319_v50, %v3295_v52  ;;  %v3311_v37 = vadd.f32 %v3310_v53, %v3309_v42 }
 0x4d8   :  { %v3416_v17 = vsel %vm19010_vm15, %v3387_v44, %v3363_v25  ;;  %v3415_v61 = vsel %vm19010_vm15, %v3379_v26, %v3355_v36  ;;  %v3371_v40 = vadd.f32 %v3370_v63, %v3369_v28  ;;  %v19391_v14 = vmov 0.0  }
 0x4d9   :  { %v3423_v5 = vsel %vm19018_vm2, %v3403_v60, %v3416_v17  ;;  %v3335_v57 = vadd.f32 %v3334_v41, %v3333_v6  ;;  %v3394_v15 = vrot.slane %v3393_v62, 1  ;;  %v3422_v54 = vsel %vm19018_vm2, %v3402_v4, %v3415_v61 }
 0x4da   :  { %3537 = vmatprep.mubr.f32.mxu0 %v3423_v5  ;;  %v3641_v55 = vadd.s32 128, %v19392_v16  ;;  %v3643_v27 = vand.u32 31, %v19392_v16  ;;  %v3642_v24 = vadd.s32 256, %v19392_v16  ;;  %v19395_v43 = vmov 0 }
 0x4db   :  { %3538 = vmatmul.mubr.f32.vlgmr.msra.gmra.mrb[16].mxu0 %v3422_v54  ;;  %v3395_v34 = vadd.f32 %v3394_v15, %v3393_v62  ;;  %v3404_v18 = vsel %vm19017_vm6, %v3335_v57, %v3311_v37  ;;  %v19400_v0 = vmov 0  ;;  %v19403_v42 = vmov 0 }
 0x4dc   :  { %3741 = vmatprep.mubr.f32.mxu0 %v19391_v14  ;;  %v3644_v23 = vand.u32 31, %v3641_v55  ;;  %vm3646_vm3 = vcmp.eq.s32.totalorder %v3643_v27, %v19393_v58  ;;  %vm3649_vm4 = vcmp.eq.s32.totalorder %v3643_v27, %v19394_v45  ;;  %v3645_v29 = vand.u32 31, %v3642_v24 }
 0x4dd   :  { %v3417_v7 = vsel %vm19010_vm15, %v3395_v34, %v3371_v40  ;;  %vm14445_vm5 = vmpackc.low %vm3649_vm4, %vm3646_vm3  ;;  %vm3652_vm15 = vcmp.eq.s32.totalorder %v3643_v27, %v19398_v21  ;;  %vm3655_vm11 = vcmp.eq.s32.totalorder %v3643_v27, %v19399_v35  ;;  %v19022_v2 = vmov 1.0|1.0   ;;  %v3286_v34 = vld [vmem:[%s18931_s1 + $0x22] sm:$0x1] }
 0x4de   :  { %v3424_v11 = vsel %vm19018_vm2, %v3404_v18, %v3417_v7  ;;  %v19396_v43 = vsel %vm14445_vm5, 4294967295, %v19395_v43  ;;  %vm3647_vm9 = vcmp.eq.s32.totalorder %v3644_v23, %v19393_v58  ;;  %vm3650_vm14 = vcmp.eq.s32.totalorder %v3644_v23, %v19394_v45  ;;  %vm14455_vm8 = vmpackc.low %vm3655_vm11, %vm3652_vm15 }
 0x4df   :  { %12295 = vmatmul.mubr.f32.vlgmr.msra.gmra.mrb[18].mxu1 %v3424_v11  ;;  %19397 = vst [vmem:[#allocation17_spill] sm:$0xff] %v19396_v43  ;;  %vm3648_vm13 = vcmp.eq.s32.totalorder %v3645_v29, %v19393_v58  ;;  %vm3651_vm12 = vcmp.eq.s32.totalorder %v3645_v29, %v19394_v45  ;;  %v19401_v0 = vsel %vm14455_vm8, 4294967295, %v19400_v0  ;;  %vm14459_vm3 = vmpackc.low %vm3650_vm14, %vm3647_vm9  ;;  %vm3653_vm4 = vcmp.eq.s32.totalorder %v3644_v23, %v19398_v21  ;;  %v3287_v11 = vld [vmem:[%s18931_s1 + $0x23] sm:$0x1]  ;;  %v19418_v58 = vld [vmem:[#allocation28_spill] sm:$0xff] }
 0x4e0   :  { %12305 = vmatprep.mubr.msk.f32.mxu1 %vm12723_vm7, %v19391_v14  ;;  %19402 = vst [vmem:[#allocation16_spill] sm:$0xff] %v19401_v0  ;;  %v19404_v42 = vsel %vm14459_vm3, 4294967295, %v19403_v42  ;;  %vm3656_vm6 = vcmp.eq.s32.totalorder %v3644_v23, %v19399_v35  ;;  %vm3654_vm2 = vcmp.eq.s32.totalorder %v3645_v29, %v19398_v21  ;;  %vm3657_vm0 = vcmp.eq.s32.totalorder %v3645_v29, %v19399_v35  ;;  %vm14470_vm11 = vmpackc.low %vm3651_vm12, %vm3648_vm13  ;;  %v19417_v23 = vld [vmem:[#allocation32_spill] sm:$0xff]  ;;  %v19419_v45 = vld [vmem:[#allocation30_spill] sm:$0xff] }
 0x4e1   :  { %19405 = vst [vmem:[#allocation19_spill] sm:$0xff] %v19404_v42  ;;  %12524 = vmatprep.subr.msk.bf16.mxu0 %vm14459_vm3, %v19022_v2  ;;  %v19406_v32 = vmov 0  ;;  %12533 = vmatpush3.bf16.msk.msra.mxu1 %vm14470_vm11, %v19022_v2  ;;  %vm14480_vm9 = vmpackc.low %vm3656_vm6, %vm3653_vm4  ;;  %v19409_v20 = vmov 0  ;;  %v19412_v22 = vmov 0.0|0.0   ;;  %v19413_v31 = vmov 0  ;;  %v19420_v29 = vld [vmem:[#allocation35_spill] sm:$0xff] }
 0x4e2   :  { %v19407_v32 = vsel %vm14470_vm11, 4294967295, %v19406_v32  ;;  %12526 = vmatpush1.bf16.msk.msra.mxu0 %vm14445_vm5, %v19022_v2  ;;  %v19410_v20 = vsel %vm14480_vm9, 4294967295, %v19409_v20  ;;  %12534 = vmatprep.subr.bf16.mxu1 %v19412_v22  ;;  %vm14488_vm12 = vmpackc.low %vm3657_vm0, %vm3654_vm2  ;;  %vm19021_vm0 = vcmask 254976   ;;  %v19421_v21 = vld [vmem:[#allocation33_spill] sm:$0xff]  ;;  %v19422_v35 = vld [vmem:[#allocation34_spill] sm:$0xff]  ;;  %vm19441_vm6 = vcmask 1043456  }
 0x4e3   :  { %19408 = vst [vmem:[#allocation18_spill] sm:$0xff] %v19407_v32  ;;  %19411 = vst [vmem:[#allocation21_spill] sm:$0xff] %v19410_v20  ;;  %12528 = vmatprep.subr.msk.bf16.mxu0 %vm14480_vm9, %v19022_v2  ;;  %v19414_v31 = vsel %vm14488_vm12, 4294967295, %v19413_v31 }
 0x4e4   :  { %19415 = vst [vmem:[#allocation14_spill] sm:$0xff] %v19414_v31  ;;  %vm19442_vm13 = vmmov %vm19441_vm6 }
 0x4e5   :  { %12536 = vmatpush3.bf16.msk.msra.mxu1 %vm14488_vm12, %v19022_v2  ;;  %vm19443_vm14 = vmmov %vm19441_vm6 }
 0x4e6   :  { %12530 = vmatpush1.bf16.msk.msra.mxu0 %vm14455_vm8, %v19022_v2  ;;  %12569 = vmatprep.subr.bf16.mxu1 %v19412_v22  ;;  %vm19444_vm15 = vmmov %vm19441_vm6 }
 0x4e7   :  { %12538 = vmatprep.subr.bf16.mxu0 %v19416_v39  ;;  %v19423_v39 = vld [vmem:[#allocation44_spill] sm:$0xff]  ;;  %vm19445_vm2 = vmmov %vm19441_vm6 }
 0x4e8   :  { %vm19446_vm4 = vmmov %vm19445_vm2 }
 0x5ae   :  { %v12070_v28 = vpop.f32.mrb[16].mxu0 }
 0x5af   :  { %v12071_v9 = vpop.f32.mrb[17].mxu0 }
 0x5b0   :  { %v12072_v46 = vadd.f32 %v12071_v9, %v12070_v28  ;;  %v19424_v28 = vld [vmem:[#allocation42_spill] sm:$0xff]  ;;  %v19425_v9 = vld [vmem:[#allocation43_spill] sm:$0xff] }
 0x5b2   :  { %v3609_v52 = vpop.f32.mrb[18].mxu1 }
 0x5b3   :  { %v3610_v50 = vadd.f32 %v12072_v46, %v3609_v52  ;;  %v12296_v6 = vpop.f32.mrb[19].mxu1  ;;  %v19426_v46 = vld [vmem:[#allocation50_spill] sm:$0xff]  ;;  %v19427_v52 = vld [vmem:[#allocation45_spill] sm:$0xff] }
 0x5b4   :  { %v19429_v6 = vld [vmem:[#allocation54_spill] sm:$0xff] }
 0x5b5   :  { %v3614_v51 = vsel %vm19021_vm0, %v3610_v50, 0.0  ;;  %v3623_v48 = vrot.slane %v3610_v50, 2  ;;  %v19428_v50 = vld [vmem:[#allocation48_spill] sm:$0xff] }
 0x5b6   :  { %v3615_v49 = vrot.slane %v3614_v51, 4 }
 0x5b7   :  { %v3625_v25 = vsel %vm19021_vm0, %v3623_v48, 0.0  ;;  %v19431_v48 = vld [vmem:[#allocation53_spill] sm:$0xff] }
 0x5b8   :  { %v3616_v44 = vadd.f32 %v3615_v49, %v3614_v51  ;;  %v3626_v36 = vrot.slane %v3625_v25, 4  ;;  %v19430_v51 = vld [vmem:[#allocation51_spill] sm:$0xff] }
 0x5b9   :  { %v19432_v49 = vld [vmem:[#allocation59_spill] sm:$0xff] }
 0x5ba   :  { %v3617_v53 = vrot.slane %v3616_v44, 2  ;;  %v3627_v26 = vadd.f32 %v3626_v36, %v3625_v25  ;;  %v19433_v25 = vld [vmem:[#allocation55_spill] sm:$0xff]  ;;  %v19435_v36 = vld [vmem:[#allocation64_spill] sm:$0xff] }
 0x5bc   :  { %v3618_v41 = vadd.f32 %v3617_v53, %v3616_v44  ;;  %v3628_v63 = vrot.slane %v3627_v26, 2  ;;  %v19434_v44 = vld [vmem:[#allocation57_spill] sm:$0xff]  ;;  %v19436_v53 = vld [vmem:[#allocation60_spill] sm:$0xff] }
 0x5be   :  { %v3619_v62 = vrot.slane %v3618_v41, 1  ;;  %v3629_v60 = vadd.f32 %v3628_v63, %v3627_v26  ;;  %v19437_v26 = vld [vmem:[#allocation62_spill] sm:$0xff]  ;;  %v19439_v63 = vld [vmem:[#allocation65_spill] sm:$0xff] }
 0x5c0   :  { %v3620_v17 = vadd.f32 %v3619_v62, %v3618_v41  ;;  %v3630_v4 = vrot.slane %v3629_v60, 1  ;;  %v19438_v41 = vld [vmem:[#allocation68_spill] sm:$0xff] }
 0x5c2   :  { %v3621_v5 = vmul.f32 0.0034722222, %v3620_v17  ;;  %v3631_v61 = vadd.f32 %v3630_v4, %v3629_v60  ;;  %v19440_v17 = vld [vmem:[#allocation11_spill] sm:$0xff] }
 0x5c4   :  { %v3632_v57 = vmul.f32 0.0034722222, %v3631_v61  ;;  %v3633_v15 = vmul.f32 %v3621_v5, %v3621_v5 }
 0x5c6   :  { %v3634_v54 = vsub.f32 %v3632_v57, %v3633_v15 }
 0x5c8   :  { %v3635_v37 = vmax.f32 %v3634_v54, 0.0 }
 0x5ca   :  { %v3636_v40 = vadd.f32 1e-05, %v3635_v37 }
 0x5cc   :  { %12679 = vrsqrt.f32 %v3636_v40 }
 0x5d6   :  { %v12680_v18 = vpop.eup %12679 }
 0x5d7   :  { %v3638_v7 = vmul.f32 %v12680_v18, %v3286_v34 }
 0x5d9   :  { %v3639_v16 = vmul.f32 %v3638_v7, %v3621_v5 }
 0x5db   :  { %v3640_v55 = vsub.f32 %v3287_v11, %v3639_v16 }
 0x5dd   :  { %v3671_v27 = vrot.slane %v3640_v55, 7 }
 0x5df   :  { %v3673_v24 = vsel %vm19020_vm10, %v3638_v7, %v3671_v27 }
 0x5e0   :  { %11869 = vmatmul.mubr.msk.f32.vlgmr.msra.gmra.mrb[18].mxu0 %vm215_vm1, %v3673_v24  ;;  %12306 = vmatmul.mubr.msk.f32.vlgmr.msra.gmra.mrb[20].mxu1 %vm215_vm1, %v3673_v24 }
 0x5e1   :  { %12571 = vmatpush3.bf16.msra.mxu1 %v19417_v23  ;;  %12540 = vmatpush3.bf16.msra.mxu0 %v19418_v58 }
 0x5e2   :  { %12572 = vmatprep.subr.bf16.mxu1 %v19412_v22  ;;  %12542 = vmatprep.subr.bf16.mxu0 %v19419_v45 }
 0x5e3   :  { %12340 = vmatprep.mubr.msk.f32.mxu1 %vm12723_vm7, %v19391_v14 }
 0x5e5   :  { %12574 = vmatpush3.bf16.msra.mxu1 %v19420_v29  ;;  %12544 = vmatpush3.bf16.msra.mxu0 %v19421_v21 }
 0x5e6   :  { %12575 = vmatprep.subr.bf16.mxu1 %v19412_v22  ;;  %12546 = vmatprep.subr.bf16.mxu0 %v19422_v35  ;;  %v11877_v35 = vld [vmem:[%s18930_s0 + $0x70] sm:$0xff] }
 0x5e9   :  { %12577 = vmatpush3.bf16.msra.mxu1 %v19423_v39  ;;  %12548 = vmatpush3.bf16.msra.mxu0 %v19424_v28 }
 0x5ea   :  { %12578 = vmatprep.subr.bf16.mxu1 %v19412_v22  ;;  %12550 = vmatprep.subr.bf16.mxu0 %v19425_v9 }
 0x5ed   :  { %12580 = vmatpush3.bf16.msra.mxu1 %v19426_v46  ;;  %12552 = vmatpush3.bf16.msra.mxu0 %v19427_v52  ;;  %v11878_v52 = vld [vmem:[%s18930_s0 + $0x78] sm:$0xf] }
 0x5ee   :  { %12581 = vmatprep.subr.bf16.mxu1 %v19412_v22  ;;  %12554 = vmatprep.subr.bf16.mxu0 %v19428_v50 }
 0x5f1   :  { %12583 = vmatpush3.bf16.msra.mxu1 %v19429_v6  ;;  %12556 = vmatpush3.bf16.msra.mxu0 %v19430_v51 }
 0x5f2   :  { %12584 = vmatprep.subr.bf16.mxu1 %v19412_v22  ;;  %12558 = vmatprep.subr.bf16.mxu0 %v19431_v48 }
 0x5f5   :  { %12586 = vmatpush3.bf16.msra.mxu1 %v19432_v49  ;;  %12560 = vmatpush3.bf16.msra.mxu0 %v19433_v25  ;;  %v11881_v49 = vld [vmem:[%s18930_s0 + $0x90] sm:$0xff] }
 0x5f6   :  { %12587 = vmatprep.subr.bf16.mxu1 %v19412_v22  ;;  %12562 = vmatprep.subr.bf16.mxu0 %v19434_v44 }
 0x5f9   :  { %12589 = vmatpush3.bf16.msra.mxu1 %v19435_v36  ;;  %12564 = vmatpush3.bf16.msra.mxu0 %v19436_v53 }
 0x5fa   :  { %12590 = vmatprep.subr.bf16.mxu1 %v19412_v22  ;;  %12566 = vmatprep.subr.bf16.mxu0 %v19437_v26 }
 0x5fd   :  { %12592 = vmatpush3.bf16.msra.mxu1 %v19438_v41  ;;  %12568 = vmatpush3.bf16.msra.mxu0 %v19439_v63 }
 0x5fe   :  { %12593 = vmatprep.subr.bf16.mxu0 %v19412_v22 }
 0x6b3   :  { %v3743_v62 = vpop.f32.mrb[18].mxu0  ;;  %v3814_v60 = vpop.f32.mrb[20].mxu1 }
 0x6b4   :  { %v3821_v4 = vrot.slane %v3743_v62, %v19440_v17  ;;  %v3829_v5 = vrot.slane %v3814_v60, %v19440_v17  ;;  %v3745_v61 = vpop.f32.mrb[19].mxu0  ;;  %v12307_v57 = vpop.f32.mrb[21].mxu1  ;;  %v3845_v15 = vrot.slane %v3743_v62, %v13333_v38  ;;  %v3853_v54 = vrot.slane %v3814_v60, %v13333_v38  ;;  %v11879_v62 = vld [vmem:[%s18930_s0 + $0x80] sm:$0xf]  ;;  %v11885_v60 = vld [vmem:[%s18930_s0 + $0xb0] sm:$0xf] }
 0x6b5   :  { %v3825_v37 = vrot.slane %v3745_v61, %v19440_v17  ;;  %v3849_v48 = vrot.slane %v3745_v61, %v13333_v38 }
 0x6b6   :  { %v3830_v40 = vmul.f32 %v3821_v4, %v14333_v1  ;;  %v3833_v34 = vmul.f32 %v3821_v4, %v14300_v33  ;;  %v3836_v18 = vmul.f32 %v3821_v4, %v14406_v56  ;;  %v3839_v7 = vmul.f32 %v3821_v4, %v14364_v10  ;;  %v11884_v33 = vld [vmem:[%s18930_s0 + $0xa8] sm:$0xf] }
 0x6b7   :  { %v3832_v11 = vmul.f32 %v3829_v5, %v14402_v13  ;;  %v3835_v16 = vmul.f32 %v3829_v5, %v14329_v19  ;;  %v3838_v55 = vmul.f32 %v3829_v5, %v14422_v30  ;;  %v3841_v27 = vmul.f32 %v3829_v5, %v14373_v8  ;;  %v11875_v8 = vld [vmem:[%s18930_s0 + $0x60] sm:$0xff] }
 0x6b8   :  { %v3854_v24 = vadd.f32 %v3845_v15, %v3830_v40  ;;  %v3857_v23 = vadd.f32 %v3845_v15, %v3833_v34  ;;  %v3860_v58 = vadd.f32 %v3845_v15, %v3836_v18  ;;  %v3863_v45 = vadd.f32 %v3845_v15, %v3839_v7  ;;  %v11883_v40 = vld [vmem:[%s18930_s0 + $0xa0] sm:$0xff] }
 0x6b9   :  { %v3856_v1 = vadd.f32 %v3853_v54, %v3832_v11  ;;  %v14560_v56 = vadd.f32 %v3853_v54, %v3835_v16  ;;  %v14562_v10 = vadd.f32 %v3853_v54, %v3838_v55  ;;  %v3865_v13 = vadd.f32 %v3853_v54, %v3841_v27  ;;  %v11882_v11 = vld [vmem:[%s18930_s0 + $0x98] sm:$0xff] }
 0x6ba   :  { %v3866_v29 = vmax.f32 %v3854_v24, 0.0  ;;  %v3869_v19 = vmax.f32 %v3857_v23, 0.0  ;;  %v3872_v21 = vmax.f32 %v3860_v58, 0.0  ;;  %v3875_v30 = vmax.f32 %v3863_v45, 0.0 }
 0x6bb   :  { %v3868_v39 = vmax.f32 %v3856_v1, 0.0  ;;  %v3871_v28 = vmax.f32 %v14560_v56, 0.0  ;;  %v3874_v9 = vmax.f32 %v14562_v10, 0.0  ;;  %v3877_v46 = vmax.f32 %v3865_v13, 0.0 }
 0x6bc   :  { %3878 = vst [vmem:[%s18933_s5] sm:$0xff] %v3866_v29  ;;  %3881 = vst [vmem:[%s18933_s5 + $0x18] sm:$0xf] %v3869_v19  ;;  %v3831_v50 = vmul.f32 %v3825_v37, %v14335_v3  ;;  %v3834_v6 = vmul.f32 %v3825_v37, %v14312_v59  ;;  %v3837_v51 = vmul.f32 %v3825_v37, %v14408_v47  ;;  %v11886_v59 = vld [vmem:[%s18930_s0 + $0xb8] sm:$0xf] }
 0x6bd   :  { %3884 = vst [vmem:[%s18933_s5 + $0x30] sm:$0xff] %v3872_v21  ;;  %3887 = vst [vmem:[%s18933_s5 + $0x48] sm:$0xf] %v3875_v30  ;;  %v14594_v25 = vadd.f32 %v11884_v33, %v3875_v30  ;;  %v3840_v3 = vmul.f32 %v3825_v37, %v14369_v12  ;;  %v3903_v47 = vadd.f32 %v11875_v8, %v3866_v29  ;;  %v11876_v12 = vld [vmem:[%s18930_s0 + $0x68] sm:$0xff] }
 0x6be   :  { %3880 = vst [vmem:[%s18933_s5 + $0x10] sm:$0xff] %v3868_v39  ;;  %3883 = vst [vmem:[%s18933_s5 + $0x28] sm:$0xf] %v3871_v28  ;;  %v14612_v44 = vadd.f32 %v11877_v35, %v3868_v39  ;;  %v3855_v36 = vadd.f32 %v3849_v48, %v3831_v50  ;;  %v3858_v53 = vadd.f32 %v3849_v48, %v3834_v6  ;;  %v11880_v37 = vld [vmem:[%s18930_s0 + $0x88] sm:$0xf] }
 0x6bf   :  { %3886 = vst [vmem:[%s18933_s5 + $0x40] sm:$0xff] %v3874_v9  ;;  %3889 = vst [vmem:[%s18933_s5 + $0x58] sm:$0xf] %v3877_v46  ;;  %v3861_v26 = vadd.f32 %v3849_v48, %v3837_v51  ;;  %v3906_v41 = vadd.f32 %v11878_v52, %v3869_v19  ;;  %v3864_v63 = vadd.f32 %v3849_v48, %v3840_v3  ;;  %v3927_v4 = vrot.slane %v3903_v47, 6 }
 0x6c0   :  { %v14623_v5 = vadd.f32 %v11881_v49, %v3872_v21  ;;  %v14625_v61 = vadd.f32 %v11886_v59, %v3877_v46  ;;  %v3867_v57 = vmax.f32 %v3855_v36, 0.0  ;;  %v3870_v15 = vmax.f32 %v3858_v53, 0.0 }
 0x6c1   :  { %v3873_v54 = vmax.f32 %v3861_v26, 0.0  ;;  %v3876_v34 = vmax.f32 %v3864_v63, 0.0  ;;  %3945 = vrot.lane.b32.xlu0 %v3927_v4, %s12726_s2  ;;  %v4037_v18 = vsel %vm19441_vm6, %v3906_v41, 0.0  ;;  %v4061_v7 = vsel %vm19442_vm13, %v14594_v25, 0.0 }
 0x6c2   :  { %3879 = vst [vmem:[%s18933_s5 + $0x8] sm:$0xff] %v3867_v57  ;;  %3882 = vst [vmem:[%s18933_s5 + $0x20] sm:$0xf] %v3870_v15  ;;  %v3907_v16 = vadd.f32 %v11879_v62, %v3870_v15  ;;  %v3904_v55 = vadd.f32 %v11876_v12, %v3867_v57  ;;  %v3929_v27 = vrot.slane %v14612_v44, 6  ;;  %v4038_v24 = vadd.f32 %v4037_v18, %v3903_v47 }
 0x6c3   :  { %3885 = vst [vmem:[%s18933_s5 + $0x38] sm:$0xff] %v3873_v54  ;;  %3888 = vst [vmem:[%s18933_s5 + $0x50] sm:$0xf] %v3876_v34  ;;  %v14653_v23 = vadd.f32 %v11885_v60, %v3876_v34  ;;  %v4062_v58 = vadd.f32 %v4061_v7, %v14623_v5  ;;  %v3908_v45 = vadd.f32 %v11880_v37, %v3871_v28  ;;  %v4077_v10 = vsel %vm19444_vm15, %v14625_v61, 0.0 }
 0x6c4   :  { %v14656_v33 = vadd.f32 %v11883_v40, %v3874_v9  ;;  %v3928_v1 = vrot.slane %v3904_v55, 6  ;;  %v4045_v56 = vsel %vm19443_vm14, %v3907_v16, 0.0  ;;  %v14661_v13 = vadd.f32 %v11882_v11, %v3873_v54 }
 0x6c5   :  { %v4046_v29 = vadd.f32 %v4045_v56, %v3904_v55  ;;  %3949 = vrot.lane.b32.xlu0 %v3929_v27, %s12726_s2  ;;  %v3930_v19 = vrot.slane %v3906_v41, 6  ;;  %v4063_v21 = vrot.slane %v4062_v58, 4  ;;  %v4053_v30 = vsel %vm19445_vm2, %v3908_v45, 0.0 }
 0x6c6   :  { %3947 = vrot.lane.b32.xlu1 %v3928_v1, %s12726_s2  ;;  %v4054_v8 = vadd.f32 %v4053_v30, %v14612_v44  ;;  %v4078_v35 = vadd.f32 %v4077_v10, %v14656_v33  ;;  %v3936_v39 = vrot.slane %v14623_v5, 6  ;;  %v4069_v28 = vsel %vm19446_vm4, %v14653_v23, 0.0 }
 0x6c7   :  { %v4047_v9 = vrot.slane %v4046_v29, 4  ;;  %v4039_v46 = vrot.slane %v4038_v24, 4  ;;  %v4070_v50 = vadd.f32 %v4069_v28, %v14661_v13  ;;  %v4064_v51 = vadd.f32 %v4063_v21, %v4062_v58 }
 0x6c8   :  { %v4079_v52 = vrot.slane %v4078_v35, 4  ;;  %v4055_v6 = vrot.slane %v4054_v8, 4  ;;  %vm19447_vm6 = vcmask 1041408   ;;  %v3934_v49 = vrot.slane %v3908_v45, 6 }
 0x6c9   :  { %v3931_v48 = vsel %vm19447_vm6, %v3927_v4, %v3930_v19  ;;  %3957 = vrot.lane.b32.xlu0 %v3936_v39, %s12726_s2  ;;  %v4048_v59 = vadd.f32 %v4047_v9, %v4046_v29  ;;  %v4040_v3 = vadd.f32 %v4039_v46, %v4038_v24  ;;  %v4071_v36 = vrot.slane %v4070_v50, 4  ;;  %vm19448_vm13 = vmmov %vm19447_vm6  ;;  %v4288_v46 = vld [vmem:[%s18934_s3 + $0x10] sm:$0xff] }
 0x6ca   :  { %3951 = vrot.lane.b32.xlu1 %v3931_v48, %s12726_s2  ;;  %v4056_v47 = vadd.f32 %v4055_v6, %v4054_v8  ;;  %v4080_v44 = vadd.f32 %v4079_v52, %v4078_v35  ;;  %v4065_v53 = vrot.slane %v4064_v51, 2  ;;  %v3938_v26 = vrot.slane %v14656_v33, 6  ;;  %vm19449_vm14 = vmmov %vm19447_vm6  ;;  %v4289_v6 = vld [vmem:[%s18934_s3 + $0x18] sm:$0xff] }
 0x6cb   :  { %v4049_v41 = vrot.slane %v4048_v59, 2  ;;  %v4041_v63 = vrot.slane %v4040_v3, 2  ;;  %v3932_v62 = vrot.slane %v3907_v16, 6  ;;  %v4072_v5 = vadd.f32 %v4071_v36, %v4070_v50  ;;  %vm19451_vm2 = vmmov %vm19447_vm6 }
 0x6cc   :  { %v4057_v60 = vrot.slane %v4056_v47, 2  ;;  %v4081_v12 = vrot.slane %v4080_v44, 2  ;;  %v4066_v4 = vadd.f32 %v4065_v53, %v4064_v51  ;;  %v3935_v57 = vsel %vm19448_vm13, %v3929_v27, %v3934_v49  ;;  %vm19452_vm4 = vmmov %vm19451_vm2 }
 0x6cd   :  { %3961 = vrot.lane.b32.xlu0 %v3938_v26, %s12726_s2  ;;  %v4050_v15 = vadd.f32 %v4049_v41, %v4048_v59  ;;  %v4042_v54 = vadd.f32 %v4041_v63, %v4040_v3  ;;  %v3937_v37 = vrot.slane %v14661_v13, 6  ;;  %v4073_v18 = vrot.slane %v4072_v5, 2 }
 0x6ce   :  { %3955 = vrot.lane.b32.xlu1 %v3935_v57, %s12726_s2  ;;  %v4058_v40 = vadd.f32 %v4057_v60, %v4056_v47  ;;  %v4082_v34 = vadd.f32 %v4081_v12, %v4080_v44  ;;  %v4067_v16 = vrot.slane %v4066_v4, 1  ;;  %v3933_v55 = vsel %vm19449_vm14, %v3928_v1, %v3932_v62  ;;  %vm19455_vm14 = vmmov %vm19451_vm2 }
 0x6cf   :  { %v4051_v7 = vrot.slane %v4050_v15, 1  ;;  %v4043_v11 = vrot.slane %v4042_v54, 1  ;;  %v4074_v45 = vadd.f32 %v4073_v18, %v4072_v5  ;;  %v3941_v27 = vrot.slane %v14653_v23, 6 }
 0x6d0   :  { %v4059_v24 = vrot.slane %v4058_v40, 1  ;;  %v4083_v58 = vrot.slane %v4082_v34, 1  ;;  %v3939_v33 = vrot.slane %v14594_v25, 6  ;;  %v4068_v21 = vadd.f32 %v4067_v16, %v4066_v4 }
 0x6d1   :  { %3953 = vrot.lane.b32.xlu0 %v3933_v55, %s12726_s2  ;;  %v4052_v13 = vadd.f32 %v4051_v7, %v4050_v15  ;;  %v4075_v29 = vrot.slane %v4074_v45, 1  ;;  %v4044_v19 = vadd.f32 %v4043_v11, %v4042_v54  ;;  %vm19450_vm15 = vcmask 1041409   ;;  %v4398_v55 = vld [vmem:[%s18935_s4 + $0x8] sm:$0xff] }
 0x6d2   :  { %3959 = vrot.lane.b32.xlu1 %v3937_v37, %s12726_s2  ;;  %v4060_v56 = vadd.f32 %v4059_v24, %v4058_v40  ;;  %v4084_v10 = vadd.f32 %v4083_v58, %v4082_v34  ;;  %v3942_v8 = vsel %vm19451_vm2, %v3937_v37, %v3941_v27  ;;  %v3940_v23 = vsel %vm19452_vm4, %v3936_v39, %v3939_v33  ;;  %vm19453_vm6 = vmmov %vm19450_vm15  ;;  %v4287_v39 = vld [vmem:[%s18934_s3 + $0x8] sm:$0xff]  ;;  %v4397_v24 = vld [vmem:[%s18935_s4] sm:$0xff] }
 0x6d3   :  { %v4076_v1 = vadd.f32 %v4075_v29, %v4074_v45  ;;  %v3943_v25 = vrot.slane %v14625_v61, 6  ;;  %vm19454_vm13 = vmmov %vm19453_vm6  ;;  %v4286_v61 = vld [vmem:[%s18934_s3] sm:$0xff]  ;;  %vm3997_vm2 = vcmask 523266   ;;  %v12597_v51 = vpack.c.bf16 %v4289_v6, %v4288_v46  ;;  %v4402_v58 = vld [vmem:[%s18935_s4 + $0x28] sm:$0xff]  ;;  %4475 = vmatprep.subr.mxu1 %v4398_v55 }
 0x6d4   :  { %v4141_v30 = vsel %vm19450_vm15, %v4084_v10, %v4060_v56  ;;  %v4139_v28 = vsel %vm19454_vm13, %v4068_v21, %v4044_v19  ;;  %vm3993_vm15 = vcmask 1048066   ;;  %v12594_v50 = vpack.c.bf16 %v4287_v39, %v4286_v61  ;;  %v4400_v45 = vld [vmem:[%s18935_s4 + $0x18] sm:$0xff]  ;;  %v4401_v27 = vld [vmem:[%s18935_s4 + $0x20] sm:$0xff]  ;;  %v4406_v33 = vld [vmem:[%s18935_s4 + $0x48] sm:$0xff] }
 0x6d5   :  { %12341 = vmatmul.mubr.f32.vlgmr.msra.gmra.mrb[22].mxu1 %v4141_v30  ;;  %3965 = vrot.lane.b32.xlu0 %v3942_v8, %s12726_s2  ;;  %v4140_v35 = vsel %vm19453_vm6, %v4076_v1, %v4052_v13  ;;  %v3944_v9 = vsel %vm19455_vm14, %v3938_v26, %v3943_v25  ;;  %vm19456_vm4 = vcmask 523264   ;;  %vm3999_vm13 = vcmask 1046016   ;;  %v4426_v55 = vld [vmem:[%s18935_s4 + $0xe8] sm:$0xff] }
 0x6d6   :  { %3963 = vrot.lane.b32.xlu1 %v3940_v23, %s12726_s2  ;;  %4539 = vmatprep.mubr.f32.mxu1 %v19391_v14  ;;  %vm19457_vm6 = vmmov %vm19456_vm4  ;;  %vm4003_vm14 = vcmask 521216  }
 0x6d7   :  { %4209 = vmatprep.mubr.f32.mxu0 %v4140_v35  ;;  %vm19459_vm10 = vmmov %vm19456_vm4  ;;  %4476 = vmatpush1.msra.mxu1 %v4397_v24  ;;  %v4419_v24 = vld [vmem:[%s18935_s4 + $0xb0] sm:$0xff] }
 0x6d8   :  { %4210 = vmatmul.mubr.f32.vlgmr.msra.gmra.mrb[20].mxu0 %v4139_v28  ;;  %vm19460_vm0 = vmmov %vm19456_vm4  ;;  %4546 = vmatprep.subr.mxu1 %v4400_v45  ;;  %v4424_v45 = vld [vmem:[%s18935_s4 + $0xd8] sm:$0xff] }
 0x6d9   :  { %12351 = vmatprep.mubr.msk.f32.mxu0 %vm12723_vm7, %v19391_v14  ;;  %12595 = vmatpush3.bf16.msra.mxu0 %v12594_v50 }
 0x6da   :  { %3967 = vrot.lane.b32.xlu1 %v3944_v9, %s12726_s2  ;;  %12596 = vmatprep.subr.bf16.mxu0 %v19412_v22 }
 0x6dd   :  { %12598 = vmatpush3.bf16.msra.mxu0 %v12597_v51 }
 0x6de   :  { %4617 = vmatprep.subr.mxu0 %v4402_v58  ;;  %v4425_v58 = vld [vmem:[%s18935_s4 + $0xe0] sm:$0xff] }
 0x733   :  { %v3946_v52 = vpop.permute.xlu0 %3945 }
 0x734   :  { %3994 = vst.msk [vmem:[#allocation2] sm:$0xfc] %vm3993_vm15, %v3946_v52 }
 0x735   :  { %4029 = vst.msk [vmem:[#allocation2] sm:$0xfc] %vm3997_vm2, %v19391_v14 }
 0x737   :  { %v3950_v48 = vpop.permute.xlu0 %3949 }
 0x738   :  { %v3948_v49 = vpop.permute.xlu1 %3947  ;;  %3998 = vst.msk [vmem:[#allocation2 + $0x18] sm:$0xfc] %vm3997_vm2, %v3950_v48 }
 0x739   :  { %v3969_v59 = vsel %vm19456_vm4, %v3946_v52, %v3948_v49  ;;  %v3970_v3 = vsel %vm19457_vm6, %v3948_v49, %v3950_v48  ;;  %4033 = vst.msk [vmem:[#allocation2 + $0x18] sm:$0xfc] %vm3993_vm15, %v19391_v14  ;;  %vm19458_vm6 = vmmov %vm19456_vm4  ;;  %v11888_v49 = vld [vmem:[%s18934_s3 + $0x20] ss:$0 sm:$0xff] }
 0x73a   :  { %3995 = vst [vmem:[#allocation2 + $0x8] sm:$0xfc] %v3969_v59  ;;  %3996 = vst [vmem:[#allocation2 + $0x10] sm:$0xfc] %v3970_v3  ;;  %v11889_v3 = vld [vmem:[%s18934_s3 + $0x21] ss:$0 sm:$0xff] }
 0x73b   :  { %v3958_v47 = vpop.permute.xlu0 %3957 }
 0x73c   :  { %v3952_v44 = vpop.permute.xlu1 %3951  ;;  %4005 = vst.msk [vmem:[#allocation2 + $0x40] sm:$0xfc] %vm3993_vm15, %v3958_v47 }
 0x73d   :  { %4000 = vst.msk [vmem:[#allocation2 + $0x20] sm:$0x3f] %vm3999_vm13, %v3952_v44 }
 0x73e   :  { %4031 = vst.msk [vmem:[#allocation2 + $0x40] sm:$0xfc] %vm3997_vm2, %v19391_v14 }
 0x73f   :  { %4030 = vst.msk [vmem:[#allocation2 + $0x20] sm:$0x3f] %vm4003_vm14, %v19391_v14  ;;  %v3962_v36 = vpop.permute.xlu0 %3961 }
 0x740   :  { %v3956_v53 = vpop.permute.xlu1 %3955  ;;  %4008 = vst.msk [vmem:[#allocation2 + $0x58] sm:$0xfc] %vm3997_vm2, %v3962_v36  ;;  %vm19462_vm2 = vmmov %vm19460_vm0 }
 0x741   :  { %4004 = vst.msk [vmem:[#allocation2 + $0x38] sm:$0x3f] %vm4003_vm14, %v3956_v53 }
 0x742   :  { %4035 = vst.msk [vmem:[#allocation2 + $0x58] sm:$0xfc] %vm3993_vm15, %v19391_v14  ;;  %vm19461_vm15 = vmmov %vm19460_vm0 }
 0x743   :  { %4034 = vst.msk [vmem:[#allocation2 + $0x38] sm:$0x3f] %vm3999_vm13, %v19391_v14  ;;  %v3954_v26 = vpop.permute.xlu0 %3953 }
 0x744   :  { %v3960_v41 = vpop.permute.xlu1 %3959  ;;  %v3971_v63 = vsel %vm19456_vm4, %v3952_v44, %v3954_v26  ;;  %v3972_v62 = vsel %vm19458_vm6, %v3954_v26, %v3956_v53  ;;  %v4399_v53 = vld [vmem:[%s18935_s4 + $0x10] sm:$0xff]  ;;  %v4404_v26 = vld [vmem:[%s18935_s4 + $0x38] sm:$0xff] }
 0x745   :  { %v3973_v60 = vsel %vm19459_vm10, %v3958_v47, %v3960_v41  ;;  %v3974_v12 = vsel %vm19460_vm0, %v3960_v41, %v3962_v36  ;;  %4001 = vst [vmem:[#allocation2 + $0x28] sm:$0x3f] %v3971_v63  ;;  %4002 = vst [vmem:[#allocation2 + $0x30] sm:$0x3f] %v3972_v62  ;;  %vm19463_vm10 = vcmask 58368   ;;  %v4405_v41 = vld [vmem:[%s18935_s4 + $0x40] sm:$0xff] }
 0x746   :  { %4006 = vst [vmem:[#allocation2 + $0x48] sm:$0xfc] %v3973_v60  ;;  %4007 = vst [vmem:[#allocation2 + $0x50] sm:$0xfc] %v3974_v12  ;;  %v4410_v63 = vld [vmem:[%s18935_s4 + $0x68] sm:$0xff]  ;;  %v4403_v62 = vld [vmem:[%s18935_s4 + $0x30] sm:$0xff] }
 0x747   :  { %v3966_v5 = vpop.permute.xlu0 %3965  ;;  %vm19464_vm0 = vmmov %vm19463_vm10  ;;  %v4409_v60 = vld [vmem:[%s18935_s4 + $0x60] sm:$0xff]  ;;  %v4408_v12 = vld [vmem:[%s18935_s4 + $0x58] sm:$0xff] }
 0x748   :  { %v3964_v4 = vpop.permute.xlu1 %3963 }
 0x749   :  { %4009 = vst.msk [vmem:[#allocation2 + $0x60] sm:$0x3f] %vm3999_vm13, %v3964_v4  ;;  %v3975_v57 = vsel %vm19461_vm15, %v3964_v4, %v3966_v5  ;;  %v4407_v4 = vld [vmem:[%s18935_s4 + $0x50] sm:$0xff] }
 0x74a   :  { %4032 = vst.msk [vmem:[#allocation2 + $0x60] sm:$0x3f] %vm4003_vm14, %v19391_v14  ;;  %4010 = vst [vmem:[#allocation2 + $0x68] sm:$0x3f] %v3975_v57  ;;  %v4413_v57 = vld [vmem:[%s18935_s4 + $0x80] sm:$0xff] }
 0x74c   :  { %v3968_v15 = vpop.permute.xlu1 %3967 }
 0x74d   :  { %v3976_v54 = vsel %vm19462_vm2, %v3966_v5, %v3968_v15  ;;  %4012 = vst.msk [vmem:[#allocation2 + $0x78] sm:$0x3f] %vm4003_vm14, %v3968_v15  ;;  %v4414_v5 = vld [vmem:[%s18935_s4 + $0x88] sm:$0xff]  ;;  %v4412_v15 = vld [vmem:[%s18935_s4 + $0x78] sm:$0xff] }
 0x74e   :  { %4011 = vst [vmem:[#allocation2 + $0x70] sm:$0x3f] %v3976_v54  ;;  %4036 = vst.msk [vmem:[#allocation2 + $0x78] sm:$0x3f] %vm3999_vm13, %v19391_v14  ;;  %vm19465_vm13 = vcmask 64512   ;;  %v4418_v54 = vld [vmem:[%s18935_s4 + $0xa8] sm:$0xff] }
 0x74f   :  { %vm19466_vm14 = vmmov %vm19465_vm13 }
 0x750   :  { %vm19467_vm4 = vmmov %vm19465_vm13 }
 0x751   :  { %vm19468_vm6 = vmmov %vm19467_vm4 }
 0x752   :  { %vm19469_vm15 = vmmov %vm19467_vm4 }
 0x753   :  { %vm19470_vm2 = vmmov %vm19467_vm4 }
 0x7a8   :  { %v4281_v37 = vpop.f32.mrb[22].mxu1 }
 0x7a9   :  { %v12342_v40 = vpop.f32.mrb[23].mxu1 }
 0x7aa   :  { %v4417_v40 = vld [vmem:[%s18935_s4 + $0xa0] sm:$0xff] }
 0x7ab   :  { %v12127_v34 = vpop.f32.mrb[20].mxu0 }
 0x7ac   :  { %v12128_v18 = vpop.f32.mrb[21].mxu0 }
 0x7ad   :  { %v12129_v7 = vadd.f32 %v12128_v18, %v12127_v34  ;;  %v4416_v34 = vld [vmem:[%s18935_s4 + $0x98] sm:$0xff]  ;;  %v4422_v18 = vld [vmem:[%s18935_s4 + $0xc8] sm:$0xff] }
 0x7af   :  { %v4282_v11 = vadd.f32 %v12129_v7, %v4281_v37  ;;  %v4411_v37 = vld [vmem:[%s18935_s4 + $0x70] sm:$0xff] }
 0x7b0   :  { %v4415_v7 = vld [vmem:[%s18935_s4 + $0x90] sm:$0xff] }
 0x7b1   :  { %v4285_v16 = vmul.f32 0.0069444445, %v4282_v11  ;;  %v4421_v11 = vld [vmem:[%s18935_s4 + $0xc0] sm:$0xff] }
 0x7b3   :  { %12352 = vmatmul.mubr.msk.f32.vlgmr.msra.gmra.mrb[22].mxu0 %vm215_vm1, %v4285_v16  ;;  %v4420_v16 = vld [vmem:[%s18935_s4 + $0xb8] sm:$0xff] }
 0x7b4   :  { %4681 = vmatprep.mubr.f32.mxu0 %v19391_v14  ;;  %4618 = vmatpush1.msra.mxu0 %v4401_v27  ;;  %v4430_v27 = vld [vmem:[%s18935_s4 + $0x108] sm:$0xff] }
 0x7b5   :  { %4759 = vmatprep.subr.mxu0 %v4406_v33  ;;  %v4423_v33 = vld [vmem:[%s18935_s4 + $0xd0] sm:$0xff] }
 0x886   :  { %v4361_v56 = vpop.f32.mrb[22].mxu0 }
 0x887   :  { %v4365_v10 = vsel %vm19463_vm10, %v4361_v56, 0.0  ;;  %v12353_v13 = vpop.f32.mrb[23].mxu0  ;;  %vm19471_vm10 = vmmov %vm19470_vm2 }
 0x888   :  { %v4366_v29 = vrot.slane %v4365_v10, 4  ;;  %v4434_v13 = vld [vmem:[%s18935_s4 + $0x128] sm:$0xff] }
 0x88a   :  { %v4367_v19 = vadd.f32 %v4366_v29, %v4365_v10  ;;  %v4428_v10 = vld [vmem:[%s18935_s4 + $0xf8] sm:$0xff]  ;;  %v4427_v29 = vld [vmem:[%s18935_s4 + $0xf0] sm:$0xff] }
 0x88c   :  { %v4368_v21 = vrot.slane %v4367_v19, 2 }
 0x88e   :  { %v4369_v30 = vadd.f32 %v4368_v21, %v4367_v19  ;;  %v4433_v19 = vld [vmem:[%s18935_s4 + $0x120] sm:$0xff]  ;;  %v4432_v21 = vld [vmem:[%s18935_s4 + $0x118] sm:$0xff] }
 0x890   :  { %v4370_v1 = vrot.slane %v4369_v30, 1 }
 0x892   :  { %v4371_v8 = vadd.f32 %v4370_v1, %v4369_v30  ;;  %v4438_v30 = vld [vmem:[%s18935_s4 + $0x148] sm:$0xff]  ;;  %v4431_v1 = vld [vmem:[%s18935_s4 + $0x110] sm:$0xff] }
 0x894   :  { %v4372_v23 = vmul.f32 0.5, %v4371_v8  ;;  %v4437_v8 = vld [vmem:[%s18935_s4 + $0x140] sm:$0xff] }
 0x896   :  { %v4373_v25 = vsub.f32 %v4361_v56, %v4372_v23  ;;  %v4429_v56 = vld [vmem:[%s18935_s4 + $0x100] sm:$0xff]  ;;  %v4436_v23 = vld [vmem:[%s18935_s4 + $0x138] sm:$0xff] }
 0x898   :  { %v4374_v35 = vmul.f32 %v4373_v25, %v4373_v25 }
 0x89a   :  { %v4375_v28 = vsel %vm19464_vm0, %v4374_v35, 0.0  ;;  %vm19472_vm0 = vmmov %vm19470_vm2  ;;  %v4435_v35 = vld [vmem:[%s18935_s4 + $0x130] sm:$0xff] }
 0x89b   :  { %v4376_v9 = vrot.slane %v4375_v28, 4 }
 0x89d   :  { %v4377_v61 = vadd.f32 %v4376_v9, %v4375_v28  ;;  %v4441_v28 = vld [vmem:[%s18935_s4 + $0x160] sm:$0xff]  ;;  %v4440_v9 = vld [vmem:[%s18935_s4 + $0x158] sm:$0xff] }
 0x89f   :  { %v4378_v39 = vrot.slane %v4377_v61, 2 }
 0x8a1   :  { %v4379_v46 = vadd.f32 %v4378_v39, %v4377_v61  ;;  %v4446_v61 = vld [vmem:[%s18935_s4 + $0x188] sm:$0xff]  ;;  %v4439_v39 = vld [vmem:[%s18935_s4 + $0x150] sm:$0xff] }
 0x8a3   :  { %v4380_v52 = vrot.slane %v4379_v46, 1 }
 0x8a5   :  { %v4381_v50 = vadd.f32 %v4380_v52, %v4379_v46  ;;  %v4445_v46 = vld [vmem:[%s18935_s4 + $0x180] sm:$0xff]  ;;  %v4444_v52 = vld [vmem:[%s18935_s4 + $0x178] sm:$0xff] }
 0x8a7   :  { %v4382_v6 = vmul.f32 0.5, %v4381_v50  ;;  %v4450_v50 = vld [vmem:[%s18935_s4 + $0x1a8] sm:$0xff] }
 0x8a9   :  { %v4383_v51 = vadd.f32 1e-05, %v4382_v6  ;;  %v4443_v6 = vld [vmem:[%s18935_s4 + $0x170] sm:$0xff] }
 0x8ab   :  { %12681 = vrsqrt.f32 %v4383_v51  ;;  %v4449_v51 = vld [vmem:[%s18935_s4 + $0x1a0] sm:$0xff] }
 0x8b5   :  { %v12682_v48 = vpop.eup %12681 }
 0x8b6   :  { %v4385_v59 = vmul.f32 %v12682_v48, %v4373_v25  ;;  %v4442_v25 = vld [vmem:[%s18935_s4 + $0x168] sm:$0xff]  ;;  %v4448_v48 = vld [vmem:[%s18935_s4 + $0x198] sm:$0xff] }
 0x8b8   :  { %v4390_v47 = vmul.f32 %v11888_v49, %v4385_v59  ;;  %v4454_v49 = vld [vmem:[%s18935_s4 + $0x1c8] sm:$0xff]  ;;  %v4447_v59 = vld [vmem:[%s18935_s4 + $0x190] sm:$0xff] }
 0x8ba   :  { %v4395_v44 = vadd.f32 %v11889_v3, %v4390_v47  ;;  %v4453_v3 = vld [vmem:[%s18935_s4 + $0x1c0] sm:$0xff]  ;;  %v4452_v47 = vld [vmem:[%s18935_s4 + $0x1b8] sm:$0xff] }
 0x8bc   :  { %v14771_v36 = vmax.f32 %v4395_v44, 0.0  ;;  %v4458_v44 = vld [vmem:[%s18935_s4 + $0x1e8] sm:$0xff] }
 0x8be   :  { %11890 = vmatmul.mubr.msk.f32.vlgmr.msra.gmra.mrb[24].mxu1 %vm19465_vm13, %v14771_v36  ;;  %11892 = vmatmul.mubr.msk.f32.vlgmr.msra.gmra.mrb[24].mxu0 %vm19466_vm14, %v14771_v36  ;;  %vm19473_vm13 = vmmov %vm19472_vm0 }
 0x8bf   :  { %4547 = vmatpush1.msra.mxu1 %v4399_v53  ;;  %4610 = vmatprep.mubr.f32.mxu1 %v19391_v14  ;;  %vm19474_vm14 = vmmov %vm19472_vm0  ;;  %v4451_v53 = vld [vmem:[%s18935_s4 + $0x1b0] sm:$0xff] }
 0x8c0   :  { %4688 = vmatprep.subr.mxu1 %v4404_v26  ;;  %4760 = vmatpush1.msra.mxu0 %v4405_v41  ;;  %v4457_v26 = vld [vmem:[%s18935_s4 + $0x1e0] sm:$0xff]  ;;  %v4456_v41 = vld [vmem:[%s18935_s4 + $0x1d8] sm:$0xff] }
 0x8c1   :  { %4823 = vmatprep.mubr.f32.mxu0 %v19391_v14  ;;  %4901 = vmatprep.subr.mxu0 %v4410_v63  ;;  %v4462_v63 = vld [vmem:[%s18935_s4 + $0x208] sm:$0xff] }
 0x8c2   :  { %11891 = vmatmul.mubr.msk.f32.vlgmr.msra.gmra.mrb[26].mxu1 %vm19467_vm4, %v14771_v36  ;;  %11894 = vmatmul.mubr.msk.f32.vlgmr.msra.gmra.mrb[26].mxu0 %vm19468_vm6, %v14771_v36  ;;  %vm19475_vm4 = vmmov %vm19472_vm0 }
 0x8c3   :  { %4689 = vmatpush1.msra.mxu1 %v4403_v62  ;;  %4752 = vmatprep.mubr.f32.mxu1 %v19391_v14  ;;  %vm19476_vm6 = vmmov %vm19472_vm0  ;;  %v4455_v62 = vld [vmem:[%s18935_s4 + $0x1d0] sm:$0xff] }
 0x8c4   :  { %4902 = vmatpush1.msra.mxu0 %v4409_v60  ;;  %4965 = vmatprep.mubr.f32.mxu0 %v19391_v14  ;;  %v4461_v60 = vld [vmem:[%s18935_s4 + $0x200] sm:$0xff] }
 0x8c5   :  { %4830 = vmatprep.subr.mxu1 %v4408_v12  ;;  %5043 = vmatprep.subr.mxu0 %v4414_v5  ;;  %v4460_v12 = vld [vmem:[%s18935_s4 + $0x1f8] sm:$0xff]  ;;  %v4466_v5 = vld [vmem:[%s18935_s4 + $0x228] sm:$0xff] }
 0x8c6   :  { %11893 = vmatmul.mubr.msk.f32.vlgmr.msra.gmra.mrb[28].mxu1 %vm19469_vm15, %v14771_v36  ;;  %11896 = vmatmul.mubr.msk.f32.vlgmr.msra.gmra.mrb[28].mxu0 %vm19470_vm2, %v14771_v36  ;;  %vm19477_vm15 = vmmov %vm19472_vm0 }
 0x8c7   :  { %4831 = vmatpush1.msra.mxu1 %v4407_v4  ;;  %4894 = vmatprep.mubr.f32.mxu1 %v19391_v14  ;;  %vm19478_vm2 = vmmov %vm19472_vm0  ;;  %v4459_v4 = vld [vmem:[%s18935_s4 + $0x1f0] sm:$0xff] }
 0x8c8   :  { %5044 = vmatpush1.msra.mxu0 %v4413_v57  ;;  %5107 = vmatprep.mubr.f32.mxu0 %v19391_v14  ;;  %v4465_v57 = vld [vmem:[%s18935_s4 + $0x220] sm:$0xff] }
 0x8c9   :  { %4972 = vmatprep.subr.mxu1 %v4412_v15  ;;  %5185 = vmatprep.subr.mxu0 %v4418_v54  ;;  %v4464_v15 = vld [vmem:[%s18935_s4 + $0x218] sm:$0xff]  ;;  %v4470_v54 = vld [vmem:[%s18935_s4 + $0x248] sm:$0xff] }
 0x8ca   :  { %11895 = vmatmul.mubr.msk.f32.vlgmr.msra.gmra.mrb[30].mxu1 %vm19471_vm10, %v14771_v36  ;;  %11898 = vmatmul.mubr.msk.f32.vlgmr.msra.gmra.mrb[30].mxu0 %vm19472_vm0, %v14771_v36  ;;  %vm19479_vm10 = vmmov %vm19472_vm0 }
 0x8cb   :  { %4973 = vmatpush1.msra.mxu1 %v4411_v37  ;;  %5036 = vmatprep.mubr.f32.mxu1 %v19391_v14  ;;  %v4463_v37 = vld [vmem:[%s18935_s4 + $0x210] sm:$0xff] }
 0x8cc   :  { %5186 = vmatpush1.msra.mxu0 %v4417_v40  ;;  %5249 = vmatprep.mubr.f32.mxu0 %v19391_v14  ;;  %v4469_v40 = vld [vmem:[%s18935_s4 + $0x240] sm:$0xff] }
 0x8cd   :  { %5114 = vmatprep.subr.mxu1 %v4416_v34  ;;  %5327 = vmatprep.subr.mxu0 %v4422_v18  ;;  %v4468_v34 = vld [vmem:[%s18935_s4 + $0x238] sm:$0xff]  ;;  %v4467_v18 = vld [vmem:[%s18935_s4 + $0x230] sm:$0xff] }
 0x8ce   :  { %11897 = vmatmul.mubr.msk.f32.vlgmr.msra.gmra.mrb[32].mxu1 %vm19473_vm13, %v14771_v36  ;;  %11900 = vmatmul.mubr.msk.f32.vlgmr.msra.gmra.mrb[32].mxu0 %vm19474_vm14, %v14771_v36  ;;  %vm19480_vm13 = vmmov %vm19472_vm0 }
 0x8cf   :  { %5115 = vmatpush1.msra.mxu1 %v4415_v7  ;;  %5178 = vmatprep.mubr.f32.mxu1 %v19391_v14  ;;  %vm19481_vm14 = vmmov %vm19472_vm0  ;;  %v4471_v7 = vld [vmem:[%s18935_s4 + $0x250] sm:$0xff] }
 0x8d0   :  { %5328 = vmatpush1.msra.mxu0 %v4421_v11  ;;  %5391 = vmatprep.mubr.f32.mxu0 %v19391_v14 }
 0x8d1   :  { %5256 = vmatprep.subr.mxu1 %v4420_v16  ;;  %5469 = vmatprep.subr.mxu0 %v4426_v55 }
 0x8d2   :  { %11899 = vmatmul.mubr.msk.f32.vlgmr.msra.gmra.mrb[34].mxu1 %vm19475_vm4, %v14771_v36  ;;  %11902 = vmatmul.mubr.msk.f32.vlgmr.msra.gmra.mrb[34].mxu0 %vm19476_vm6, %v14771_v36  ;;  %vm19482_vm4 = vmmov %vm19472_vm0 }
 0x8d3   :  { %5257 = vmatpush1.msra.mxu1 %v4419_v24  ;;  %5320 = vmatprep.mubr.f32.mxu1 %v19391_v14  ;;  %vm19483_vm6 = vmmov %vm19472_vm0 }
 0x8d4   :  { %5470 = vmatpush1.msra.mxu0 %v4425_v58  ;;  %5533 = vmatprep.mubr.f32.mxu0 %v19391_v14 }
 0x8d5   :  { %5398 = vmatprep.subr.mxu1 %v4424_v45  ;;  %5611 = vmatprep.subr.mxu0 %v4430_v27 }
 0x8d6   :  { %11901 = vmatmul.mubr.msk.f32.vlgmr.msra.gmra.mrb[36].mxu1 %vm19477_vm15, %v14771_v36  ;;  %11904 = vmatmul.mubr.msk.f32.vlgmr.msra.gmra.mrb[36].mxu0 %vm19478_vm2, %v14771_v36  ;;  %vm19484_vm15 = vmmov %vm19472_vm0 }
 0x8d7   :  { %5399 = vmatpush1.msra.mxu1 %v4423_v33  ;;  %5462 = vmatprep.mubr.f32.mxu1 %v19391_v14  ;;  %vm19485_vm2 = vmmov %vm19472_vm0 }
 0x8d8   :  { %5612 = vmatpush1.msra.mxu0 %v4429_v56  ;;  %5675 = vmatprep.mubr.f32.mxu0 %v19391_v14 }
 0x8d9   :  { %5540 = vmatprep.subr.mxu1 %v4428_v10  ;;  %5753 = vmatprep.subr.mxu0 %v4434_v13 }
 0x8da   :  { %11903 = vmatmul.mubr.msk.f32.vlgmr.msra.gmra.mrb[38].mxu1 %vm19479_vm10, %v14771_v36  ;;  %11906 = vmatmul.mubr.msk.f32.vlgmr.msra.gmra.mrb[38].mxu0 %vm19472_vm0, %v14771_v36  ;;  %vm19486_vm10 = vmmov %vm19472_vm0 }
 0x8db   :  { %5541 = vmatpush1.msra.mxu1 %v4427_v29  ;;  %5604 = vmatprep.mubr.f32.mxu1 %v19391_v14 }
 0x8dc   :  { %5754 = vmatpush1.msra.mxu0 %v4433_v19  ;;  %5817 = vmatprep.mubr.f32.mxu0 %v19391_v14  ;;  %v19500_v19 = vld [vmem:[#allocation10_spill] sm:$0xff] }
 0x8dd   :  { %5682 = vmatprep.subr.mxu1 %v4432_v21  ;;  %5895 = vmatprep.subr.mxu0 %v4438_v30 }
 0x8de   :  { %11905 = vmatmul.mubr.msk.f32.vlgmr.msra.gmra.mrb[40].mxu1 %vm19480_vm13, %v14771_v36  ;;  %11908 = vmatmul.mubr.msk.f32.vlgmr.msra.gmra.mrb[40].mxu0 %vm19481_vm14, %v14771_v36  ;;  %vm19487_vm13 = vmmov %vm19472_vm0 }
 0x8df   :  { %5683 = vmatpush1.msra.mxu1 %v4431_v1  ;;  %5746 = vmatprep.mubr.f32.mxu1 %v19391_v14  ;;  %vm19488_vm14 = vmmov %vm19472_vm0 }
 0x8e0   :  { %5896 = vmatpush1.msra.mxu0 %v4437_v8  ;;  %5959 = vmatprep.mubr.f32.mxu0 %v19391_v14 }
 0x8e1   :  { %5824 = vmatprep.subr.mxu1 %v4436_v23  ;;  %6037 = vmatprep.subr.mxu0 %v4442_v25 }
 0x8e2   :  { %11907 = vmatmul.mubr.msk.f32.vlgmr.msra.gmra.mrb[42].mxu1 %vm19482_vm4, %v14771_v36  ;;  %11910 = vmatmul.mubr.msk.f32.vlgmr.msra.gmra.mrb[42].mxu0 %vm19483_vm6, %v14771_v36  ;;  %vm19489_vm4 = vmmov %vm19472_vm0 }
 0x8e3   :  { %5825 = vmatpush1.msra.mxu1 %v4435_v35  ;;  %5888 = vmatprep.mubr.f32.mxu1 %v19391_v14  ;;  %vm19490_vm6 = vmmov %vm19472_vm0 }
 0x8e4   :  { %6038 = vmatpush1.msra.mxu0 %v4441_v28  ;;  %6101 = vmatprep.mubr.f32.mxu0 %v19391_v14 }
 0x8e5   :  { %5966 = vmatprep.subr.mxu1 %v4440_v9  ;;  %6179 = vmatprep.subr.mxu0 %v4446_v61 }
 0x8e6   :  { %11909 = vmatmul.mubr.msk.f32.vlgmr.msra.gmra.mrb[44].mxu1 %vm19484_vm15, %v14771_v36  ;;  %11912 = vmatmul.mubr.msk.f32.vlgmr.msra.gmra.mrb[44].mxu0 %vm19485_vm2, %v14771_v36  ;;  %vm19491_vm15 = vmmov %vm19472_vm0 }
 0x8e7   :  { %5967 = vmatpush1.msra.mxu1 %v4439_v39  ;;  %6030 = vmatprep.mubr.f32.mxu1 %v19391_v14  ;;  %vm19492_vm2 = vmmov %vm19472_vm0 }
 0x8e8   :  { %6180 = vmatpush1.msra.mxu0 %v4445_v46  ;;  %6243 = vmatprep.mubr.f32.mxu0 %v19391_v14 }
 0x8e9   :  { %6108 = vmatprep.subr.mxu1 %v4444_v52  ;;  %6321 = vmatprep.subr.mxu0 %v4450_v50 }
 0x8ea   :  { %11911 = vmatmul.mubr.msk.f32.vlgmr.msra.gmra.mrb[46].mxu1 %vm19486_vm10, %v14771_v36  ;;  %11914 = vmatmul.mubr.msk.f32.vlgmr.msra.gmra.mrb[46].mxu0 %vm19472_vm0, %v14771_v36  ;;  %vm19493_vm10 = vmmov %vm19472_vm0 }
 0x8eb   :  { %6109 = vmatpush1.msra.mxu1 %v4443_v6  ;;  %6172 = vmatprep.mubr.f32.mxu1 %v19391_v14 }
 0x8ec   :  { %6322 = vmatpush1.msra.mxu0 %v4449_v51  ;;  %6385 = vmatprep.mubr.f32.mxu0 %v19391_v14 }
 0x8ed   :  { %6250 = vmatprep.subr.mxu1 %v4448_v48  ;;  %6463 = vmatprep.subr.mxu0 %v4454_v49 }
 0x8ee   :  { %11913 = vmatmul.mubr.msk.f32.vlgmr.msra.gmra.mrb[48].mxu1 %vm19487_vm13, %v14771_v36  ;;  %11916 = vmatmul.mubr.msk.f32.vlgmr.msra.gmra.mrb[48].mxu0 %vm19488_vm14, %v14771_v36  ;;  %vm19494_vm13 = vmmov %vm19472_vm0 }
 0x8ef   :  { %6251 = vmatpush1.msra.mxu1 %v4447_v59  ;;  %6314 = vmatprep.mubr.f32.mxu1 %v19391_v14  ;;  %vm19495_vm14 = vmmov %vm19472_vm0 }
 0x8f0   :  { %6464 = vmatpush1.msra.mxu0 %v4453_v3  ;;  %6527 = vmatprep.mubr.f32.mxu0 %v19391_v14 }
 0x8f1   :  { %6392 = vmatprep.subr.mxu1 %v4452_v47  ;;  %6605 = vmatprep.subr.mxu0 %v4458_v44 }
 0x8f2   :  { %11915 = vmatmul.mubr.msk.f32.vlgmr.msra.gmra.mrb[50].mxu1 %vm19489_vm4, %v14771_v36  ;;  %11918 = vmatmul.mubr.msk.f32.vlgmr.msra.gmra.mrb[50].mxu0 %vm19490_vm6, %v14771_v36  ;;  %vm19496_vm4 = vmmov %vm19472_vm0 }
 0x8f3   :  { %6393 = vmatpush1.msra.mxu1 %v4451_v53  ;;  %6456 = vmatprep.mubr.f32.mxu1 %v19391_v14  ;;  %vm19497_vm6 = vmmov %vm19472_vm0 }
 0x8f4   :  { %6606 = vmatpush1.msra.mxu0 %v4457_v26  ;;  %6669 = vmatprep.mubr.f32.mxu0 %v19391_v14 }
 0x8f5   :  { %6534 = vmatprep.subr.mxu1 %v4456_v41  ;;  %6747 = vmatprep.subr.mxu0 %v4462_v63 }
 0x8f6   :  { %11917 = vmatmul.mubr.msk.f32.vlgmr.msra.gmra.mrb[52].mxu1 %vm19491_vm15, %v14771_v36  ;;  %11920 = vmatmul.mubr.msk.f32.vlgmr.msra.gmra.mrb[52].mxu0 %vm19492_vm2, %v14771_v36  ;;  %vm19498_vm15 = vmmov %vm19472_vm0 }
 0x8f7   :  { %6535 = vmatpush1.msra.mxu1 %v4455_v62  ;;  %6598 = vmatprep.mubr.f32.mxu1 %v19391_v14  ;;  %vm19499_vm2 = vmmov %vm19472_vm0 }
 0x8f8   :  { %6748 = vmatpush1.msra.mxu0 %v4461_v60  ;;  %6811 = vmatprep.mubr.f32.mxu0 %v19391_v14 }
 0x8f9   :  { %6676 = vmatprep.subr.mxu1 %v4460_v12  ;;  %6889 = vmatprep.subr.mxu0 %v4466_v5 }
 0x8fa   :  { %11919 = vmatmul.mubr.msk.f32.vlgmr.msra.gmra.mrb[54].mxu1 %vm19493_vm10, %v14771_v36  ;;  %11922 = vmatmul.mubr.msk.f32.vlgmr.msra.gmra.mrb[54].mxu0 %vm19472_vm0, %v14771_v36  ;;  %vm19505_vm10 = vcmask 523264   ;;  %vm19510_vm0 = vcmask 785408  }
 0x8fb   :  { %6677 = vmatpush1.msra.mxu1 %v4459_v4  ;;  %6740 = vmatprep.mubr.f32.mxu1 %v19391_v14 }
 0x8fc   :  { %6890 = vmatpush1.msra.mxu0 %v4465_v57  ;;  %6953 = vmatprep.mubr.f32.mxu0 %v19391_v14 }
 0x8fd   :  { %6818 = vmatprep.subr.mxu1 %v4464_v15  ;;  %7031 = vmatprep.subr.mxu0 %v4470_v54 }
 0x8fe   :  { %11921 = vmatmul.mubr.msk.f32.vlgmr.msra.gmra.mrb[56].mxu1 %vm19494_vm13, %v14771_v36  ;;  %11924 = vmatmul.mubr.msk.f32.vlgmr.msra.gmra.mrb[56].mxu0 %vm19495_vm14, %v14771_v36  ;;  %vm19520_vm13 = vmmov %vm19505_vm10 }
 0x8ff   :  { %6819 = vmatpush1.msra.mxu1 %v4463_v37  ;;  %6882 = vmatprep.mubr.f32.mxu1 %v19391_v14  ;;  %vm19525_vm14 = vmmov %vm19510_vm0 }
 0x900   :  { %7032 = vmatpush1.msra.mxu0 %v4469_v40  ;;  %7095 = vmatprep.mubr.f32.mxu0 %v19391_v14 }
 0x901   :  { %6960 = vmatprep.subr.mxu1 %v4468_v34 }
 0x902   :  { %11923 = vmatmul.mubr.msk.f32.vlgmr.msra.gmra.mrb[58].mxu1 %vm19496_vm4, %v14771_v36  ;;  %11926 = vmatmul.mubr.msk.f32.vlgmr.msra.gmra.mrb[58].mxu0 %vm19497_vm6, %v14771_v36  ;;  %vm19530_vm4 = vmmov %vm19505_vm10 }
 0x903   :  { %6961 = vmatpush1.msra.mxu1 %v4467_v18  ;;  %7024 = vmatprep.mubr.f32.mxu1 %v19391_v14  ;;  %vm19532_vm6 = vmmov %vm19530_vm4 }
 0x904   :  { %12354 = vmatprep.subr.mxu1 %v19391_v14 }
 0x906   :  { %11925 = vmatmul.mubr.msk.f32.vlgmr.msra.gmra.mrb[60].mxu1 %vm19498_vm15, %v14771_v36  ;;  %vm19536_vm15 = vmmov %vm19510_vm0 }
 0x907   :  { %12355 = vmatpush3.msra.mxu1 %v4471_v7  ;;  %12356 = vmatprep.mubr.msk.f32.mxu1 %vm12723_vm7, %v19391_v14 }
 0x908   :  { %12631 = vmatprep.subr.bf16.mxu1 %v19412_v22 }
 0x90a   :  { %12357 = vmatmul.mubr.msk.f32.vlgmr.msra.gmra.mrb[62].mxu1 %vm19499_vm2, %v14771_v36  ;;  %vm19538_vm2 = vmmov %vm19510_vm0 }
 0x90b   :  { %12391 = vmatprep.mubr.msk.f32.mxu1 %vm12723_vm7, %v19391_v14 }
 0x991   :  { %v4541_v11 = vpop.f32.mrb[24].mxu1  ;;  %v4683_v16 = vpop.f32.mrb[24].mxu0 }
 0x992   :  { %v4543_v55 = vpop.f32.mrb[25].mxu1  ;;  %v4685_v24 = vpop.f32.mrb[25].mxu0 }
 0x993   :  { %v7247_v58 = vcombine.low %v4541_v11, %v4543_v55  ;;  %v7264_v45 = vcombine.low %v4683_v16, %v4685_v24 }
 0x995   :  { %v4612_v27 = vpop.f32.mrb[26].mxu1  ;;  %v4825_v33 = vpop.f32.mrb[26].mxu0  ;;  %v7255_v21 = vrot.slane %v7247_v58, %v19500_v19  ;;  %v7272_v9 = vrot.slane %v7264_v45, %v19500_v19 }
 0x996   :  { %v4614_v56 = vpop.f32.mrb[27].mxu1  ;;  %v4827_v10 = vpop.f32.mrb[27].mxu0 }
 0x997   :  { %v7248_v13 = vcombine.low %v4612_v27, %v4614_v56  ;;  %v7281_v29 = vcombine.low %v4825_v33, %v4827_v10 }
 0x999   :  { %v7262_v30 = vrot.slane %v7248_v13, %v19500_v19  ;;  %v4754_v36 = vpop.f32.mrb[28].mxu1  ;;  %v4967_v1 = vpop.f32.mrb[28].mxu0  ;;  %v7289_v49 = vrot.slane %v7281_v29, %v19500_v19 }
 0x99a   :  { %v4756_v8 = vpop.f32.mrb[29].mxu1  ;;  %v4969_v23 = vpop.f32.mrb[29].mxu0 }
 0x99b   :  { %v7263_v25 = vcombine.low %v7255_v21, %v7262_v30  ;;  %v7265_v35 = vcombine.low %v4754_v36, %v4756_v8  ;;  %v7298_v28 = vcombine.low %v4967_v1, %v4969_v23  ;;  %v19501_v30 = vld [vmem:[#allocation13_spill] sm:$0xff] }
 0x99d   :  { %7588 = vst [vmem:[#allocation3] sm:$0xff] %v7263_v25  ;;  %v7279_v61 = vrot.slane %v7265_v35, %v19500_v19  ;;  %v4896_v39 = vpop.f32.mrb[30].mxu1  ;;  %v5109_v46 = vpop.f32.mrb[30].mxu0  ;;  %v7306_v62 = vrot.slane %v7298_v28, %v19500_v19 }
 0x99e   :  { %v4898_v52 = vpop.f32.mrb[31].mxu1  ;;  %v5111_v50 = vpop.f32.mrb[31].mxu0 }
 0x99f   :  { %v7280_v6 = vcombine.low %v7272_v9, %v7279_v61  ;;  %v7282_v51 = vcombine.low %v4896_v39, %v4898_v52  ;;  %v7315_v48 = vcombine.low %v5109_v46, %v5111_v50 }
 0x9a1   :  { %7589 = vst [vmem:[#allocation3 + $0x8] sm:$0xff] %v7280_v6  ;;  %v7296_v59 = vrot.slane %v7282_v51, %v19500_v19  ;;  %v5038_v3 = vpop.f32.mrb[32].mxu1  ;;  %v5251_v47 = vpop.f32.mrb[32].mxu0  ;;  %v7323_v34 = vrot.slane %v7315_v48, %v19500_v19 }
 0x9a2   :  { %v5040_v44 = vpop.f32.mrb[33].mxu1  ;;  %v5253_v53 = vpop.f32.mrb[33].mxu0 }
 0x9a3   :  { %v7297_v26 = vcombine.low %v7289_v49, %v7296_v59  ;;  %v7299_v41 = vcombine.low %v5038_v3, %v5040_v44  ;;  %v7332_v63 = vcombine.low %v5251_v47, %v5253_v53 }
 0x9a5   :  { %7590 = vst [vmem:[#allocation3 + $0x10] sm:$0xff] %v7297_v26  ;;  %v7313_v60 = vrot.slane %v7299_v41, %v19500_v19  ;;  %v5180_v12 = vpop.f32.mrb[34].mxu1  ;;  %v5393_v5 = vpop.f32.mrb[34].mxu0  ;;  %v7340_v10 = vrot.slane %v7332_v63, %v19500_v19 }
 0x9a6   :  { %v5182_v4 = vpop.f32.mrb[35].mxu1  ;;  %v5395_v57 = vpop.f32.mrb[35].mxu0 }
 0x9a7   :  { %v7314_v15 = vcombine.low %v7306_v62, %v7313_v60  ;;  %v7316_v54 = vcombine.low %v5180_v12, %v5182_v4  ;;  %v7349_v37 = vcombine.low %v5393_v5, %v5395_v57 }
 0x9a8   :  { %v11933_v40 = vld.sshfl [vmem:[#allocation3 + $0x6] sm:$0x77 pattern:$0x75316420] }
 0x9a9   :  { %7591 = vst [vmem:[#allocation3 + $0x18] sm:$0xff] %v7314_v15  ;;  %v7330_v18 = vrot.slane %v7316_v54, %v19500_v19  ;;  %v5322_v7 = vpop.f32.mrb[36].mxu1  ;;  %v5535_v11 = vpop.f32.mrb[36].mxu0  ;;  %v8129_v16 = vrot.slane %v11933_v40, %v13333_v38  ;;  %v8125_v55 = vrot.slane %v11933_v40, %v19440_v17  ;;  %v8121_v45 = vcombine.high %v11933_v40, %v11933_v40 }
 0x9aa   :  { %v5324_v24 = vpop.f32.mrb[37].mxu1  ;;  %v5537_v58 = vpop.f32.mrb[37].mxu0  ;;  %v8133_v36 = vrot.slane %v11933_v40, %v19501_v30  ;;  %v7357_v9 = vrot.slane %v7349_v37, %v19500_v19 }
 0x9ab   :  { %v7331_v27 = vcombine.low %v7323_v34, %v7330_v18  ;;  %v7333_v33 = vcombine.low %v5322_v7, %v5324_v24  ;;  %v7366_v56 = vcombine.low %v5535_v11, %v5537_v58  ;;  %8148 = vrot.lane.b32.xlu1 %v8129_v16, %s12724_s12  ;;  %8146 = vrot.lane.b32.xlu0 %v8125_v55, %s12724_s12 }
 0x9ac   :  { %v8137_v1 = vrot.slane %v8121_v45, %v19440_v17  ;;  %v8141_v52 = vrot.slane %v8121_v45, %v13333_v38  ;;  %v8145_v50 = vrot.slane %v8121_v45, %v19501_v30  ;;  %v11938_v48 = vld.sshfl [vmem:[#allocation3 + $0xc] sm:$0x77 pattern:$0x75316420] }
 0x9ad   :  { %7592 = vst [vmem:[#allocation3 + $0x20] sm:$0xff] %v7331_v27  ;;  %v7347_v13 = vrot.slane %v7333_v33, %v19500_v19  ;;  %v5464_v29 = vpop.f32.mrb[38].mxu1  ;;  %v5677_v21 = vpop.f32.mrb[38].mxu0  ;;  %v7374_v47 = vrot.slane %v7366_v56, %v19500_v19  ;;  %v9015_v41 = vrot.slane %v11938_v48, %v13333_v38  ;;  %v9011_v63 = vrot.slane %v11938_v48, %v19440_v17 }
 0x9ae   :  { %v5466_v8 = vpop.f32.mrb[39].mxu1  ;;  %v5679_v23 = vpop.f32.mrb[39].mxu0  ;;  %v11943_v62 = vld.sshfl [vmem:[#allocation3 + $0x12] sm:$0x77 pattern:$0x75316420]  ;;  %v9019_v18 = vrot.slane %v11938_v48, %v19501_v30  ;;  %v9007_v7 = vcombine.high %v11938_v48, %v11938_v48 }
 0x9af   :  { %v7348_v25 = vcombine.low %v7340_v10, %v7347_v13  ;;  %v7350_v35 = vcombine.low %v5464_v29, %v5466_v8  ;;  %v7383_v28 = vcombine.low %v5677_v21, %v5679_v23  ;;  %8150 = vrot.lane.b32.xlu0 %v8133_v36, %s12724_s12  ;;  %8152 = vrot.lane.b32.xlu1 %v8137_v1, %s12724_s12 }
 0x9b0   :  { %v9901_v15 = vrot.slane %v11943_v62, %v13333_v38  ;;  %v9897_v10 = vrot.slane %v11943_v62, %v19440_v17  ;;  %v9023_v13 = vrot.slane %v9007_v7, %v19440_v17  ;;  %v9905_v23 = vrot.slane %v11943_v62, %v19501_v30 }
 0x9b1   :  { %7593 = vst [vmem:[#allocation3 + $0x28] sm:$0xff] %v7348_v25  ;;  %v7364_v61 = vrot.slane %v7350_v35, %v19500_v19  ;;  %v5606_v39 = vpop.f32.mrb[40].mxu1  ;;  %v5819_v46 = vpop.f32.mrb[40].mxu0  ;;  %v7391_v54 = vrot.slane %v7383_v28, %v19500_v19 }
 0x9b2   :  { %v5608_v6 = vpop.f32.mrb[41].mxu1  ;;  %v5821_v51 = vpop.f32.mrb[41].mxu0 }
 0x9b3   :  { %v7365_v49 = vcombine.low %v7357_v9, %v7364_v61  ;;  %v7367_v59 = vcombine.low %v5606_v39, %v5608_v6  ;;  %v7400_v3 = vcombine.low %v5819_v46, %v5821_v51  ;;  %8154 = vrot.lane.b32.xlu0 %v8141_v52, %s12724_s12  ;;  %8156 = vrot.lane.b32.xlu1 %v8145_v50, %s12724_s12 }
 0x9b4   :  { %v9031_v61 = vrot.slane %v9007_v7, %v19501_v30  ;;  %v9893_v39 = vcombine.high %v11943_v62, %v11943_v62 }
 0x9b5   :  { %7594 = vst [vmem:[#allocation3 + $0x30] sm:$0xff] %v7365_v49  ;;  %v7381_v44 = vrot.slane %v7367_v59, %v19500_v19  ;;  %v5748_v53 = vpop.f32.mrb[42].mxu1  ;;  %v5961_v26 = vpop.f32.mrb[42].mxu0  ;;  %v7408_v45 = vrot.slane %v7400_v3, %v19500_v19 }
 0x9b6   :  { %v5750_v60 = vpop.f32.mrb[43].mxu1  ;;  %v5963_v12 = vpop.f32.mrb[43].mxu0 }
 0x9b7   :  { %v7382_v5 = vcombine.low %v7374_v47, %v7381_v44  ;;  %v7384_v4 = vcombine.low %v5748_v53, %v5750_v60  ;;  %v7417_v57 = vcombine.low %v5961_v26, %v5963_v12  ;;  %9034 = vrot.lane.b32.xlu1 %v9015_v41, %s12726_s2  ;;  %9032 = vrot.lane.b32.xlu0 %v9011_v63, %s12726_s2 }
 0x9b8   :  { %v9027_v47 = vrot.slane %v9007_v7, %v13333_v38  ;;  %v9909_v44 = vrot.slane %v9893_v39, %v19440_v17 }
 0x9b9   :  { %7595 = vst [vmem:[#allocation3 + $0x38] sm:$0xff] %v7382_v5  ;;  %v7398_v37 = vrot.slane %v7384_v4, %v19500_v19  ;;  %v5890_v40 = vpop.f32.mrb[44].mxu1  ;;  %v6103_v34 = vpop.f32.mrb[44].mxu0  ;;  %v7425_v25 = vrot.slane %v7417_v57, %v19500_v19  ;;  %v9913_v57 = vrot.slane %v9893_v39, %v13333_v38 }
 0x9ba   :  { %v5892_v11 = vpop.f32.mrb[45].mxu1  ;;  %v6105_v16 = vpop.f32.mrb[45].mxu0 }
 0x9bb   :  { %v7399_v55 = vcombine.low %v7391_v54, %v7398_v37  ;;  %v7401_v24 = vcombine.low %v5890_v40, %v5892_v11  ;;  %v7434_v58 = vcombine.low %v6103_v34, %v6105_v16  ;;  %9920 = vrot.lane.b32.xlu1 %v9901_v15, %s12727_s10  ;;  %9036 = vrot.lane.b32.xlu0 %v9019_v18, %s12726_s2  ;;  %v11934_v40 = vld.sshfl [vmem:[#allocation3 + $0x24] sm:$0x77 pattern:$0x75316420] }
 0x9bc   :  { %v9917_v15 = vrot.slane %v9893_v39, %v19501_v30 }
 0x9bd   :  { %7596 = vst [vmem:[#allocation3 + $0x40] sm:$0xff] %v7399_v55  ;;  %v7415_v27 = vrot.slane %v7401_v24, %v19500_v19  ;;  %v6032_v33 = vpop.f32.mrb[46].mxu1  ;;  %v6245_v56 = vpop.f32.mrb[46].mxu0  ;;  %v7442_v48 = vrot.slane %v7434_v58, %v19500_v19  ;;  %v8287_v58 = vrot.slane %v11934_v40, %v13333_v38 }
 0x9be   :  { %v6034_v29 = vpop.f32.mrb[47].mxu1  ;;  %v6247_v21 = vpop.f32.mrb[47].mxu0 }
 0x9bf   :  { %v7416_v36 = vcombine.low %v7408_v45, %v7415_v27  ;;  %v7418_v1 = vcombine.low %v6032_v33, %v6034_v29  ;;  %v7451_v8 = vcombine.low %v6245_v56, %v6247_v21  ;;  %9918 = vrot.lane.b32.xlu0 %v9897_v10, %s12727_s10  ;;  %9038 = vrot.lane.b32.xlu1 %v9023_v13, %s12726_s2  ;;  %v11939_v27 = vld.sshfl [vmem:[#allocation3 + $0x2a] sm:$0x77 pattern:$0x75316420] }
 0x9c0   :  { %v8283_v45 = vrot.slane %v11934_v40, %v19440_v17  ;;  %v9173_v21 = vrot.slane %v11939_v27, %v13333_v38 }
 0x9c1   :  { %7597 = vst [vmem:[#allocation3 + $0x48] sm:$0xff] %v7416_v36  ;;  %v7432_v35 = vrot.slane %v7418_v1, %v19500_v19  ;;  %v6174_v28 = vpop.f32.mrb[48].mxu1  ;;  %v6387_v9 = vpop.f32.mrb[48].mxu0  ;;  %v7459_v60 = vrot.slane %v7451_v8, %v19500_v19 }
 0x9c2   :  { %v6176_v46 = vpop.f32.mrb[49].mxu1  ;;  %v6389_v52 = vpop.f32.mrb[49].mxu0 }
 0x9c3   :  { %v7433_v50 = vcombine.low %v7425_v25, %v7432_v35  ;;  %v7435_v6 = vcombine.low %v6174_v28, %v6176_v46  ;;  %v7468_v51 = vcombine.low %v6387_v9, %v6389_v52  ;;  %9922 = vrot.lane.b32.xlu0 %v9905_v23, %s12727_s10  ;;  %9042 = vrot.lane.b32.xlu1 %v9031_v61, %s12726_s2 }
 0x9c4   :  { %v8291_v25 = vrot.slane %v11934_v40, %v19501_v30  ;;  %v8279_v35 = vcombine.high %v11934_v40, %v11934_v40 }
 0x9c5   :  { %7598 = vst [vmem:[#allocation3 + $0x50] sm:$0xff] %v7433_v50  ;;  %v7449_v49 = vrot.slane %v7435_v6, %v19500_v19  ;;  %v6316_v59 = vpop.f32.mrb[50].mxu1  ;;  %v6529_v3 = vpop.f32.mrb[50].mxu0  ;;  %v7476_v11 = vrot.slane %v7468_v51, %v19500_v19 }
 0x9c6   :  { %v6318_v53 = vpop.f32.mrb[51].mxu1  ;;  %v6531_v26 = vpop.f32.mrb[51].mxu0  ;;  %v8299_v40 = vrot.slane %v8279_v35, %v13333_v38 }
 0x9c7   :  { %v7450_v41 = vcombine.low %v7442_v48, %v7449_v49  ;;  %v7452_v63 = vcombine.low %v6316_v59, %v6318_v53  ;;  %v7485_v62 = vcombine.low %v6529_v3, %v6531_v26  ;;  %9040 = vrot.lane.b32.xlu0 %v9027_v47, %s12726_s2  ;;  %9924 = vrot.lane.b32.xlu1 %v9909_v44, %s12727_s10 }
 0x9c8   :  { %v9169_v48 = vrot.slane %v11939_v27, %v19440_v17  ;;  %v8295_v49 = vrot.slane %v8279_v35, %v19440_v17  ;;  %v9177_v26 = vrot.slane %v11939_v27, %v19501_v30 }
 0x9c9   :  { %7599 = vst [vmem:[#allocation3 + $0x58] sm:$0xff] %v7450_v41  ;;  %v7466_v12 = vrot.slane %v7452_v63, %v19500_v19  ;;  %v6458_v5 = vpop.f32.mrb[52].mxu1  ;;  %v6671_v4 = vpop.f32.mrb[52].mxu0  ;;  %v7493_v36 = vrot.slane %v7485_v62, %v19500_v19 }
 0x9ca   :  { %v6460_v54 = vpop.f32.mrb[53].mxu1  ;;  %v6673_v37 = vpop.f32.mrb[53].mxu0 }
 0x9cb   :  { %v7467_v34 = vcombine.low %v7459_v60, %v7466_v12  ;;  %v7469_v18 = vcombine.low %v6458_v5, %v6460_v54  ;;  %v7502_v7 = vcombine.low %v6671_v4, %v6673_v37  ;;  %9926 = vrot.lane.b32.xlu0 %v9913_v57, %s12727_s10  ;;  %9928 = vrot.lane.b32.xlu1 %v9917_v15, %s12727_s10 }
 0x9cc   :  { %v8303_v60 = vrot.slane %v8279_v35, %v19501_v30  ;;  %v9165_v12 = vcombine.high %v11939_v27, %v11939_v27 }
 0x9cd   :  { %7600 = vst [vmem:[#allocation3 + $0x60] sm:$0xff] %v7467_v34  ;;  %v7483_v16 = vrot.slane %v7469_v18, %v19500_v19  ;;  %v6600_v55 = vpop.f32.mrb[54].mxu1  ;;  %v6813_v24 = vpop.f32.mrb[54].mxu0  ;;  %v7510_v52 = vrot.slane %v7502_v7, %v19500_v19 }
 0x9ce   :  { %v6602_v33 = vpop.f32.mrb[55].mxu1  ;;  %v6815_v56 = vpop.f32.mrb[55].mxu0  ;;  %v9181_v34 = vrot.slane %v9165_v12, %v19440_v17 }
 0x9cf   :  { %v7484_v10 = vcombine.low %v7476_v11, %v7483_v16  ;;  %v7486_v13 = vcombine.low %v6600_v55, %v6602_v33  ;;  %v7519_v29 = vcombine.low %v6813_v24, %v6815_v56  ;;  %8306 = vrot.lane.b32.xlu1 %v8287_v58, %s12724_s12  ;;  %8304 = vrot.lane.b32.xlu0 %v8283_v45, %s12724_s12  ;;  %v11944_v45 = vld.sshfl [vmem:[#allocation3 + $0x30] sm:$0x77 pattern:$0x75316420] }
 0x9d0   :  { %v9185_v24 = vrot.slane %v9165_v12, %v13333_v38  ;;  %v9189_v58 = vrot.slane %v9165_v12, %v19501_v30  ;;  %v10055_v27 = vrot.slane %v11944_v45, %v19440_v17  ;;  %v10051_v33 = vcombine.high %v11944_v45, %v11944_v45 }
 0x9d1   :  { %7601 = vst [vmem:[#allocation3 + $0x68] sm:$0xff] %v7484_v10  ;;  %v7500_v1 = vrot.slane %v7486_v13, %v19500_v19  ;;  %v6742_v8 = vpop.f32.mrb[56].mxu1  ;;  %v6955_v23 = vpop.f32.mrb[56].mxu0  ;;  %v7527_v41 = vrot.slane %v7519_v29, %v19500_v19  ;;  %v10063_v56 = vrot.slane %v11944_v45, %v19501_v30 }
 0x9d2   :  { %v6744_v28 = vpop.f32.mrb[57].mxu1  ;;  %v6957_v9 = vpop.f32.mrb[57].mxu0  ;;  %v10067_v10 = vrot.slane %v10051_v33, %v19440_v17  ;;  %v10071_v13 = vrot.slane %v10051_v33, %v13333_v38  ;;  %v10075_v29 = vrot.slane %v10051_v33, %v19501_v30 }
 0x9d3   :  { %v7501_v61 = vcombine.low %v7493_v36, %v7500_v1  ;;  %v7503_v39 = vcombine.low %v6742_v8, %v6744_v28  ;;  %v7536_v46 = vcombine.low %v6955_v23, %v6957_v9  ;;  %9192 = vrot.lane.b32.xlu1 %v9173_v21, %s12726_s2  ;;  %8308 = vrot.lane.b32.xlu0 %v8291_v25, %s12724_s12  ;;  %v11935_v21 = vld.sshfl [vmem:[#allocation3 + $0x42] sm:$0x77 pattern:$0x75316420] }
 0x9d4   :  { %v8469_v36 = vrot.slane %v11935_v21, %v13333_v38  ;;  %v8465_v1 = vrot.slane %v11935_v21, %v19440_v17  ;;  %v8461_v8 = vcombine.high %v11935_v21, %v11935_v21  ;;  %v8473_v23 = vrot.slane %v11935_v21, %v19501_v30  ;;  %v11940_v9 = vld.sshfl [vmem:[#allocation3 + $0x48] sm:$0x77 pattern:$0x75316420] }
 0x9d5   :  { %7602 = vst [vmem:[#allocation3 + $0x70] sm:$0xff] %v7501_v61  ;;  %v7517_v50 = vrot.slane %v7503_v39, %v19500_v19  ;;  %v6884_v6 = vpop.f32.mrb[58].mxu1  ;;  %v7097_v51 = vpop.f32.mrb[58].mxu0  ;;  %v7544_v15 = vrot.slane %v7536_v46, %v19500_v19  ;;  %v9355_v61 = vrot.slane %v11940_v9, %v13333_v38  ;;  %v9351_v39 = vrot.slane %v11940_v9, %v19440_v17 }
 0x9d6   :  { %v6886_v59 = vpop.f32.mrb[59].mxu1  ;;  %v7099_v3 = vpop.f32.mrb[59].mxu0  ;;  %v8477_v25 = vrot.slane %v8461_v8, %v19440_v17  ;;  %v8481_v35 = vrot.slane %v8461_v8, %v13333_v38  ;;  %v8485_v28 = vrot.slane %v8461_v8, %v19501_v30  ;;  %v9347_v46 = vcombine.high %v11940_v9, %v11940_v9 }
 0x9d7   :  { %v7518_v47 = vcombine.low %v7510_v52, %v7517_v50  ;;  %v7520_v44 = vcombine.low %v6884_v6, %v6886_v59  ;;  %v7553_v53 = vcombine.low %v7097_v51, %v7099_v3  ;;  %9190 = vrot.lane.b32.xlu0 %v9169_v48, %s12726_s2  ;;  %8310 = vrot.lane.b32.xlu1 %v8295_v49, %s12724_s12  ;;  %v11945_v48 = vld.sshfl [vmem:[#allocation3 + $0x4e] sm:$0x77 pattern:$0x75316420] }
 0x9d8   :  { %v9359_v52 = vrot.slane %v11940_v9, %v19501_v30  ;;  %v9363_v50 = vrot.slane %v9347_v46, %v19440_v17  ;;  %v9367_v6 = vrot.slane %v9347_v46, %v13333_v38  ;;  %v9371_v51 = vrot.slane %v9347_v46, %v19501_v30 }
 0x9d9   :  { %7603 = vst [vmem:[#allocation3 + $0x78] sm:$0xff] %v7518_v47  ;;  %v7534_v63 = vrot.slane %v7520_v44, %v19500_v19  ;;  %v7026_v62 = vpop.f32.mrb[60].mxu1  ;;  %v7560_v18 = vrot.slane %v7553_v53, %v19500_v19  ;;  %v10241_v49 = vrot.slane %v11945_v48, %v13333_v38  ;;  %v10237_v59 = vrot.slane %v11945_v48, %v19440_v17 }
 0x9da   :  { %v7028_v5 = vpop.f32.mrb[61].mxu1  ;;  %v10233_v3 = vcombine.high %v11945_v48, %v11945_v48  ;;  %v10245_v47 = vrot.slane %v11945_v48, %v19501_v30 }
 0x9db   :  { %v7535_v4 = vcombine.low %v7527_v41, %v7534_v63  ;;  %v7537_v57 = vcombine.low %v7026_v62, %v7028_v5  ;;  %9194 = vrot.lane.b32.xlu0 %v9177_v26, %s12726_s2  ;;  %8314 = vrot.lane.b32.xlu1 %v8303_v60, %s12724_s12  ;;  %v11936_v41 = vld.sshfl [vmem:[#allocation3 + $0x60] sm:$0x77 pattern:$0x75316420] }
 0x9dc   :  { %v10249_v44 = vrot.slane %v10233_v3, %v19440_v17  ;;  %v10253_v53 = vrot.slane %v10233_v3, %v13333_v38  ;;  %v10257_v26 = vrot.slane %v10233_v3, %v19501_v30  ;;  %v8651_v63 = vrot.slane %v11936_v41, %v13333_v38 }
 0x9dd   :  { %7604 = vst [vmem:[#allocation3 + $0x80] sm:$0xff] %v7535_v4  ;;  %v7551_v54 = vrot.slane %v7537_v57, %v19500_v19  ;;  %v7168_v37 = vpop.f32.mrb[62].mxu1  ;;  %v8647_v62 = vrot.slane %v11936_v41, %v19440_v17  ;;  %v8643_v60 = vcombine.high %v11936_v41, %v11936_v41  ;;  %v8655_v12 = vrot.slane %v11936_v41, %v19501_v30 }
 0x9de   :  { %v7567_v7 = vrot.slane %v7168_v37, %v19500_v19  ;;  %v12358_v11 = vpop.f32.mrb[63].mxu1  ;;  %v10059_v19 = vrot.slane %v11944_v45, %v13333_v38  ;;  %v11941_v37 = vld.sshfl [vmem:[#allocation3 + $0x66] sm:$0x77 pattern:$0x75316420] }
 0x9df   :  { %v7552_v16 = vcombine.low %v7544_v15, %v7551_v54  ;;  %8312 = vrot.lane.b32.xlu0 %v8299_v40, %s12724_s12  ;;  %9196 = vrot.lane.b32.xlu1 %v9181_v34, %s12726_s2  ;;  %v8659_v5 = vrot.slane %v8643_v60, %v19440_v17  ;;  %v8663_v15 = vrot.slane %v8643_v60, %v13333_v38 }
 0x9e0   :  { %v7568_v55 = vcombine.low %v7560_v18, %v7567_v7  ;;  %v8667_v54 = vrot.slane %v8643_v60, %v19501_v30  ;;  %v9537_v18 = vrot.slane %v11941_v37, %v13333_v38  ;;  %v9533_v7 = vrot.slane %v11941_v37, %v19440_v17 }
 0x9e1   :  { %7605 = vst [vmem:[#allocation3 + $0x88] sm:$0xff] %v7552_v16  ;;  %v9529_v11 = vcombine.high %v11941_v37, %v11941_v37 }
 0x9e2   :  { %7606 = vst [vmem:[#allocation3 + $0x90] sm:$0x3f] %v7568_v55 }
 0x9e3   :  { %9198 = vrot.lane.b32.xlu0 %v9185_v24, %s12726_s2  ;;  %9200 = vrot.lane.b32.xlu1 %v9189_v58, %s12726_s2  ;;  %v9541_v24 = vrot.slane %v11941_v37, %v19501_v30  ;;  %v9545_v58 = vrot.slane %v9529_v11, %v19440_v17  ;;  %v9553_v33 = vrot.slane %v9529_v11, %v19501_v30 }
 0x9e7   :  { %10078 = vrot.lane.b32.xlu1 %v10059_v19, %s12727_s10  ;;  %10076 = vrot.lane.b32.xlu0 %v10055_v27, %s12727_s10  ;;  %v9549_v27 = vrot.slane %v9529_v11, %v13333_v38 }
 0x9e8   :  { %v11942_v41 = vld.sshfl [vmem:[#allocation3 + $0x84] sm:$0x77 pattern:$0x75316420] }
 0x9e9   :  { %v9715_v60 = vrot.slane %v11942_v41, %v19440_v17  ;;  %v9723_v37 = vrot.slane %v11942_v41, %v19501_v30 }
 0x9eb   :  { %10080 = vrot.lane.b32.xlu0 %v10063_v56, %s12727_s10  ;;  %10082 = vrot.lane.b32.xlu1 %v10067_v10, %s12727_s10  ;;  %v11946_v56 = vld.sshfl [vmem:[#allocation3 + $0x6c] sm:$0x77 pattern:$0x75316420] }
 0x9ec   :  { %v10423_v21 = vrot.slane %v11946_v56, %v13333_v38 }
 0x9ef   :  { %10084 = vrot.lane.b32.xlu0 %v10071_v13, %s12727_s10  ;;  %10086 = vrot.lane.b32.xlu1 %v10075_v29, %s12727_s10  ;;  %v10419_v29 = vrot.slane %v11946_v56, %v19440_v17 }
 0x9f3   :  { %8488 = vrot.lane.b32.xlu1 %v8469_v36, %s12724_s12  ;;  %8486 = vrot.lane.b32.xlu0 %v8465_v1, %s12724_s12  ;;  %v10415_v36 = vcombine.high %v11946_v56, %v11946_v56 }
 0x9f5   :  { %v10435_v9 = vrot.slane %v10415_v36, %v13333_v38 }
 0x9f7   :  { %8490 = vrot.lane.b32.xlu0 %v8473_v23, %s12724_s12  ;;  %8492 = vrot.lane.b32.xlu1 %v8477_v25, %s12724_s12  ;;  %v10427_v23 = vrot.slane %v11946_v56, %v19501_v30  ;;  %v10431_v25 = vrot.slane %v10415_v36, %v19440_v17 }
 0x9fb   :  { %8494 = vrot.lane.b32.xlu0 %v8481_v35, %s12724_s12  ;;  %8496 = vrot.lane.b32.xlu1 %v8485_v28, %s12724_s12 }
 0x9ff   :  { %9374 = vrot.lane.b32.xlu1 %v9355_v61, %s12726_s2  ;;  %9372 = vrot.lane.b32.xlu0 %v9351_v39, %s12726_s2  ;;  %v10439_v61 = vrot.slane %v10415_v36, %v19501_v30  ;;  %v11937_v39 = vld.sshfl [vmem:[#allocation3 + $0x7e] sm:$0x77 pattern:$0x75316420] }
 0xa03   :  { %9376 = vrot.lane.b32.xlu0 %v9359_v52, %s12726_s2  ;;  %9378 = vrot.lane.b32.xlu1 %v9363_v50, %s12726_s2  ;;  %v8829_v50 = vrot.slane %v11937_v39, %v19440_v17 }
 0xa07   :  { %9380 = vrot.lane.b32.xlu0 %v9367_v6, %s12726_s2  ;;  %9382 = vrot.lane.b32.xlu1 %v9371_v51, %s12726_s2  ;;  %v8833_v6 = vrot.slane %v11937_v39, %v13333_v38  ;;  %v8825_v51 = vcombine.high %v11937_v39, %v11937_v39 }
 0xa09   :  { %v8841_v3 = vrot.slane %v8825_v51, %v19440_v17 }
 0xa0b   :  { %10260 = vrot.lane.b32.xlu1 %v10241_v49, %s12727_s10  ;;  %10258 = vrot.lane.b32.xlu0 %v10237_v59, %s12727_s10  ;;  %v8837_v59 = vrot.slane %v11937_v39, %v19501_v30 }
 0xa0f   :  { %10262 = vrot.lane.b32.xlu0 %v10245_v47, %s12727_s10  ;;  %10264 = vrot.lane.b32.xlu1 %v10249_v44, %s12727_s10 }
 0xa13   :  { %10266 = vrot.lane.b32.xlu0 %v10253_v53, %s12727_s10  ;;  %10268 = vrot.lane.b32.xlu1 %v10257_v26, %s12727_s10  ;;  %v8845_v53 = vrot.slane %v8825_v51, %v13333_v38  ;;  %v8849_v26 = vrot.slane %v8825_v51, %v19501_v30  ;;  %v15376_v51 = vld [vmem:[#allocation2 + $0x20] sm:$0xff] }
 0xa17   :  { %8670 = vrot.lane.b32.xlu1 %v8651_v63, %s12724_s12  ;;  %8668 = vrot.lane.b32.xlu0 %v8647_v62, %s12724_s12 }
 0xa1b   :  { %8672 = vrot.lane.b32.xlu0 %v8655_v12, %s12724_s12  ;;  %8674 = vrot.lane.b32.xlu1 %v8659_v5, %s12724_s12  ;;  %v9719_v12 = vrot.slane %v11942_v41, %v13333_v38  ;;  %v11947_v5 = vld.sshfl [vmem:[#allocation3 + $0x8a] sm:$0x77 pattern:$0x75316420] }
 0xa1c   :  { %v10597_v36 = vcombine.high %v11947_v5, %v11947_v5 }
 0xa1d   :  { %v15251_v4 = vpop.permute.xlu1 %8148  ;;  %v15253_v57 = vpop.permute.xlu0 %8146 }
 0xa1f   :  { %8676 = vrot.lane.b32.xlu0 %v8663_v15, %s12724_s12  ;;  %8678 = vrot.lane.b32.xlu1 %v8667_v54, %s12724_s12 }
 0xa21   :  { %v15259_v40 = vpop.permute.xlu0 %8150  ;;  %v15261_v34 = vpop.permute.xlu1 %8152 }
 0xa23   :  { %9556 = vrot.lane.b32.xlu1 %v9537_v18, %s12726_s2  ;;  %9554 = vrot.lane.b32.xlu0 %v9533_v7, %s12726_s2  ;;  %v10605_v18 = vrot.slane %v11947_v5, %v13333_v38  ;;  %v9711_v7 = vcombine.high %v11942_v41, %v11942_v41 }
 0xa25   :  { %v15267_v16 = vpop.permute.xlu0 %8154  ;;  %v15269_v55 = vpop.permute.xlu1 %8156 }
 0xa26   :  { %v8160_v14 = vsel %vm215_vm1, %v15261_v34, %v15267_v16 }
 0xa27   :  { %9558 = vrot.lane.b32.xlu0 %v9541_v24, %s12726_s2  ;;  %9560 = vrot.lane.b32.xlu1 %v9545_v58, %s12726_s2  ;;  %v10601_v58 = vrot.slane %v11947_v5, %v19440_v17 }
 0xa29   :  { %v15275_v45 = vpop.permute.xlu1 %9034  ;;  %v15277_v19 = vpop.permute.xlu0 %9032 }
 0xa2b   :  { %9562 = vrot.lane.b32.xlu0 %v9549_v27, %s12726_s2  ;;  %9564 = vrot.lane.b32.xlu1 %v9553_v33, %s12726_s2  ;;  %v9727_v27 = vrot.slane %v9711_v7, %v19440_v17 }
 0xa2d   :  { %v15283_v10 = vpop.permute.xlu1 %9920  ;;  %v15285_v13 = vpop.permute.xlu0 %9036 }
 0xa2f   :  { %10440 = vrot.lane.b32.xlu0 %v10419_v29, %s12727_s10  ;;  %10442 = vrot.lane.b32.xlu1 %v10423_v21, %s12727_s10  ;;  %v10609_v29 = vrot.slane %v11947_v5, %v19501_v30  ;;  %v9735_v21 = vrot.slane %v9711_v7, %v19501_v30 }
 0xa31   :  { %v15291_v1 = vpop.permute.xlu0 %9918  ;;  %v15293_v8 = vpop.permute.xlu1 %9038 }
 0xa33   :  { %10444 = vrot.lane.b32.xlu0 %v10427_v23, %s12727_s10  ;;  %10446 = vrot.lane.b32.xlu1 %v10431_v25, %s12727_s10 }
 0xa35   :  { %v15299_v35 = vpop.permute.xlu0 %9922  ;;  %v15301_v28 = vpop.permute.xlu1 %9042 }
 0xa37   :  { %10448 = vrot.lane.b32.xlu0 %v10435_v9, %s12727_s10  ;;  %10450 = vrot.lane.b32.xlu1 %v10439_v61, %s12727_s10  ;;  %v9731_v9 = vrot.slane %v9711_v7, %v13333_v38  ;;  %v10613_v61 = vrot.slane %v10597_v36, %v19440_v17  ;;  %v15482_v17 = vld [vmem:[#allocation2 + $0x50] sm:$0xff] }
 0xa39   :  { %v15307_v46 = vpop.permute.xlu0 %9040  ;;  %v15309_v52 = vpop.permute.xlu1 %9924 }
 0xa3b   :  { %8850 = vrot.lane.b32.xlu0 %v8829_v50, %s12724_s12  ;;  %8852 = vrot.lane.b32.xlu1 %v8833_v6, %s12724_s12  ;;  %v10617_v6 = vrot.slane %v10597_v36, %v13333_v38 }
 0xa3d   :  { %v15315_v48 = vpop.permute.xlu0 %9926  ;;  %v15317_v49 = vpop.permute.xlu1 %9928 }
 0xa3f   :  { %8854 = vrot.lane.b32.xlu0 %v8837_v59, %s12724_s12  ;;  %8856 = vrot.lane.b32.xlu1 %v8841_v3, %s12724_s12  ;;  %v10621_v59 = vrot.slane %v10597_v36, %v19501_v30  ;;  %v8159_v3 = vsel %vm215_vm1, %v15251_v4, %v15259_v40 }
 0xa41   :  { %v15323_v47 = vpop.permute.xlu1 %8306  ;;  %v15325_v44 = vpop.permute.xlu0 %8304 }
 0xa43   :  { %8858 = vrot.lane.b32.xlu0 %v8845_v53, %s12724_s12  ;;  %8860 = vrot.lane.b32.xlu1 %v8849_v26, %s12724_s12  ;;  %v15384_v53 = vld [vmem:[#allocation2 + $0x30] sm:$0xff]  ;;  %v8174_v26 = vmul.f32 %v15253_v57, %v15376_v51 }
 0xa44   :  { %v8176_v5 = vmul.f32 %v8159_v3, %v15384_v53 }
 0xa45   :  { %v15331_v63 = vpop.permute.xlu1 %9192  ;;  %v15333_v62 = vpop.permute.xlu0 %8308 }
 0xa47   :  { %9736 = vrot.lane.b32.xlu0 %v9715_v60, %s12726_s2  ;;  %9738 = vrot.lane.b32.xlu1 %v9719_v12, %s12726_s2  ;;  %v15392_v12 = vld [vmem:[#allocation2] sm:$0xff] }
 0xa49   :  { %v15339_v15 = vpop.permute.xlu0 %9190  ;;  %v15341_v54 = vpop.permute.xlu1 %8310 }
 0xa4b   :  { %9740 = vrot.lane.b32.xlu0 %v9723_v37, %s12726_s2  ;;  %10624 = vrot.lane.b32.xlu1 %v10605_v18, %s12727_s10  ;;  %v15397_v37 = vld [vmem:[#allocation2 + $0x10] sm:$0xff]  ;;  %v8170_v18 = vmul.f32 %v15253_v57, %v15392_v12 }
 0xa4d   :  { %v15347_v11 = vpop.permute.xlu0 %9194  ;;  %v15349_v24 = vpop.permute.xlu1 %8314 }
 0xa4f   :  { %10622 = vrot.lane.b32.xlu0 %v10601_v58, %s12727_s10  ;;  %9742 = vrot.lane.b32.xlu1 %v9727_v27, %s12726_s2  ;;  %v8172_v27 = vmul.f32 %v8159_v3, %v15397_v37  ;;  %v15423_v3 = vld [vmem:[#allocation2 + $0x18] sm:$0xff] }
 0xa51   :  { %v15355_v33 = vpop.permute.xlu0 %8312  ;;  %v15357_v56 = vpop.permute.xlu1 %9196 }
 0xa53   :  { %10626 = vrot.lane.b32.xlu0 %v10609_v29, %s12727_s10  ;;  %9746 = vrot.lane.b32.xlu1 %v9735_v21, %s12726_s2  ;;  %v15406_v29 = vld [vmem:[#allocation2 + $0x60] sm:$0xff]  ;;  %v15409_v21 = vld [vmem:[#allocation2 + $0x38] sm:$0xff] }
 0xa54   :  { %v8177_v36 = vmul.f32 %v15259_v40, %v15409_v21 }
 0xa55   :  { %v15363_v23 = vpop.permute.xlu0 %9198  ;;  %v15365_v25 = vpop.permute.xlu1 %9200 }
 0xa57   :  { %9744 = vrot.lane.b32.xlu0 %v9731_v9, %s12726_s2  ;;  %10628 = vrot.lane.b32.xlu1 %v10613_v61, %s12727_s10 }
 0xa59   :  { %v15371_v39 = vpop.permute.xlu1 %10078  ;;  %v15373_v50 = vpop.permute.xlu0 %10076 }
 0xa5b   :  { %10630 = vrot.lane.b32.xlu0 %v10617_v6, %s12727_s10  ;;  %10632 = vrot.lane.b32.xlu1 %v10621_v59, %s12727_s10  ;;  %v8182_v6 = vmul.f32 %v15261_v34, %v15406_v29  ;;  %v15420_v59 = vld [vmem:[#allocation2 + $0x40] sm:$0xff] }
 0xa5c   :  { %v8178_v2 = vmul.f32 %v15261_v34, %v15420_v59 }
 0xa5d   :  { %v15388_v41 = vpop.permute.xlu0 %10080  ;;  %v15390_v60 = vpop.permute.xlu1 %10082 }
 0xa5f   :  { %8210 = vrot.lane.b32.xlu0 %v8174_v26, %s12727_s10  ;;  %8214 = vrot.lane.b32.xlu1 %v8176_v5, %s12727_s10  ;;  %v8173_v26 = vmul.f32 %v15259_v40, %v15423_v3 }
 0xa61   :  { %v15401_v7 = vpop.permute.xlu0 %10084  ;;  %v15403_v58 = vpop.permute.xlu1 %10086 }
 0xa63   :  { %8202 = vrot.lane.b32.xlu0 %v8170_v18, %s12727_s10  ;;  %8206 = vrot.lane.b32.xlu1 %v8172_v27, %s12727_s10  ;;  %v8158_v27 = vsel %vm215_vm1, %v15253_v57, %v15251_v4  ;;  %v15451_v57 = vld [vmem:[#allocation2 + $0x8] sm:$0xff] }
 0xa65   :  { %v15414_v9 = vpop.permute.xlu1 %8488  ;;  %v15416_v61 = vpop.permute.xlu0 %8486 }
 0xa67   :  { %8216 = vrot.lane.b32.xlu0 %v8177_v36, %s12727_s10  ;;  %8226 = vrot.lane.b32.xlu1 %v8182_v6, %s12727_s10  ;;  %v15438_v36 = vld [vmem:[#allocation2 + $0x28] sm:$0xff]  ;;  %v15441_v6 = vld [vmem:[#allocation2 + $0x78] sm:$0xff] }
 0xa68   :  { %v8175_v40 = vmul.f32 %v8158_v27, %v15438_v36  ;;  %v8185_v4 = vmul.f32 %v15269_v55, %v15441_v6 }
 0xa69   :  { %v15428_v5 = vpop.permute.xlu0 %8490  ;;  %v15430_v18 = vpop.permute.xlu1 %8492 }
 0xa6b   :  { %8208 = vrot.lane.b32.xlu0 %v8173_v26, %s12727_s10  ;;  %8218 = vrot.lane.b32.xlu1 %v8178_v2, %s12727_s10  ;;  %v15454_v26 = vld [vmem:[#allocation2 + $0x58] sm:$0xff]  ;;  %v8171_v2 = vmul.f32 %v8158_v27, %v15451_v57  ;;  %v15473_v27 = vld [vmem:[#allocation2 + $0x70] sm:$0xff] }
 0xa6c   :  { %v8181_v43 = vmul.f32 %v15269_v55, %v15454_v26 }
 0xa6d   :  { %v15444_v31 = vpop.permute.xlu0 %8494  ;;  %v15446_v32 = vpop.permute.xlu1 %8496 }
 0xa6f   :  { %8212 = vrot.lane.b32.xlu0 %v8175_v40, %s12727_s10  ;;  %8232 = vrot.lane.b32.xlu1 %v8185_v4, %s12727_s10  ;;  %v8161_v40 = vsel %vm215_vm1, %v15267_v16, %v15269_v55  ;;  %v15470_v4 = vld [vmem:[#allocation2 + $0x68] sm:$0xff] }
 0xa70   :  { %v8183_v42 = vmul.f32 %v8160_v14, %v15470_v4  ;;  %v8184_v38 = vmul.f32 %v8161_v40, %v15473_v27  ;;  %v15485_v16 = vld [vmem:[#allocation2 + $0x48] sm:$0xff] }
 0xa71   :  { %v15457_v0 = vpop.permute.xlu1 %9374  ;;  %v15459_v20 = vpop.permute.xlu0 %9372  ;;  %v8179_v30 = vmul.f32 %v8160_v14, %v15485_v16  ;;  %v9056_v14 = vmul.f32 %v15277_v19, %v15392_v12 }
 0xa73   :  { %8204 = vrot.lane.b32.xlu0 %v8171_v2, %s12727_s10  ;;  %8224 = vrot.lane.b32.xlu1 %v8181_v43, %s12727_s10  ;;  %v8180_v43 = vmul.f32 %v8161_v40, %v15482_v17 }
 0xa75   :  { %v15476_v22 = vpop.permute.xlu0 %9376  ;;  %v15478_v34 = vpop.permute.xlu1 %9378 }
 0xa76   :  { %19502 = vst [vmem:[#allocation23_spill] sm:$0xff] %v15478_v34  ;;  %v9045_v34 = vsel %vm19505_vm10, %v15275_v45, %v15285_v13  ;;  %vm19543_vm10 = vmmov %vm19530_vm4 }
 0xa77   :  { %8228 = vrot.lane.b32.xlu0 %v8183_v42, %s12727_s10  ;;  %8230 = vrot.lane.b32.xlu1 %v8184_v38, %s12727_s10  ;;  %v9060_v38 = vmul.f32 %v15277_v19, %v15376_v51 }
 0xa79   :  { %v15488_v55 = vpop.permute.xlu0 %9380  ;;  %v15490_v2 = vpop.permute.xlu1 %9382 }
 0xa7a   :  { %19503 = vst [vmem:[#allocation15_spill] sm:$0xff] %v15488_v55  ;;  %19504 = vst [vmem:[#allocation40_spill] sm:$0xff] %v15490_v2  ;;  %v9062_v55 = vmul.f32 %v9045_v34, %v15384_v53 }
 0xa7b   :  { %8222 = vrot.lane.b32.xlu0 %v8180_v43, %s12727_s10  ;;  %8220 = vrot.lane.b32.xlu1 %v8179_v30, %s12727_s10  ;;  %v9058_v30 = vmul.f32 %v9045_v34, %v15397_v37  ;;  %v9059_v34 = vmul.f32 %v15285_v13, %v15423_v3 }
 0xa7d   :  { %v15500_v42 = vpop.permute.xlu1 %10260  ;;  %v15502_v40 = vpop.permute.xlu0 %10258 }
 0xa7e   :  { %19506 = vst [vmem:[#allocation36_spill] sm:$0xff] %v15500_v42  ;;  %19507 = vst [vmem:[#allocation25_spill] sm:$0xff] %v15502_v40  ;;  %v9931_v42 = vsel %vm19510_vm0, %v15283_v10, %v15299_v35  ;;  %vm19550_vm0 = vcmask 1046528  }
 0xa7f   :  { %9096 = vrot.lane.b32.xlu0 %v9060_v38, %s12726_s2  ;;  %9100 = vrot.lane.b32.xlu1 %v9062_v55, %s12726_s2  ;;  %v9063_v55 = vmul.f32 %v15285_v13, %v15409_v21  ;;  %v9068_v13 = vmul.f32 %v15293_v8, %v15406_v29 }
 0xa81   :  { %v15509_v2 = vpop.permute.xlu0 %10262  ;;  %v15511_v43 = vpop.permute.xlu1 %10264 }
 0xa82   :  { %19508 = vst [vmem:[#allocation20_spill] sm:$0xff] %v15509_v2  ;;  %19509 = vst [vmem:[#allocation38_spill] sm:$0xff] %v15511_v43  ;;  %v9948_v2 = vmul.f32 %v9931_v42, %v15384_v53 }
 0xa83   :  { %9088 = vrot.lane.b32.xlu0 %v9056_v14, %s12726_s2  ;;  %9092 = vrot.lane.b32.xlu1 %v9058_v30, %s12726_s2  ;;  %v9944_v30 = vmul.f32 %v9931_v42, %v15397_v37 }
 0xa85   :  { %v15521_v38 = vpop.permute.xlu0 %10266  ;;  %v15523_v40 = vpop.permute.xlu1 %10268 }
 0xa86   :  { %19511 = vst [vmem:[#allocation39_spill] sm:$0xff] %v15521_v38  ;;  %19512 = vst [vmem:[#allocation49_spill] sm:$0xff] %v15523_v40  ;;  %v9946_v38 = vmul.f32 %v15291_v1, %v15376_v51 }
 0xa87   :  { %9102 = vrot.lane.b32.xlu0 %v9063_v55, %s12726_s2  ;;  %9986 = vrot.lane.b32.xlu1 %v9948_v2, %s12724_s12  ;;  %v9942_v2 = vmul.f32 %v15291_v1, %v15392_v12 }
 0xa89   :  { %v15530_v43 = vpop.permute.xlu1 %8670  ;;  %v15532_v14 = vpop.permute.xlu0 %8668 }
 0xa8a   :  { %19513 = vst [vmem:[#allocation41_spill] sm:$0xff] %v15532_v14  ;;  %v9071_v14 = vmul.f32 %v15301_v28, %v15441_v6 }
 0xa8b   :  { %9094 = vrot.lane.b32.xlu0 %v9059_v34, %s12726_s2  ;;  %9978 = vrot.lane.b32.xlu1 %v9944_v30, %s12724_s12  ;;  %v9064_v30 = vmul.f32 %v15293_v8, %v15420_v59 }
 0xa8d   :  { %v15539_v40 = vpop.permute.xlu0 %8672  ;;  %v15541_v55 = vpop.permute.xlu1 %8674 }
 0xa8e   :  { %19514 = vst [vmem:[#allocation27_spill] sm:$0xff] %v15541_v55  ;;  %v9949_v55 = vmul.f32 %v15299_v35, %v15409_v21 }
 0xa8f   :  { %9982 = vrot.lane.b32.xlu0 %v9946_v38, %s12724_s12  ;;  %9112 = vrot.lane.b32.xlu1 %v9068_v13, %s12726_s2 }
 0xa91   :  { %v15549_v42 = vpop.permute.xlu0 %8676  ;;  %v15551_v34 = vpop.permute.xlu1 %8678 }
 0xa92   :  { %19515 = vst [vmem:[#allocation29_spill] sm:$0xff] %v15549_v42  ;;  %19516 = vst [vmem:[#allocation31_spill] sm:$0xff] %v15551_v34  ;;  %v9945_v42 = vmul.f32 %v15299_v35, %v15423_v3  ;;  %v9954_v35 = vmul.f32 %v15309_v52, %v15406_v29  ;;  %v8339_v34 = vmul.f32 %v15349_v24, %v15454_v26 }
 0xa93   :  { %9974 = vrot.lane.b32.xlu0 %v9942_v2, %s12724_s12  ;;  %9104 = vrot.lane.b32.xlu1 %v9064_v30, %s12726_s2  ;;  %v9044_v30 = vsel %vm19520_vm13, %v15277_v19, %v15275_v45  ;;  %vm19556_vm13 = vmmov %vm19530_vm4 }
 0xa94   :  { %v9057_v45 = vmul.f32 %v9044_v30, %v15451_v57 }
 0xa95   :  { %v15559_v38 = vpop.permute.xlu1 %9556  ;;  %v15561_v13 = vpop.permute.xlu0 %9554 }
 0xa96   :  { %19517 = vst [vmem:[#allocation24_spill] sm:$0xff] %v15559_v38  ;;  %19518 = vst [vmem:[#allocation83_spill] sm:$0xff] %v15561_v13  ;;  %v9067_v38 = vmul.f32 %v15301_v28, %v15454_v26 }
 0xa97   :  { %9988 = vrot.lane.b32.xlu0 %v9949_v55, %s12724_s12  ;;  %9118 = vrot.lane.b32.xlu1 %v9071_v14, %s12726_s2  ;;  %v9061_v14 = vmul.f32 %v9044_v30, %v15438_v36  ;;  %v9957_v30 = vmul.f32 %v15317_v49, %v15441_v6 }
 0xa99   :  { %v15569_v2 = vpop.permute.xlu0 %9558  ;;  %v15576_v13 = vpop.permute.xlu1 %9560 }
 0xa9a   :  { %19519 = vst [vmem:[#allocation37_spill] sm:$0xff] %v15569_v2  ;;  %19521 = vst [vmem:[#allocation22_spill] sm:$0xff] %v15576_v13 }
 0xa9b   :  { %9980 = vrot.lane.b32.xlu0 %v9945_v42, %s12724_s12  ;;  %9110 = vrot.lane.b32.xlu1 %v9067_v38, %s12726_s2  ;;  %v9930_v42 = vsel %vm19525_vm14, %v15291_v1, %v15283_v10  ;;  %v9950_v38 = vmul.f32 %v15309_v52, %v15420_v59  ;;  %vm19558_vm14 = vmmov %vm19550_vm0 }
 0xa9c   :  { %v9943_v10 = vmul.f32 %v9930_v42, %v15451_v57 }
 0xa9d   :  { %v15581_v55 = vpop.permute.xlu0 %9562  ;;  %v15585_v2 = vpop.permute.xlu1 %9564 }
 0xa9e   :  { %19522 = vst [vmem:[#allocation56_spill] sm:$0xff] %v15581_v55  ;;  %19523 = vst [vmem:[#allocation46_spill] sm:$0xff] %v15585_v2  ;;  %v15724_v2 = vmul.f32 %v15349_v24, %v15441_v6 }
 0xa9f   :  { %9098 = vrot.lane.b32.xlu0 %v9061_v14, %s12726_s2  ;;  %9998 = vrot.lane.b32.xlu1 %v9954_v35, %s12724_s12  ;;  %v9947_v14 = vmul.f32 %v9930_v42, %v15438_v36 }
 0xaa1   :  { %v15590_v19 = vpop.permute.xlu0 %10440  ;;  %v15597_v55 = vpop.permute.xlu1 %10442 }
 0xaa2   :  { %19524 = vst [vmem:[#allocation52_spill] sm:$0xff] %v15590_v19  ;;  %19526 = vst [vmem:[#allocation58_spill] sm:$0xff] %v15597_v55 }
 0xaa3   :  { %9090 = vrot.lane.b32.xlu0 %v9057_v45, %s12726_s2  ;;  %9990 = vrot.lane.b32.xlu1 %v9950_v38, %s12724_s12  ;;  %v9046_v45 = vsel %vm19530_vm4, %v15293_v8, %v15307_v46  ;;  %v9953_v38 = vmul.f32 %v15317_v49, %v15454_v26  ;;  %vm19559_vm4 = vmmov %vm19550_vm0 }
 0xaa4   :  { %v9069_v42 = vmul.f32 %v9046_v45, %v15470_v4 }
 0xaa5   :  { %v15602_v35 = vpop.permute.xlu0 %10444  ;;  %v15606_v19 = vpop.permute.xlu1 %10446 }
 0xaa6   :  { %19527 = vst [vmem:[#allocation61_spill] sm:$0xff] %v15602_v35  ;;  %19528 = vst [vmem:[#allocation47_spill] sm:$0xff] %v15606_v19  ;;  %v9047_v19 = vsel %vm19532_vm6, %v15307_v46, %v15301_v28  ;;  %v9065_v28 = vmul.f32 %v9046_v45, %v15485_v16  ;;  %v9932_v46 = vsel %vm19536_vm15, %v15309_v52, %v15315_v48 }
 0xaa7   :  { %9984 = vrot.lane.b32.xlu0 %v9947_v14, %s12724_s12  ;;  %10004 = vrot.lane.b32.xlu1 %v9957_v30, %s12724_s12  ;;  %v9070_v30 = vmul.f32 %v9047_v19, %v15473_v27  ;;  %v8317_v52 = vsel %vm215_vm1, %v15323_v47, %v15333_v62  ;;  %v8328_v35 = vmul.f32 %v15325_v44, %v15392_v12  ;;  %vm19562_vm6 = vmmov %vm19550_vm0 }
 0xaa8   :  { %vm19568_vm15 = vmmov %vm19550_vm0 }
 0xaa9   :  { %v15611_v1 = vpop.permute.xlu0 %10448  ;;  %v15618_v55 = vpop.permute.xlu1 %10450 }
 0xaaa   :  { %19529 = vst [vmem:[#allocation67_spill] sm:$0xff] %v15611_v1  ;;  %19531 = vst [vmem:[#allocation66_spill] sm:$0xff] %v15618_v55  ;;  %v9066_v1 = vmul.f32 %v9047_v19, %v15482_v17  ;;  %v9955_v19 = vmul.f32 %v9932_v46, %v15470_v4 }
 0xaab   :  { %9976 = vrot.lane.b32.xlu0 %v9943_v10, %s12724_s12  ;;  %9996 = vrot.lane.b32.xlu1 %v9953_v38, %s12724_s12  ;;  %v9933_v38 = vsel %vm19538_vm2, %v15315_v48, %v15317_v49  ;;  %v8332_v49 = vmul.f32 %v15325_v44, %v15376_v51  ;;  %vm19571_vm2 = vmmov %vm19550_vm0 }
 0xaac   :  { %v9956_v45 = vmul.f32 %v9933_v38, %v15473_v27  ;;  %v9952_v48 = vmul.f32 %v9933_v38, %v15482_v17 }
 0xaad   :  { %v15626_v14 = vpop.permute.xlu0 %8850  ;;  %v15629_v8 = vpop.permute.xlu1 %8852  ;;  %v8361_v38 = vrot.slane %v8332_v49, 1  ;;  %v15684_v49 = vmul.f32 %v15339_v15, %v15376_v51 }
 0xaae   :  { %19533 = vst [vmem:[#allocation85_spill] sm:$0xff] %v15626_v14  ;;  %19534 = vst [vmem:[#allocation70_spill] sm:$0xff] %v15629_v8 }
 0xaaf   :  { %9114 = vrot.lane.b32.xlu0 %v9069_v42, %s12726_s2  ;;  %9116 = vrot.lane.b32.xlu1 %v9070_v30, %s12726_s2 }
 0xab1   :  { %v15634_v55 = vpop.permute.xlu0 %8854  ;;  %v15640_v10 = vpop.permute.xlu1 %8856 }
 0xab2   :  { %19535 = vst [vmem:[#allocation63_spill] sm:$0xff] %v15634_v55  ;;  %19537 = vst [vmem:[#allocation88_spill] sm:$0xff] %v15640_v10  ;;  %v9203_v10 = vsel %vm19543_vm10, %v15331_v63, %v15347_v11 }
 0xab3   :  { %9108 = vrot.lane.b32.xlu0 %v9066_v1, %s12726_s2  ;;  %9106 = vrot.lane.b32.xlu1 %v9065_v28, %s12726_s2  ;;  %v9951_v28 = vmul.f32 %v9932_v46, %v15485_v16  ;;  %v9220_v46 = vmul.f32 %v9203_v10, %v15384_v53 }
 0xab5   :  { %v15648_v42 = vpop.permute.xlu0 %8858  ;;  %v15651_v30 = vpop.permute.xlu1 %8860  ;;  %v9253_v8 = vrot.slane %v9220_v46, 1  ;;  %v15704_v46 = vmul.f32 %v15341_v54, %v15406_v29 }
 0xab6   :  { %19539 = vst [vmem:[#allocation71_spill] sm:$0xff] %v15648_v42  ;;  %19540 = vst [vmem:[#allocation72_spill] sm:$0xff] %v15651_v30  ;;  %v8334_v42 = vmul.f32 %v8317_v52, %v15384_v53 }
 0xab7   :  { %10000 = vrot.lane.b32.xlu0 %v9955_v19, %s12724_s12  ;;  %10002 = vrot.lane.b32.xlu1 %v9956_v45, %s12724_s12  ;;  %v8335_v19 = vmul.f32 %v15333_v62, %v15409_v21 }
 0xab9   :  { %v15661_v1 = vpop.permute.xlu0 %9736  ;;  %v15665_v30 = vpop.permute.xlu1 %9738 }
 0xaba   :  { %19541 = vst [vmem:[#allocation73_spill] sm:$0xff] %v15661_v1  ;;  %19542 = vst [vmem:[#allocation69_spill] sm:$0xff] %v15665_v30  ;;  %v8367_v1 = vrot.slane %v8334_v42, 1  ;;  %v8330_v30 = vmul.f32 %v8317_v52, %v15397_v37  ;;  %v19073_v52 = vrot.slane %v15684_v49, 1 }
 0xabb   :  { %9994 = vrot.lane.b32.xlu0 %v9952_v48, %s12724_s12  ;;  %9992 = vrot.lane.b32.xlu1 %v9951_v28, %s12724_s12  ;;  %v8370_v48 = vrot.slane %v8335_v19, 1 }
 0xabc   :  { %v8366_v42 = vrot.slane %v8330_v30, 1 }
 0xabd   :  { %v15674_v45 = vpop.permute.xlu0 %9740  ;;  %v15677_v14 = vpop.permute.xlu1 %10624 }
 0xabe   :  { %19544 = vst [vmem:[#allocation77_spill] sm:$0xff] %v15674_v45  ;;  %19545 = vst [vmem:[#allocation74_spill] sm:$0xff] %v15677_v14  ;;  %v15695_v14 = vmul.f32 %v15347_v11, %v15409_v21 }
 0xabf   :  { %8392 = vrot.lane.b32.xlu0 %v8361_v38, %s12727_s10  ;;  %8396 = vrot.lane.b32.xlu1 %v8367_v1, %s12727_s10 }
 0xac0   :  { %v9256_v55 = vrot.slane %v15695_v14, 1 }
 0xac1   :  { %v15686_v28 = vpop.permute.xlu0 %10622  ;;  %v15688_v45 = vpop.permute.xlu1 %9742 }
 0xac2   :  { %19546 = vst [vmem:[#allocation79_spill] sm:$0xff] %v15686_v28  ;;  %19547 = vst [vmem:[#allocation75_spill] sm:$0xff] %v15688_v45  ;;  %v8316_v28 = vsel %vm215_vm1, %v15325_v44, %v15323_v47  ;;  %v8368_v45 = vsel %vm19550_vm0, %v8366_v42, %v8367_v1  ;;  %v9216_v1 = vmul.f32 %v9203_v10, %v15397_v37  ;;  %v8360_v44 = vrot.slane %v8328_v35, 1 }
 0xac3   :  { %8398 = vrot.lane.b32.xlu0 %v8370_v48, %s12727_s10  ;;  %9282 = vrot.lane.b32.xlu1 %v9253_v8, %s12726_s2  ;;  %v8331_v42 = vmul.f32 %v15333_v62, %v15423_v3  ;;  %v9202_v62 = vsel %vm19556_vm13, %v15339_v15, %v15331_v63  ;;  %v15754_v35 = vmul.f32 %v15357_v56, %v15406_v29  ;;  %vm19576_vm13 = vmmov %vm19550_vm0 }
 0xac4   :  { %v9214_v63 = vmul.f32 %v15339_v15, %v15392_v12 }
 0xac5   :  { %v15697_v19 = vpop.permute.xlu0 %10626  ;;  %v15706_v30 = vpop.permute.xlu1 %9746 }
 0xac6   :  { %19548 = vst [vmem:[#allocation78_spill] sm:$0xff] %v15697_v19  ;;  %19549 = vst [vmem:[#allocation80_spill] sm:$0xff] %v15706_v30  ;;  %v15714_v19 = vmul.f32 %v8316_v28, %v15438_v36  ;;  %v19077_v30 = vrot.slane %v15704_v46, 1 }
 0xac7   :  { %9278 = vrot.lane.b32.xlu0 %v19073_v52, %s12726_s2  ;;  %8388 = vrot.lane.b32.xlu1 %v8368_v45, %s12727_s10 }
 0xac8   :  { %v19079_v14 = vrot.slane %v15714_v19, 1 }
 0xac9   :  { %v15717_v47 = vpop.permute.xlu0 %9744  ;;  %v15726_v52 = vpop.permute.xlu1 %10628 }
 0xaca   :  { %19551 = vst [vmem:[#allocation81_spill] sm:$0xff] %v15717_v47  ;;  %19552 = vst [vmem:[#allocation76_spill] sm:$0xff] %v15726_v52  ;;  %v19080_v47 = vrot.slane %v15724_v2, 1  ;;  %v9252_v52 = vrot.slane %v9216_v1, 1 }
 0xacb   :  { %9284 = vrot.lane.b32.xlu0 %v9256_v55, %s12726_s2  ;;  %8408 = vrot.lane.b32.xlu1 %v19077_v30, %s12727_s10  ;;  %v8369_v30 = vrot.slane %v8331_v42, 1  ;;  %v9219_v42 = vmul.f32 %v9202_v62, %v15438_v36 }
 0xacd   :  { %v15734_v45 = vpop.permute.xlu0 %10630  ;;  %v15739_v13 = vpop.permute.xlu1 %10632  ;;  %v9250_v15 = vrot.slane %v9219_v42, 1 }
 0xace   :  { %19553 = vst [vmem:[#allocation86_spill] sm:$0xff] %v15734_v45  ;;  %19554 = vst [vmem:[#allocation82_spill] sm:$0xff] %v15739_v13  ;;  %v8362_v45 = vsel %vm19558_vm14, %v8360_v44, %v8361_v38  ;;  %v9217_v44 = vmul.f32 %v15347_v11, %v15423_v3  ;;  %v8329_v11 = vmul.f32 %v8316_v28, %v15451_v57 }
 0xacf   :  { %8394 = vrot.lane.b32.xlu0 %v19079_v14, %s12727_s10  ;;  %8414 = vrot.lane.b32.xlu1 %v19080_v47, %s12727_s10  ;;  %v9254_v14 = vsel %vm19559_vm4, %v9252_v52, %v9253_v8  ;;  %v8319_v8 = vsel %vm215_vm1, %v15355_v33, %v15349_v24  ;;  %v19572_v24 = vrot.slane %v15704_v46, 1  ;;  %v19577_v46 = vrot.slane %v15724_v2, 1  ;;  %vm19578_vm14 = vmmov %vm19550_vm0 }
 0xad0   :  { %v8363_v28 = vrot.slane %v8329_v11, 1  ;;  %v19575_v11 = vrot.slane %v15714_v19, 1  ;;  %vm19580_vm4 = vmmov %vm19543_vm10  ;;  %v9225_v2 = vmul.f32 %v15365_v25, %v15454_v26 }
 0xad1   :  { %v15747_v10 = vpop.permute.xlu0 %8210  ;;  %v15756_v1 = vpop.permute.xlu1 %8214  ;;  %v9204_v19 = vsel %vm19580_vm4, %v15357_v56, %v15363_v23 }
 0xad2   :  { %19555 = vst [vmem:[#allocation87_spill] sm:$0xff] %v15747_v10  ;;  %19557 = vst [vmem:[#allocation84_spill] sm:$0xff] %v15756_v1  ;;  %v19082_v10 = vrot.slane %v15754_v35, 1  ;;  %v15770_v1 = vmul.f32 %v15365_v25, %v15441_v6 }
 0xad3   :  { %8384 = vrot.lane.b32.xlu0 %v8362_v45, %s12727_s10  ;;  %9274 = vrot.lane.b32.xlu1 %v9254_v14, %s12726_s2  ;;  %v8371_v45 = vsel %vm19562_vm6, %v8369_v30, %v8370_v48  ;;  %v9246_v14 = vrot.slane %v9214_v63, 1  ;;  %v9255_v63 = vrot.slane %v9217_v44, 1  ;;  %v9215_v44 = vmul.f32 %v9202_v62, %v15451_v57  ;;  %vm19582_vm6 = vmmov %vm19550_vm0 }
 0xad4   :  { %v19086_v48 = vrot.slane %v15770_v1, 1 }
 0xad5   :  { %v15763_v47 = vpop.permute.xlu0 %8202  ;;  %v15772_v38 = vpop.permute.xlu1 %8206  ;;  %v9249_v62 = vrot.slane %v9215_v44, 1 }
 0xad6   :  { %19560 = vst [vmem:[#allocation6_spill] sm:$0xff] %v15763_v47  ;;  %19561 = vst [vmem:[#allocation5_spill] sm:$0xff] %v15772_v38  ;;  %v15787_v47 = vmul.f32 %v8319_v8, %v15473_v27 }
 0xad7   :  { %8390 = vrot.lane.b32.xlu0 %v8371_v45, %s12727_s10  ;;  %9294 = vrot.lane.b32.xlu1 %v19082_v10, %s12726_s2  ;;  %v8336_v45 = vmul.f32 %v15341_v54, %v15420_v59 }
 0xad8   :  { %v8379_v10 = vrot.slane %v15787_v47, 1 }
 0xad9   :  { %v15782_v52 = vpop.permute.xlu0 %8216  ;;  %v15790_v30 = vpop.permute.xlu1 %8226  ;;  %v8372_v13 = vrot.slane %v8336_v45, 1 }
 0xada   :  { %19563 = vst [vmem:[#allocation7_spill] sm:$0xff] %v15782_v52  ;;  %19564 = vst [vmem:[#allocation8_spill] sm:$0xff] %v15790_v30  ;;  %v19567_v30 = vrot.slane %v15684_v49, 1  ;;  %v8381_v49 = vrot.slane %v8339_v34, 1 }
 0xadb   :  { %9280 = vrot.lane.b32.xlu0 %v9250_v15, %s12726_s2  ;;  %9300 = vrot.lane.b32.xlu1 %v19086_v48, %s12726_s2 }
 0xadc   :  { %v9248_v52 = vsel %vm19568_vm15, %v9246_v14, %v19567_v30  ;;  %v9205_v14 = vsel %vm19543_vm10, %v15363_v23, %v15365_v25  ;;  %v19585_v25 = vrot.slane %v15754_v35, 1  ;;  %vm19586_vm15 = vmmov %vm19550_vm0 }
 0xadd   :  { %v15798_v42 = vpop.permute.xlu0 %8208  ;;  %v15802_v38 = vpop.permute.xlu1 %8218  ;;  %v9228_v34 = vmul.f32 %v9205_v14, %v15473_v27  ;;  %vm19593_vm10 = vmmov %vm19550_vm0 }
 0xade   :  { %19565 = vst [vmem:[#allocation9_spill] sm:$0xff] %v15798_v42  ;;  %19566 = vst [vmem:[#allocation26_spill] sm:$0xff] %v15802_v38  ;;  %v9257_v38 = vsel %vm19571_vm2, %v9255_v63, %v9256_v55  ;;  %v8318_v55 = vsel %vm215_vm1, %v15341_v54, %v15355_v33  ;;  %v8383_v63 = vsel %vm19578_vm14, %v8381_v49, %v19577_v46 }
 0xadf   :  { %9270 = vrot.lane.b32.xlu0 %v9248_v52, %s12726_s2  ;;  %8412 = vrot.lane.b32.xlu1 %v8379_v10, %s12727_s10  ;;  %v8374_v52 = vsel %vm19550_vm0, %v8372_v13, %v19572_v24  ;;  %v9222_v13 = vmul.f32 %v15357_v56, %v15420_v59  ;;  %v8341_v54 = vmul.f32 %v8318_v55, %v15470_v4  ;;  %vm19590_vm2 = vmmov %vm19550_vm0  ;;  %vm19594_vm0 = vcmask 785408  }
 0xae0   :  { %v9251_v24 = vsel %vm19582_vm6, %v9249_v62, %v9250_v15  ;;  %v8338_v56 = vmul.f32 %v8319_v8, %v15482_v17  ;;  %v9267_v15 = vrot.slane %v9225_v2, 1  ;;  %v19589_v2 = vrot.slane %v15770_v1, 1  ;;  %vm19598_vm14 = vmmov %vm19590_vm2 }
 0xae1   :  { %v15811_v48 = vpop.permute.xlu0 %8212  ;;  %v15814_v47 = vpop.permute.xlu1 %8232  ;;  %v8376_v49 = vrot.slane %v8341_v54, 1  ;;  %v9224_v54 = vmul.f32 %v9205_v14, %v15482_v17  ;;  %vm19599_vm4 = vmmov %vm19590_vm2 }
 0xae2   :  { %19569 = vst [vmem:[#allocation32_spill] sm:$0xff] %v15811_v48  ;;  %19570 = vst [vmem:[#allocation28_spill] sm:$0xff] %v15814_v47  ;;  %v9269_v35 = vsel %vm19590_vm2, %v9267_v15, %v19589_v2  ;;  %v16579_v48 = vld [vmem:[#allocation2 + $0x68] sm:$0xff] }
 0xae3   :  { %9276 = vrot.lane.b32.xlu0 %v9257_v38, %s12726_s2  ;;  %8400 = vrot.lane.b32.xlu1 %v8374_v52, %s12727_s10  ;;  %v8365_v38 = vsel %vm19576_vm13, %v8363_v28, %v19575_v11  ;;  %v9265_v28 = vrot.slane %v9228_v34, 1  ;;  %v9258_v52 = vrot.slane %v9222_v13, 1  ;;  %v9227_v11 = vmul.f32 %v9204_v19, %v15470_v4  ;;  %vm19595_vm13 = vmmov %vm19590_vm2  ;;  %19780 = vst [vmem:[#allocation169_spill] sm:$0xff] %v16579_v48 }
 0xae4   :  { %v8337_v34 = vmul.f32 %v8318_v55, %v15485_v16  ;;  %v9223_v55 = vmul.f32 %v9204_v19, %v15485_v16  ;;  %v10089_v19 = vsel %vm19594_vm0, %v15371_v39, %v15388_v41  ;;  %vm19601_vm6 = vmmov %vm19594_vm0 }
 0xae5   :  { %v15825_v30 = vpop.permute.xlu0 %8204  ;;  %v15831_v45 = vpop.permute.xlu1 %8224  ;;  %v9260_v62 = vsel %vm19586_vm15, %v9258_v52, %v19585_v25  ;;  %v9262_v13 = vrot.slane %v9227_v11, 1  ;;  %v9264_v11 = vrot.slane %v9224_v54, 1  ;;  %vm19605_vm15 = vmmov %vm19590_vm2 }
 0xae6   :  { %19573 = vst [vmem:[#allocation30_spill] sm:$0xff] %v15825_v30  ;;  %19574 = vst [vmem:[#allocation35_spill] sm:$0xff] %v15831_v45 }
 0xae7   :  { %8386 = vrot.lane.b32.xlu0 %v8365_v38, %s12727_s10  ;;  %8406 = vrot.lane.b32.xlu1 %v8383_v63, %s12727_s10  ;;  %v8378_v63 = vrot.slane %v8338_v56, 1  ;;  %v9261_v56 = vrot.slane %v9223_v55, 1  ;;  %vm19608_vm2 = vmmov %vm19594_vm0 }
 0xae9   :  { %v15844_v33 = vpop.permute.xlu0 %8228  ;;  %v15849_v44 = vpop.permute.xlu1 %8230  ;;  %v8380_v14 = vsel %vm19593_vm10, %v8378_v63, %v8379_v10  ;;  %v9266_v10 = vsel %vm19598_vm14, %v9264_v11, %v9265_v28  ;;  %v10102_v63 = vmul.f32 %v10089_v19, %v15397_v37  ;;  %v9263_v55 = vsel %vm19599_vm4, %v9261_v56, %v9262_v13  ;;  %vm19611_vm10 = vmmov %vm19599_vm4 }
 0xaea   :  { %19579 = vst [vmem:[#allocation33_spill] sm:$0xff] %v15844_v33  ;;  %19581 = vst [vmem:[#allocation34_spill] sm:$0xff] %v15849_v44 }
 0xaeb   :  { %9272 = vrot.lane.b32.xlu0 %v9251_v24, %s12726_s2  ;;  %9298 = vrot.lane.b32.xlu1 %v9265_v28, %s12726_s2  ;;  %v8375_v24 = vrot.slane %v8337_v34, 1  ;;  %v10104_v34 = vmul.f32 %v15373_v50, %v15376_v51  ;;  %v10138_v11 = vrot.slane %v10102_v63, 1  ;;  %vm19617_vm14 = vmmov %vm19599_vm4 }
 0xaed   :  { %v15857_v38 = vpop.permute.xlu0 %8222  ;;  %v15860_v23 = vpop.permute.xlu1 %8220  ;;  %v8377_v1 = vsel %vm19595_vm13, %v8375_v24, %v8376_v49  ;;  %v10107_v24 = vmul.f32 %v15388_v41, %v15409_v21  ;;  %vm19614_vm13 = vmmov %vm19599_vm4 }
 0xaee   :  { %19583 = vst [vmem:[#allocation44_spill] sm:$0xff] %v15857_v38  ;;  %19584 = vst [vmem:[#allocation42_spill] sm:$0xff] %v15860_v23 }
 0xaef   :  { %8410 = vrot.lane.b32.xlu0 %v8376_v49, %s12727_s10  ;;  %9286 = vrot.lane.b32.xlu1 %v9260_v62, %s12726_s2  ;;  %v10106_v62 = vmul.f32 %v10089_v19, %v15384_v53  ;;  %v10133_v49 = vrot.slane %v10104_v34, 1  ;;  %v10142_v56 = vrot.slane %v10107_v24, 1  ;;  %v10112_v34 = vmul.f32 %v15390_v60, %v15406_v29 }
 0xaf0   :  { %v10103_v24 = vmul.f32 %v15388_v41, %v15423_v3 }
 0xaf1   :  { %v15868_v46 = vpop.permute.xlu0 %9096  ;;  %v15871_v8 = vpop.permute.xlu1 %9100 }
 0xaf2   :  { %19587 = vst [vmem:[#allocation43_spill] sm:$0xff] %v15868_v46  ;;  %19588 = vst [vmem:[#allocation50_spill] sm:$0xff] %v15871_v8  ;;  %v11948_v8 = vld.sshfl [vmem:[#allocation3 + $0x18] sm:$0x77 pattern:$0x75316420] }
 0xaf3   :  { %9296 = vrot.lane.b32.xlu0 %v9262_v13, %s12726_s2  ;;  %9292 = vrot.lane.b32.xlu1 %v9269_v35, %s12726_s2  ;;  %v10088_v35 = vsel %vm19601_vm6, %v15373_v50, %v15371_v39  ;;  %vm19620_vm6 = vmmov %vm19599_vm4 }
 0xaf4   :  { %v10105_v13 = vmul.f32 %v10088_v35, %v15438_v36 }
 0xaf5   :  { %v15879_v52 = vpop.permute.xlu0 %9088  ;;  %v15881_v25 = vpop.permute.xlu1 %9092 }
 0xaf6   :  { %19591 = vst [vmem:[#allocation45_spill] sm:$0xff] %v15879_v52  ;;  %19592 = vst [vmem:[#allocation48_spill] sm:$0xff] %v15881_v25  ;;  %v16518_v52 = vld [vmem:[#allocation2 + $0x60] sm:$0xff] }
 0xaf7   :  { %8404 = vrot.lane.b32.xlu0 %v8380_v14, %s12727_s10  ;;  %8402 = vrot.lane.b32.xlu1 %v8377_v1, %s12727_s10  ;;  %v10139_v14 = vrot.slane %v10106_v62, 1  ;;  %v10100_v1 = vmul.f32 %v15373_v50, %v15392_v12  ;;  %v10115_v50 = vmul.f32 %v15403_v58, %v15441_v6  ;;  %v16530_v25 = vld [vmem:[#allocation2 + $0x40] sm:$0xff] }
 0xaf9   :  { %v15892_v15 = vpop.permute.xlu0 %9102  ;;  %v15895_v54 = vpop.permute.xlu1 %9986  ;;  %v10140_v62 = vsel %vm19605_vm15, %v10138_v11, %v10139_v14  ;;  %vm19623_vm15 = vmmov %vm19599_vm4 }
 0xafa   :  { %19596 = vst [vmem:[#allocation54_spill] sm:$0xff] %v15892_v15  ;;  %19597 = vst [vmem:[#allocation51_spill] sm:$0xff] %v15895_v54  ;;  %v10091_v54 = vsel %vm19608_vm2, %v15401_v7, %v15403_v58 }
 0xafb   :  { %9290 = vrot.lane.b32.xlu0 %v9266_v10, %s12726_s2  ;;  %9288 = vrot.lane.b32.xlu1 %v9263_v55, %s12726_s2  ;;  %v10136_v10 = vrot.slane %v10105_v13, 1  ;;  %v10132_v55 = vrot.slane %v10100_v1, 1  ;;  %v10141_v13 = vrot.slane %v10103_v24, 1  ;;  %v10114_v41 = vmul.f32 %v10091_v54, %v15473_v27  ;;  %vm19624_vm2 = vmmov %vm19599_vm4 }
 0xafc   :  { %v10154_v1 = vrot.slane %v10115_v50, 1  ;;  %v10090_v24 = vsel %vm19594_vm0, %v15390_v60, %v15401_v7 }
 0xafd   :  { %v15904_v2 = vpop.permute.xlu0 %9094  ;;  %v15909_v28 = vpop.permute.xlu1 %9978 }
 0xafe   :  { %19600 = vst [vmem:[#allocation53_spill] sm:$0xff] %v15904_v2  ;;  %19602 = vst [vmem:[#allocation59_spill] sm:$0xff] %v15909_v28  ;;  %v10145_v28 = vrot.slane %v10112_v34, 1 }
 0xaff   :  { %10164 = vrot.lane.b32.xlu0 %v10133_v49, %s12724_s12  ;;  %10168 = vrot.lane.b32.xlu1 %v10139_v14, %s12724_s12  ;;  %v10101_v14 = vmul.f32 %v10088_v35, %v15451_v57 }
 0xb01   :  { %v15914_v19 = vpop.permute.xlu0 %9982  ;;  %v15920_v39 = vpop.permute.xlu1 %9112  ;;  %v10135_v35 = vrot.slane %v10101_v14, 1 }
 0xb02   :  { %19603 = vst [vmem:[#allocation55_spill] sm:$0xff] %v15914_v19  ;;  %19604 = vst [vmem:[#allocation57_spill] sm:$0xff] %v15920_v39  ;;  %v16505_v39 = vld.sshfl [vmem:[#allocation3 + $0x3c] sm:$0x77 pattern:$0x75316420] }
 0xb03   :  { %10170 = vrot.lane.b32.xlu0 %v10142_v56, %s12724_s12  ;;  %10160 = vrot.lane.b32.xlu1 %v10140_v62, %s12724_s12  ;;  %v10134_v62 = vsel %vm19611_vm10, %v10132_v55, %v10133_v49  ;;  %v10111_v55 = vmul.f32 %v15403_v58, %v15454_v26  ;;  %v10137_v7 = vsel %vm19617_vm14, %v10135_v35, %v10136_v10  ;;  %vm19629_vm10 = vcmask 1045504  }
 0xb04   :  { %vm19634_vm0 = vmmov %vm19629_vm10 }
 0xb05   :  { %v15925_v63 = vpop.permute.xlu0 %9974  ;;  %v15931_v19 = vpop.permute.xlu1 %9104  ;;  %vm19640_vm14 = vmmov %vm19634_vm0 }
 0xb06   :  { %19606 = vst [vmem:[#allocation64_spill] sm:$0xff] %v15925_v63  ;;  %19607 = vst [vmem:[#allocation60_spill] sm:$0xff] %v15931_v19  ;;  %v10108_v63 = vmul.f32 %v15390_v60, %v15420_v59 }
 0xb07   :  { %10166 = vrot.lane.b32.xlu0 %v10136_v10, %s12724_s12  ;;  %10180 = vrot.lane.b32.xlu1 %v10145_v28, %s12724_s12  ;;  %v8499_v10 = vsel %vm215_vm1, %v15414_v9, %v15428_v5 }
 0xb08   :  { %v10144_v49 = vrot.slane %v10108_v63, 1  ;;  %v10153_v63 = vrot.slane %v10111_v55, 1 }
 0xb09   :  { %v15939_v11 = vpop.permute.xlu0 %9988  ;;  %v15942_v34 = vpop.permute.xlu1 %9118 }
 0xb0a   :  { %19609 = vst [vmem:[#allocation62_spill] sm:$0xff] %v15939_v11  ;;  %19610 = vst [vmem:[#allocation68_spill] sm:$0xff] %v15942_v34  ;;  %v10151_v11 = vrot.slane %v10114_v41, 1  ;;  %v10143_v34 = vsel %vm19614_vm13, %v10141_v13, %v10142_v56  ;;  %v10109_v56 = vmul.f32 %v10090_v24, %v15485_v16  ;;  %v10146_v58 = vsel %vm19599_vm4, %v10144_v49, %v10145_v28 }
 0xb0b   :  { %10156 = vrot.lane.b32.xlu0 %v10134_v62, %s12724_s12  ;;  %10186 = vrot.lane.b32.xlu1 %v10154_v1, %s12724_s12  ;;  %v10113_v62 = vmul.f32 %v10090_v24, %v15470_v4  ;;  %v10155_v35 = vsel %vm19620_vm6, %v10153_v63, %v10154_v1  ;;  %v8514_v28 = vmul.f32 %v15416_v61, %v15376_v51  ;;  %vm19637_vm13 = vmmov %vm19634_vm0  ;;  %vm19644_vm6 = vcmask 523264  }
 0xb0c   :  { %vm19641_vm4 = vmmov %vm19634_vm0 }
 0xb0d   :  { %v15949_v19 = vpop.permute.xlu0 %9980  ;;  %v15954_v50 = vpop.permute.xlu1 %9110  ;;  %v10148_v13 = vrot.slane %v10113_v62, 1  ;;  %v8512_v62 = vmul.f32 %v8499_v10, %v15397_v37  ;;  %v8543_v1 = vrot.slane %v8514_v28, 2  ;;  %v8510_v28 = vmul.f32 %v15416_v61, %v15392_v12 }
 0xb0e   :  { %19612 = vst [vmem:[#allocation65_spill] sm:$0xff] %v15949_v19  ;;  %19613 = vst [vmem:[#allocation10_spill] sm:$0xff] %v15954_v50  ;;  %v10110_v19 = vmul.f32 %v10091_v54, %v15482_v17  ;;  %v10147_v54 = vrot.slane %v10109_v56, 1  ;;  %v8517_v56 = vmul.f32 %v15428_v5, %v15409_v21 }
 0xb0f   :  { %10162 = vrot.lane.b32.xlu0 %v10143_v34, %s12724_s12  ;;  %10184 = vrot.lane.b32.xlu1 %v10151_v11, %s12724_s12 }
 0xb10   :  { %v10150_v34 = vrot.slane %v10110_v19, 1  ;;  %v8516_v19 = vmul.f32 %v8499_v10, %v15384_v53 }
 0xb11   :  { %v15962_v14 = vpop.permute.xlu0 %9098  ;;  %v15965_v60 = vpop.permute.xlu1 %9998 }
 0xb12   :  { %19615 = vst [vmem:[#allocation89_spill] sm:$0xff] %v15962_v14  ;;  %19616 = vst [vmem:[#allocation90_spill] sm:$0xff] %v15965_v60  ;;  %v10152_v55 = vsel %vm19623_vm15, %v10150_v34, %v10151_v11  ;;  %v8548_v34 = vrot.slane %v8512_v62, 2  ;;  %v8501_v60 = vsel %vm215_vm1, %v15444_v31, %v15446_v32 }
 0xb13   :  { %10158 = vrot.lane.b32.xlu0 %v10137_v7, %s12724_s12  ;;  %10172 = vrot.lane.b32.xlu1 %v10146_v58, %s12724_s12  ;;  %v10149_v7 = vsel %vm19624_vm2, %v10147_v54, %v10148_v13  ;;  %v8498_v58 = vsel %vm215_vm1, %v15416_v61, %v15414_v9  ;;  %v8552_v54 = vrot.slane %v8517_v56, 2  ;;  %v8542_v56 = vrot.slane %v8510_v28, 2  ;;  %vm19645_vm15 = vmmov %vm19634_vm0 }
 0xb14   :  { %v8525_v61 = vmul.f32 %v15446_v32, %v15441_v6  ;;  %vm19648_vm2 = vmmov %vm19634_vm0 }
 0xb15   :  { %v15972_v41 = vpop.permute.xlu0 %9090  ;;  %v15974_v50 = vpop.permute.xlu1 %9990 }
 0xb16   :  { %19618 = vst [vmem:[#allocation91_spill] sm:$0xff] %v15972_v41  ;;  %19619 = vst [vmem:[#allocation92_spill] sm:$0xff] %v15974_v50  ;;  %v8513_v50 = vmul.f32 %v15428_v5, %v15423_v3  ;;  %v8524_v5 = vmul.f32 %v8501_v60, %v15473_v27  ;;  %v8564_v28 = vrot.slane %v8525_v61, 2 }
 0xb17   :  { %10182 = vrot.lane.b32.xlu0 %v10148_v13, %s12724_s12  ;;  %10178 = vrot.lane.b32.xlu1 %v10155_v35, %s12724_s12  ;;  %v8549_v35 = vrot.slane %v8516_v19, 2  ;;  %v8515_v13 = vmul.f32 %v8498_v58, %v15438_v36 }
 0xb19   :  { %v15984_v24 = vpop.permute.xlu0 %9984  ;;  %v15987_v49 = vpop.permute.xlu1 %10004  ;;  %v8550_v19 = vsel %vm19629_vm10, %v8548_v34, %v8549_v35  ;;  %v8546_v62 = vrot.slane %v8515_v13, 2  ;;  %v8551_v13 = vrot.slane %v8513_v50, 2  ;;  %v8500_v50 = vsel %vm215_vm1, %v15430_v18, %v15444_v31  ;;  %vm19649_vm10 = vmmov %vm19634_vm0 }
 0xb1a   :  { %19621 = vst [vmem:[#allocation93_spill] sm:$0xff] %v15984_v24  ;;  %19622 = vst [vmem:[#allocation94_spill] sm:$0xff] %v15987_v49 }
 0xb1b   :  { %10176 = vrot.lane.b32.xlu0 %v10152_v55, %s12724_s12  ;;  %10174 = vrot.lane.b32.xlu1 %v10149_v7, %s12724_s12  ;;  %v8522_v55 = vmul.f32 %v15430_v18, %v15406_v29 }
 0xb1d   :  { %v15996_v63 = vpop.permute.xlu0 %9976  ;;  %v16001_v11 = vpop.permute.xlu1 %9996 }
 0xb1e   :  { %19625 = vst [vmem:[#allocation95_spill] sm:$0xff] %v15996_v63  ;;  %19626 = vst [vmem:[#allocation96_spill] sm:$0xff] %v16001_v11  ;;  %v8555_v11 = vrot.slane %v8522_v55, 2  ;;  %v8518_v63 = vmul.f32 %v15430_v18, %v15420_v59 }
 0xb1f   :  { %8574 = vrot.lane.b32.xlu0 %v8543_v1, %s12727_s10  ;;  %8578 = vrot.lane.b32.xlu1 %v8549_v35, %s12727_s10  ;;  %v8511_v35 = vmul.f32 %v8498_v58, %v15451_v57 }
 0xb21   :  { %v16006_v10 = vpop.permute.xlu0 %9114  ;;  %v16012_v9 = vpop.permute.xlu1 %9116  ;;  %v8545_v58 = vrot.slane %v8511_v35, 2 }
 0xb22   :  { %19627 = vst [vmem:[#allocation97_spill] sm:$0xff] %v16006_v10  ;;  %19628 = vst [vmem:[#allocation98_spill] sm:$0xff] %v16012_v9 }
 0xb23   :  { %8580 = vrot.lane.b32.xlu0 %v8552_v54, %s12727_s10  ;;  %8570 = vrot.lane.b32.xlu1 %v8550_v19, %s12727_s10  ;;  %v8544_v19 = vsel %vm19634_vm0, %v8542_v56, %v8543_v1  ;;  %v8554_v1 = vrot.slane %v8518_v63, 2  ;;  %v8521_v56 = vmul.f32 %v15446_v32, %v15454_v26  ;;  %v8547_v18 = vsel %vm19640_vm14, %v8545_v58, %v8546_v62  ;;  %vm19651_vm0 = vmmov %vm19644_vm6 }
 0xb24   :  { %vm19661_vm14 = vmmov %vm19651_vm0 }
 0xb25   :  { %v16017_v7 = vpop.permute.xlu0 %9108  ;;  %v16023_v49 = vpop.permute.xlu1 %9106  ;;  %v8563_v63 = vrot.slane %v8521_v56, 2  ;;  %v8556_v32 = vsel %vm19641_vm4, %v8554_v1, %v8555_v11  ;;  %vm19664_vm4 = vmmov %vm19648_vm2 }
 0xb26   :  { %19630 = vst [vmem:[#allocation99_spill] sm:$0xff] %v16017_v7  ;;  %19631 = vst [vmem:[#allocation100_spill] sm:$0xff] %v16023_v49 }
 0xb27   :  { %8576 = vrot.lane.b32.xlu0 %v8546_v62, %s12727_s10  ;;  %8590 = vrot.lane.b32.xlu1 %v8555_v11, %s12727_s10  ;;  %v9385_v62 = vsel %vm19644_vm6, %v15457_v0, %v15476_v22  ;;  %v8565_v58 = vsel %vm19645_vm15, %v8563_v63, %v8564_v28  ;;  %v9400_v11 = vmul.f32 %v15459_v20, %v15376_v51  ;;  %vm19666_vm6 = vmmov %vm19651_vm0 }
 0xb28   :  { %v9403_v51 = vmul.f32 %v15476_v22, %v15409_v21  ;;  %v9396_v21 = vmul.f32 %v15459_v20, %v15392_v12  ;;  %vm19668_vm15 = vmmov %vm19648_vm2 }
 0xb29   :  { %v16031_v34 = vpop.permute.xlu0 %10000  ;;  %v16034_v55 = vpop.permute.xlu1 %10002 }
 0xb2a   :  { %19632 = vst [vmem:[#allocation101_spill] sm:$0xff] %v16031_v34  ;;  %19633 = vst [vmem:[#allocation102_spill] sm:$0xff] %v16034_v55  ;;  %v8561_v34 = vrot.slane %v8524_v5, 2  ;;  %v8553_v55 = vsel %vm19637_vm13, %v8551_v13, %v8552_v54  ;;  %v8519_v54 = vmul.f32 %v8500_v50, %v15485_v16 }
 0xb2b   :  { %8566 = vrot.lane.b32.xlu0 %v8544_v19, %s12727_s10  ;;  %8596 = vrot.lane.b32.xlu1 %v8564_v28, %s12727_s10  ;;  %v8523_v19 = vmul.f32 %v8500_v50, %v15470_v4  ;;  %v9429_v28 = vrot.slane %v9400_v11, 2  ;;  %vm19656_vm13 = vmmov %vm19648_vm2 }
 0xb2d   :  { %v16041_v24 = vpop.permute.xlu0 %9994  ;;  %v16046_v61 = vpop.permute.xlu1 %9992  ;;  %v8558_v13 = vrot.slane %v8523_v19, 2  ;;  %v9398_v19 = vmul.f32 %v9385_v62, %v15397_v37 }
 0xb2e   :  { %19635 = vst [vmem:[#allocation103_spill] sm:$0xff] %v16041_v24  ;;  %19636 = vst [vmem:[#allocation104_spill] sm:$0xff] %v16046_v61  ;;  %v8520_v24 = vmul.f32 %v8501_v60, %v15482_v17  ;;  %v8557_v60 = vrot.slane %v8519_v54, 2 }
 0xb2f   :  { %8572 = vrot.lane.b32.xlu0 %v8553_v55, %s12727_s10  ;;  %8594 = vrot.lane.b32.xlu1 %v8561_v34, %s12727_s10  ;;  %v9434_v37 = vrot.slane %v9398_v19, 2 }
 0xb30   :  { %v8560_v55 = vrot.slane %v8520_v24, 2  ;;  %v9402_v24 = vmul.f32 %v9385_v62, %v15384_v53  ;;  %v9384_v53 = vsel %vm19651_vm0, %v15459_v20, %v15457_v0  ;;  %v19658_v20 = vld [vmem:[#allocation40_spill] sm:$0xff]  ;;  %vm19676_vm0 = vcmask 785408  }
 0xb31   :  { %v16054_v35 = vpop.permute.xlu0 %8392  ;;  %v16057_v31 = vpop.permute.xlu1 %8396  ;;  %v9411_v12 = vmul.f32 %v19658_v20, %v15441_v6 }
 0xb32   :  { %19638 = vst [vmem:[#allocation105_spill] sm:$0xff] %v16054_v35  ;;  %19639 = vst [vmem:[#allocation106_spill] sm:$0xff] %v16057_v31  ;;  %v8562_v56 = vsel %vm19648_vm2, %v8560_v55, %v8561_v34  ;;  %v9435_v63 = vrot.slane %v9402_v24, 2  ;;  %v19765_v35 = vld [vmem:[#allocation58_spill] sm:$0xff] }
 0xb33   :  { %8568 = vrot.lane.b32.xlu0 %v8547_v18, %s12727_s10  ;;  %8582 = vrot.lane.b32.xlu1 %v8556_v32, %s12727_s10  ;;  %v8559_v18 = vsel %vm19649_vm10, %v8557_v60, %v8558_v13  ;;  %v9401_v32 = vmul.f32 %v9384_v53, %v15438_v36  ;;  %v19654_v60 = vld [vmem:[#allocation23_spill] sm:$0xff]  ;;  %v9428_v36 = vrot.slane %v9396_v21, 2  ;;  %vm19671_vm10 = vmmov %vm19648_vm2 }
 0xb34   :  { %v9408_v62 = vmul.f32 %v19654_v60, %v15406_v29 }
 0xb35   :  { %v16064_v5 = vpop.permute.xlu0 %8398  ;;  %v16066_v61 = vpop.permute.xlu1 %9282  ;;  %v9432_v11 = vrot.slane %v9401_v32, 2  ;;  %v9430_v6 = vsel %vm19664_vm4, %v9428_v36, %v9429_v28  ;;  %vm19682_vm4 = vmmov %vm19648_vm2 }
 0xb36   :  { %19642 = vst [vmem:[#allocation107_spill] sm:$0xff] %v16064_v5  ;;  %19643 = vst [vmem:[#allocation108_spill] sm:$0xff] %v16066_v61  ;;  %v9441_v19 = vrot.slane %v9408_v62, 2  ;;  %v9404_v62 = vmul.f32 %v19654_v60, %v15420_v59  ;;  %v9407_v59 = vmul.f32 %v19658_v20, %v15454_v26  ;;  %v16257_v61 = vld [vmem:[#allocation2 + $0x58] sm:$0xff]  ;;  %v19767_v5 = vld [vmem:[#allocation52_spill] sm:$0xff] }
 0xb37   :  { %8592 = vrot.lane.b32.xlu0 %v8558_v13, %s12727_s10  ;;  %8588 = vrot.lane.b32.xlu1 %v8565_v58, %s12727_s10  ;;  %v9438_v13 = vrot.slane %v9403_v51, 2  ;;  %v9436_v58 = vsel %vm19656_vm13, %v9434_v37, %v9435_v63  ;;  %vm19677_vm13 = vmmov %vm19648_vm2  ;;  %19705 = vst [vmem:[#allocation132_spill] sm:$0xff] %v16257_v61 }
 0xb38   :  { %19769 = vst [vmem:[#allocation52_spill] sm:$0xff] %v16530_v25 }
 0xb39   :  { %v16076_v50 = vpop.permute.xlu0 %9278  ;;  %v16079_v1 = vpop.permute.xlu1 %8388 }
 0xb3a   :  { %19646 = vst [vmem:[#allocation109_spill] sm:$0xff] %v16076_v50  ;;  %19647 = vst [vmem:[#allocation110_spill] sm:$0xff] %v16079_v1 }
 0xb3b   :  { %8586 = vrot.lane.b32.xlu0 %v8562_v56, %s12727_s10  ;;  %8584 = vrot.lane.b32.xlu1 %v8559_v18, %s12727_s10  ;;  %v9399_v56 = vmul.f32 %v15476_v22, %v15423_v3  ;;  %v19660_v18 = vld [vmem:[#allocation15_spill] sm:$0xff]  ;;  %v9450_v3 = vrot.slane %v9411_v12, 2 }
 0xb3c   :  { %v9387_v51 = vsel %vm19661_vm14, %v19660_v18, %v19658_v20  ;;  %vm19681_vm14 = vmmov %vm19648_vm2 }
 0xb3d   :  { %v16088_v54 = vpop.permute.xlu0 %9284  ;;  %v16093_v34 = vpop.permute.xlu1 %8408  ;;  %v9437_v32 = vrot.slane %v9399_v56, 2  ;;  %v9410_v22 = vmul.f32 %v9387_v51, %v15473_v27 }
 0xb3e   :  { %19650 = vst [vmem:[#allocation111_spill] sm:$0xff] %v16088_v54  ;;  %19652 = vst [vmem:[#allocation112_spill] sm:$0xff] %v16093_v34 }
 0xb3f   :  { %9460 = vrot.lane.b32.xlu0 %v9429_v28, %s12726_s2  ;;  %9464 = vrot.lane.b32.xlu1 %v9435_v63, %s12726_s2  ;;  %v9397_v63 = vmul.f32 %v9384_v53, %v15451_v57  ;;  %v9386_v53 = vsel %vm19666_vm6, %v19654_v60, %v19660_v18  ;;  %v9447_v27 = vrot.slane %v9410_v22, 2  ;;  %v9439_v12 = vsel %vm19668_vm15, %v9437_v32, %v9438_v13  ;;  %vm19684_vm6 = vmmov %vm19676_vm0 }
 0xb40   :  { %v9440_v28 = vrot.slane %v9404_v62, 2  ;;  %v9409_v36 = vmul.f32 %v9386_v53, %v15470_v4  ;;  %v9449_v32 = vrot.slane %v9407_v59, 2  ;;  %v16172_v59 = vld [vmem:[#allocation2 + $0x30] sm:$0xff]  ;;  %vm19689_vm15 = vmmov %vm19648_vm2 }
 0xb41   :  { %v16098_v55 = vpop.permute.xlu0 %8394  ;;  %v16104_v0 = vpop.permute.xlu1 %8414  ;;  %v9431_v57 = vrot.slane %v9397_v63, 2 }
 0xb42   :  { %19653 = vst [vmem:[#allocation113_spill] sm:$0xff] %v16098_v55  ;;  %19655 = vst [vmem:[#allocation23_spill] sm:$0xff] %v16104_v0  ;;  %v9442_v26 = vsel %vm19671_vm10, %v9440_v28, %v9441_v19  ;;  %v9444_v20 = vrot.slane %v9409_v36, 2 }
 0xb43   :  { %9466 = vrot.lane.b32.xlu0 %v9438_v13, %s12726_s2  ;;  %9456 = vrot.lane.b32.xlu1 %v9436_v58, %s12726_s2  ;;  %v9433_v18 = vsel %vm19648_vm2, %v9431_v57, %v9432_v11  ;;  %v9405_v13 = vmul.f32 %v9386_v53, %v15485_v16  ;;  %v9451_v16 = vsel %vm19677_vm13, %v9449_v32, %v9450_v3  ;;  %v19678_v57 = vld [vmem:[#allocation25_spill] sm:$0xff]  ;;  %vm19696_vm2 = vmmov %vm19676_vm0 }
 0xb44   :  { %vm19701_vm10 = vmmov %vm19682_vm4 }
 0xb45   :  { %v16109_v24 = vpop.permute.xlu0 %8384  ;;  %v16115_v29 = vpop.permute.xlu1 %9274  ;;  %vm19704_vm13 = vmmov %vm19682_vm4 }
 0xb46   :  { %19657 = vst [vmem:[#allocation114_spill] sm:$0xff] %v16109_v24  ;;  %19659 = vst [vmem:[#allocation40_spill] sm:$0xff] %v16115_v29  ;;  %v19693_v24 = vld [vmem:[#allocation49_spill] sm:$0xff] }
 0xb47   :  { %9462 = vrot.lane.b32.xlu0 %v9432_v11, %s12726_s2  ;;  %9476 = vrot.lane.b32.xlu1 %v9441_v19, %s12726_s2  ;;  %v16166_v19 = vld [vmem:[#allocation2 + $0x20] sm:$0xff] }
 0xb48   :  { %v10286_v53 = vmul.f32 %v16166_v19, %v19678_v57  ;;  %v16503_v9 = vmul.f32 %v16166_v19, %v19767_v5 }
 0xb49   :  { %v16123_v37 = vpop.permute.xlu0 %8390  ;;  %v16126_v21 = vpop.permute.xlu1 %9294 }
 0xb4a   :  { %19662 = vst [vmem:[#allocation15_spill] sm:$0xff] %v16123_v37  ;;  %19663 = vst [vmem:[#allocation115_spill] sm:$0xff] %v16126_v21 }
 0xb4b   :  { %9452 = vrot.lane.b32.xlu0 %v9430_v6, %s12726_s2  ;;  %9482 = vrot.lane.b32.xlu1 %v9450_v3, %s12726_s2  ;;  %v9406_v6 = vmul.f32 %v9387_v51, %v15482_v17  ;;  %v9443_v17 = vrot.slane %v9405_v13, 2  ;;  %v19674_v51 = vld [vmem:[#allocation20_spill] sm:$0xff] }
 0xb4c   :  { %v16178_v13 = vld [vmem:[#allocation2 + $0x10] sm:$0xff] }
 0xb4d   :  { %v16133_v58 = vpop.permute.xlu0 %9280  ;;  %v16138_v56 = vpop.permute.xlu1 %9300  ;;  %v9446_v4 = vrot.slane %v9406_v6, 2  ;;  %v9445_v32 = vsel %vm19682_vm4, %v9443_v17, %v9444_v20 }
 0xb4e   :  { %19665 = vst [vmem:[#allocation116_spill] sm:$0xff] %v16133_v58  ;;  %19667 = vst [vmem:[#allocation117_spill] sm:$0xff] %v16138_v56 }
 0xb4f   :  { %9458 = vrot.lane.b32.xlu0 %v9439_v12, %s12726_s2  ;;  %9480 = vrot.lane.b32.xlu1 %v9447_v27, %s12726_s2  ;;  %v19675_v12 = vld [vmem:[#allocation36_spill] sm:$0xff] }
 0xb50   :  { %v10271_v11 = vsel %vm19676_vm0, %v19675_v12, %v19674_v51 }
 0xb51   :  { %v16146_v63 = vpop.permute.xlu0 %9270  ;;  %v16149_v60 = vpop.permute.xlu1 %8412  ;;  %v10288_v36 = vmul.f32 %v16172_v59, %v10271_v11  ;;  %v10284_v3 = vmul.f32 %v16178_v13, %v10271_v11 }
 0xb52   :  { %19669 = vst [vmem:[#allocation118_spill] sm:$0xff] %v16146_v63  ;;  %19670 = vst [vmem:[#allocation119_spill] sm:$0xff] %v16149_v60  ;;  %v16243_v60 = vld [vmem:[#allocation2 + $0x40] sm:$0xff] }
 0xb53   :  { %9454 = vrot.lane.b32.xlu0 %v9433_v18, %s12726_s2  ;;  %9468 = vrot.lane.b32.xlu1 %v9442_v26, %s12726_s2  ;;  %v9448_v18 = vsel %vm19681_vm14, %v9446_v4, %v9447_v27  ;;  %v10315_v26 = vrot.slane %v10286_v53, 2  ;;  %v10270_v27 = vsel %vm19684_vm6, %v19678_v57, %v19675_v12  ;;  %v10321_v4 = vrot.slane %v10288_v36, 2  ;;  %v16206_v36 = vld [vmem:[#allocation2 + $0x60] sm:$0xff]  ;;  %vm19708_vm14 = vmmov %vm19682_vm4 }
 0xb54   :  { %vm19712_vm6 = vmmov %vm19682_vm4 }
 0xb55   :  { %v16156_v22 = vpop.permute.xlu0 %9276  ;;  %v16158_v62 = vpop.permute.xlu1 %8400 }
 0xb56   :  { %19672 = vst [vmem:[#allocation120_spill] sm:$0xff] %v16156_v22  ;;  %19673 = vst [vmem:[#allocation121_spill] sm:$0xff] %v16158_v62  ;;  %v16221_v22 = vld [vmem:[#allocation2 + $0x78] sm:$0xff] }
 0xb57   :  { %9478 = vrot.lane.b32.xlu0 %v9444_v20, %s12726_s2  ;;  %9474 = vrot.lane.b32.xlu1 %v9451_v16, %s12726_s2  ;;  %v16184_v16 = vld [vmem:[#allocation2 + $0x38] sm:$0xff]  ;;  %v16197_v20 = vld [vmem:[#allocation2 + $0x28] sm:$0xff]  ;;  %19692 = vst [vmem:[#allocation126_spill] sm:$0xff] %v16221_v22 }
 0xb58   :  { %v10289_v21 = vmul.f32 %v16184_v16, %v19674_v51  ;;  %v10287_v17 = vmul.f32 %v16197_v20, %v10270_v27 }
 0xb59   :  { %v16170_v28 = vpop.permute.xlu0 %8386  ;;  %v16175_v6 = vpop.permute.xlu1 %8406 }
 0xb5a   :  { %19679 = vst [vmem:[#allocation20_spill] sm:$0xff] %v16170_v28  ;;  %19680 = vst [vmem:[#allocation36_spill] sm:$0xff] %v16175_v6  ;;  %v10324_v53 = vrot.slane %v10289_v21, 2  ;;  %v16202_v6 = vld [vmem:[#allocation2] sm:$0xff]  ;;  %v10318_v21 = vrot.slane %v10287_v17, 2 }
 0xb5b   :  { %9472 = vrot.lane.b32.xlu0 %v9448_v18, %s12726_s2  ;;  %9470 = vrot.lane.b32.xlu1 %v9445_v32, %s12726_s2  ;;  %v10320_v18 = vrot.slane %v10284_v3, 2  ;;  %v10282_v12 = vmul.f32 %v16202_v6, %v19678_v57 }
 0xb5d   :  { %v16188_v62 = vpop.permute.xlu0 %9272  ;;  %v16193_v11 = vpop.permute.xlu1 %9298  ;;  %v10322_v63 = vsel %vm19689_vm15, %v10320_v18, %v10321_v4  ;;  %v10314_v34 = vrot.slane %v10282_v12, 2  ;;  %v16232_v18 = vld [vmem:[#allocation2 + $0x8] sm:$0xff]  ;;  %vm19716_vm15 = vmmov %vm19682_vm4 }
 0xb5e   :  { %19683 = vst [vmem:[#allocation25_spill] sm:$0xff] %v16188_v62  ;;  %19685 = vst [vmem:[#allocation122_spill] sm:$0xff] %v16193_v11  ;;  %v19687_v11 = vld [vmem:[#allocation38_spill] sm:$0xff] }
 0xb5f   :  { %10346 = vrot.lane.b32.xlu0 %v10315_v26, %s12724_s12  ;;  %10350 = vrot.lane.b32.xlu1 %v10321_v4, %s12724_s12  ;;  %v10294_v3 = vmul.f32 %v16206_v36, %v19687_v11  ;;  %v19695_v4 = vld [vmem:[#allocation39_spill] sm:$0xff]  ;;  %v10316_v58 = vsel %vm19701_vm10, %v10314_v34, %v10315_v26  ;;  %v10290_v0 = vmul.f32 %v16243_v60, %v19687_v11  ;;  %vm7947_vm10 = vcmask 1044480  }
 0xb60   :  { %19697 = vst [vmem:[#allocation39_spill] sm:$0xff] %v16232_v18 }
 0xb61   :  { %v16200_v32 = vpop.permute.xlu0 %8410  ;;  %v16210_v56 = vpop.permute.xlu1 %9286  ;;  %v10327_v29 = vrot.slane %v10294_v3, 2  ;;  %v16237_v3 = vld [vmem:[#allocation2 + $0x70] sm:$0xff]  ;;  %v10326_v26 = vrot.slane %v10290_v0, 2 }
 0xb62   :  { %19686 = vst [vmem:[#allocation123_spill] sm:$0xff] %v16200_v32  ;;  %19688 = vst [vmem:[#allocation38_spill] sm:$0xff] %v16210_v56  ;;  %v16217_v32 = vld [vmem:[#allocation2 + $0x18] sm:$0xff]  ;;  %v10297_v56 = vmul.f32 %v16221_v22, %v19693_v24 }
 0xb63   :  { %10352 = vrot.lane.b32.xlu0 %v10324_v53, %s12724_s12  ;;  %10342 = vrot.lane.b32.xlu1 %v10322_v63, %s12724_s12  ;;  %19691 = vst [vmem:[#allocation125_spill] sm:$0xff] %v16217_v32  ;;  %v10285_v57 = vmul.f32 %v16217_v32, %v19674_v51  ;;  %v10273_v63 = vsel %vm19696_vm2, %v19695_v4, %v19693_v24  ;;  %19699 = vst [vmem:[#allocation128_spill] sm:$0xff] %v16237_v3 }
 0xb64   :  { %v10283_v51 = vmul.f32 %v16232_v18, %v10270_v27  ;;  %vm19717_vm2 = vmmov %vm19682_vm4 }
 0xb65   :  { %v16215_v62 = vpop.permute.xlu0 %9296  ;;  %v16225_v28 = vpop.permute.xlu1 %9292  ;;  %v10323_v12 = vrot.slane %v10285_v57, 2 }
 0xb66   :  { %19690 = vst [vmem:[#allocation124_spill] sm:$0xff] %v16215_v62  ;;  %19694 = vst [vmem:[#allocation49_spill] sm:$0xff] %v16225_v28  ;;  %v10296_v62 = vmul.f32 %v16237_v3, %v10273_v63  ;;  %v10336_v28 = vrot.slane %v10297_v56, 2  ;;  %v10317_v57 = vrot.slane %v10283_v51, 2  ;;  %v10272_v56 = vsel %vm19676_vm0, %v19687_v11, %v19695_v4  ;;  %v16263_v51 = vld [vmem:[#allocation2 + $0x68] sm:$0xff] }
 0xb67   :  { %10348 = vrot.lane.b32.xlu0 %v10318_v21, %s12724_s12  ;;  %10362 = vrot.lane.b32.xlu1 %v10327_v29, %s12724_s12  ;;  %v10325_v34 = vsel %vm19704_vm13, %v10323_v12, %v10324_v53  ;;  %v16274_v12 = vld [vmem:[#allocation2 + $0x48] sm:$0xff]  ;;  %vm19737_vm0 = vcmask 523264  }
 0xb68   :  { %v10319_v4 = vsel %vm19708_vm14, %v10317_v57, %v10318_v21  ;;  %19709 = vst [vmem:[#allocation135_spill] sm:$0xff] %v16274_v12  ;;  %v8681_v21 = vsel %vm215_vm1, %v15530_v43, %v15539_v40  ;;  %vm19742_vm13 = vmmov %vm19737_vm0 }
 0xb69   :  { %v16235_v17 = vpop.permute.xlu0 %8404  ;;  %v16240_v50 = vpop.permute.xlu1 %8402  ;;  %vm19751_vm14 = vmmov %vm19737_vm0 }
 0xb6a   :  { %19698 = vst [vmem:[#allocation127_spill] sm:$0xff] %v16235_v17  ;;  %19700 = vst [vmem:[#allocation129_spill] sm:$0xff] %v16240_v50  ;;  %v10333_v17 = vrot.slane %v10296_v62, 2  ;;  %v16268_v62 = vld [vmem:[#allocation2 + $0x50] sm:$0xff] }
 0xb6b   :  { %10338 = vrot.lane.b32.xlu0 %v10316_v58, %s12724_s12  ;;  %10368 = vrot.lane.b32.xlu1 %v10336_v28, %s12724_s12  ;;  %v10293_v58 = vmul.f32 %v16257_v61, %v19693_v24  ;;  %v10292_v53 = vmul.f32 %v16268_v62, %v10273_v63  ;;  %v10291_v24 = vmul.f32 %v16274_v12, %v10272_v56 }
 0xb6d   :  { %v16249_v27 = vpop.permute.xlu0 %9290  ;;  %v16254_v50 = vpop.permute.xlu1 %9288  ;;  %v10332_v1 = vrot.slane %v10292_v53, 2  ;;  %v8694_v53 = vmul.f32 %v16178_v13, %v8681_v21 }
 0xb6e   :  { %19702 = vst [vmem:[#allocation130_spill] sm:$0xff] %v16249_v27  ;;  %19703 = vst [vmem:[#allocation131_spill] sm:$0xff] %v16254_v50  ;;  %v10295_v27 = vmul.f32 %v16263_v51, %v10272_v56  ;;  %v10328_v50 = vsel %vm19682_vm4, %v10326_v26, %v10327_v29  ;;  %v19713_v29 = vld [vmem:[#allocation41_spill] sm:$0xff]  ;;  %v8698_v56 = vmul.f32 %v16172_v59, %v8681_v21 }
 0xb6f   :  { %10344 = vrot.lane.b32.xlu0 %v10325_v34, %s12724_s12  ;;  %10366 = vrot.lane.b32.xlu1 %v10333_v17, %s12724_s12  ;;  %v10335_v34 = vrot.slane %v10293_v58, 2  ;;  %v10334_v58 = vsel %vm19716_vm15, %v10332_v1, %v10333_v17  ;;  %v8730_v17 = vrot.slane %v8694_v53, 3  ;;  %vm19755_vm4 = vmmov %vm19737_vm0 }
 0xb71   :  { %v16266_v11 = vpop.permute.xlu0 %10164  ;;  %v16271_v0 = vpop.permute.xlu1 %10168  ;;  %v10337_v57 = vsel %vm19712_vm6, %v10335_v34, %v10336_v28  ;;  %vm19766_vm6 = vcmask 785408  }
 0xb72   :  { %19706 = vst [vmem:[#allocation133_spill] sm:$0xff] %v16266_v11  ;;  %19707 = vst [vmem:[#allocation134_spill] sm:$0xff] %v16271_v0  ;;  %v10330_v11 = vrot.slane %v10295_v27, 2  ;;  %v10329_v0 = vrot.slane %v10291_v24, 2  ;;  %v8699_v24 = vmul.f32 %v16184_v16, %v15539_v40 }
 0xb73   :  { %10340 = vrot.lane.b32.xlu0 %v10319_v4, %s12724_s12  ;;  %10354 = vrot.lane.b32.xlu1 %v10328_v50, %s12724_s12  ;;  %v8696_v50 = vmul.f32 %v16166_v19, %v19713_v29  ;;  %vm19777_vm15 = vmmov %vm19766_vm6 }
 0xb74   :  { %v10331_v4 = vsel %vm19717_vm2, %v10329_v0, %v10330_v11  ;;  %v8734_v0 = vrot.slane %v8699_v24, 3  ;;  %vm19790_vm2 = vcmask 1046528  }
 0xb75   :  { %v16280_v54 = vpop.permute.xlu0 %10170  ;;  %v16282_v63 = vpop.permute.xlu1 %10160  ;;  %v8725_v28 = vrot.slane %v8696_v50, 3  ;;  %v8692_v50 = vmul.f32 %v16202_v6, %v19713_v29 }
 0xb76   :  { %19710 = vst [vmem:[#allocation136_spill] sm:$0xff] %v16280_v54  ;;  %19711 = vst [vmem:[#allocation137_spill] sm:$0xff] %v16282_v63  ;;  %v19724_v63 = vld [vmem:[#allocation31_spill] sm:$0xff] }
 0xb77   :  { %10364 = vrot.lane.b32.xlu0 %v10330_v11, %s12724_s12  ;;  %10360 = vrot.lane.b32.xlu1 %v10337_v57, %s12724_s12  ;;  %v8680_v57 = vsel %vm215_vm1, %v19713_v29, %v15530_v43  ;;  %v8724_v24 = vrot.slane %v8692_v50, 3 }
 0xb78   :  { %v8697_v11 = vmul.f32 %v16197_v20, %v8680_v57 }
 0xb79   :  { %v16292_v27 = vpop.permute.xlu0 %10166  ;;  %v16295_v26 = vpop.permute.xlu1 %10180 }
 0xb7a   :  { %19714 = vst [vmem:[#allocation41_spill] sm:$0xff] %v16292_v27  ;;  %19715 = vst [vmem:[#allocation138_spill] sm:$0xff] %v16295_v26  ;;  %v8731_v26 = vrot.slane %v8698_v56, 3  ;;  %v8728_v53 = vrot.slane %v8697_v11, 3 }
 0xb7b   :  { %10358 = vrot.lane.b32.xlu0 %v10334_v58, %s12724_s12  ;;  %10356 = vrot.lane.b32.xlu1 %v10331_v4, %s12724_s12  ;;  %v19721_v58 = vld [vmem:[#allocation27_spill] sm:$0xff] }
 0xb7c   :  { %v8704_v4 = vmul.f32 %v16206_v36, %v19721_v58  ;;  %v8732_v56 = vsel %vm7947_vm10, %v8730_v17, %v8731_v26 }
 0xb7d   :  { %v16304_v34 = vpop.permute.xlu0 %10156  ;;  %v16309_v1 = vpop.permute.xlu1 %10186 }
 0xb7e   :  { %19718 = vst [vmem:[#allocation139_spill] sm:$0xff] %v16304_v34  ;;  %19719 = vst [vmem:[#allocation140_spill] sm:$0xff] %v16309_v1  ;;  %v8695_v1 = vmul.f32 %v16217_v32, %v15539_v40  ;;  %v8737_v29 = vrot.slane %v8704_v4, 3 }
 0xb7f   :  { %8756 = vrot.lane.b32.xlu0 %v8725_v28, %s12727_s10  ;;  %8760 = vrot.lane.b32.xlu1 %v8731_v26, %s12727_s10  ;;  %v8693_v26 = vmul.f32 %v16232_v18, %v8680_v57 }
 0xb80   :  { %v8733_v11 = vrot.slane %v8695_v1, 3 }
 0xb81   :  { %v16314_v21 = vpop.permute.xlu0 %10162  ;;  %v16320_v43 = vpop.permute.xlu1 %10184  ;;  %v8727_v57 = vrot.slane %v8693_v26, 3 }
 0xb82   :  { %19720 = vst [vmem:[#allocation141_spill] sm:$0xff] %v16314_v21  ;;  %19722 = vst [vmem:[#allocation27_spill] sm:$0xff] %v16320_v43  ;;  %v8707_v21 = vmul.f32 %v16221_v22, %v19724_v63  ;;  %v19726_v43 = vld [vmem:[#allocation29_spill] sm:$0xff] }
 0xb83   :  { %8762 = vrot.lane.b32.xlu0 %v8734_v0, %s12727_s10  ;;  %8752 = vrot.lane.b32.xlu1 %v8732_v56, %s12727_s10  ;;  %v8683_v54 = vsel %vm215_vm1, %v19726_v43, %v19724_v63  ;;  %v8726_v56 = vsel %vm7947_vm10, %v8724_v24, %v8725_v28  ;;  %v8682_v1 = vsel %vm215_vm1, %v19721_v58, %v19726_v43 }
 0xb84   :  { %v8706_v40 = vmul.f32 %v16237_v3, %v8683_v54  ;;  %v8746_v50 = vrot.slane %v8707_v21, 3  ;;  %v8703_v24 = vmul.f32 %v16257_v61, %v19724_v63  ;;  %v8729_v43 = vsel %vm7947_vm10, %v8727_v57, %v8728_v53 }
 0xb85   :  { %v16325_v34 = vpop.permute.xlu0 %10158  ;;  %v16331_v27 = vpop.permute.xlu1 %10172 }
 0xb86   :  { %19723 = vst [vmem:[#allocation142_spill] sm:$0xff] %v16325_v34  ;;  %19725 = vst [vmem:[#allocation31_spill] sm:$0xff] %v16331_v27  ;;  %v8700_v27 = vmul.f32 %v16243_v60, %v19721_v58 }
 0xb87   :  { %8758 = vrot.lane.b32.xlu0 %v8728_v53, %s12727_s10  ;;  %8772 = vrot.lane.b32.xlu1 %v8737_v29, %s12727_s10 }
 0xb88   :  { %v8736_v28 = vrot.slane %v8700_v27, 3  ;;  %v8745_v27 = vrot.slane %v8703_v24, 3 }
 0xb89   :  { %v16339_v17 = vpop.permute.xlu0 %10182  ;;  %v16342_v4 = vpop.permute.xlu1 %10178 }
 0xb8a   :  { %19727 = vst [vmem:[#allocation29_spill] sm:$0xff] %v16339_v17  ;;  %19728 = vst [vmem:[#allocation143_spill] sm:$0xff] %v16342_v4  ;;  %v8743_v17 = vrot.slane %v8706_v40, 3  ;;  %v8735_v4 = vsel %vm7947_vm10, %v8733_v11, %v8734_v0  ;;  %v8701_v0 = vmul.f32 %v16274_v12, %v8682_v1  ;;  %v8738_v63 = vsel %vm7947_vm10, %v8736_v28, %v8737_v29  ;;  %v19738_v29 = vld [vmem:[#allocation83_spill] sm:$0xff] }
 0xb8b   :  { %8748 = vrot.lane.b32.xlu0 %v8726_v56, %s12727_s10  ;;  %8778 = vrot.lane.b32.xlu1 %v8746_v50, %s12727_s10  ;;  %v8705_v56 = vmul.f32 %v16263_v51, %v8682_v1  ;;  %v8747_v57 = vsel %vm7947_vm10, %v8745_v27, %v8746_v50  ;;  %v9582_v1 = vmul.f32 %v16166_v19, %v19738_v29 }
 0xb8d   :  { %v16349_v34 = vpop.permute.xlu0 %10176  ;;  %v16354_v21 = vpop.permute.xlu1 %10174  ;;  %v8740_v11 = vrot.slane %v8705_v56, 3  ;;  %v9611_v50 = vrot.slane %v9582_v1, 3  ;;  %v9578_v1 = vmul.f32 %v16202_v6, %v19738_v29 }
 0xb8e   :  { %19729 = vst [vmem:[#allocation144_spill] sm:$0xff] %v16349_v34  ;;  %19730 = vst [vmem:[#allocation145_spill] sm:$0xff] %v16354_v21  ;;  %v8702_v34 = vmul.f32 %v16268_v62, %v8683_v54  ;;  %v8739_v54 = vrot.slane %v8701_v0, 3 }
 0xb8f   :  { %8754 = vrot.lane.b32.xlu0 %v8735_v4, %s12727_s10  ;;  %8776 = vrot.lane.b32.xlu1 %v8743_v17, %s12727_s10 }
 0xb90   :  { %v8742_v4 = vrot.slane %v8702_v34, 3  ;;  %v8741_v0 = vsel %vm7947_vm10, %v8739_v54, %v8740_v11 }
 0xb91   :  { %v16362_v26 = vpop.permute.xlu0 %8574  ;;  %v16365_v58 = vpop.permute.xlu1 %8578 }
 0xb92   :  { %19731 = vst [vmem:[#allocation146_spill] sm:$0xff] %v16362_v26  ;;  %19732 = vst [vmem:[#allocation147_spill] sm:$0xff] %v16365_v58  ;;  %v19735_v26 = vld [vmem:[#allocation37_spill] sm:$0xff]  ;;  %v19736_v58 = vld [vmem:[#allocation24_spill] sm:$0xff]  ;;  %v8744_v56 = vsel %vm7947_vm10, %v8742_v4, %v8743_v17 }
 0xb93   :  { %8750 = vrot.lane.b32.xlu0 %v8729_v43, %s12727_s10  ;;  %8764 = vrot.lane.b32.xlu1 %v8738_v63, %s12727_s10  ;;  %v9567_v53 = vsel %vm19737_vm0, %v19736_v58, %v19735_v26  ;;  %v9585_v27 = vmul.f32 %v16184_v16, %v19735_v26  ;;  %vm19797_vm0 = vmmov %vm19766_vm6 }
 0xb94   :  { %v9584_v34 = vmul.f32 %v16172_v59, %v9567_v53  ;;  %v9580_v43 = vmul.f32 %v16178_v13, %v9567_v53 }
 0xb95   :  { %v16372_v40 = vpop.permute.xlu0 %8580  ;;  %v16374_v21 = vpop.permute.xlu1 %8570  ;;  %v9620_v54 = vrot.slane %v9585_v27, 3  ;;  %v9610_v27 = vrot.slane %v9578_v1, 3 }
 0xb96   :  { %19733 = vst [vmem:[#allocation148_spill] sm:$0xff] %v16372_v40  ;;  %19734 = vst [vmem:[#allocation149_spill] sm:$0xff] %v16374_v21  ;;  %v9616_v4 = vrot.slane %v9580_v43, 3 }
 0xb97   :  { %8774 = vrot.lane.b32.xlu0 %v8740_v11, %s12727_s10  ;;  %8770 = vrot.lane.b32.xlu1 %v8747_v57, %s12727_s10  ;;  %v9566_v57 = vsel %vm19742_vm13, %v19738_v29, %v19736_v58  ;;  %v19748_v29 = vld [vmem:[#allocation46_spill] sm:$0xff]  ;;  %vm19799_vm13 = vcmask 1045504  }
 0xb98   :  { %v9583_v11 = vmul.f32 %v16197_v20, %v9566_v57 }
 0xb99   :  { %v16384_v28 = vpop.permute.xlu0 %8576  ;;  %v16387_v24 = vpop.permute.xlu1 %8590 }
 0xb9a   :  { %19739 = vst [vmem:[#allocation37_spill] sm:$0xff] %v16384_v28  ;;  %19740 = vst [vmem:[#allocation24_spill] sm:$0xff] %v16387_v24  ;;  %v9617_v24 = vrot.slane %v9584_v34, 3  ;;  %v9614_v43 = vrot.slane %v9583_v11, 3 }
 0xb9b   :  { %8768 = vrot.lane.b32.xlu0 %v8744_v56, %s12727_s10  ;;  %8766 = vrot.lane.b32.xlu1 %v8741_v0, %s12727_s10  ;;  %v19745_v56 = vld [vmem:[#allocation22_spill] sm:$0xff] }
 0xb9c   :  { %v9590_v0 = vmul.f32 %v16206_v36, %v19745_v56  ;;  %v9618_v34 = vsel %vm7947_vm10, %v9616_v4, %v9617_v24 }
 0xb9d   :  { %v16396_v63 = vpop.permute.xlu0 %8566  ;;  %v16401_v17 = vpop.permute.xlu1 %8596 }
 0xb9e   :  { %19741 = vst [vmem:[#allocation83_spill] sm:$0xff] %v16396_v63  ;;  %19743 = vst [vmem:[#allocation150_spill] sm:$0xff] %v16401_v17  ;;  %v9581_v17 = vmul.f32 %v16217_v32, %v19735_v26  ;;  %v9623_v21 = vrot.slane %v9590_v0, 3 }
 0xb9f   :  { %9642 = vrot.lane.b32.xlu0 %v9611_v50, %s12726_s2  ;;  %9646 = vrot.lane.b32.xlu1 %v9617_v24, %s12726_s2  ;;  %v9579_v24 = vmul.f32 %v16232_v18, %v9566_v57 }
 0xba0   :  { %v9619_v11 = vrot.slane %v9581_v17, 3 }
 0xba1   :  { %v16406_v53 = vpop.permute.xlu0 %8572  ;;  %v16412_v58 = vpop.permute.xlu1 %8594  ;;  %v9613_v57 = vrot.slane %v9579_v24, 3 }
 0xba2   :  { %19744 = vst [vmem:[#allocation151_spill] sm:$0xff] %v16406_v53  ;;  %19746 = vst [vmem:[#allocation22_spill] sm:$0xff] %v16412_v58  ;;  %v9593_v53 = vmul.f32 %v16221_v22, %v19748_v29  ;;  %v19750_v58 = vld [vmem:[#allocation56_spill] sm:$0xff] }
 0xba3   :  { %9648 = vrot.lane.b32.xlu0 %v9620_v54, %s12726_s2  ;;  %9638 = vrot.lane.b32.xlu1 %v9618_v34, %s12726_s2  ;;  %v9569_v40 = vsel %vm19751_vm14, %v19750_v58, %v19748_v29  ;;  %v9612_v34 = vsel %vm7947_vm10, %v9610_v27, %v9611_v50  ;;  %v9568_v17 = vsel %vm19755_vm4, %v19745_v56, %v19750_v58  ;;  %vm19802_vm14 = vmmov %vm19797_vm0 }
 0xba4   :  { %v16434_v26 = vmul.f32 %v16237_v3, %v9569_v40  ;;  %v9632_v1 = vrot.slane %v9593_v53, 3  ;;  %v9621_v50 = vsel %vm7947_vm10, %v9619_v11, %v9620_v54  ;;  %v9591_v24 = vmul.f32 %v16263_v51, %v9568_v17  ;;  %v19759_v11 = vld [vmem:[#allocation13_spill] sm:$0xff]  ;;  %vm19810_vm4 = vmmov %vm19790_vm2 }
 0xba5   :  { %v16417_v63 = vpop.permute.xlu0 %8568  ;;  %v16423_v28 = vpop.permute.xlu1 %8582 }
 0xba6   :  { %19747 = vst [vmem:[#allocation152_spill] sm:$0xff] %v16417_v63  ;;  %19749 = vst [vmem:[#allocation46_spill] sm:$0xff] %v16423_v28  ;;  %v9586_v28 = vmul.f32 %v16243_v60, %v19745_v56  ;;  %v9629_v53 = vrot.slane %v16434_v26, 3  ;;  %v9588_v56 = vmul.f32 %v16268_v62, %v9569_v40  ;;  %v9615_v26 = vsel %vm7947_vm10, %v9613_v57, %v9614_v43  ;;  %v19760_v40 = vld [vmem:[#allocation11_spill] sm:$0xff] }
 0xba7   :  { %9644 = vrot.lane.b32.xlu0 %v9614_v43, %s12726_s2  ;;  %9658 = vrot.lane.b32.xlu1 %v9623_v21, %s12726_s2 }
 0xba8   :  { %v9622_v27 = vrot.slane %v9586_v28, 3  ;;  %v9587_v28 = vmul.f32 %v16274_v12, %v9568_v17  ;;  %v9628_v57 = vrot.slane %v9588_v56, 3  ;;  %v16476_v17 = vld [vmem:[#allocation2] sm:$0xff] }
 0xba9   :  { %v16431_v4 = vpop.permute.xlu0 %8592  ;;  %v16436_v0 = vpop.permute.xlu1 %8588 }
 0xbaa   :  { %19752 = vst [vmem:[#allocation56_spill] sm:$0xff] %v16431_v4  ;;  %19753 = vst [vmem:[#allocation153_spill] sm:$0xff] %v16436_v0  ;;  %v9589_v0 = vmul.f32 %v16257_v61, %v19748_v29  ;;  %v9624_v29 = vsel %vm7947_vm10, %v9622_v27, %v9623_v21  ;;  %v9625_v27 = vrot.slane %v9587_v28, 3 }
 0xbab   :  { %9634 = vrot.lane.b32.xlu0 %v9612_v34, %s12726_s2  ;;  %9664 = vrot.lane.b32.xlu1 %v9632_v1, %s12726_s2  ;;  %v11928_v34 = vld.sshfl [vmem:[#allocation3] sm:$0x77 pattern:$0x75316420] }
 0xbac   :  { %v9631_v54 = vrot.slane %v9589_v0, 3  ;;  %v7628_v37 = vcombine.high %v11928_v34, %v11928_v34  ;;  %v7632_v49 = vrot.slane %v11928_v34, %v19760_v40  ;;  %v16474_v0 = vld [vmem:[#allocation2 + $0x20] sm:$0xff] }
 0xbad   :  { %v16443_v63 = vpop.permute.xlu0 %8586  ;;  %v16449_v4 = vpop.permute.xlu1 %8584 }
 0xbae   :  { %19754 = vst [vmem:[#allocation154_spill] sm:$0xff] %v16443_v63  ;;  %19756 = vst [vmem:[#allocation155_spill] sm:$0xff] %v16449_v4  ;;  %v16467_v4 = vld.sshfl [vmem:[#allocation3 + $0x1e] sm:$0x77 pattern:$0x75316420]  ;;  %v9633_v56 = vsel %vm7947_vm10, %v9631_v54, %v9632_v1  ;;  %v7644_v31 = vrot.slane %v7628_v37, %v19760_v40  ;;  %v16508_v1 = vmul.f32 %v7632_v49, %v16474_v0 }
 0xbaf   :  { %9640 = vrot.lane.b32.xlu0 %v9621_v50, %s12726_s2  ;;  %9662 = vrot.lane.b32.xlu1 %v9629_v53, %s12726_s2  ;;  %v7640_v50 = vrot.slane %v11928_v34, %v19759_v11  ;;  %v16516_v10 = vmul.f32 %v7632_v49, %v16476_v17  ;;  %v16525_v46 = vrot.slane %v16467_v4, %v19760_v40 }
 0xbb0   :  { %v9630_v49 = vsel %vm7947_vm10, %v9628_v57, %v9629_v53  ;;  %v16543_v45 = vmul.f32 %v7644_v31, %v16518_v52  ;;  %v7652_v53 = vrot.slane %v7628_v37, %v19759_v11 }
 0xbb1   :  { %v16457_v63 = vpop.permute.xlu0 %9460  ;;  %v16460_v58 = vpop.permute.xlu1 %9464  ;;  %v16577_v30 = vmul.f32 %v16525_v46, %v16474_v0 }
 0xbb2   :  { %19757 = vst [vmem:[#allocation156_spill] sm:$0xff] %v16457_v63  ;;  %19758 = vst [vmem:[#allocation157_spill] sm:$0xff] %v16460_v58  ;;  %v9626_v63 = vrot.slane %v9591_v24, 3  ;;  %v19761_v58 = vld [vmem:[#allocation12_spill] sm:$0xff]  ;;  %v7692_v24 = vrot.slane %v16467_v4, %v19759_v11 }
 0xbb3   :  { %9636 = vrot.lane.b32.xlu0 %v9615_v26, %s12726_s2  ;;  %9650 = vrot.lane.b32.xlu1 %v9624_v29, %s12726_s2  ;;  %v7636_v7 = vrot.slane %v11928_v34, %v19761_v58  ;;  %v19764_v26 = vld [vmem:[#allocation61_spill] sm:$0xff]  ;;  %19771 = vst [vmem:[#allocation161_spill] sm:$0xff] %v16543_v45 }
 0xbb4   :  { %v10453_v55 = vsel %vm19766_vm6, %v19765_v35, %v19764_v26  ;;  %v16483_v29 = vld [vmem:[#allocation2 + $0x30] sm:$0xff]  ;;  %v9627_v38 = vsel %vm7947_vm10, %v9625_v27, %v9626_v63  ;;  %v16553_v57 = vmul.f32 %v16184_v16, %v19764_v26  ;;  %vm19812_vm6 = vmmov %vm19790_vm2 }
 0xbb5   :  { %v16472_v43 = vpop.permute.xlu0 %9466  ;;  %v16478_v21 = vpop.permute.xlu1 %9456  ;;  %v16487_v34 = vld [vmem:[#allocation2 + $0x10] sm:$0xff]  ;;  %v10470_v41 = vmul.f32 %v16172_v59, %v10453_v55  ;;  %v10466_v15 = vmul.f32 %v16178_v13, %v10453_v55  ;;  %v7688_v55 = vrot.slane %v16467_v4, %v19761_v58 }
 0xbb6   :  { %19762 = vst [vmem:[#allocation158_spill] sm:$0xff] %v16472_v43  ;;  %19763 = vst [vmem:[#allocation159_spill] sm:$0xff] %v16478_v21  ;;  %v16492_v43 = vmul.f32 %v7640_v50, %v16483_v29  ;;  %v16495_v28 = vmul.f32 %v7640_v50, %v16487_v34  ;;  %v16497_v21 = vld [vmem:[#allocation2 + $0x28] sm:$0xff]  ;;  %v7713_v23 = vmul.f32 %v7692_v24, %v16487_v34 }
 0xbb7   :  { %9660 = vrot.lane.b32.xlu0 %v9626_v63, %s12726_s2  ;;  %9656 = vrot.lane.b32.xlu1 %v9633_v56, %s12726_s2  ;;  %v16511_v54 = vmul.f32 %v7636_v7, %v16497_v21  ;;  %v16513_v50 = vld [vmem:[#allocation2 + $0x8] sm:$0xff]  ;;  %19773 = vst [vmem:[#allocation163_spill] sm:$0xff] %v16553_v57  ;;  %v16556_v63 = vmul.f32 %v7644_v31, %v16530_v25  ;;  %v10502_v44 = vrot.slane %v10466_v15, 3 }
 0xbb8   :  { %v16528_v14 = vmul.f32 %v7636_v7, %v16513_v50  ;;  %v7798_v7 = vrot.slane %v16505_v39, %v19759_v11  ;;  %v16573_v31 = vrot.slane %v11948_v8, %v19761_v58  ;;  %v7741_v33 = vrot.slane %v7713_v23, 1  ;;  %v16592_v23 = vld [vmem:[#allocation2 + $0x70] sm:$0xff] }
 0xbb9   :  { %v16520_v56 = vpop.permute.xlu0 %9462  ;;  %v16532_v2 = vpop.permute.xlu1 %9476  ;;  %19774 = vst [vmem:[#allocation164_spill] sm:$0xff] %v16556_v63  ;;  %19782 = vst [vmem:[#allocation170_spill] sm:$0xff] %v16592_v23  ;;  %v16606_v42 = vmul.f32 %v7652_v53, %v16592_v23 }
 0xbba   :  { %19768 = vst [vmem:[#allocation58_spill] sm:$0xff] %v16520_v56  ;;  %19770 = vst [vmem:[#allocation160_spill] sm:$0xff] %v16532_v2  ;;  %v7716_v56 = vmul.f32 %v7692_v24, %v16483_v29  ;;  %v16546_v2 = vrot.slane %v7628_v37, %v19761_v58  ;;  %v16561_v24 = vrot.slane %v11948_v8, %v19760_v40 }
 0xbbb   :  { %9654 = vrot.lane.b32.xlu0 %v9630_v49, %s12726_s2  ;;  %9652 = vrot.lane.b32.xlu1 %v9627_v38, %s12726_s2  ;;  %v10452_v37 = vsel %vm19777_vm15, %v19767_v5, %v19765_v35  ;;  %v10503_v49 = vrot.slane %v10470_v41, 3  ;;  %v16566_v38 = vld.sshfl [vmem:[#allocation3 + $0x5a] sm:$0x77 pattern:$0x75316420]  ;;  %19779 = vst [vmem:[#allocation168_spill] sm:$0xff] %v16573_v31  ;;  %v16585_v35 = vmul.f32 %v7798_v7, %v16483_v29  ;;  %vm19822_vm15 = vmmov %vm19799_vm13 }
 0xbbc   :  { %19772 = vst [vmem:[#allocation162_spill] sm:$0xff] %v16546_v2  ;;  %19776 = vst [vmem:[#allocation166_spill] sm:$0xff] %v16561_v24  ;;  %v19781_v41 = vrot.slane %v16503_v9, 3  ;;  %v16590_v8 = vcombine.high %v16467_v4, %v16467_v4  ;;  %v16596_v15 = vmul.f32 %v16546_v2, %v16579_v48  ;;  %v16608_v4 = vld [vmem:[#allocation2 + $0x50] sm:$0xff]  ;;  %v10464_v31 = vmul.f32 %v16202_v6, %v19767_v5  ;;  %v19787_v24 = vld [vmem:[#allocation47_spill] sm:$0xff] }
 0xbbd   :  { %v16558_v27 = vpop.permute.xlu0 %9452  ;;  %v16570_v47 = vpop.permute.xlu1 %9482  ;;  %19784 = vst [vmem:[#allocation172_spill] sm:$0xff] %v16606_v42  ;;  %19785 = vst [vmem:[#allocation173_spill] sm:$0xff] %v16608_v4  ;;  %v16616_v63 = vmul.f32 %v16206_v36, %v19787_v24  ;;  %v16619_v2 = vmul.f32 %v7688_v55, %v16497_v21  ;;  %v19791_v5 = vrot.slane %v16553_v57, 3  ;;  %v10504_v61 = vsel %vm7947_vm10, %v10502_v44, %v10503_v49 }
 0xbbe   :  { %19775 = vst [vmem:[#allocation165_spill] sm:$0xff] %v16558_v27  ;;  %19778 = vst [vmem:[#allocation167_spill] sm:$0xff] %v16570_v47  ;;  %v7742_v27 = vrot.slane %v7716_v56, 1  ;;  %v7819_v47 = vmul.f32 %v7798_v7, %v16487_v34  ;;  %v16600_v56 = vmul.f32 %v16197_v20, %v10452_v37  ;;  %v7904_v7 = vrot.slane %v16566_v38, %v19759_v11 }
 0xbbf   :  { %10528 = vrot.lane.b32.xlu0 %v19781_v41, %s12724_s12  ;;  %19783 = vst [vmem:[#allocation171_spill] sm:$0xff] %v16596_v15  ;;  %10532 = vrot.lane.b32.xlu1 %v10503_v49, %s12724_s12  ;;  %v16622_v41 = vmul.f32 %v7652_v53, %v16608_v4  ;;  %v7848_v23 = vrot.slane %v16585_v35, 2  ;;  %v16636_v53 = vrot.slane %v16505_v39, %v19760_v40  ;;  %v7739_v57 = vrot.slane %v16619_v2, 1 }
 0xbc0   :  { %v7770_v42 = vadd.f32 %v7742_v27, %v16492_v43  ;;  %v7743_v15 = vsel %vm19790_vm2, %v7741_v33, %v7742_v27  ;;  %v7847_v48 = vrot.slane %v7819_v47, 2  ;;  %v16640_v43 = vrot.slane %v16505_v39, %v19761_v58 }
 0xbc1   :  { %v16610_v26 = vpop.permute.xlu0 %9458  ;;  %19788 = vst [vmem:[#allocation47_spill] sm:$0xff] %v16622_v41  ;;  %v16624_v25 = vpop.permute.xlu1 %9480  ;;  %v10465_v33 = vmul.f32 %v16232_v18, %v10452_v37  ;;  %v10500_v27 = vrot.slane %v16600_v56, 3  ;;  %v7925_v44 = vmul.f32 %v7904_v7, %v16487_v34  ;;  %v10496_v47 = vrot.slane %v10464_v31, 3  ;;  %v19796_v37 = vld [vmem:[#allocation67_spill] sm:$0xff] }
 0xbc2   :  { %19786 = vst [vmem:[#allocation174_spill] sm:$0xff] %v16610_v26  ;;  %19789 = vst [vmem:[#allocation175_spill] sm:$0xff] %v16624_v25  ;;  %v19793_v26 = vld [vmem:[#allocation66_spill] sm:$0xff]  ;;  %v7767_v41 = vadd.f32 %v7743_v15, %v16495_v28  ;;  %v7711_v35 = vmul.f32 %v16525_v46, %v16476_v17  ;;  %v16670_v2 = vmul.f32 %v16636_v53, %v16474_v0  ;;  %vm19824_vm2 = vcmask 1043456  }
 0xbc3   :  { %10534 = vrot.lane.b32.xlu0 %v19791_v5, %s12724_s12  ;;  %10524 = vrot.lane.b32.xlu1 %v10504_v61, %s12724_s12  ;;  %v7928_v5 = vmul.f32 %v7904_v7, %v16483_v29  ;;  %v16652_v25 = vmul.f32 %v16221_v22, %v19793_v26  ;;  %v10455_v56 = vsel %vm19797_vm0, %v19796_v37, %v19793_v26  ;;  %v19798_v7 = vrot.slane %v16577_v30, 1  ;;  %v16693_v18 = vld.sshfl [vmem:[#allocation3 + $0x78] sm:$0x77 pattern:$0x75316420]  ;;  %vm19827_vm0 = vmmov %vm19799_vm13 }
 0xbc4   :  { %v7712_v28 = vmul.f32 %v7688_v55, %v16513_v50  ;;  %v10499_v15 = vrot.slane %v10465_v33, 3  ;;  %v10454_v4 = vsel %vm19802_vm14, %v19787_v24, %v19796_v37  ;;  %v16690_v45 = vmul.f32 %v16237_v3, %v10455_v56  ;;  %vm19838_vm14 = vmmov %vm19824_vm2 }
 0xbc5   :  { %v16647_v49 = vpop.permute.xlu0 %9454  ;;  %19794 = vst [vmem:[#allocation177_spill] sm:$0xff] %v16652_v25  ;;  %v16655_v61 = vpop.permute.xlu1 %9468  ;;  %v7768_v31 = vadd.f32 %v19798_v7, %v16508_v1  ;;  %v19800_v1 = vrot.slane %v16616_v63, 3  ;;  %v7955_v46 = vrot.slane %v7928_v5, 3  ;;  %v7954_v7 = vrot.slane %v7925_v44, 3 }
 0xbc6   :  { %19792 = vst [vmem:[#allocation176_spill] sm:$0xff] %v16647_v49  ;;  %19795 = vst [vmem:[#allocation178_spill] sm:$0xff] %v16655_v61  ;;  %v7849_v49 = vsel %vm19799_vm13, %v7847_v48, %v7848_v23  ;;  %v16674_v61 = vmul.f32 %v16640_v43, %v16497_v21  ;;  %v16682_v48 = vrot.slane %v16566_v38, %v19760_v40  ;;  %v19804_v5 = vrot.slane %v16503_v9, 3 }
 0xbc7   :  { %10530 = vrot.lane.b32.xlu0 %v10500_v27, %s12724_s12  ;;  %10544 = vrot.lane.b32.xlu1 %v19800_v1, %s12724_s12  ;;  %v10472_v1 = vmul.f32 %v16243_v60, %v19787_v24  ;;  %v16705_v37 = vrot.slane %v16566_v38, %v19761_v58  ;;  %v7735_v3 = vrot.slane %v7711_v35, 1  ;;  %v7876_v55 = vadd.f32 %v7848_v23, %v7770_v42  ;;  %vm19831_vm13 = vmmov %vm19824_vm2 }
 0xbc8   :  { %v10498_v44 = vsel %vm7947_vm10, %v10496_v47, %v19804_v5  ;;  %v7873_v22 = vadd.f32 %v7849_v49, %v7767_v41  ;;  %v7738_v32 = vrot.slane %v7712_v28, 1  ;;  %v19805_v9 = vrot.slane %v16652_v25, 3  ;;  %v19814_v25 = vld [vmem:[#allocation63_spill] sm:$0xff] }
 0xbc9   :  { %v16684_v26 = vpop.permute.xlu0 %9478  ;;  %v16695_v33 = vpop.permute.xlu1 %9474  ;;  %v10477_v24 = vmul.f32 %v16263_v51, %v10454_v4  ;;  %v7956_v47 = vsel %vm7947_vm10, %v7954_v7, %v7955_v46  ;;  %v10474_v42 = vmul.f32 %v16268_v62, %v10455_v56  ;;  %v10515_v23 = vrot.slane %v16690_v45, 3 }
 0xbca   :  { %19801 = vst [vmem:[#allocation67_spill] sm:$0xff] %v16684_v26  ;;  %19803 = vst [vmem:[#allocation179_spill] sm:$0xff] %v16695_v33  ;;  %v7769_v26 = vadd.f32 %v7739_v57, %v16511_v54  ;;  %v19167_v33 = vrot.slane %v16670_v2, 2  ;;  %v8011_v54 = vrot.slane %v16693_v18, %v19759_v11  ;;  %v16723_v41 = vmul.f32 %v16682_v48, %v16474_v0 }
 0xbcb   :  { %10520 = vrot.lane.b32.xlu0 %v10498_v44, %s12724_s12  ;;  %10550 = vrot.lane.b32.xlu1 %v19805_v9, %s12724_s12  ;;  %v10501_v28 = vsel %vm7947_vm10, %v10499_v15, %v10500_v27  ;;  %v10508_v44 = vrot.slane %v10472_v1, 3  ;;  %v10473_v9 = vmul.f32 %v16274_v12, %v10454_v4  ;;  %v7983_v7 = vadd.f32 %v7955_v46, %v7876_v55  ;;  %v19815_v12 = vld [vmem:[#allocation70_spill] sm:$0xff] }
 0xbcc   :  { %v16731_v35 = vmul.f32 %v16705_v37, %v16497_v21  ;;  %v16734_v56 = vadd.f32 %v7956_v47, %v7873_v22  ;;  %v7874_v45 = vadd.f32 %v19167_v33, %v7768_v31  ;;  %v16742_v27 = vrot.slane %v16693_v18, %v19761_v58 }
 0xbcd   :  { %v16717_v5 = vpop.permute.xlu0 %9472  ;;  %v16725_v49 = vpop.permute.xlu1 %9470  ;;  %v10512_v4 = vrot.slane %v10477_v24, 3  ;;  %v8035_v15 = vmul.f32 %v8011_v54, %v16483_v29  ;;  %v19808_v46 = vrot.slane %v16674_v61, 2  ;;  %v19809_v22 = vrot.slane %v16577_v30, 1 }
 0xbce   :  { %19806 = vst [vmem:[#allocation180_spill] sm:$0xff] %v16717_v5  ;;  %19807 = vst [vmem:[#allocation181_spill] sm:$0xff] %v16725_v49  ;;  %v8003_v49 = vrot.slane %v16693_v18, %v19760_v40  ;;  %v10514_v47 = vrot.slane %v10474_v42, 3  ;;  %v7740_v33 = vsel %vm19812_vm6, %v7738_v32, %v7739_v57  ;;  %v7817_v5 = vmul.f32 %v16636_v53, %v16476_v17 }
 0xbcf   :  { %10522 = vrot.lane.b32.xlu0 %v10501_v28, %s12724_s12  ;;  %10548 = vrot.lane.b32.xlu1 %v10515_v23, %s12724_s12  ;;  %v7875_v55 = vadd.f32 %v19808_v46, %v7769_v26  ;;  %v7737_v1 = vsel %vm19810_vm4, %v7735_v3, %v19809_v22  ;;  %v7949_v28 = vrot.slane %v16723_v41, 3  ;;  %v10511_v29 = vrot.slane %v10473_v9, 3  ;;  %v19817_v46 = vld [vmem:[#allocation85_spill] sm:$0xff]  ;;  %vm19840_vm4 = vmmov %vm19824_vm2 }
 0xbd0   :  { %v8863_v26 = vsel %vm215_vm1, %v19815_v12, %v19814_v25  ;;  %v7952_v30 = vrot.slane %v16731_v35, 3  ;;  %v19816_v3 = vrot.slane %v16616_v63, 3  ;;  %v8032_v32 = vmul.f32 %v8011_v54, %v16487_v34  ;;  %v19837_v35 = vld [vmem:[#allocation71_spill] sm:$0xff]  ;;  %vm19844_vm6 = vmmov %vm19824_vm2 }
 0xbd1   :  { %v16751_v31 = vpop.permute.xlu0 %10346  ;;  %v16757_v24 = vpop.permute.xlu1 %10350  ;;  %v16769_v57 = vmul.f32 %v8003_v49, %v16474_v0  ;;  %v16773_v53 = vmul.f32 %v16742_v27, %v16497_v21  ;;  %v7818_v9 = vmul.f32 %v16640_v43, %v16513_v50  ;;  %v16780_v22 = vmul.f32 %v16166_v19, %v19817_v46 }
 0xbd2   :  { %19811 = vst [vmem:[#allocation182_spill] sm:$0xff] %v16751_v31  ;;  %19813 = vst [vmem:[#allocation183_spill] sm:$0xff] %v16757_v24  ;;  %v10510_v42 = vsel %vm7947_vm10, %v10508_v44, %v19816_v3  ;;  %v8061_v63 = vrot.slane %v8035_v15, 4  ;;  %v7765_v44 = vadd.f32 %v7737_v1, %v16516_v10  ;;  %v7766_v34 = vadd.f32 %v7740_v33, %v16528_v14  ;;  %v19884_v31 = vld [vmem:[#allocation78_spill] sm:$0xff] }
 0xbd3   :  { %10546 = vrot.lane.b32.xlu0 %v10512_v4, %s12724_s12  ;;  %10536 = vrot.lane.b32.xlu1 %v10510_v42, %s12724_s12  ;;  %v8880_v54 = vmul.f32 %v16172_v59, %v8863_v26  ;;  %v7841_v21 = vrot.slane %v7817_v5, 2  ;;  %v7923_v3 = vmul.f32 %v16682_v48, %v16476_v17  ;;  %v10516_v42 = vsel %vm7947_vm10, %v10514_v47, %v10515_v23 }
 0xbd4   :  { %v8876_v19 = vmul.f32 %v16178_v13, %v8863_v26  ;;  %v7981_v15 = vadd.f32 %v7949_v28, %v7874_v45  ;;  %v7982_v14 = vadd.f32 %v7952_v30, %v7875_v55  ;;  %v10513_v10 = vsel %vm7947_vm10, %v10511_v29, %v10512_v4 }
 0xbd5   :  { %v16784_v0 = vpop.permute.xlu0 %10352  ;;  %v16789_v43 = vpop.permute.xlu1 %10342  ;;  %v8060_v59 = vrot.slane %v8032_v32, 4  ;;  %v8055_v33 = vrot.slane %v16769_v57, 4  ;;  %v8058_v48 = vrot.slane %v16773_v53, 4  ;;  %v7844_v5 = vrot.slane %v7818_v9, 2 }
 0xbd6   :  { %19818 = vst [vmem:[#allocation63_spill] sm:$0xff] %v16784_v0  ;;  %19819 = vst [vmem:[#allocation70_spill] sm:$0xff] %v16789_v43  ;;  %v8907_v13 = vrot.slane %v16780_v22, 4  ;;  %v16805_v23 = vmul.f32 %v16184_v16, %v19814_v25  ;;  %v16807_v45 = vadd.f32 %v8061_v63, %v7983_v7  ;;  %v7924_v55 = vmul.f32 %v16705_v37, %v16513_v50  ;;  %v17117_v0 = vld [vmem:[#allocation2 + $0x48] sm:$0xff] }
 0xbd7   :  { %10540 = vrot.lane.b32.xlu0 %v10516_v42, %s12724_s12  ;;  %10538 = vrot.lane.b32.xlu1 %v10513_v10, %s12724_s12  ;;  %v8862_v1 = vsel %vm215_vm1, %v19817_v46, %v19815_v12  ;;  %v8913_v47 = vrot.slane %v8880_v54, 4  ;;  %v19821_v29 = vrot.slane %v16670_v2, 2  ;;  %v7948_v32 = vrot.slane %v7923_v3, 3 }
 0xbd8   :  { %v8912_v16 = vrot.slane %v8876_v19, 4  ;;  %v8030_v7 = vmul.f32 %v8003_v49, %v16476_v17  ;;  %v16824_v37 = vrot.slane %v16590_v8, %v19760_v40  ;;  %v16828_v9 = vcombine.high %v16505_v39, %v16505_v39 }
 0xbd9   :  { %v16811_v4 = vpop.permute.xlu0 %10348  ;;  %v7843_v26 = vsel %vm19822_vm15, %v7841_v21, %v19821_v29  ;;  %v16819_v57 = vpop.permute.xlu1 %10362  ;;  %v8062_v12 = vsel %vm19824_vm2, %v8060_v59, %v8061_v63  ;;  %v16834_v2 = vadd.f32 %v8055_v33, %v7981_v15  ;;  %v16838_v54 = vadd.f32 %v8058_v48, %v7982_v14  ;;  %v19829_v15 = vld [vmem:[#allocation88_spill] sm:$0xff]  ;;  %v19833_v29 = vld [vmem:[#allocation125_spill] sm:$0xff]  ;;  %vm19852_vm15 = vmmov %vm19824_vm2 }
 0xbda   :  { %19820 = vst [vmem:[#allocation85_spill] sm:$0xff] %v16811_v4  ;;  %19823 = vst [vmem:[#allocation184_spill] sm:$0xff] %v16819_v57  ;;  %v19826_v17 = vrot.slane %v16674_v61, 2  ;;  %v16845_v39 = vmul.f32 %v16197_v20, %v8862_v1  ;;  %v19172_v21 = vrot.slane %v16805_v23, 4  ;;  %v7951_v3 = vrot.slane %v7924_v55, 3 }
 0xbdb   :  { %8938 = vrot.lane.b32.xlu0 %v8907_v13, %s12727_s10  ;;  %19825 = vst [vmem:[#allocation185_spill] sm:$0xff] %v16838_v54  ;;  %8942 = vrot.lane.b32.xlu1 %v8913_v47, %s12727_s10  ;;  %v8031_v63 = vmul.f32 %v16742_v27, %v16513_v50  ;;  %v8874_v19 = vmul.f32 %v16202_v6, %v19817_v46  ;;  %v8054_v59 = vrot.slane %v8030_v7, 4  ;;  %v19977_v54 = vld [vmem:[#allocation82_spill] sm:$0xff] }
 0xbdc   :  { %v7846_v49 = vsel %vm19827_vm0, %v7844_v5, %v19826_v17  ;;  %v16856_v61 = vmul.f32 %v16206_v36, %v19829_v15  ;;  %v7871_v14 = vadd.f32 %v7843_v26, %v7765_v44  ;;  %v7950_v20 = vsel %vm7947_vm10, %v7948_v32, %v7949_v28  ;;  %v19835_v32 = vld [vmem:[#allocation126_spill] sm:$0xff]  ;;  %vm19863_vm0 = vmmov %vm19824_vm2 }
 0xbdd   :  { %v16850_v42 = vpop.permute.xlu0 %10338  ;;  %v16861_v10 = vpop.permute.xlu1 %10368  ;;  %v16865_v50 = vmul.f32 %v16824_v37, %v16518_v52  ;;  %v16869_v27 = vrot.slane %v16828_v9, %v19760_v40  ;;  %v8914_v6 = vsel %vm19831_vm13, %v8912_v16, %v8913_v47  ;;  %v16876_v36 = vadd.f32 %v8062_v12, %v16734_v56 }
 0xbde   :  { %19828 = vst [vmem:[#allocation186_spill] sm:$0xff] %v16850_v42  ;;  %19830 = vst [vmem:[#allocation88_spill] sm:$0xff] %v16861_v10  ;;  %v7872_v41 = vadd.f32 %v7846_v49, %v7766_v34  ;;  %v7892_v28 = vcombine.high %v16566_v38, %v16566_v38  ;;  %v16882_v46 = vcombine.high %v16693_v18, %v16693_v18  ;;  %v19171_v44 = vrot.slane %v16845_v39, 4  ;;  %v19834_v18 = vld [vmem:[#allocation72_spill] sm:$0xff] }
 0xbdf   :  { %8944 = vrot.lane.b32.xlu0 %v19172_v21, %s12727_s10  ;;  %8934 = vrot.lane.b32.xlu1 %v8914_v6, %s12727_s10  ;;  %v7953_v5 = vsel %vm7947_vm10, %v7951_v3, %v7952_v30  ;;  %v7978_v55 = vadd.f32 %v7950_v20, %v7871_v14  ;;  %v8057_v47 = vrot.slane %v8031_v63, 4  ;;  %v8906_v34 = vrot.slane %v8874_v19, 4  ;;  %v19839_v19 = vld [vmem:[#allocation39_spill] sm:$0xff] }
 0xbe0   :  { %v8877_v38 = vmul.f32 %v19833_v29, %v19814_v25  ;;  %v19173_v26 = vrot.slane %v16856_v61, 4  ;;  %v16896_v16 = vmul.f32 %v19835_v32, %v19834_v18  ;;  %v8865_v30 = vsel %vm215_vm1, %v19837_v35, %v19834_v18 }
 0xbe1   :  { %v16889_v56 = vpop.permute.xlu0 %10344  ;;  %v16898_v7 = vpop.permute.xlu1 %10366  ;;  %v8056_v12 = vsel %vm19838_vm14, %v8054_v59, %v8055_v33  ;;  %v19174_v17 = vrot.slane %v16865_v50, 1  ;;  %v16907_v49 = vmul.f32 %v16869_v27, %v16518_v52  ;;  %v16913_v25 = vrot.slane %v7892_v28, %v19760_v40  ;;  %vm19875_vm14 = vmmov %vm19863_vm0 }
 0xbe2   :  { %19832 = vst [vmem:[#allocation187_spill] sm:$0xff] %v16889_v56  ;;  %19836 = vst [vmem:[#allocation125_spill] sm:$0xff] %v16898_v7  ;;  %v16917_v3 = vrot.slane %v16882_v46, %v19760_v40  ;;  %v16921_v33 = vrot.slane %v16590_v8, %v19761_v58  ;;  %v16925_v63 = vrot.slane %v16590_v8, %v19759_v11  ;;  %v8915_v32 = vrot.slane %v8877_v38, 4  ;;  %v19842_v8 = vld [vmem:[#allocation128_spill] sm:$0xff] }
 0xbe3   :  { %8940 = vrot.lane.b32.xlu0 %v19171_v44, %s12727_s10  ;;  %8954 = vrot.lane.b32.xlu1 %v19173_v26, %s12727_s10  ;;  %v8875_v14 = vmul.f32 %v19839_v19, %v8862_v1  ;;  %v7979_v20 = vadd.f32 %v7953_v5, %v7872_v41  ;;  %v8059_v59 = vsel %vm19840_vm4, %v8057_v47, %v8058_v48  ;;  %v19175_v21 = vrot.slane %v16896_v16, 4  ;;  %v19846_v41 = vld [vmem:[#allocation161_spill] sm:$0xff]  ;;  %v19853_v56 = vld [vmem:[#allocation132_spill] sm:$0xff] }
 0xbe4   :  { %v16936_v6 = vrot.slane %v16828_v9, %v19761_v58  ;;  %v16941_v44 = vmul.f32 %v19842_v8, %v8865_v30  ;;  %v8908_v53 = vsel %vm19844_vm6, %v8906_v34, %v8907_v13  ;;  %v8882_v48 = vmul.f32 %v16243_v60, %v19829_v15  ;;  %v19847_v13 = vld [vmem:[#allocation169_spill] sm:$0xff]  ;;  %vm19883_vm6 = vmmov %vm19863_vm0 }
 0xbe5   :  { %v16938_v29 = vpop.permute.xlu0 %10340  ;;  %v16944_v26 = vpop.permute.xlu1 %10354  ;;  %v16951_v1 = vadd.f32 %v8056_v12, %v7978_v55  ;;  %v7774_v5 = vadd.f32 %v19174_v17, %v19846_v41  ;;  %v16960_v38 = vmul.f32 %v16913_v25, %v16518_v52  ;;  %v16964_v22 = vmul.f32 %v16917_v3, %v16518_v52  ;;  %v19848_v55 = vld [vmem:[#allocation170_spill] sm:$0xff] }
 0xbe6   :  { %19841 = vst [vmem:[#allocation72_spill] sm:$0xff] %v16938_v29  ;;  %19843 = vst [vmem:[#allocation126_spill] sm:$0xff] %v16944_v26  ;;  %v16968_v60 = vmul.f32 %v16921_v33, %v19847_v13  ;;  %v16972_v34 = vmul.f32 %v16925_v63, %v19848_v55  ;;  %v7810_v12 = vrot.slane %v16828_v9, %v19759_v11  ;;  %v8909_v41 = vrot.slane %v8875_v14, 4 }
 0xbe7   :  { %19845 = vst [vmem:[#allocation71_spill] sm:$0xff] %v16951_v1  ;;  %8930 = vrot.lane.b32.xlu0 %v8908_v53, %s12727_s10  ;;  %8960 = vrot.lane.b32.xlu1 %v19175_v21, %s12727_s10  ;;  %v16981_v19 = vmul.f32 %v16936_v6, %v19847_v13  ;;  %v16984_v52 = vrot.slane %v7892_v28, %v19761_v58  ;;  %v19851_v9 = vrot.slane %v16805_v23, 4  ;;  %v8918_v57 = vrot.slane %v8882_v48, 4  ;;  %v17443_v1 = vld [vmem:[#allocation2 + $0x58] sm:$0xff] }
 0xbe8   :  { %v7916_v8 = vrot.slane %v7892_v28, %v19759_v11  ;;  %v8864_v17 = vsel %vm215_vm1, %v19829_v15, %v19837_v35  ;;  %v8885_v43 = vmul.f32 %v19853_v56, %v19834_v18  ;;  %v17000_v28 = vadd.f32 %v8059_v59, %v7979_v20  ;;  %v19860_v35 = vld [vmem:[#allocation135_spill] sm:$0xff] }
 0xbe9   :  { %v16987_v53 = vpop.permute.xlu0 %10364  ;;  %v16993_v47 = vpop.permute.xlu1 %10360  ;;  %v8917_v26 = vsel %vm19852_vm15, %v8915_v32, %v19851_v9  ;;  %v19855_v14 = vrot.slane %v16907_v49, 2  ;;  %v17010_v23 = vrot.slane %v16882_v46, %v19761_v58  ;;  %v19856_v56 = vrot.slane %v16941_v44, 4 }
 0xbea   :  { %19849 = vst [vmem:[#allocation39_spill] sm:$0xff] %v16987_v53  ;;  %19850 = vst [vmem:[#allocation128_spill] sm:$0xff] %v16993_v47  ;;  %v8887_v18 = vmul.f32 %v16263_v51, %v8864_v17  ;;  %v17022_v59 = vmul.f32 %v16984_v52, %v19847_v13  ;;  %v8884_v48 = vmul.f32 %v16268_v62, %v8865_v30  ;;  %v19859_v51 = vrot.slane %v16845_v39, 4  ;;  %v19865_v39 = vld [vmem:[#allocation171_spill] sm:$0xff] }
 0xbeb   :  { %19854 = vst [vmem:[#allocation161_spill] sm:$0xff] %v17000_v28  ;;  %v7880_v53 = vadd.f32 %v19855_v14, %v7774_v5  ;;  %8936 = vrot.lane.b32.xlu0 %v8917_v26, %s12727_s10  ;;  %8958 = vrot.lane.b32.xlu1 %v19856_v56, %s12727_s10  ;;  %v17018_v26 = vmul.f32 %v7810_v12, %v19848_v55  ;;  %v8927_v21 = vrot.slane %v8885_v43, 4  ;;  %v19862_v62 = vrot.slane %v16856_v61, 4 }
 0xbec   :  { %v17029_v9 = vmul.f32 %v7916_v8, %v19848_v55  ;;  %v8911_v56 = vsel %vm19824_vm2, %v8909_v41, %v19859_v51  ;;  %v8883_v20 = vmul.f32 %v19860_v35, %v8864_v17  ;;  %v19864_v5 = vrot.slane %v16960_v38, 3  ;;  %vm19887_vm2 = vmmov %vm19863_vm0 }
 0xbed   :  { %v17024_v32 = vpop.permute.xlu0 %10358  ;;  %v17031_v14 = vpop.permute.xlu1 %10356  ;;  %v8920_v30 = vsel %vm19863_vm0, %v8918_v57, %v19862_v62  ;;  %v19866_v41 = vrot.slane %v16968_v60, 1  ;;  %v8023_v43 = vrot.slane %v16882_v46, %v19759_v11  ;;  %v17055_v17 = vmul.f32 %v17010_v23, %v19847_v13 }
 0xbee   :  { %19857 = vst [vmem:[#allocation169_spill] sm:$0xff] %v17024_v32  ;;  %19858 = vst [vmem:[#allocation170_spill] sm:$0xff] %v17031_v14  ;;  %v17040_v15 = vsel %vm215_vm1, %v17031_v14, %v17024_v32  ;;  %v7987_v47 = vadd.f32 %v19864_v5, %v7880_v53  ;;  %v8922_v35 = vrot.slane %v8887_v18, 4  ;;  %v7857_v61 = vrot.slane %v17018_v26, 2  ;;  %v19871_v32 = vld [vmem:[#allocation77_spill] sm:$0xff] }
 0xbef   :  { %19861 = vst [vmem:[#allocation132_spill] sm:$0xff] %v17040_v15  ;;  %8932 = vrot.lane.b32.xlu0 %v8911_v56, %s12727_s10  ;;  %v7775_v51 = vadd.f32 %v19866_v41, %v19865_v39  ;;  %8946 = vrot.lane.b32.xlu1 %v8920_v30, %s12727_s10  ;;  %v19867_v56 = vld [vmem:[#allocation173_spill] sm:$0xff]  ;;  %v8924_v62 = vrot.slane %v8884_v48, 4  ;;  %v19868_v39 = vld [vmem:[#allocation172_spill] sm:$0xff]  ;;  %v19869_v41 = vrot.slane %v16972_v34, 1  ;;  %v19870_v15 = vrot.slane %v16981_v19, 2 }
 0xbf0   :  { %v7719_v53 = vmul.f32 %v16925_v63, %v19867_v56  ;;  %v7964_v14 = vrot.slane %v17029_v9, 3  ;;  %v8921_v18 = vrot.slane %v8883_v20, 4  ;;  %v19872_v26 = vld [vmem:[#allocation69_spill] sm:$0xff]  ;;  %vm19873_vm13 = vcmask 523264  }
 0xbf1   :  { %v8757_v5 = vpop.permute.xlu0 %8756  ;;  %v7776_v46 = vadd.f32 %v19869_v41, %v19868_v39  ;;  %v7881_v13 = vadd.f32 %v19870_v15, %v7775_v51  ;;  %v8761_v30 = vpop.permute.xlu1 %8760  ;;  %v9749_v57 = vsel %vm19873_vm13, %v19872_v26, %v19871_v32  ;;  %v7825_v42 = vmul.f32 %v7810_v12, %v19867_v56  ;;  %v12701_v12 = vld [vmem:[#allocation2 + $0x20] sm:$0xff]  ;;  %v19878_v51 = vld [vmem:[#allocation73_spill] sm:$0xff] }
 0xbf2   :  { %v19874_v63 = vrot.slane %v16896_v16, 4  ;;  %v19876_v39 = vrot.slane %v16964_v22, 4  ;;  %v17081_v15 = vmul.f32 %v8023_v43, %v19848_v55  ;;  %v7931_v9 = vmul.f32 %v7916_v8, %v19867_v56 }
 0xbf3   :  { %8956 = vrot.lane.b32.xlu0 %v8922_v35, %s12727_s10  ;;  %v17087_v29 = vmul.f32 %v12701_v12, %v19878_v51  ;;  %v7882_v16 = vadd.f32 %v7857_v61, %v7776_v46  ;;  %v7750_v7 = vrot.slane %v7719_v53, 1  ;;  %v8038_v20 = vmul.f32 %v8023_v43, %v19867_v56 }
 0xbf4   :  { %v8929_v48 = vsel %vm19875_vm14, %v8927_v21, %v19874_v63  ;;  %v17078_v41 = vadd.f32 %v19876_v39, %v7987_v47  ;;  %v19879_v21 = vrot.slane %v17022_v59, 3  ;;  %v17091_v39 = vld [vmem:[#allocation2 + $0x30] sm:$0xff]  ;;  %vm19880_vm4 = vcmask 785408  }
 0xbf5   :  { %8952 = vrot.lane.b32.xlu1 %v8929_v48, %s12727_s10  ;;  %v8763_v47 = vpop.permute.xlu0 %8762  ;;  %v17094_v55 = vmul.f32 %v17091_v39, %v9749_v57  ;;  %v17100_v48 = vpop.permute.xlu1 %8752  ;;  %v19882_v10 = vrot.slane %v16941_v44, 4  ;;  %vm19886_vm15 = vmmov %vm19880_vm4  ;;  %v7856_v4 = vrot.slane %v7825_v42, 2  ;;  %v8923_v43 = vsel %vm19887_vm2, %v8921_v18, %v8922_v35 }
 0xbf6   :  { %19877 = vst [vmem:[#allocation135_spill] sm:$0xff] %v17078_v41  ;;  %v7988_v63 = vadd.f32 %v19879_v21, %v7881_v13  ;;  %v17098_v8 = vsel %vm19880_vm4, %v8761_v30, %v8763_v47  ;;  %v19885_v13 = vld [vmem:[#allocation74_spill] sm:$0xff]  ;;  %v7989_v21 = vadd.f32 %v7964_v14, %v7882_v16  ;;  %v8070_v56 = vrot.slane %v17081_v15, 4  ;;  %vm19893_vm13 = vmmov %vm19880_vm4 }
 0xbf7   :  { %19881 = vst [vmem:[#allocation171_spill] sm:$0xff] %v17098_v8  ;;  %v8926_v46 = vsel %vm19883_vm6, %v8924_v62, %v19882_v10  ;;  %v17108_v53 = vsel %vm19886_vm15, %v19885_v13, %v19884_v31  ;;  %v19888_v47 = vrot.slane %v17055_v17, 4  ;;  %v7963_v44 = vrot.slane %v7931_v9, 3  ;;  %v19890_v10 = vld [vmem:[#allocation52_spill] sm:$0xff]  ;;  %v17123_v16 = vld [vmem:[#allocation2 + $0x38] sm:$0xff]  ;;  %vm19895_vm14 = vmmov %vm19880_vm4 }
 0xbf8   :  { %8950 = vrot.lane.b32.xlu0 %v8926_v46, %s12727_s10  ;;  %v7717_v62 = vmul.f32 %v16824_v37, %v19890_v10  ;;  %v17127_v35 = vmul.f32 %v17123_v16, %v19871_v32  ;;  %v19891_v18 = vrot.slane %v16972_v34, 1  ;;  %vm19892_vm0 = vcmask 1046528   ;;  %v17147_v34 = vld [vmem:[#allocation2 + $0x10] sm:$0xff]  ;;  %vm19905_vm15 = vmmov %vm19887_vm2 }
 0xbf9   :  { %v17115_v24 = vadd.f32 %v19888_v47, %v7988_v63  ;;  %8948 = vrot.lane.b32.xlu1 %v8923_v43, %s12727_s10  ;;  %v7718_v9 = vmul.f32 %v16921_v33, %v17117_v0  ;;  %v8759_v63 = vpop.permute.xlu0 %8758  ;;  %v9799_v37 = vrot.slane %v17094_v55, 4  ;;  %v17137_v46 = vmul.f32 %v17091_v39, %v17108_v53  ;;  %v17145_v42 = vpop.permute.xlu1 %8772  ;;  %vm19907_vm2 = vmmov %vm19892_vm0 }
 0xbfa   :  { %v7752_v15 = vsel %vm19892_vm0, %v7750_v7, %v19891_v18  ;;  %v17140_v43 = vsel %vm19893_vm13, %v8757_v5, %v8759_v63  ;;  %v17143_v47 = vsel %vm19895_vm14, %v8759_v63, %v8761_v30  ;;  %v9762_v7 = vmul.f32 %v17147_v34, %v9749_v57  ;;  %v19899_v5 = vld [vmem:[#allocation47_spill] sm:$0xff]  ;;  %v19900_v30 = vld [vmem:[#allocation162_spill] sm:$0xff] }
 0xbfb   :  { %19889 = vst [vmem:[#allocation173_spill] sm:$0xff] %v17115_v24  ;;  %19894 = vst [vmem:[#allocation172_spill] sm:$0xff] %v17140_v43  ;;  %vm19897_vm4 = vcmask 1045504   ;;  %v8069_v18 = vrot.slane %v8038_v20, 4  ;;  %v7823_v55 = vmul.f32 %v16869_v27, %v19890_v10  ;;  %v19898_v8 = vrot.slane %v17087_v29, 4 }
 0xbfc   :  { %19896 = vst [vmem:[#allocation77_spill] sm:$0xff] %v17143_v47  ;;  %v7858_v33 = vsel %vm19897_vm4, %v7856_v4, %v7857_v61  ;;  %v7773_v43 = vadd.f32 %v7752_v15, %v19899_v5  ;;  %v7666_v63 = vmul.f32 %v19900_v30, %v17117_v0  ;;  %v7744_v47 = vrot.slane %v7717_v62, 1  ;;  %v19901_v61 = vld [vmem:[#allocation79_spill] sm:$0xff]  ;;  %vm19912_vm14 = vmmov %vm19897_vm4 }
 0xbfd   :  { %9824 = vrot.lane.b32.xlu0 %v19898_v8, %s12726_s2  ;;  %v7824_v24 = vmul.f32 %v16936_v6, %v17117_v0  ;;  %9828 = vrot.lane.b32.xlu1 %v9799_v37, %s12726_s2  ;;  %v17164_v57 = vmul.f32 %v12701_v12, %v19901_v61  ;;  %v7965_v27 = vsel %vm7947_vm10, %v7963_v44, %v7964_v14  ;;  %v7747_v20 = vrot.slane %v7718_v9, 1  ;;  %v8749_v8 = vpop.permute.xlu0 %8748  ;;  %v8779_v30 = vpop.permute.xlu1 %8778  ;;  %vm19913_vm4 = vmmov %vm19893_vm13 }
 0xbfe   :  { %vm19902_vm6 = vcmask 523264   ;;  %v19184_v62 = vrot.slane %v17137_v46, 4  ;;  %v7879_v5 = vadd.f32 %v7858_v33, %v7773_v43  ;;  %v7929_v6 = vmul.f32 %v16913_v25, %v19890_v10 }
 0xbff   :  { %v17170_v15 = vsel %vm19902_vm6, %v19878_v51, %v19872_v26  ;;  %v9798_v4 = vrot.slane %v9762_v7, 4  ;;  %v17175_v41 = vadd.f32 %v8070_v56, %v7989_v21  ;;  %v7850_v12 = vrot.slane %v7823_v55, 2  ;;  %v17189_v21 = vld [vmem:[#allocation2] sm:$0xff]  ;;  %v17193_v7 = vld [vmem:[#allocation2 + $0x28] sm:$0xff]  ;;  %vm19916_vm6 = vmmov %vm19905_vm15 }
 0xc00   :  { %v7930_v14 = vmul.f32 %v16984_v52, %v17117_v0  ;;  %v19904_v44 = vrot.slane %v17127_v35, 4  ;;  %v7986_v26 = vadd.f32 %v7965_v27, %v7879_v5  ;;  %v8071_v9 = vsel %vm19905_vm15, %v8069_v18, %v8070_v56  ;;  %v17203_v18 = vld [vmem:[#allocation2 + $0x60] sm:$0xff]  ;;  %vm19920_vm15 = vmmov %vm19912_vm14 }
 0xc01   :  { %19903 = vst [vmem:[#allocation69_spill] sm:$0xff] %v17175_v41  ;;  %v19906_v43 = vrot.slane %v16865_v50, 1  ;;  %v7853_v25 = vrot.slane %v7824_v24, 2  ;;  %10714 = vrot.lane.b32.xlu1 %v19184_v62, %s12724_s12  ;;  %v9760_v52 = vmul.f32 %v17189_v21, %v19878_v51  ;;  %v17197_v55 = vmul.f32 %v17193_v7, %v17170_v15  ;;  %v19909_v27 = vld [vmem:[#allocation75_spill] sm:$0xff]  ;;  %v8777_v62 = vpop.permute.xlu1 %8776 }
 0xc02   :  { %9830 = vrot.lane.b32.xlu0 %v19904_v44, %s12726_s2  ;;  %v19908_v56 = vrot.slane %v16968_v60, 1  ;;  %v17207_v5 = vmul.f32 %v17203_v18, %v19909_v27  ;;  %v7957_v51 = vrot.slane %v7929_v6, 3  ;;  %v8036_v44 = vmul.f32 %v16917_v3, %v19890_v10  ;;  %v19918_v10 = vld [vmem:[#allocation164_spill] sm:$0xff] }
 0xc03   :  { %v7746_v33 = vsel %vm19907_vm2, %v7744_v47, %v19906_v43  ;;  %v8755_v47 = vpop.permute.xlu0 %8754  ;;  %v19911_v60 = vrot.slane %v16907_v49, 2  ;;  %v17219_v50 = vsel %vm19913_vm4, %v8777_v62, %v8779_v30  ;;  %v19915_v41 = vrot.slane %v17164_v57, 4  ;;  %vm19922_vm2 = vmmov %vm19913_vm4 }
 0xc04   :  { %v7749_v24 = vsel %vm19892_vm0, %v7747_v20, %v19908_v56  ;;  %v17213_v43 = vsel %vm19893_vm13, %v17100_v48, %v8755_v47  ;;  %v7960_v56 = vrot.slane %v7930_v14, 3  ;;  %19914 = vst [vmem:[#allocation78_spill] sm:$0xff] %v17219_v50  ;;  %v9800_v6 = vsel %vm19916_vm6, %v9798_v4, %v9799_v37  ;;  %v17232_v14 = vld [vmem:[#allocation2 + $0x18] sm:$0xff]  ;;  %vm19924_vm0 = vmmov %vm19922_vm2 }
 0xc05   :  { %19910 = vst [vmem:[#allocation73_spill] sm:$0xff] %v17213_v43  ;;  %v7852_v20 = vsel %vm19912_vm14, %v7850_v12, %v19911_v60  ;;  %v17225_v3 = vadd.f32 %v8071_v9, %v7986_v26  ;;  %v7771_v47 = vadd.f32 %v7746_v33, %v19918_v10  ;;  %v7772_v43 = vadd.f32 %v7749_v24, %v7666_v63  ;;  %v17239_v9 = vld.sshfl [vmem:[#allocation3 + $0x36] sm:$0x77 pattern:$0x75316420]  ;;  %vm19930_vm13 = vmmov %vm19916_vm6 }
 0xc06   :  { %10710 = vrot.lane.b32.xlu0 %v19915_v41, %s12724_s12  ;;  %v8037_v49 = vmul.f32 %v17010_v23, %v17117_v0  ;;  %9820 = vrot.lane.b32.xlu1 %v9800_v6, %s12726_s2  ;;  %v9792_v12 = vrot.slane %v9760_v52, 4  ;;  %v19185_v30 = vrot.slane %v17197_v55, 4  ;;  %v9763_v41 = vmul.f32 %v17232_v14, %v19871_v32  ;;  %v17242_v0 = vld [vmem:[#allocation2 + $0x78] sm:$0xff]  ;;  %v19921_v23 = vld [vmem:[#allocation80_spill] sm:$0xff]  ;;  %vm19931_vm14 = vmmov %vm19924_vm0 }
 0xc07   :  { %19917 = vst [vmem:[#allocation74_spill] sm:$0xff] %v17225_v3  ;;  %v19919_v37 = vrot.slane %v16981_v19, 2  ;;  %v8751_v26 = vpop.permute.xlu0 %8750  ;;  %v17246_v33 = vmul.f32 %v17242_v0, %v19921_v23  ;;  %v8765_v19 = vpop.permute.xlu1 %8764  ;;  %v10648_v24 = vmul.f32 %v17147_v34, %v17108_v53  ;;  %v19926_v60 = vrot.slane %v16960_v38, 3  ;;  %vm19932_vm4 = vmmov %vm19924_vm0 }
 0xc08   :  { %v17249_v52 = vsel %vm19922_vm2, %v8749_v8, %v8751_v26  ;;  %v17253_v32 = vsel %vm19924_vm0, %v8751_v26, %v17100_v48  ;;  %v19927_v10 = vrot.slane %v17022_v59, 3  ;;  %v8063_v8 = vrot.slane %v8036_v44, 4  ;;  %vm19934_vm6 = vmmov %vm19924_vm0 }
 0xc09   :  { %v7855_v4 = vsel %vm19920_vm15, %v7853_v25, %v19919_v37  ;;  %19923 = vst [vmem:[#allocation52_spill] sm:$0xff] %v17249_v52  ;;  %19925 = vst [vmem:[#allocation47_spill] sm:$0xff] %v17253_v32  ;;  %v17255_v25 = vld.sshfl [vmem:[#allocation3 + $0x54] sm:$0x77 pattern:$0x75316420]  ;;  %v7959_v6 = vsel %vm7947_vm10, %v7957_v51, %v19926_v60  ;;  %v7877_v48 = vadd.f32 %v7852_v20, %v7771_v47 }
 0xc0a   :  { %v7962_v37 = vsel %vm7947_vm10, %v7960_v56, %v19927_v10  ;;  %9826 = vrot.lane.b32.xlu0 %v19185_v30, %s12726_s2  ;;  %v7878_v26 = vadd.f32 %v7855_v4, %v7772_v43  ;;  %v8066_v63 = vrot.slane %v8037_v49, 4  ;;  %v19928_v32 = vrot.slane %v17207_v5, 4  ;;  %vm19937_vm15 = vmmov %vm19930_vm13 }
 0xc0b   :  { %v17273_v38 = vrot.slane %v17239_v9, %v19760_v40  ;;  %v9801_v53 = vrot.slane %v9763_v41, 4  ;;  %v8775_v59 = vpop.permute.xlu0 %8774  ;;  %v19929_v51 = vrot.slane %v17087_v29, 4  ;;  %v17280_v56 = vrot.slane %v17239_v9, %v19761_v58  ;;  %v17299_v41 = vld.sshfl [vmem:[#allocation3 + $0x72] sm:$0x77 pattern:$0x75316420]  ;;  %vm19941_vm2 = vmmov %vm19930_vm13 }
 0xc0c   :  { %9840 = vrot.lane.b32.xlu1 %v19928_v32, %s12726_s2  ;;  %v17284_v43 = vrot.slane %v17255_v25, %v19760_v40  ;;  %v17289_v20 = vsel %vm19931_vm14, %v19901_v61, %v19885_v13  ;;  %v19186_v47 = vrot.slane %v17246_v33, 4  ;;  %v17294_v29 = vsel %vm19932_vm4, %v17145_v42, %v8775_v59  ;;  %v19938_v13 = vld [vmem:[#allocation166_spill] sm:$0xff]  ;;  %vm19951_vm4 = vmmov %vm19924_vm0 }
 0xc0d   :  { %v9794_v44 = vsel %vm19930_vm13, %v9792_v12, %v19929_v51  ;;  %19933 = vst [vmem:[#allocation162_spill] sm:$0xff] %v17294_v29  ;;  %v17297_v49 = vsel %vm19934_vm6, %v8775_v59, %v8777_v62  ;;  %v8771_v12 = vpop.permute.xlu1 %8770  ;;  %v10684_v4 = vrot.slane %v10648_v24, 4  ;;  %v7984_v32 = vadd.f32 %v7959_v6, %v7877_v48  ;;  %v19945_v48 = vld [vmem:[#allocation76_spill] sm:$0xff]  ;;  %vm19948_vm13 = vmmov %vm19941_vm2 }
 0xc0e   :  { %19935 = vst [vmem:[#allocation79_spill] sm:$0xff] %v17297_v49  ;;  %v19936_v60 = vrot.slane %v16964_v22, 4  ;;  %9816 = vrot.lane.b32.xlu0 %v9794_v44, %s12726_s2  ;;  %v17307_v51 = vmul.f32 %v17193_v7, %v19938_v13  ;;  %v7985_v42 = vadd.f32 %v7962_v37, %v7878_v26  ;;  %v19940_v30 = vrot.slane %v17055_v17, 4  ;;  %vm19953_vm6 = vmmov %vm19924_vm0 }
 0xc0f   :  { %v17317_v22 = vmul.f32 %v17193_v7, %v17273_v38  ;;  %v17321_v24 = vrot.slane %v17255_v25, %v19761_v58  ;;  %v17325_v6 = vmul.f32 %v17193_v7, %v17289_v20  ;;  %v8769_v37 = vpop.permute.xlu0 %8768  ;;  %v17329_v17 = vmul.f32 %v17091_v39, %v17280_v56 }
 0xc10   :  { %v8065_v10 = vsel %vm19937_vm15, %v8063_v8, %v19936_v60  ;;  %19939 = vst [vmem:[#allocation75_spill] sm:$0xff] %v17307_v51  ;;  %v8068_v62 = vsel %vm19941_vm2, %v8066_v63, %v19940_v30  ;;  %9846 = vrot.lane.b32.xlu1 %v19186_v47, %s12726_s2  ;;  %v17333_v30 = vmul.f32 %v17193_v7, %v17284_v43  ;;  %v19947_v60 = vrot.slane %v17127_v35, 4  ;;  %v19949_v51 = vld [vmem:[#allocation81_spill] sm:$0xff]  ;;  %vm19956_vm15 = vmmov %vm19941_vm2 }
 0xc11   :  { %19942 = vst [vmem:[#allocation164_spill] sm:$0xff] %v17317_v22  ;;  %19943 = vst [vmem:[#allocation80_spill] sm:$0xff] %v17329_v17  ;;  %v11059_v63 = vrot.slane %v17299_v41, %v19760_v40  ;;  %v10646_v8 = vmul.f32 %v17189_v21, %v19901_v61  ;;  %v17341_v26 = vmul.f32 %v17203_v18, %v19945_v48  ;;  %v8767_v44 = vpop.permute.xlu1 %8766  ;;  %vm19950_vm14 = vcmask 523264  }
 0xc12   :  { %19944 = vst [vmem:[#allocation166_spill] sm:$0xff] %v17333_v30  ;;  %v17344_v59 = vsel %vm19924_vm0, %v8769_v37, %v8771_v12  ;;  %v9803_v47 = vsel %vm19948_vm13, %v9801_v53, %v19947_v60  ;;  %v17352_v49 = vsel %vm19950_vm14, %v19949_v51, %v19921_v23  ;;  %v17355_v29 = vsel %vm19951_vm4, %v8765_v19, %v8767_v44  ;;  %v19958_v53 = vld [vmem:[#allocation168_spill] sm:$0xff]  ;;  %vm19966_vm2 = vmmov %vm19950_vm14 }
 0xc13   :  { %19946 = vst [vmem:[#allocation76_spill] sm:$0xff] %v17344_v59  ;;  %19952 = vst [vmem:[#allocation81_spill] sm:$0xff] %v17355_v29  ;;  %v17358_v61 = vsel %vm19953_vm6, %v8767_v44, %v8769_v37  ;;  %9822 = vrot.lane.b32.xlu0 %v9803_v47, %s12726_s2  ;;  %v19955_v21 = vrot.slane %v17137_v46, 4  ;;  %v17364_v35 = vadd.f32 %v8065_v10, %v7984_v32  ;;  %v17381_v46 = vld [vmem:[#allocation2 + $0x8] sm:$0xff]  ;;  %v19187_v32 = vrot.slane %v17325_v6, 4  ;;  %v9643_v44 = vpop.permute.xlu0 %9642 }
 0xc14   :  { %19954 = vst [vmem:[#allocation188_spill] sm:$0xff] %v17358_v61  ;;  %v17369_v12 = vmul.f32 %v17091_v39, %v19958_v53  ;;  %v17373_v19 = vmul.f32 %v17091_v39, %v17321_v24  ;;  %v17377_v37 = vrot.slane %v17299_v41, %v19761_v58  ;;  %v17379_v47 = vld.sshfl [vmem:[#allocation3 + $0x90] sm:$0x77 pattern:$0x75316420]  ;;  %v17386_v10 = vadd.f32 %v8068_v62, %v7985_v42  ;;  %vm19969_vm0 = vmmov %vm19948_vm13 }
 0xc15   :  { %v10686_v18 = vsel %vm19956_vm15, %v10684_v4, %v19955_v21  ;;  %19957 = vst [vmem:[#allocation189_spill] sm:$0xff] %v17364_v35  ;;  %v9761_v4 = vmul.f32 %v17381_v46, %v17170_v15  ;;  %v10678_v21 = vrot.slane %v10646_v8, 4  ;;  %v19188_v61 = vrot.slane %v17341_v26, 4  ;;  %v9647_v29 = vpop.permute.xlu1 %9646  ;;  %v17397_v15 = vld [vmem:[#allocation2 + $0x40] sm:$0xff]  ;;  %vm19973_vm13 = vmmov %vm19969_vm0 }
 0xc16   :  { %10706 = vrot.lane.b32.xlu1 %v10686_v18, %s12724_s12  ;;  %19959 = vst [vmem:[#allocation168_spill] sm:$0xff] %v17369_v12  ;;  %19960 = vst [vmem:[#allocation190_spill] sm:$0xff] %v17373_v19  ;;  %v17389_v18 = vld [vmem:[#allocation2 + $0x70] sm:$0xff]  ;;  %v9768_v42 = vmul.f32 %v17397_v15, %v19909_v27  ;;  %v17406_v8 = vmul.f32 %v17193_v7, %v11059_v63  ;;  %v11165_v60 = vrot.slane %v17379_v47, %v19760_v40  ;;  %vm19979_vm15 = vcmask 785408  }
 0xc17   :  { %19961 = vst [vmem:[#allocation191_spill] sm:$0xff] %v17386_v10  ;;  %v17393_v12 = vmul.f32 %v17389_v18, %v17352_v49  ;;  %10712 = vrot.lane.b32.xlu0 %v19187_v32, %s12724_s12  ;;  %v17416_v52 = vmul.f32 %v17091_v39, %v17377_v37  ;;  %v11169_v32 = vrot.slane %v17379_v47, %v19761_v58  ;;  %v9795_v50 = vrot.slane %v9761_v4, 4  ;;  %v9649_v10 = vpop.permute.xlu0 %9648  ;;  %vm19974_vm14 = vmmov %vm19966_vm2 }
 0xc18   :  { %19962 = vst [vmem:[#allocation192_spill] sm:$0xff] %v17406_v8  ;;  %v17422_v62 = vmul.f32 %v17381_v46, %v19938_v13  ;;  %v17426_v35 = vmul.f32 %v17147_v34, %v19958_v53  ;;  %v10875_v59 = vmul.f32 %v17147_v34, %v17280_v56  ;;  %v10647_v3 = vmul.f32 %v17381_v46, %v17289_v20  ;;  %vm19975_vm4 = vmmov %vm19966_vm2 }
 0xc19   :  { %19963 = vst [vmem:[#allocation193_spill] sm:$0xff] %v17416_v52  ;;  %v19189_v28 = vrot.slane %v17393_v12, 4  ;;  %v17436_v13 = vsel %vm19966_vm2, %v9647_v29, %v9649_v10  ;;  %v17438_v4 = vpop.permute.xlu1 %9638  ;;  %v10980_v20 = vmul.f32 %v17381_v46, %v17284_v43  ;;  %v17458_v10 = vmul.f32 %v17091_v39, %v11169_v32  ;;  %vm19976_vm6 = vmmov %vm19966_vm2 }
 0xc1a   :  { %10726 = vrot.lane.b32.xlu1 %v19188_v61, %s12724_s12  ;;  %19964 = vst [vmem:[#allocation194_spill] sm:$0xff] %v17422_v62  ;;  %19965 = vst [vmem:[#allocation195_spill] sm:$0xff] %v17426_v35  ;;  %v10874_v61 = vmul.f32 %v17381_v46, %v17273_v38  ;;  %v19968_v62 = vrot.slane %v17164_v57, 4  ;;  %v9804_v35 = vrot.slane %v9768_v42, 4  ;;  %v9771_v38 = vmul.f32 %v17443_v1, %v19921_v23 }
 0xc1b   :  { %19967 = vst [vmem:[#allocation196_spill] sm:$0xff] %v17436_v13  ;;  %v17455_v57 = vmul.f32 %v17193_v7, %v11165_v60  ;;  %19971 = vst [vmem:[#allocation198_spill] sm:$0xff] %v17458_v10  ;;  %v10981_v23 = vmul.f32 %v17147_v34, %v17321_v24  ;;  %v9645_v42 = vpop.permute.xlu0 %9644  ;;  %v10681_v13 = vrot.slane %v10647_v3, 4  ;;  %v9750_v39 = vsel %vm19974_vm14, %v19909_v27, %v19949_v51 }
 0xc1c   :  { %v10680_v53 = vsel %vm19969_vm0, %v10678_v21, %v19968_v62  ;;  %v11086_v21 = vmul.f32 %v17381_v46, %v11059_v63  ;;  %v19972_v62 = vrot.slane %v17197_v55, 4  ;;  %v10898_v56 = vrot.slane %v10874_v61, 1  ;;  %vm19981_vm2 = vmmov %vm19969_vm0 }
 0xc1d   :  { %10702 = vrot.lane.b32.xlu0 %v10680_v53, %s12724_s12  ;;  %19970 = vst [vmem:[#allocation197_spill] sm:$0xff] %v17455_v57  ;;  %v17471_v7 = vsel %vm19975_vm4, %v9643_v44, %v9645_v42  ;;  %v17474_v24 = vsel %vm19976_vm6, %v9645_v42, %v9647_v29  ;;  %v17476_v63 = vpop.permute.xlu1 %9658  ;;  %v9813_v55 = vrot.slane %v9771_v38, 4  ;;  %v19980_v3 = vrot.slane %v17207_v5, 4  ;;  %v17491_v38 = vld [vmem:[#allocation2 + $0x68] sm:$0xff]  ;;  %vm19987_vm14 = vmmov %vm19981_vm2 }
 0xc1e   :  { %9844 = vrot.lane.b32.xlu1 %v19189_v28, %s12726_s2  ;;  %v9797_v43 = vsel %vm19973_vm13, %v9795_v50, %v19972_v62  ;;  %v10901_v28 = vrot.slane %v10875_v59, 1  ;;  %v19978_v50 = vld [vmem:[#allocation86_spill] sm:$0xff]  ;;  %v11004_v51 = vrot.slane %v10980_v20, 2  ;;  %v11007_v59 = vrot.slane %v10981_v23, 2  ;;  %vm19985_vm13 = vmmov %vm19979_vm15 }
 0xc1f   :  { %v17481_v62 = vsel %vm19979_vm15, %v19978_v50, %v19977_v54  ;;  %v9806_v27 = vsel %vm19981_vm2, %v9804_v35, %v19980_v3  ;;  %v11087_v61 = vmul.f32 %v17147_v34, %v17377_v37  ;;  %v11110_v44 = vrot.slane %v11086_v21, 3  ;;  %vm19989_vm4 = vmmov %vm19981_vm2 }
 0xc20   :  { %v17494_v42 = vmul.f32 %v17491_v38, %v9750_v39  ;;  %v19982_v35 = vrot.slane %v17317_v22, 1  ;;  %vm19983_vm0 = vcmask 1046528   ;;  %v11192_v3 = vmul.f32 %v17381_v46, %v11165_v60 }
 0xc21   :  { %9818 = vrot.lane.b32.xlu0 %v9797_v43, %s12726_s2  ;;  %v9635_v43 = vpop.permute.xlu0 %9634  ;;  %v17506_v37 = vsel %vm19985_vm13, %v19945_v48, %v19978_v50  ;;  %v17510_v23 = vmul.f32 %v17389_v18, %v17481_v62  ;;  %v9665_v21 = vpop.permute.xlu1 %9664  ;;  %v11193_v29 = vmul.f32 %v17147_v34, %v11169_v32  ;;  %v19988_v46 = vrot.slane %v17246_v33, 4  ;;  %vm19991_vm6 = vmmov %vm19983_vm0 }
 0xc22   :  { %9832 = vrot.lane.b32.xlu1 %v9806_v27, %s12726_s2  ;;  %v17500_v20 = vsel %vm19983_vm0, %v10898_v56, %v19982_v35  ;;  %v19986_v27 = vrot.slane %v17325_v6, 4  ;;  %v10654_v56 = vmul.f32 %v17397_v15, %v19945_v48  ;;  %v19990_v50 = vrot.slane %v17329_v17, 1 }
 0xc23   :  { %19984 = vst [vmem:[#allocation82_spill] sm:$0xff] %v17500_v20  ;;  %v9815_v60 = vsel %vm19989_vm4, %v9813_v55, %v19988_v46  ;;  %v19993_v6 = vrot.slane %v17333_v30, 2  ;;  %vm19994_vm15 = vcmask 1045504   ;;  %v19996_v34 = vrot.slane %v17373_v19, 2 }
 0xc24   :  { %v10683_v5 = vsel %vm19987_vm14, %v10681_v13, %v19986_v27  ;;  %v17525_v35 = vsel %vm19991_vm6, %v10901_v28, %v19990_v50  ;;  %vm19997_vm2 = vmmov %vm19994_vm15  ;;  %v19999_v33 = vrot.slane %v17406_v8, 3  ;;  %v11113_v15 = vrot.slane %v11087_v61, 3  ;;  %v17543_v28 = vld.sshfl [vmem:[#allocation3 + $0x18] sm:$0x77 pattern:$0x75316420] }
 0xc25   :  { %10704 = vrot.lane.b32.xlu0 %v10683_v5, %s12724_s12  ;;  %19992 = vst [vmem:[#allocation86_spill] sm:$0xff] %v17525_v35  ;;  %v17530_v13 = vsel %vm19994_vm15, %v11004_v51, %v19993_v6  ;;  %v17536_v48 = vsel %vm19997_vm2, %v11007_v59, %v19996_v34  ;;  %v17547_v55 = vcombine.high %v17543_v28, %v17543_v28  ;;  %v9808_v51 = vrot.slane %v17494_v42, 4  ;;  %v9641_v59 = vpop.permute.xlu0 %9640  ;;  %v9663_v50 = vpop.permute.xlu1 %9662  ;;  %v17567_v34 = vld [vmem:[#allocation2 + $0x48] sm:$0xff] }
 0xc26   :  { %19995 = vst [vmem:[#allocation199_spill] sm:$0xff] %v17530_v13  ;;  %9838 = vrot.lane.b32.xlu1 %v9815_v60, %s12726_s2  ;;  %19998 = vst [vmem:[#allocation200_spill] sm:$0xff] %v17536_v48  ;;  %v17541_v32 = vsel %vm7947_vm10, %v11110_v44, %v19999_v33  ;;  %v17552_v5 = vmul.f32 %v17491_v38, %v17506_v37  ;;  %v11216_v27 = vrot.slane %v11192_v3, 4  ;;  %v17558_v44 = vld [vmem:[#allocation2 + $0x50] sm:$0xff]  ;;  %v19190_v60 = vrot.slane %v17510_v23, 4  ;;  %v20012_v48 = vld [vmem:[#allocation66_spill] sm:$0xff] }
 0xc27   :  { %20000 = vst [vmem:[#allocation201_spill] sm:$0xff] %v17541_v32  ;;  %v17556_v46 = vcombine.high %v17239_v9, %v17239_v9  ;;  %20001 = vst [vmem:[#allocation202_spill] sm:$0xff] %v17558_v44  ;;  %v9770_v61 = vmul.f32 %v17558_v44, %v17352_v49  ;;  %vm20002_vm0 = vcmask 523264   ;;  %v11219_v6 = vrot.slane %v11193_v29, 4  ;;  %v20011_v32 = vld [vmem:[#allocation61_spill] sm:$0xff] }
 0xc28   :  { %v17565_v42 = vsel %vm20002_vm0, %v17438_v4, %v9641_v59  ;;  %20004 = vst [vmem:[#allocation204_spill] sm:$0xff] %v17567_v34  ;;  %v9769_v3 = vmul.f32 %v17567_v34, %v9750_v39  ;;  %v10690_v33 = vrot.slane %v10654_v56, 4  ;;  %vm20005_vm13 = vmmov %vm20002_vm0  ;;  %v17576_v49 = vcombine.high %v17255_v25, %v17255_v25 }
 0xc29   :  { %20003 = vst [vmem:[#allocation203_spill] sm:$0xff] %v17565_v42  ;;  %v17571_v53 = vsel %vm20005_vm13, %v9663_v50, %v9665_v21  ;;  %9842 = vrot.lane.b32.xlu0 %v9808_v51, %s12726_s2  ;;  %v20007_v29 = vrot.slane %v17416_v52, 3  ;;  %v17588_v39 = vrot.slane %v17547_v55, %v19760_v40  ;;  %v17592_v21 = vrot.slane %v17547_v55, %v19761_v58  ;;  %vm20014_vm14 = vmmov %vm20002_vm0  ;;  %v9651_v8 = vpop.permute.xlu1 %9650 }
 0xc2a   :  { %20006 = vst [vmem:[#allocation205_spill] sm:$0xff] %v17571_v53  ;;  %10730 = vrot.lane.b32.xlu1 %v19190_v60, %s12724_s12  ;;  %v17596_v56 = vcombine.high %v17299_v41, %v17299_v41  ;;  %v10467_v60 = vmul.f32 %v17232_v14, %v20011_v32  ;;  %v10475_v13 = vmul.f32 %v17443_v1, %v20012_v48  ;;  %v9810_v35 = vrot.slane %v9770_v61, 4  ;;  %vm20016_vm4 = vmmov %vm20002_vm0  ;;  %v20201_v53 = vld [vmem:[#allocation121_spill] sm:$0xff] }
 0xc2b   :  { %v17584_v59 = vsel %vm7947_vm10, %v11113_v15, %v20007_v29  ;;  %20009 = vst [vmem:[#allocation207_spill] sm:$0xff] %v17588_v39  ;;  %20010 = vst [vmem:[#allocation208_spill] sm:$0xff] %v17592_v21  ;;  %v19194_v15 = vrot.slane %v17552_v5, 4  ;;  %v9637_v29 = vpop.permute.xlu0 %9636  ;;  %v17616_v32 = vrot.slane %v17556_v46, %v19761_v58  ;;  %v9807_v48 = vrot.slane %v9769_v3, 4 }
 0xc2c   :  { %20008 = vst [vmem:[#allocation206_spill] sm:$0xff] %v17584_v59  ;;  %v17605_v59 = vrot.slane %v17556_v46, %v19760_v40  ;;  %v17608_v20 = vsel %vm20014_vm14, %v9635_v43, %v9637_v29  ;;  %v17612_v52 = vsel %vm20016_vm4, %v9637_v29, %v17438_v4  ;;  %v20019_v19 = vrot.slane %v17341_v26, 4  ;;  %vm20034_vm13 = vmmov %vm20002_vm0 }
 0xc2d   :  { %20015 = vst [vmem:[#allocation66_spill] sm:$0xff] %v17608_v20  ;;  %20017 = vst [vmem:[#allocation209_spill] sm:$0xff] %v17612_v52  ;;  %10728 = vrot.lane.b32.xlu0 %v19194_v15, %s12724_s12  ;;  %vm20020_vm6 = vcmask 1043456   ;;  %v17626_v43 = vrot.slane %v17576_v49, %v19760_v40  ;;  %v17630_v4 = vrot.slane %v17576_v49, %v19761_v58  ;;  %v20023_v3 = vrot.slane %v17455_v57, 4  ;;  %v20048_v57 = vld [vmem:[#allocation177_spill] sm:$0xff]  ;;  %v20164_v52 = vld [vmem:[#allocation108_spill] sm:$0xff] }
 0xc2e   :  { %20013 = vst [vmem:[#allocation61_spill] sm:$0xff] %v17605_v59  ;;  %20018 = vst [vmem:[#allocation210_spill] sm:$0xff] %v17616_v32  ;;  %v10692_v61 = vsel %vm20020_vm6, %v10690_v33, %v20019_v19  ;;  %v20026_v15 = vrot.slane %v17458_v10, 4  ;;  %v17645_v19 = vrot.slane %v17596_v56, %v19760_v40  ;;  %v17649_v33 = vcombine.high %v17379_v47, %v17379_v47 }
 0xc2f   :  { %20021 = vst [vmem:[#allocation211_spill] sm:$0xff] %v17626_v43  ;;  %20022 = vst [vmem:[#allocation212_spill] sm:$0xff] %v17630_v4  ;;  %10718 = vrot.lane.b32.xlu1 %v10692_v61, %s12724_s12  ;;  %v10505_v30 = vrot.slane %v10467_v60, 3  ;;  %v10517_v61 = vrot.slane %v10475_v13, 3  ;;  %v9661_v17 = vpop.permute.xlu0 %9660  ;;  %v20036_v60 = vrot.slane %v17393_v12, 4  ;;  %v17685_v12 = vmul.f32 %v17389_v18, %v17630_v4 }
 0xc30   :  { %vm20024_vm15 = vmmov %vm20020_vm6  ;;  %20029 = vst [vmem:[#allocation215_spill] sm:$0xff] %v17645_v19  ;;  %v20049_v22 = vrot.slane %v20048_v57, 3  ;;  %v10656_v4 = vmul.f32 %v17558_v44, %v17481_v62  ;;  %v10657_v57 = vmul.f32 %v17443_v1, %v19977_v54  ;;  %v17743_v62 = vrot.slane %v17255_v25, %v19759_v11  ;;  %v20137_v44 = vld [vmem:[#allocation98_spill] sm:$0xff] }
 0xc31   :  { %v17636_v29 = vsel %vm20024_vm15, %v11216_v27, %v20023_v3  ;;  %vm20027_vm2 = vmmov %vm20020_vm6  ;;  %20030 = vst [vmem:[#allocation216_spill] sm:$0xff] %v17649_v33  ;;  %v17653_v27 = vmul.f32 %v17491_v38, %v17588_v39  ;;  %v17657_v3 = vmul.f32 %v17389_v18, %v17592_v21  ;;  %v17751_v1 = vrot.slane %v17379_v47, %v19759_v11 }
 0xc32   :  { %20025 = vst [vmem:[#allocation213_spill] sm:$0xff] %v17636_v29  ;;  %v17641_v26 = vsel %vm20027_vm2, %v11219_v6, %v20026_v15  ;;  %v17661_v6 = vsel %vm20002_vm0, %v17476_v63, %v9661_v17  ;;  %v17664_v15 = vsel %vm20034_vm13, %v9661_v17, %v9663_v50  ;;  %vm20037_vm14 = vmmov %vm20027_vm2  ;;  %v17671_v29 = vmul.f32 %v17491_v38, %v17605_v59 }
 0xc33   :  { %20028 = vst [vmem:[#allocation214_spill] sm:$0xff] %v17641_v26  ;;  %20031 = vst [vmem:[#allocation217_spill] sm:$0xff] %v17653_v27  ;;  %v9657_v26 = vpop.permute.xlu1 %9656  ;;  %v9812_v13 = vsel %vm20037_vm14, %v9810_v35, %v20036_v60  ;;  %v17677_v63 = vmul.f32 %v17389_v18, %v17616_v32  ;;  %v17681_v17 = vmul.f32 %v17491_v38, %v17626_v43  ;;  %v20140_v32 = vld [vmem:[#allocation68_spill] sm:$0xff] }
 0xc34   :  { %20032 = vst [vmem:[#allocation218_spill] sm:$0xff] %v17657_v3  ;;  %20033 = vst [vmem:[#allocation219_spill] sm:$0xff] %v17661_v6  ;;  %9836 = vrot.lane.b32.xlu0 %v9812_v13, %s12726_s2  ;;  %v17690_v35 = vrot.slane %v17596_v56, %v19761_v58  ;;  %v17698_v50 = vrot.slane %v17649_v33, %v19760_v40  ;;  %v10653_v60 = vmul.f32 %v17123_v16, %v19884_v31  ;;  %v20046_v13 = vld [vmem:[#allocation163_spill] sm:$0xff] }
 0xc35   :  { %20035 = vst [vmem:[#allocation220_spill] sm:$0xff] %v17664_v15  ;;  %20038 = vst [vmem:[#allocation221_spill] sm:$0xff] %v17671_v29  ;;  %v20047_v27 = vrot.slane %v20046_v13, 3  ;;  %v17714_v40 = vrot.slane %v17649_v33, %v19761_v58  ;;  %v10661_v43 = vmul.f32 %v17242_v0, %v19977_v54  ;;  %v17747_v54 = vrot.slane %v17299_v41, %v19759_v11  ;;  %v20072_v58 = vld [vmem:[#allocation5_spill] sm:$0xff]  ;;  %v20149_v15 = vld [vmem:[#allocation10_spill] sm:$0xff] }
 0xc36   :  { %vm20039_vm4 = vmmov %vm20027_vm2  ;;  %20040 = vst [vmem:[#allocation222_spill] sm:$0xff] %v17677_v63  ;;  %v17763_v25 = vrot.slane %v17547_v55, %v19759_v11  ;;  %v10696_v41 = vrot.slane %v10656_v4, 4  ;;  %v17767_v47 = vmul.f32 %v17491_v38, %v17698_v50  ;;  %v17793_v4 = vmul.f32 %v17123_v16, %v17751_v1  ;;  %v20150_v6 = vld [vmem:[#allocation99_spill] sm:$0xff]  ;;  %v11438_v63 = vld [vmem:[#allocation4 + $0x158] sm:$0xff] }
 0xc37   :  { %v9809_v3 = vsel %vm20039_vm4, %v9807_v48, %v9808_v51  ;;  %20041 = vst [vmem:[#allocation223_spill] sm:$0xff] %v17681_v17  ;;  %20042 = vst [vmem:[#allocation224_spill] sm:$0xff] %v17685_v12  ;;  %v17694_v51 = vmul.f32 %v17491_v38, %v17645_v19  ;;  %v17702_v48 = vrot.slane %v17543_v28, %v19759_v11  ;;  %v20198_v12 = vld [vmem:[#allocation146_spill] sm:$0xff] }
 0xc38   :  { %9834 = vrot.lane.b32.xlu1 %v9809_v3, %s12726_s2  ;;  %20043 = vst [vmem:[#allocation225_spill] sm:$0xff] %v17690_v35  ;;  %20044 = vst [vmem:[#allocation226_spill] sm:$0xff] %v17698_v50  ;;  %v9655_v3 = vpop.permute.xlu0 %9654  ;;  %v10507_v10 = vsel %vm7947_vm10, %v10505_v30, %v20047_v27  ;;  %v10519_v19 = vsel %vm7947_vm10, %v10517_v61, %v20049_v22  ;;  %v10649_v28 = vmul.f32 %v17232_v14, %v19884_v31  ;;  %v9653_v30 = vpop.permute.xlu1 %9652 }
 0xc39   :  { %20045 = vst [vmem:[#allocation227_spill] sm:$0xff] %v17702_v48  ;;  %20050 = vst [vmem:[#allocation163_spill] sm:$0xff] %v17714_v40  ;;  %v10655_v22 = vmul.f32 %v17567_v34, %v17506_v37  ;;  %10526 = vrot.lane.b32.xlu0 %v10507_v10, %s12724_s12  ;;  %v17739_v14 = vrot.slane %v17239_v9, %v19759_v11  ;;  %v17755_v37 = vmul.f32 %v17389_v18, %v17690_v35  ;;  %v11397_v35 = vld [vmem:[#allocation4 + $0x10] sm:$0xff] }
 0xc3a   :  { %vm20051_vm6 = vmmov %vm20002_vm0  ;;  %20058 = vst [vmem:[#allocation231_spill] sm:$0xff] %v17743_v62  ;;  %v17759_v9 = vmul.f32 %v17123_v16, %v17702_v48  ;;  %v17771_v27 = vrot.slane %v17556_v46, %v19759_v11  ;;  %v17776_v55 = vmul.f32 %v17389_v18, %v17714_v40  ;;  %v17785_v38 = vmul.f32 %v17123_v16, %v17743_v62  ;;  %v20068_v18 = vld [vmem:[#allocation7_spill] sm:$0xff] }
 0xc3b   :  { %v17723_v13 = vsel %vm20051_vm6, %v9655_v3, %v9657_v26  ;;  %vm20053_vm15 = vmmov %vm20002_vm0  ;;  %20057 = vst [vmem:[#allocation230_spill] sm:$0xff] %v17739_v14  ;;  %v10700_v26 = vrot.slane %v10661_v43, 4  ;;  %v17781_v43 = vmul.f32 %v17123_v16, %v17739_v14  ;;  %v17789_v46 = vmul.f32 %v17123_v16, %v17747_v54  ;;  %v20074_v14 = vld [vmem:[#allocation32_spill] sm:$0xff]  ;;  %v20075_v48 = vld [vmem:[#allocation87_spill] sm:$0xff] }
 0xc3c   :  { %20052 = vst [vmem:[#allocation177_spill] sm:$0xff] %v17723_v13  ;;  %v17730_v61 = vsel %vm20053_vm15, %v9651_v8, %v9653_v30  ;;  %vm20055_vm2 = vmmov %vm20002_vm0  ;;  %10542 = vrot.lane.b32.xlu1 %v10519_v19, %s12724_s12  ;;  %v10688_v8 = vrot.slane %v10653_v60, 4  ;;  %v10529_v10 = vpop.permute.xlu0 %10528  ;;  %v10533_v19 = vpop.permute.xlu1 %10532  ;;  %v10687_v60 = vrot.slane %v10649_v28, 4  ;;  %v20069_v28 = vld [vmem:[#allocation84_spill] sm:$0xff]  ;;  %vm20070_vm0 = vcmask 785408   ;;  %v11420_v13 = vld [vmem:[#allocation4 + $0xc8] sm:$0xff] }
 0xc3d   :  { %20054 = vst [vmem:[#allocation228_spill] sm:$0xff] %v17730_v61  ;;  %v17733_v31 = vsel %vm20055_vm2, %v9653_v30, %v9655_v3  ;;  %20059 = vst [vmem:[#allocation232_spill] sm:$0xff] %v17747_v54  ;;  %v10693_v3 = vrot.slane %v10655_v22, 4  ;;  %v10699_v30 = vrot.slane %v10657_v57, 4  ;;  %v8239_v22 = vsel %vm20070_vm0, %v20069_v28, %v20068_v18  ;;  %v20071_v57 = vld [vmem:[#allocation9_spill] sm:$0xff] }
 0xc3e   :  { %20056 = vst [vmem:[#allocation229_spill] sm:$0xff] %v17733_v31  ;;  %20060 = vst [vmem:[#allocation233_spill] sm:$0xff] %v17751_v1  ;;  %10716 = vrot.lane.b32.xlu0 %v10688_v8, %s12724_s12  ;;  %v17806_v54 = vmul.f32 %v17242_v0, %v17763_v25  ;;  %v20080_v18 = vrot.slane %v17510_v23, 4  ;;  %v20117_v31 = vld [vmem:[#allocation50_spill] sm:$0xff] }
 0xc3f   :  { %20061 = vst [vmem:[#allocation234_spill] sm:$0xff] %v17755_v37  ;;  %20062 = vst [vmem:[#allocation235_spill] sm:$0xff] %v17759_v9 }
 0xc40   :  { %20063 = vst [vmem:[#allocation236_spill] sm:$0xff] %v17763_v25  ;;  %20064 = vst [vmem:[#allocation237_spill] sm:$0xff] %v17771_v27  ;;  %10732 = vrot.lane.b32.xlu1 %v10700_v26, %s12724_s12  ;;  %v10535_v40 = vpop.permute.xlu0 %10534  ;;  %v17811_v1 = vpop.permute.xlu1 %10524  ;;  %v10698_v50 = vsel %vm20039_vm4, %v10696_v41, %v20080_v18  ;;  %v17832_v41 = vrot.slane %v17596_v56, %v19759_v11  ;;  %v20088_v56 = vld [vmem:[#allocation30_spill] sm:$0xff] }
 0xc41   :  { %20065 = vst [vmem:[#allocation238_spill] sm:$0xff] %v17785_v38  ;;  %20066 = vst [vmem:[#allocation239_spill] sm:$0xff] %v17789_v46  ;;  %v17809_v16 = vsel %vm215_vm1, %v10533_v19, %v10535_v40 }
 0xc42   :  { %20067 = vst [vmem:[#allocation240_spill] sm:$0xff] %v17793_v4  ;;  %vm20073_vm13 = vmmov %vm20070_vm0  ;;  %10722 = vrot.lane.b32.xlu0 %v10698_v50, %s12724_s12  ;;  %v20122_v4 = vld [vmem:[#allocation89_spill] sm:$0xff] }
 0xc43   :  { %v8236_v9 = vsel %vm20073_vm13, %v20072_v58, %v20071_v57  ;;  %vm20076_vm14 = vmmov %vm20070_vm0  ;;  %20077 = vst [vmem:[#allocation7_spill] sm:$0xff] %v17806_v54  ;;  %v17818_v57 = vmul.f32 %v17242_v0, %v17771_v27  ;;  %v20083_v54 = vrot.slane %v17552_v5, 4  ;;  %v17835_v0 = vadd.f32 %v8239_v22, %v16807_v45  ;;  %v20103_v27 = vld [vmem:[#allocation44_spill] sm:$0xff] }
 0xc44   :  { %v8237_v62 = vsel %vm20076_vm14, %v20075_v48, %v20074_v14  ;;  %20078 = vst [vmem:[#allocation84_spill] sm:$0xff] %v17809_v16  ;;  %20079 = vst [vmem:[#allocation9_spill] sm:$0xff] %v17811_v1  ;;  %v17822_v48 = vrot.slane %v17576_v49, %v19759_v11  ;;  %v17838_v49 = vadd.f32 %v8236_v9, %v16876_v36  ;;  %v20092_v9 = vld [vmem:[#allocation33_spill] sm:$0xff]  ;;  %v11428_v16 = vld [vmem:[#allocation4 + $0x108] sm:$0xff] }
 0xc45   :  { %20081 = vst [vmem:[#allocation5_spill] sm:$0xff] %v17818_v57  ;;  %vm20084_vm6 = vmmov %vm20039_vm4  ;;  %v8238_v5 = vsel %vm20070_vm0, %v20074_v14, %v20069_v28  ;;  %v17844_v50 = vadd.f32 %v8237_v62, %v16834_v2  ;;  %v11396_v62 = vld [vmem:[#allocation4 + $0x8] sm:$0xff]  ;;  %v11415_v57 = vld [vmem:[#allocation4 + $0xa0] sm:$0xff] }
 0xc46   :  { %20082 = vst [vmem:[#allocation32_spill] sm:$0xff] %v17822_v48  ;;  %v10695_v40 = vsel %vm20084_vm6, %v10693_v3, %v20083_v54  ;;  %vm20085_vm15 = vmmov %vm20039_vm4  ;;  %v11411_v54 = vld [vmem:[#allocation4 + $0x80] sm:$0xff]  ;;  %v20093_v3 = vld [vmem:[#allocation8_spill] sm:$0xff] }
 0xc47   :  { %v10689_v1 = vsel %vm20085_vm15, %v10687_v60, %v10688_v8  ;;  %vm20086_vm2 = vmmov %vm20039_vm4  ;;  %20087 = vst [vmem:[#allocation87_spill] sm:$0xff] %v17832_v41  ;;  %10720 = vrot.lane.b32.xlu1 %v10695_v40, %s12724_s12  ;;  %v11412_v8 = vld [vmem:[#allocation4 + $0x88] sm:$0xff]  ;;  %v20114_v41 = vld [vmem:[#allocation189_spill] sm:$0xff] }
 0xc48   :  { %v10701_v23 = vsel %vm20086_vm2, %v10699_v30, %v10700_v26  ;;  %v11395_v26 = vld [vmem:[#allocation4] sm:$0xff]  ;;  %v20089_v60 = vld [vmem:[#allocation6_spill] sm:$0xff]  ;;  %vm20090_vm13 = vmmov %vm20070_vm0  ;;  %v10531_v30 = vpop.permute.xlu0 %10530  ;;  %v12599_v2 = vpack.c.bf16 %v11412_v8, %v11411_v54  ;;  %10708 = vrot.lane.b32.xlu0 %v10689_v1, %s12724_s12 }
 0xc49   :  { %v8234_v45 = vsel %vm20090_vm13, %v20089_v60, %v20088_v56  ;;  %vm20091_vm14 = vmmov %vm20070_vm0  ;;  %v20095_v28 = vld [vmem:[#allocation34_spill] sm:$0xff]  ;;  %v17860_v18 = vsel %vm215_vm1, %v10529_v10, %v10531_v30  ;;  %v17863_v40 = vsel %vm215_vm1, %v10531_v30, %v10533_v19  ;;  %v17865_v60 = vpop.permute.xlu1 %10544  ;;  %v20102_v8 = vld [vmem:[#allocation35_spill] sm:$0xff] }
 0xc4a   :  { %v8235_v36 = vsel %vm20091_vm14, %v20088_v56, %v20072_v58  ;;  %vm20094_vm4 = vmmov %vm20070_vm0  ;;  %20097 = vst [vmem:[#allocation30_spill] sm:$0xff] %v17860_v18  ;;  %v12601_v58 = vpack.c.bf16 %v11396_v62, %v11395_v26  ;;  %v20099_v56 = vld [vmem:[#allocation185_spill] sm:$0xff]  ;;  %12600 = vmatprep.subr.bf16.mxu0 %v12599_v2  ;;  %v20105_v10 = vld [vmem:[#allocation71_spill] sm:$0xff]  ;;  %vm20118_vm14 = vcmask 523264  }
 0xc4b   :  { %v8243_v14 = vsel %vm20094_vm4, %v20093_v3, %v20092_v9  ;;  %vm20096_vm6 = vmmov %vm20070_vm0  ;;  %20098 = vst [vmem:[#allocation6_spill] sm:$0xff] %v17863_v40  ;;  %v17868_v25 = vadd.f32 %v8238_v5, %v20099_v56  ;;  %v20100_v3 = vld [vmem:[#allocation28_spill] sm:$0xff]  ;;  %v17878_v19 = vadd.f32 %v8234_v45, %v20105_v10  ;;  %v20106_v30 = vld [vmem:[#allocation42_spill] sm:$0xff]  ;;  %10724 = vrot.lane.b32.xlu1 %v10701_v23, %s12724_s12 }
 0xc4c   :  { %v8244_v22 = vsel %vm20096_vm6, %v20092_v9, %v20095_v28  ;;  %vm20101_vm15 = vmmov %vm20070_vm0  ;;  %v20107_v40 = vld [vmem:[#allocation26_spill] sm:$0xff]  ;;  %12602 = vmatpush3.bf16.msra.mxu0 %v12601_v58  ;;  %v11413_v62 = vld [vmem:[#allocation4 + $0x90] sm:$0xff] }
 0xc4d   :  { %v8245_v54 = vsel %vm20101_vm15, %v20095_v28, %v20100_v3  ;;  %vm20104_vm2 = vmmov %vm20070_vm0  ;;  %v8240_v26 = vsel %vm20070_vm0, %v20107_v40, %v20106_v30  ;;  %v11414_v28 = vld [vmem:[#allocation4 + $0x98] sm:$0xff]  ;;  %v11427_v56 = vld [vmem:[#allocation4 + $0x100] sm:$0xff]  ;;  %v10521_v40 = vpop.permute.xlu0 %10520  ;;  %v10551_v39 = vpop.permute.xlu1 %10550 }
 0xc4e   :  { %v8242_v9 = vsel %vm20104_vm2, %v20103_v27, %v20102_v8  ;;  %vm20108_vm13 = vmmov %vm20070_vm0  ;;  %v20109_v3 = vld [vmem:[#allocation161_spill] sm:$0xff]  ;;  %v20110_v2 = vld [vmem:[#allocation135_spill] sm:$0xff]  ;;  %v12603_v18 = vpack.c.bf16 %v11414_v28, %v11413_v62 }
 0xc4f   :  { %v8241_v5 = vsel %vm20108_vm13, %v20106_v30, %v20103_v27  ;;  %v17888_v1 = vadd.f32 %v8235_v36, %v20109_v3  ;;  %v17891_v45 = vadd.f32 %v8243_v14, %v20110_v2  ;;  %v20111_v8 = vld [vmem:[#allocation173_spill] sm:$0xff]  ;;  %v11398_v27 = vld [vmem:[#allocation4 + $0x18] sm:$0xff]  ;;  %v20113_v58 = vld [vmem:[#allocation74_spill] sm:$0xff]  ;;  %v12632_v36 = vpack.c.bf16 %v11428_v16, %v11427_v56 }
 0xc50   :  { %v17894_v10 = vadd.f32 %v8244_v22, %v20111_v8  ;;  %v20112_v30 = vld [vmem:[#allocation69_spill] sm:$0xff]  ;;  %v17900_v21 = vadd.f32 %v8242_v9, %v20113_v58  ;;  %v12605_v3 = vpack.c.bf16 %v11398_v27, %v11397_v35  ;;  %v11416_v14 = vld [vmem:[#allocation4 + $0xa8] sm:$0xff]  ;;  %v11429_v2 = vld [vmem:[#allocation4 + $0x110] sm:$0xff]  ;;  %v17903_v22 = vadd.f32 %v8240_v26, %v20114_v41  ;;  %12604 = vmatprep.subr.bf16.mxu0 %v12603_v18 }
 0xc51   :  { %v17897_v23 = vadd.f32 %v8245_v54, %v20112_v30  ;;  %v20115_v8 = vld [vmem:[#allocation191_spill] sm:$0xff]  ;;  %v20116_v28 = vld [vmem:[#allocation54_spill] sm:$0xff]  ;;  %v12607_v9 = vpack.c.bf16 %v11416_v14, %v11415_v57  ;;  %v11430_v30 = vld [vmem:[#allocation4 + $0x118] sm:$0xff]  ;;  %12633 = vmatpush3.bf16.msra.mxu1 %v12632_v36  ;;  %v17928_v14 = vpop.permute.xlu0 %10522 }
 0xc52   :  { %v17906_v62 = vadd.f32 %v8241_v5, %v20115_v8  ;;  %v17911_v54 = vsel %vm20118_vm14, %v20117_v31, %v20116_v28  ;;  %v11399_v58 = vld [vmem:[#allocation4 + $0x20] sm:$0xff]  ;;  %v11400_v16 = vld [vmem:[#allocation4 + $0x28] sm:$0xff]  ;;  %v20120_v56 = vld [vmem:[#allocation48_spill] sm:$0xff]  ;;  %12606 = vmatpush3.bf16.msra.mxu0 %v12605_v3  ;;  %v12635_v41 = vpack.c.bf16 %v11430_v30, %v11429_v2  ;;  %20126 = vst [vmem:[#allocation33_spill] sm:$0xff] %v17928_v14 }
 0xc53   :  { %v20119_v35 = vld [vmem:[#allocation53_spill] sm:$0xff]  ;;  %vm20121_vm4 = vmmov %vm20118_vm14  ;;  %v12609_v26 = vpack.c.bf16 %v11400_v16, %v11399_v58  ;;  %v11417_v5 = vld [vmem:[#allocation4 + $0xb0] sm:$0xff]  ;;  %12608 = vmatprep.subr.bf16.mxu0 %v12607_v9  ;;  %v17948_v9 = vsel %vm215_vm1, %v10521_v40, %v17928_v14 }
 0xc54   :  { %v17916_v27 = vsel %vm20121_vm4, %v20120_v56, %v20119_v35  ;;  %v11418_v8 = vld [vmem:[#allocation4 + $0xb8] sm:$0xff]  ;;  %v11431_v48 = vld [vmem:[#allocation4 + $0x120] sm:$0xff]  ;;  %v20123_v28 = vld [vmem:[#allocation43_spill] sm:$0xff]  ;;  %v20127_v35 = vmov 0.0|0.0   ;;  %20136 = vst [vmem:[#allocation34_spill] sm:$0xff] %v17948_v9 }
 0xc55   :  { %vm20124_vm6 = vmmov %vm20121_vm4  ;;  %12634 = vmatprep.subr.bf16.mxu1 %v20127_v35  ;;  %v12611_v36 = vpack.c.bf16 %v11418_v8, %v11417_v5  ;;  %v11432_v3 = vld [vmem:[#allocation4 + $0x128] sm:$0xff]  ;;  %v11401_v2 = vld [vmem:[#allocation4 + $0x30] sm:$0xff]  ;;  %v10549_v5 = vpop.permute.xlu1 %10548 }
 0xc56   :  { %v17921_v18 = vsel %vm20124_vm6, %v20123_v28, %v20122_v4  ;;  %vm20125_vm15 = vmmov %vm20121_vm4  ;;  %v11402_v30 = vld [vmem:[#allocation4 + $0x38] sm:$0xff]  ;;  %v20128_v58 = vld [vmem:[#allocation91_spill] sm:$0xff]  ;;  %vm20144_vm6 = vcmask 785408   ;;  %v17964_v40 = vsel %vm215_vm1, %v10549_v5, %v10551_v39  ;;  %12636 = vmatpush3.bf16.msra.mxu1 %v12635_v41  ;;  %12610 = vmatpush3.bf16.msra.mxu0 %v12609_v26  ;;  %v10547_v39 = vpop.permute.xlu0 %10546 }
 0xc57   :  { %v17926_v57 = vsel %vm20125_vm15, %v20122_v4, %v20117_v31  ;;  %v20129_v16 = vld [vmem:[#allocation45_spill] sm:$0xff]  ;;  %vm20130_vm2 = vmmov %vm20121_vm4  ;;  %20145 = vst [vmem:[#allocation28_spill] sm:$0xff] %v17964_v40  ;;  %v12613_v33 = vpack.c.bf16 %v11402_v30, %v11401_v2  ;;  %v11433_v11 = vld [vmem:[#allocation4 + $0x130] sm:$0xff]  ;;  %12637 = vmatprep.subr.bf16.mxu1 %v20127_v35  ;;  %12612 = vmatprep.subr.bf16.mxu0 %v12611_v36 }
 0xc58   :  { %v17934_v61 = vsel %vm20130_vm2, %v20129_v16, %v20128_v58  ;;  %vm20131_vm0 = vmmov %vm20130_vm2  ;;  %v20132_v31 = vld [vmem:[#allocation97_spill] sm:$0xff]  ;;  %v11404_v26 = vld [vmem:[#allocation4 + $0x48] sm:$0xff] }
 0xc59   :  { %v17939_v28 = vsel %vm20131_vm0, %v20128_v58, %v20120_v56  ;;  %v20133_v4 = vld [vmem:[#allocation57_spill] sm:$0xff]  ;;  %vm20134_vm13 = vmmov %vm20131_vm0  ;;  %v20142_v58 = vld [vmem:[#allocation107_spill] sm:$0xff] }
 0xc5a   :  { %v17944_v46 = vsel %vm20134_vm13, %v20133_v4, %v20132_v31  ;;  %v11419_v8 = vld [vmem:[#allocation4 + $0xc0] sm:$0xff]  ;;  %vm20138_vm14 = vmmov %vm20131_vm0  ;;  %v20143_v4 = vld [vmem:[#allocation106_spill] sm:$0xff]  ;;  %12614 = vmatpush3.bf16.msra.mxu0 %v12613_v33  ;;  %v18017_v20 = vpop.permute.xlu0 %10540 }
 0xc5b   :  { %20135 = vst [vmem:[#allocation8_spill] sm:$0xff] %v17944_v46  ;;  %v17953_v16 = vsel %vm20138_vm14, %v20132_v31, %v20137_v44  ;;  %vm20141_vm4 = vmmov %vm20131_vm0  ;;  %v8421_v34 = vsel %vm20144_vm6, %v20143_v4, %v20142_v58  ;;  %v20146_v9 = vld [vmem:[#allocation113_spill] sm:$0xff]  ;;  %v12638_v31 = vpack.c.bf16 %v11432_v3, %v11431_v48  ;;  %v12615_v58 = vpack.c.bf16 %v11420_v13, %v11419_v8  ;;  %v20154_v48 = vld [vmem:[#allocation100_spill] sm:$0xff]  ;;  %v10537_v13 = vpop.permute.xlu1 %10536 }
 0xc5c   :  { %20139 = vst [vmem:[#allocation185_spill] sm:$0xff] %v17953_v16  ;;  %v17958_v56 = vsel %vm20141_vm4, %v20137_v44, %v20140_v32  ;;  %v20147_v14 = vld [vmem:[#allocation105_spill] sm:$0xff]  ;;  %vm20148_vm15 = vmmov %vm20144_vm6  ;;  %v20155_v3 = vld [vmem:[#allocation60_spill] sm:$0xff] }
 0xc5d   :  { %v8419_v59 = vsel %vm20148_vm15, %v20147_v14, %v20146_v9  ;;  %vm20151_vm2 = vmmov %vm20131_vm0  ;;  %v11434_v14 = vld [vmem:[#allocation4 + $0x138] sm:$0xff]  ;;  %v11403_v41 = vld [vmem:[#allocation4 + $0x40] sm:$0xff]  ;;  %12639 = vmatpush3.bf16.msra.mxu1 %v12638_v31  ;;  %20172 = vst [vmem:[#allocation26_spill] sm:$0xff] %v18017_v20  ;;  %12616 = vmatprep.subr.bf16.mxu0 %v12615_v58 }
 0xc5e   :  { %v17972_v44 = vsel %vm20151_vm2, %v20150_v6, %v20149_v15  ;;  %vm20153_vm0 = vmmov %vm20144_vm6  ;;  %v20158_v30 = vld [vmem:[#allocation15_spill] sm:$0xff]  ;;  %v20159_v15 = vld [vmem:[#allocation110_spill] sm:$0xff]  ;;  %v8445_v6 = vadd.f32 %v8421_v34, %v17835_v0  ;;  %v12641_v34 = vpack.c.bf16 %v11434_v14, %v11433_v11  ;;  %v12617_v0 = vpack.c.bf16 %v11404_v26, %v11403_v41  ;;  %12640 = vmatprep.subr.bf16.mxu1 %v20127_v35 }
 0xc5f   :  { %20152 = vst [vmem:[#allocation35_spill] sm:$0xff] %v17972_v44  ;;  %v8420_v32 = vsel %vm20153_vm0, %v20146_v9, %v20143_v4  ;;  %vm20156_vm13 = vmmov %vm20151_vm2  ;;  %v17988_v9 = vsel %vm215_vm1, %v17865_v60, %v10547_v39  ;;  %v17991_v4 = vsel %vm215_vm1, %v10547_v39, %v10549_v5  ;;  %v11421_v36 = vld [vmem:[#allocation4 + $0xd0] sm:$0xff]  ;;  %v11422_v8 = vld [vmem:[#allocation4 + $0xd8] sm:$0xff] }
 0xc60   :  { %v17981_v2 = vsel %vm20156_vm13, %v20155_v3, %v20154_v48  ;;  %vm20160_vm14 = vmmov %vm20153_vm0  ;;  %20161 = vst [vmem:[#allocation71_spill] sm:$0xff] %v17988_v9  ;;  %v20163_v44 = vld [vmem:[#allocation111_spill] sm:$0xff]  ;;  %v18006_v5 = vadd.f32 %v8420_v32, %v17868_v25  ;;  %v20169_v9 = vld [vmem:[#allocation116_spill] sm:$0xff]  ;;  %v12619_v31 = vpack.c.bf16 %v11422_v8, %v11421_v36  ;;  %v18035_v36 = vpop.permute.xlu1 %10538  ;;  %12618 = vmatpush3.bf16.msra.mxu0 %v12617_v0 }
 0xc61   :  { %20157 = vst [vmem:[#allocation44_spill] sm:$0xff] %v17981_v2  ;;  %v8418_v40 = vsel %vm20160_vm14, %v20159_v15, %v20158_v30  ;;  %20162 = vst [vmem:[#allocation42_spill] sm:$0xff] %v17991_v4  ;;  %v18000_v2 = vadd.f32 %v8419_v59, %v17844_v50  ;;  %v20166_v30 = vld [vmem:[#allocation23_spill] sm:$0xff]  ;;  %v11435_v4 = vld [vmem:[#allocation4 + $0x140] sm:$0xff]  ;;  %12642 = vmatpush3.bf16.msra.mxu1 %v12641_v34 }
 0xc62   :  { %vm20165_vm4 = vmmov %vm20151_vm2  ;;  %v20167_v48 = vld [vmem:[#allocation119_spill] sm:$0xff]  ;;  %v20170_v59 = vld [vmem:[#allocation109_spill] sm:$0xff]  ;;  %20176 = vst [vmem:[#allocation161_spill] sm:$0xff] %v18035_v36  ;;  %12643 = vmatprep.subr.bf16.mxu1 %v20127_v35  ;;  %12620 = vmatprep.subr.bf16.mxu0 %v12619_v31 }
 0xc63   :  { %v17997_v3 = vsel %vm20165_vm4, %v20164_v52, %v20163_v44  ;;  %vm20168_vm6 = vmmov %vm20153_vm0  ;;  %v18010_v44 = vadd.f32 %v8418_v40, %v17838_v49  ;;  %v11436_v33 = vld [vmem:[#allocation4 + $0x148] sm:$0xff]  ;;  %v11405_v11 = vld [vmem:[#allocation4 + $0x50] sm:$0xff]  ;;  %v18024_v49 = vsel %vm20151_vm2, %v20169_v9, %v20164_v52 }
 0xc64   :  { %v8427_v60 = vsel %vm20168_vm6, %v20167_v48, %v20166_v30  ;;  %vm20171_vm15 = vmmov %vm20151_vm2  ;;  %v11406_v32 = vld [vmem:[#allocation4 + $0x58] sm:$0xff]  ;;  %v20174_v41 = vld [vmem:[#allocation114_spill] sm:$0xff] }
 0xc65   :  { %v18015_v50 = vsel %vm20171_vm15, %v20170_v59, %v20169_v9  ;;  %v18027_v40 = vadd.f32 %v8427_v60, %v17897_v23  ;;  %v20173_v14 = vld [vmem:[#allocation20_spill] sm:$0xff]  ;;  %vm20175_vm13 = vmmov %vm20153_vm0  ;;  %v11423_v8 = vld [vmem:[#allocation4 + $0xe0] sm:$0xff]  ;;  %v12621_v29 = vpack.c.bf16 %v11406_v32, %v11405_v11 }
 0xc66   :  { %v8416_v26 = vsel %vm20153_vm0, %v20174_v41, %v20173_v14  ;;  %v8417_v58 = vsel %vm20175_vm13, %v20173_v14, %v20159_v15  ;;  %v11424_v30 = vld [vmem:[#allocation4 + $0xe8] sm:$0xff]  ;;  %v20177_v59 = vld [vmem:[#allocation120_spill] sm:$0xff]  ;;  %vm20179_vm14 = vmmov %vm20151_vm2  ;;  %v18050_v15 = vsel %vm215_vm1, %v10537_v13, %v18035_v36 }
 0xc67   :  { %v20178_v25 = vld [vmem:[#allocation40_spill] sm:$0xff]  ;;  %v20180_v9 = vld [vmem:[#allocation123_spill] sm:$0xff]  ;;  %vm20182_vm4 = vmmov %vm20153_vm0  ;;  %20184 = vst [vmem:[#allocation135_spill] sm:$0xff] %v18050_v15  ;;  %12622 = vmatpush3.bf16.msra.mxu0 %v12621_v29 }
 0xc68   :  { %v18040_v52 = vsel %vm20179_vm14, %v20178_v25, %v20177_v59  ;;  %v20181_v23 = vld [vmem:[#allocation112_spill] sm:$0xff]  ;;  %vm20183_vm6 = vmmov %vm20153_vm0  ;;  %v20186_v39 = vld [vmem:[#allocation147_spill] sm:$0xff]  ;;  %v12644_v59 = vpack.c.bf16 %v11436_v33, %v11435_v4 }
 0xc69   :  { %v8425_v60 = vsel %vm20182_vm4, %v20181_v23, %v20180_v9  ;;  %v8426_v41 = vsel %vm20183_vm6, %v20180_v9, %v20167_v48  ;;  %v20185_v14 = vld [vmem:[#allocation148_spill] sm:$0xff]  ;;  %vm20187_vm15 = vmmov %vm20153_vm0  ;;  %v11437_v16 = vld [vmem:[#allocation4 + $0x150] sm:$0xff]  ;;  %v18057_v23 = vadd.f32 %v8416_v26, %v17878_v19  ;;  %v18060_v48 = vadd.f32 %v8417_v58, %v17888_v1  ;;  %v18062_v9 = vpop.permute.xlu0 %8938  ;;  %v8943_v58 = vpop.permute.xlu1 %8942 }
 0xc6a   :  { %v8603_v20 = vsel %vm20187_vm15, %v20186_v39, %v20185_v14  ;;  %v12623_v14 = vpack.c.bf16 %v11424_v30, %v11423_v8  ;;  %v11407_v34 = vld [vmem:[#allocation4 + $0x60] sm:$0xff]  ;;  %v11408_v0 = vld [vmem:[#allocation4 + $0x68] sm:$0xff]  ;;  %vm20190_vm0 = vmmov %vm20151_vm2  ;;  %v18082_v31 = vadd.f32 %v8425_v60, %v17891_v45  ;;  %v18085_v13 = vadd.f32 %v8426_v41, %v17894_v10  ;;  %12645 = vmatpush3.bf16.msra.mxu1 %v12644_v59 }
 0xc6b   :  { %v20188_v4 = vld [vmem:[#allocation25_spill] sm:$0xff]  ;;  %v20189_v33 = vld [vmem:[#allocation118_spill] sm:$0xff]  ;;  %vm20193_vm13 = vmmov %vm20190_vm0  ;;  %v12625_v10 = vpack.c.bf16 %v11408_v0, %v11407_v34  ;;  %12646 = vmatprep.subr.bf16.mxu1 %v20127_v35 }
 0xc6c   :  { %v18069_v11 = vsel %vm20151_vm2, %v20189_v33, %v20188_v4  ;;  %v18074_v19 = vsel %vm20190_vm0, %v20188_v4, %v20178_v25  ;;  %v20191_v1 = vld [vmem:[#allocation117_spill] sm:$0xff]  ;;  %v20192_v32 = vld [vmem:[#allocation122_spill] sm:$0xff]  ;;  %v11425_v8 = vld [vmem:[#allocation4 + $0xf0] sm:$0xff]  ;;  %v8627_v25 = vadd.f32 %v8603_v20, %v8445_v6  ;;  %12624 = vmatprep.subr.bf16.mxu0 %v12623_v14 }
 0xc6d   :  { %v18079_v26 = vsel %vm20193_vm13, %v20192_v32, %v20191_v1  ;;  %v11426_v30 = vld [vmem:[#allocation4 + $0xf8] sm:$0xff]  ;;  %v20195_v15 = vld [vmem:[#allocation127_spill] sm:$0xff]  ;;  %vm20196_vm14 = vmmov %vm20182_vm4  ;;  %v12647_v1 = vpack.c.bf16 %v11438_v63, %v11437_v16  ;;  %v8945_v42 = vpop.permute.xlu0 %8944  ;;  %v18117_v14 = vpop.permute.xlu1 %8934  ;;  %12626 = vmatpush3.bf16.msra.mxu0 %v12625_v10 }
 0xc6e   :  { %v20194_v33 = vld [vmem:[#allocation36_spill] sm:$0xff]  ;;  %v20197_v4 = vld [vmem:[#allocation37_spill] sm:$0xff]  ;;  %vm20199_vm6 = vmmov %vm20182_vm4 }
 0xc6f   :  { %v8424_v36 = vsel %vm20196_vm14, %v20195_v15, %v20194_v33  ;;  %v8601_v17 = vsel %vm20182_vm4, %v20198_v12, %v20197_v4  ;;  %v8602_v45 = vsel %vm20199_vm6, %v20197_v4, %v20186_v39  ;;  %v11439_v41 = vld [vmem:[#allocation4 + $0x160] sm:$0xff]  ;;  %vm20202_vm15 = vmmov %vm20182_vm4  ;;  %v20203_v20 = vld [vmem:[#allocation171_spill] sm:$0xff]  ;;  %v12627_v39 = vpack.c.bf16 %v11426_v30, %v11425_v8  ;;  %12648 = vmatpush3.bf16.msra.mxu1 %v12647_v1 }
 0xc70   :  { %v20200_v46 = vld [vmem:[#allocation129_spill] sm:$0xff]  ;;  %v8809_v6 = vadd.f32 %v20203_v20, %v8627_v25  ;;  %v11440_v4 = vld [vmem:[#allocation4 + $0x168] sm:$0xff]  ;;  %v11409_v60 = vld [vmem:[#allocation4 + $0x70] sm:$0xff]  ;;  %v18114_v34 = vadd.f32 %v8424_v36, %v17900_v21  ;;  %v8625_v30 = vadd.f32 %v8601_v17, %v18000_v2  ;;  %v8626_v25 = vadd.f32 %v8602_v45, %v18006_v5  ;;  %12649 = vmatprep.subr.bf16.mxu1 %v20127_v35 }
 0xc71   :  { %v8422_v33 = vsel %vm20202_vm15, %v20201_v53, %v20200_v46  ;;  %v11410_v59 = vld [vmem:[#allocation4 + $0x78] sm:$0xff]  ;;  %v20205_v63 = vld [vmem:[#allocation115_spill] sm:$0xff]  ;;  %vm20206_vm2 = vmmov %vm20190_vm0  ;;  %v12650_v21 = vpack.c.bf16 %v11440_v4, %v11439_v41  ;;  %12628 = vmatprep.subr.bf16.mxu0 %v12627_v39 }
 0xc72   :  { %v20204_v29 = vld [vmem:[#allocation124_spill] sm:$0xff]  ;;  %vm20207_vm13 = vmmov %vm20182_vm4  ;;  %v20210_v12 = vld [vmem:[#allocation77_spill] sm:$0xff] }
 0xc73   :  { %v18106_v16 = vsel %vm20206_vm2, %v20205_v63, %v20204_v29  ;;  %v18111_v53 = vsel %vm20190_vm0, %v20204_v29, %v20192_v32  ;;  %v8967_v0 = vsel %vm20207_vm13, %v8943_v58, %v8945_v42  ;;  %vm20208_vm14 = vmmov %vm20182_vm4  ;;  %v18125_v63 = vadd.f32 %v8422_v33, %v17903_v22  ;;  %v20209_v36 = vld [vmem:[#allocation172_spill] sm:$0xff]  ;;  %v11441_v22 = vld [vmem:[#allocation4 + $0x170] sm:$0xff]  ;;  %12651 = vmatpush3.bf16.msra.mxu1 %v12650_v21 }
 0xc74   :  { %v8423_v8 = vsel %vm20208_vm14, %v20200_v46, %v20195_v15  ;;  %v8991_v20 = vadd.f32 %v8967_v0, %v8809_v6  ;;  %v12629_v42 = vpack.c.bf16 %v11410_v59, %v11409_v60  ;;  %v8807_v29 = vadd.f32 %v20209_v36, %v8625_v30  ;;  %v8941_v15 = vpop.permute.xlu0 %8940  ;;  %v11442_v2 = vld [vmem:[#allocation4 + $0x178] sm:$0xff]  ;;  %v20211_v5 = vld [vmem:[#allocation151_spill] sm:$0xff]  ;;  %v20212_v45 = vld [vmem:[#allocation149_spill] sm:$0xff]  ;;  %v18142_v6 = vpop.permute.xlu1 %8954  ;;  %12652 = vmatprep.subr.bf16.mxu1 %v20127_v35 }
 0xc75   :  { %v8808_v37 = vadd.f32 %v20210_v12, %v8626_v25  ;;  %v8600_v1 = vsel %vm20182_vm4, %v20212_v45, %v20211_v5  ;;  %v20213_v10 = vld [vmem:[#allocation150_spill] sm:$0xff]  ;;  %vm20215_vm6 = vmmov %vm20182_vm4  ;;  %v20218_v12 = vld [vmem:[#allocation152_spill] sm:$0xff]  ;;  %vm20224_vm14 = vcmask 523264  }
 0xc76   :  { %v9149_v46 = vadd.f32 %v17911_v54, %v8991_v20  ;;  %v20214_v60 = vld [vmem:[#allocation22_spill] sm:$0xff]  ;;  %vm20216_vm15 = vmmov %vm20182_vm4  ;;  %v20219_v4 = vld [vmem:[#allocation83_spill] sm:$0xff]  ;;  %12630 = vmatpush3.bf16.msra.mxu0 %v12629_v42  ;;  %v8624_v21 = vadd.f32 %v8600_v1, %v18010_v44 }
 0xc77   :  { %v8609_v41 = vsel %vm20215_vm6, %v20214_v60, %v20213_v10  ;;  %v8965_v33 = vsel %vm20216_vm15, %v18062_v9, %v8941_v15  ;;  %vm20217_vm2 = vmmov %vm20182_vm4  ;;  %v20222_v20 = vld [vmem:[#allocation158_spill] sm:$0xff]  ;;  %v20223_v36 = vld [vmem:[#allocation157_spill] sm:$0xff] }
 0xc78   :  { %v8966_v54 = vsel %vm20217_vm2, %v8941_v15, %v8943_v58  ;;  %vm20220_vm0 = vmmov %vm20217_vm2  ;;  %v9331_v59 = vadd.f32 %v17997_v3, %v9149_v46  ;;  %v8989_v0 = vadd.f32 %v8965_v33, %v8807_v29  ;;  %v9489_v9 = vsel %vm20224_vm14, %v20223_v36, %v20222_v20  ;;  %v8931_v3 = vpop.permute.xlu0 %8930  ;;  %v20353_v32 = vld [vmem:[#allocation182_spill] sm:$0xff] }
 0xc79   :  { %v8598_v39 = vsel %vm20220_vm0, %v20219_v4, %v20218_v12  ;;  %v8990_v30 = vadd.f32 %v8966_v54, %v8808_v37  ;;  %vm20221_vm13 = vmmov %vm20220_vm0  ;;  %v12653_v15 = vpack.c.bf16 %v11442_v2, %v11441_v22  ;;  %v20225_v46 = vmov 1.0|1.0   ;;  %v8961_v22 = vpop.permute.xlu1 %8960 }
 0xc7a   :  { %v8599_v25 = vsel %vm20221_vm13, %v20218_v12, %v20212_v45  ;;  %v9147_v5 = vadd.f32 %v17921_v18, %v8989_v0  ;;  %v9513_v29 = vadd.f32 %v9489_v9, %v9331_v59  ;;  %12656 = vmatprep.subr.msk.bf16.mxu0 %vm14459_vm3, %v20225_v46  ;;  %v8447_v33 = vadd.f32 %v8423_v8, %v17906_v62  ;;  %v20227_v12 = vld [vmem:[#allocation196_spill] sm:$0xff]  ;;  %vm20230_vm3 = vmmov %vm20220_vm0  ;;  %v20241_v9 = vld [vmem:[#allocation46_spill] sm:$0xff] }
 0xc7b   :  { %v9148_v10 = vadd.f32 %v17926_v57, %v8990_v30  ;;  %v8633_v42 = vadd.f32 %v8609_v41, %v18027_v40  ;;  %v8622_v18 = vadd.f32 %v8598_v39, %v18057_v23  ;;  %v8623_v57 = vadd.f32 %v8599_v25, %v18060_v48  ;;  %v20228_v59 = vld [vmem:[#allocation56_spill] sm:$0xff]  ;;  %vm20231_vm4 = vmmov %vm20220_vm0  ;;  %v20232_v40 = vld [vmem:[#allocation58_spill] sm:$0xff]  ;;  %12654 = vmatpush3.bf16.msra.mxu1 %v12653_v15 }
 0xc7c   :  { %v9329_v2 = vadd.f32 %v18015_v50, %v9147_v5  ;;  %v18170_v4 = vadd.f32 %v20227_v12, %v9513_v29  ;;  %v20229_v0 = vld [vmem:[#allocation24_spill] sm:$0xff]  ;;  %v8608_v44 = vsel %vm20231_vm4, %v20228_v59, %v20214_v60  ;;  %vm20234_vm6 = vmmov %vm20224_vm14  ;;  %v20237_v48 = vld [vmem:[#allocation154_spill] sm:$0xff]  ;;  %v8937_v30 = vpop.permute.xlu0 %8936  ;;  %12663 = vmatprep.subr.bf16.mxu1 %v20127_v35 }
 0xc7d   :  { %v9330_v54 = vadd.f32 %v18024_v49, %v9148_v10  ;;  %v8607_v62 = vsel %vm20230_vm3, %v20229_v0, %v20228_v59  ;;  %v20233_v23 = vld [vmem:[#allocation156_spill] sm:$0xff]  ;;  %vm20235_vm15 = vmmov %vm20234_vm6  ;;  %v20236_v49 = vld [vmem:[#allocation153_spill] sm:$0xff]  ;;  %v8959_v45 = vpop.permute.xlu1 %8958  ;;  %v8632_v0 = vadd.f32 %v8608_v44, %v18085_v13 }
 0xc7e   :  { %v9487_v8 = vsel %vm20234_vm6, %v20233_v23, %v20232_v40  ;;  %v9488_v50 = vsel %vm20235_vm15, %v20232_v40, %v20223_v36  ;;  %vm20238_vm2 = vmmov %vm20220_vm0  ;;  %v20239_v41 = vld [vmem:[#allocation73_spill] sm:$0xff]  ;;  %v20240_v60 = vld [vmem:[#allocation155_spill] sm:$0xff]  ;;  %v8631_v59 = vadd.f32 %v8607_v62, %v18082_v31 }
 0xc7f   :  { %v8606_v1 = vsel %vm20238_vm2, %v20237_v48, %v20236_v49  ;;  %v8806_v39 = vadd.f32 %v20239_v41, %v8624_v21  ;;  %v9511_v25 = vadd.f32 %v9487_v8, %v9329_v2  ;;  %v9512_v20 = vadd.f32 %v9488_v50, %v9330_v54  ;;  %vm20242_vm13 = vmmov %vm20220_vm0  ;;  %v20243_v15 = vld [vmem:[#allocation78_spill] sm:$0xff]  ;;  %v20246_v8 = vld [vmem:[#allocation52_spill] sm:$0xff] }
 0xc80   :  { %v8604_v5 = vsel %vm20220_vm0, %v20241_v9, %v20240_v60  ;;  %v8605_v36 = vsel %vm20242_vm13, %v20240_v60, %v20237_v48  ;;  %v8815_v10 = vadd.f32 %v20243_v15, %v8633_v42  ;;  %vm20244_vm14 = vmmov %vm20220_vm0  ;;  %v8630_v40 = vadd.f32 %v8606_v1, %v18114_v34  ;;  %v20247_v49 = vld [vmem:[#allocation47_spill] sm:$0xff]  ;;  %v20250_v34 = vld [vmem:[#allocation174_spill] sm:$0xff] }
 0xc81   :  { %v8964_v29 = vsel %vm20244_vm14, %v18117_v14, %v8937_v30  ;;  %vm20245_vm3 = vmmov %vm20220_vm0  ;;  %v18200_v54 = vadd.f32 %v17471_v7, %v9511_v25  ;;  %v18203_v12 = vadd.f32 %v17474_v24, %v9512_v20  ;;  %v8628_v23 = vadd.f32 %v8604_v5, %v18125_v63  ;;  %v8933_v7 = vpop.permute.xlu0 %8932  ;;  %v8947_v31 = vpop.permute.xlu1 %8946  ;;  %v20251_v62 = vld [vmem:[#allocation159_spill] sm:$0xff]  ;;  %v20255_v30 = vld [vmem:[#allocation176_spill] sm:$0xff] }
 0xc82   :  { %v8988_v21 = vadd.f32 %v8964_v29, %v8806_v39  ;;  %v8973_v2 = vsel %vm20245_vm3, %v8959_v45, %v8961_v22  ;;  %v8804_v50 = vadd.f32 %v20246_v8, %v8622_v18  ;;  %v8805_v48 = vadd.f32 %v20247_v49, %v8623_v57  ;;  %vm20248_vm4 = vmmov %vm20220_vm0  ;;  %v20252_v1 = vld [vmem:[#allocation167_spill] sm:$0xff]  ;;  %v20258_v25 = vld [vmem:[#allocation162_spill] sm:$0xff] }
 0xc83   :  { %v8997_v42 = vadd.f32 %v8973_v2, %v8815_v10  ;;  %v8629_v41 = vadd.f32 %v8605_v36, %v8447_v33  ;;  %v8962_v39 = vsel %vm20248_vm4, %v8931_v3, %v8933_v7  ;;  %vm20249_vm6 = vmmov %vm20220_vm0  ;;  %v9486_v63 = vsel %vm20235_vm15, %v20251_v62, %v20250_v34  ;;  %v20259_v60 = vld [vmem:[#allocation79_spill] sm:$0xff]  ;;  %v20263_v8 = vld [vmem:[#allocation160_spill] sm:$0xff] }
 0xc84   :  { %v9146_v22 = vadd.f32 %v17916_v27, %v8988_v21  ;;  %v8963_v13 = vsel %vm20249_vm6, %v8933_v7, %v18117_v14  ;;  %v8986_v44 = vadd.f32 %v8962_v39, %v8804_v50  ;;  %v20253_v27 = vld [vmem:[#allocation175_spill] sm:$0xff]  ;;  %vm20254_vm2 = vmmov %vm20235_vm15  ;;  %v8813_v20 = vadd.f32 %v20258_v25, %v8631_v59  ;;  %v20265_v49 = vld [vmem:[#allocation76_spill] sm:$0xff] }
 0xc85   :  { %v9155_v24 = vadd.f32 %v17958_v56, %v8997_v42  ;;  %v8987_v57 = vadd.f32 %v8963_v13, %v8805_v48  ;;  %v9495_v33 = vsel %vm20254_vm2, %v20253_v27, %v20252_v1  ;;  %v20256_v56 = vld [vmem:[#allocation165_spill] sm:$0xff]  ;;  %vm20257_vm0 = vmmov %vm20254_vm2  ;;  %v8814_v9 = vadd.f32 %v20259_v60, %v8632_v0  ;;  %v8957_v36 = vpop.permute.xlu0 %8956  ;;  %v8953_v2 = vpop.permute.xlu1 %8952  ;;  %v20276_v60 = vld [vmem:[#allocation66_spill] sm:$0xff] }
 0xc86   :  { %v9328_v18 = vadd.f32 %v18040_v52, %v9146_v22  ;;  %v9484_v3 = vsel %vm20257_vm0, %v20256_v56, %v20255_v30  ;;  %v9144_v5 = vadd.f32 %v17934_v61, %v8986_v44  ;;  %vm20260_vm13 = vmmov %vm20257_vm0  ;;  %v8972_v21 = vsel %vm20245_vm3, %v8957_v36, %v8959_v45  ;;  %v20266_v22 = vld [vmem:[#allocation203_spill] sm:$0xff]  ;;  %v20268_v45 = vld [vmem:[#allocation8_spill] sm:$0xff] }
 0xc87   :  { %v9337_v14 = vadd.f32 %v18079_v26, %v9155_v24  ;;  %v9145_v52 = vadd.f32 %v17939_v28, %v8987_v57  ;;  %v9485_v10 = vsel %vm20260_vm13, %v20255_v30, %v20251_v62  ;;  %vm20261_vm14 = vmmov %vm20245_vm3  ;;  %v8996_v42 = vadd.f32 %v8972_v21, %v8814_v9  ;;  %v20262_v28 = vld [vmem:[#allocation67_spill] sm:$0xff]  ;;  %v20269_v13 = vld [vmem:[#allocation185_spill] sm:$0xff] }
 0xc88   :  { %v9510_v15 = vadd.f32 %v9486_v63, %v9328_v18  ;;  %v8971_v29 = vsel %vm20261_vm14, %v18142_v6, %v8957_v36  ;;  %v9326_v26 = vadd.f32 %v18069_v11, %v9144_v5  ;;  %vm20264_vm4 = vmmov %vm20257_vm0  ;;  %v8812_v48 = vadd.f32 %v20265_v49, %v8630_v40  ;;  %v20267_v6 = vld [vmem:[#allocation205_spill] sm:$0xff]  ;;  %v20272_v40 = vld [vmem:[#allocation188_spill] sm:$0xff] }
 0xc89   :  { %v9519_v59 = vadd.f32 %v9495_v33, %v9337_v14  ;;  %v9327_v0 = vadd.f32 %v18074_v19, %v9145_v52  ;;  %v8995_v61 = vadd.f32 %v8971_v29, %v8813_v20  ;;  %v9493_v50 = vsel %vm20264_vm4, %v20263_v8, %v20262_v28  ;;  %v8951_v34 = vpop.permute.xlu0 %8950  ;;  %vm20270_vm6 = vmmov %vm20257_vm0  ;;  %v20271_v18 = vld [vmem:[#allocation81_spill] sm:$0xff]  ;;  %v8949_v33 = vpop.permute.xlu1 %8948  ;;  %v20283_v21 = vld [vmem:[#allocation130_spill] sm:$0xff] }
 0xc8a   :  { %v18244_v7 = vadd.f32 %v20266_v22, %v9510_v15  ;;  %v9154_v11 = vadd.f32 %v20269_v13, %v8996_v42  ;;  %v9508_v19 = vadd.f32 %v9484_v3, %v9326_v26  ;;  %v9494_v63 = vsel %vm20270_vm6, %v20262_v28, %v20253_v27  ;;  %vm20273_vm15 = vmmov %vm20245_vm3  ;;  %v20277_v27 = vld [vmem:[#allocation209_spill] sm:$0xff]  ;;  %v20286_v26 = vld [vmem:[#allocation38_spill] sm:$0xff] }
 0xc8b   :  { %v18247_v24 = vadd.f32 %v20267_v6, %v9519_v59  ;;  %v9153_v39 = vadd.f32 %v20268_v45, %v8995_v61  ;;  %v9509_v62 = vadd.f32 %v9485_v10, %v9327_v0  ;;  %v8810_v44 = vadd.f32 %v20271_v18, %v8628_v23  ;;  %vm20274_vm2 = vmmov %vm20245_vm3  ;;  %v20279_v10 = vld [vmem:[#allocation99_spill] sm:$0xff]  ;;  %v20288_v61 = vld [vmem:[#allocation44_spill] sm:$0xff] }
 0xc8c   :  { %v8811_v57 = vadd.f32 %v20272_v40, %v8629_v41  ;;  %v8970_v1 = vsel %vm20273_vm15, %v8951_v34, %v8953_v2  ;;  %v9336_v56 = vadd.f32 %v18111_v53, %v9154_v11  ;;  %v8968_v20 = vsel %vm20274_vm2, %v8947_v31, %v8949_v33  ;;  %vm20275_vm0 = vmmov %vm20274_vm2  ;;  %v20278_v41 = vld [vmem:[#allocation35_spill] sm:$0xff]  ;;  %v20280_v53 = vld [vmem:[#allocation100_spill] sm:$0xff] }
 0xc8d   :  { %v9335_v30 = vadd.f32 %v18106_v16, %v9153_v39  ;;  %v8994_v25 = vadd.f32 %v8970_v1, %v8812_v48  ;;  %v8969_v3 = vsel %vm20275_vm0, %v8949_v33, %v8951_v34  ;;  %v8992_v14 = vadd.f32 %v8968_v20, %v8810_v44  ;;  %v9825_v36 = vpop.permute.xlu0 %9824  ;;  %vm20281_vm13 = vmmov %vm20264_vm4  ;;  %v20282_v31 = vld [vmem:[#allocation49_spill] sm:$0xff]  ;;  %v20285_v59 = vld [vmem:[#allocation131_spill] sm:$0xff]  ;;  %v9829_v28 = vpop.permute.xlu1 %9828 }
 0xc8e   :  { %v18262_v9 = vadd.f32 %v20276_v60, %v9508_v19  ;;  %v18265_v23 = vadd.f32 %v20277_v27, %v9509_v62  ;;  %v8993_v52 = vadd.f32 %v8969_v3, %v8811_v57  ;;  %v9518_v16 = vadd.f32 %v9494_v63, %v9336_v56  ;;  %vm20284_vm14 = vmmov %vm20264_vm4  ;;  %v20289_v48 = vld [vmem:[#allocation219_spill] sm:$0xff]  ;;  %v20290_v22 = vld [vmem:[#allocation220_spill] sm:$0xff] }
 0xc8f   :  { %v9152_v5 = vadd.f32 %v20278_v41, %v8994_v25  ;;  %v9517_v15 = vadd.f32 %v9493_v50, %v9335_v30  ;;  %v9127_v29 = vsel %vm20281_vm13, %v20280_v53, %v20279_v10  ;;  %v9310_v2 = vsel %vm20284_vm14, %v20283_v21, %v20282_v31  ;;  %vm20287_vm3 = vmmov %vm20264_vm4  ;;  %v20292_v39 = vld [vmem:[#allocation179_spill] sm:$0xff]  ;;  %v20293_v13 = vld [vmem:[#allocation180_spill] sm:$0xff] }
 0xc90   :  { %v9308_v0 = vsel %vm20287_vm3, %v20286_v26, %v20285_v59  ;;  %v9150_v42 = vadd.f32 %v20288_v61, %v8992_v14  ;;  %v9151_v49 = vadd.f32 %v9127_v29, %v8993_v52  ;;  %v18282_v6 = vadd.f32 %v20290_v22, %v9518_v16  ;;  %vm20291_vm4 = vmmov %vm20287_vm3  ;;  %v20295_v19 = vld [vmem:[#allocation13_spill] sm:$0xff]  ;;  %v20296_v62 = vld [vmem:[#allocation216_spill] sm:$0xff] }
 0xc91   :  { %v9334_v8 = vadd.f32 %v9310_v2, %v9152_v5  ;;  %v18279_v50 = vadd.f32 %v20289_v48, %v9517_v15  ;;  %v9309_v45 = vsel %vm20291_vm4, %v20285_v59, %v20283_v21  ;;  %vm20294_vm6 = vmmov %vm20287_vm3  ;;  %v18292_v63 = vrot.slane %v20296_v62, %v20295_v19  ;;  %v20297_v18 = vld [vmem:[#allocation181_spill] sm:$0xff]  ;;  %v20298_v44 = vld [vmem:[#allocation178_spill] sm:$0xff]  ;;  %v9831_v1 = vpop.permute.xlu0 %9830  ;;  %v18303_v14 = vpop.permute.xlu1 %10714 }
 0xc92   :  { %v9492_v11 = vsel %vm20294_vm6, %v20293_v13, %v20292_v39  ;;  %v9332_v34 = vadd.f32 %v9308_v0, %v9150_v42  ;;  %vm20299_vm15 = vmmov %vm20287_vm3  ;;  %v9333_v57 = vadd.f32 %v9309_v45, %v9151_v49  ;;  %v20300_v30 = vld [vmem:[#allocation61_spill] sm:$0xff]  ;;  %v20301_v56 = vld [vmem:[#allocation204_spill] sm:$0xff]  ;;  %vm20359_vm6 = vcmask 1045504  }
 0xc93   :  { %v9490_v40 = vsel %vm20299_vm15, %v20298_v44, %v20297_v18  ;;  %v9516_v33 = vadd.f32 %v9492_v11, %v9334_v8  ;;  %v10880_v25 = vmul.f32 %v20301_v56, %v20300_v30  ;;  %vm20302_vm2 = vmmov %vm20287_vm3  ;;  %v20304_v27 = vld [vmem:[#allocation210_spill] sm:$0xff]  ;;  %v20306_v15 = vld [vmem:[#allocation177_spill] sm:$0xff]  ;;  %vm20335_vm3 = vcmask 1046528  }
 0xc94   :  { %v9491_v20 = vsel %vm20302_vm2, %v20297_v18, %v20293_v13  ;;  %vm20303_vm0 = vmmov %vm20302_vm2  ;;  %v9514_v60 = vadd.f32 %v9490_v40, %v9332_v34  ;;  %v20305_v41 = vld [vmem:[#allocation202_spill] sm:$0xff]  ;;  %v20307_v53 = vld [vmem:[#allocation239_spill] sm:$0xff]  ;;  %vm20373_vm2 = vcmask 1043456  }
 0xc95   :  { %v9853_v3 = vsel %vm20303_vm0, %v9829_v28, %v9831_v1  ;;  %v10881_v5 = vmul.f32 %v20305_v41, %v20304_v27  ;;  %v18309_v16 = vadd.f32 %v20306_v15, %v9516_v33  ;;  %v9515_v10 = vadd.f32 %v9491_v20, %v9333_v57  ;;  %v20308_v31 = vld [vmem:[#allocation62_spill] sm:$0xff]  ;;  %v20309_v21 = vld [vmem:[#allocation51_spill] sm:$0xff]  ;;  %v20310_v59 = vld [vmem:[#allocation228_spill] sm:$0xff]  ;;  %v18322_v48 = vpop.permute.xlu0 %10710  ;;  %v18336_v18 = vpop.permute.xlu1 %9820 }
 0xc96   :  { %v9877_v52 = vadd.f32 %v9853_v3, %v18170_v4  ;;  %v10011_v2 = vsel %vm215_vm1, %v20309_v21, %v20308_v31  ;;  %v18316_v26 = vadd.f32 %v20310_v59, %v9514_v60  ;;  %v20311_v0 = vld [vmem:[#allocation240_spill] sm:$0xff]  ;;  %v12718_v42 = vld [vmem:[#allocation2 + $0x78] sm:$0xff]  ;;  %v20315_v39 = vld [vmem:[#allocation87_spill] sm:$0xff]  ;;  %v10907_v57 = vrot.slane %v10880_v25, 1 }
 0xc97   :  { %v20312_v8 = vld [vmem:[#allocation32_spill] sm:$0xff]  ;;  %v20314_v22 = vld [vmem:[#allocation229_spill] sm:$0xff]  ;;  %v18328_v13 = vmul.f32 %v12718_v42, %v20315_v39  ;;  %v18331_v11 = vmul.f32 %v12718_v42, %v18292_v63  ;;  %v20319_v19 = vld [vmem:[#allocation134_spill] sm:$0xff]  ;;  %v10910_v1 = vrot.slane %v10881_v5, 1 }
 0xc98   :  { %v18320_v49 = vmul.f32 %v12718_v42, %v20312_v8  ;;  %v10035_v4 = vadd.f32 %v10011_v2, %v9877_v52  ;;  %v18325_v45 = vadd.f32 %v20314_v22, %v9515_v10  ;;  %v20318_v34 = vld [vmem:[#allocation136_spill] sm:$0xff]  ;;  %v20320_v44 = vld [vmem:[#allocation5_spill] sm:$0xff]  ;;  %v20321_v30 = vld [vmem:[#allocation207_spill] sm:$0xff] }
 0xc99   :  { %20316 = vst [vmem:[#allocation69_spill] sm:$0xff] %v18328_v13  ;;  %20317 = vst [vmem:[#allocation74_spill] sm:$0xff] %v18331_v11  ;;  %v10193_v62 = vsel %vm215_vm1, %v20319_v19, %v20318_v34  ;;  %v18341_v20 = vmul.f32 %v20301_v56, %v20321_v30  ;;  %v20323_v3 = vld [vmem:[#allocation208_spill] sm:$0xff]  ;;  %v20325_v27 = vld [vmem:[#allocation211_spill] sm:$0xff]  ;;  %v18363_v2 = vpop.permute.xlu1 %9840 }
 0xc9a   :  { %20313 = vst [vmem:[#allocation173_spill] sm:$0xff] %v18320_v49  ;;  %v10217_v33 = vadd.f32 %v10193_v62, %v10035_v4  ;;  %v18345_v60 = vmul.f32 %v20305_v41, %v20323_v3  ;;  %v10986_v52 = vmul.f32 %v20301_v56, %v20325_v27  ;;  %v20326_v15 = vld [vmem:[#allocation63_spill] sm:$0xff]  ;;  %v20328_v25 = vld [vmem:[#allocation212_spill] sm:$0xff]  ;;  %v9827_v4 = vpop.permute.xlu0 %9826  ;;  %v20330_v30 = vld [vmem:[#allocation225_spill] sm:$0xff] }
 0xc9b   :  { %20322 = vst [vmem:[#allocation189_spill] sm:$0xff] %v18341_v20  ;;  %v20327_v10 = vld [vmem:[#allocation183_spill] sm:$0xff]  ;;  %v10987_v5 = vmul.f32 %v20305_v41, %v20328_v25  ;;  %v11093_v3 = vmul.f32 %v20305_v41, %v20330_v30  ;;  %vm20331_vm13 = vmmov %vm20303_vm0  ;;  %v20333_v40 = vld [vmem:[#allocation221_spill] sm:$0xff] }
 0xc9c   :  { %20324 = vst [vmem:[#allocation191_spill] sm:$0xff] %v18345_v60  ;;  %v10375_v31 = vsel %vm215_vm1, %v20327_v10, %v20326_v15  ;;  %v20329_v59 = vld [vmem:[#allocation215_spill] sm:$0xff]  ;;  %v9851_v27 = vsel %vm20331_vm13, %v9825_v36, %v9827_v4  ;;  %vm20332_vm14 = vmmov %vm20303_vm0  ;;  %v20334_v25 = vrot.slane %v20333_v40, 1  ;;  %v20341_v34 = vld [vmem:[#allocation84_spill] sm:$0xff]  ;;  %v20367_v60 = vrot.slane %v17694_v51, 3 }
 0xc9d   :  { %v11092_v42 = vmul.f32 %v20301_v56, %v20329_v59  ;;  %v10399_v22 = vadd.f32 %v10375_v31, %v10217_v33  ;;  %v9852_v15 = vsel %vm20332_vm14, %v9827_v4, %v9829_v28  ;;  %v20337_v59 = vld [vmem:[#allocation222_spill] sm:$0xff]  ;;  %vm20339_vm4 = vmmov %vm20335_vm3  ;;  %v9875_v62 = vadd.f32 %v9851_v27, %v18200_v54  ;;  %v20342_v4 = vld [vmem:[#allocation93_spill] sm:$0xff] }
 0xc9e   :  { %v18368_v61 = vsel %vm20335_vm3, %v10907_v57, %v20334_v25  ;;  %v20338_v33 = vrot.slane %v20337_v59, 1  ;;  %v9876_v30 = vadd.f32 %v9852_v15, %v18203_v12  ;;  %v11013_v28 = vrot.slane %v10986_v52, 2  ;;  %v20343_v29 = vld [vmem:[#allocation55_spill] sm:$0xff]  ;;  %v18386_v17 = vpop.permute.xlu0 %9816  ;;  %v20344_v12 = vld [vmem:[#allocation226_spill] sm:$0xff]  ;;  %v20346_v52 = vld [vmem:[#allocation133_spill] sm:$0xff]  ;;  %v18396_v15 = vpop.permute.xlu1 %9846 }
 0xc9f   :  { %20336 = vst [vmem:[#allocation54_spill] sm:$0xff] %v18368_v61  ;;  %v18378_v36 = vadd.f32 %v20341_v34, %v10399_v22  ;;  %v10009_v37 = vsel %vm215_vm1, %v20343_v29, %v20342_v4  ;;  %v10010_v57 = vsel %vm215_vm1, %v20342_v4, %v20309_v21  ;;  %v11016_v25 = vrot.slane %v10987_v5, 2  ;;  %v20345_v34 = vld [vmem:[#allocation41_spill] sm:$0xff]  ;;  %v20347_v21 = vld [vmem:[#allocation163_spill] sm:$0xff]  ;;  %vm20363_vm15 = vmmov %vm20359_vm6 }
 0xca0   :  { %v18373_v31 = vsel %vm20339_vm4, %v10910_v1, %v20338_v33  ;;  %v11119_v58 = vrot.slane %v11092_v42, 3  ;;  %v10033_v1 = vadd.f32 %v10009_v37, %v9875_v62  ;;  %v10034_v33 = vadd.f32 %v10010_v57, %v9876_v30  ;;  %v12719_v5 = vld [vmem:[#allocation2 + $0x18] sm:$0xff]  ;;  %v20348_v42 = vld [vmem:[#allocation227_spill] sm:$0xff]  ;;  %vm20376_vm0 = vmmov %vm20373_vm2 }
 0xca1   :  { %20340 = vst [vmem:[#allocation50_spill] sm:$0xff] %v18373_v31  ;;  %v11122_v54 = vrot.slane %v11093_v3, 3  ;;  %v11198_v22 = vmul.f32 %v20301_v56, %v20344_v12  ;;  %v10191_v27 = vsel %vm215_vm1, %v20346_v52, %v20345_v34  ;;  %v10192_v29 = vsel %vm215_vm1, %v20345_v34, %v20319_v19  ;;  %v20350_v56 = vld [vmem:[#allocation230_spill] sm:$0xff]  ;;  %v20351_v57 = vld [vmem:[#allocation231_spill] sm:$0xff]  ;;  %v20352_v52 = vld [vmem:[#allocation85_spill] sm:$0xff] }
 0xca2   :  { %v11199_v37 = vmul.f32 %v20305_v41, %v20347_v21  ;;  %v18401_v62 = vmul.f32 %v12719_v5, %v20348_v42  ;;  %v10215_v3 = vadd.f32 %v10191_v27, %v10033_v1  ;;  %v10216_v30 = vadd.f32 %v10192_v29, %v10034_v33  ;;  %v20354_v34 = vld [vmem:[#allocation232_spill] sm:$0xff]  ;;  %v20355_v21 = vld [vmem:[#allocation233_spill] sm:$0xff]  ;;  %v9823_v42 = vpop.permute.xlu0 %9822  ;;  %v20357_v31 = vld [vmem:[#allocation223_spill] sm:$0xff] }
 0xca3   :  { %v10876_v4 = vmul.f32 %v12719_v5, %v20350_v56  ;;  %v10982_v12 = vmul.f32 %v12719_v5, %v20351_v57  ;;  %v10373_v35 = vsel %vm215_vm1, %v20353_v32, %v20352_v52  ;;  %v10374_v19 = vsel %vm215_vm1, %v20352_v52, %v20327_v10  ;;  %v12720_v33 = vld [vmem:[#allocation2 + $0x58] sm:$0xff]  ;;  %v18415_v57 = vpop.permute.xlu1 %10706  ;;  %v20361_v10 = vld [vmem:[#allocation224_spill] sm:$0xff]  ;;  %vm20379_vm13 = vmmov %vm20335_vm3 }
 0xca4   :  { %20349 = vst [vmem:[#allocation53_spill] sm:$0xff] %v18401_v62  ;;  %v11088_v41 = vmul.f32 %v12719_v5, %v20354_v34  ;;  %v11194_v46 = vmul.f32 %v12719_v5, %v20355_v21  ;;  %v10397_v62 = vadd.f32 %v10373_v35, %v10215_v3  ;;  %v10398_v1 = vadd.f32 %v10374_v19, %v10216_v30  ;;  %v20356_v27 = vld [vmem:[#allocation237_spill] sm:$0xff]  ;;  %v20365_v3 = vld [vmem:[#allocation30_spill] sm:$0xff]  ;;  %vm20382_vm14 = vmmov %vm20359_vm6 }
 0xca5   :  { %v10882_v29 = vmul.f32 %v12720_v33, %v20356_v27  ;;  %v10988_v56 = vmul.f32 %v12720_v33, %v20312_v8  ;;  %v20358_v32 = vrot.slane %v20357_v31, 2  ;;  %v20362_v52 = vrot.slane %v20361_v10, 2  ;;  %v20366_v19 = vld [vmem:[#allocation6_spill] sm:$0xff]  ;;  %vm20390_vm3 = vmmov %vm20376_vm0 }
 0xca6   :  { %v11094_v35 = vmul.f32 %v12720_v33, %v20315_v39  ;;  %v11200_v5 = vmul.f32 %v12720_v33, %v18292_v63  ;;  %v10579_v30 = vadd.f32 %v20365_v3, %v10397_v62  ;;  %v10580_v8 = vadd.f32 %v20366_v19, %v10398_v1  ;;  %v20386_v19 = vld [vmem:[#allocation236_spill] sm:$0xff] }
 0xca7   :  { %v18420_v61 = vsel %vm20359_vm6, %v11013_v28, %v20358_v32  ;;  %v18425_v34 = vsel %vm20363_vm15, %v11016_v25, %v20362_v52  ;;  %v11225_v21 = vrot.slane %v11198_v22, 4  ;;  %v11228_v27 = vrot.slane %v11199_v37, 4  ;;  %v10713_v25 = vpop.permute.xlu0 %10712  ;;  %v20369_v52 = vld [vmem:[#allocation234_spill] sm:$0xff]  ;;  %vm20402_vm15 = vmmov %vm20376_vm0 }
 0xca8   :  { %20360 = vst [vmem:[#allocation48_spill] sm:$0xff] %v18420_v61  ;;  %20364 = vst [vmem:[#allocation89_spill] sm:$0xff] %v18425_v34  ;;  %v18434_v28 = vsel %vm7947_vm10, %v11119_v58, %v20367_v60  ;;  %v10904_v32 = vrot.slane %v10876_v4, 1  ;;  %v11010_v61 = vrot.slane %v10982_v12, 2  ;;  %v11116_v20 = vrot.slane %v11088_v41, 3  ;;  %v18445_v58 = vpop.permute.xlu1 %10726 }
 0xca9   :  { %20368 = vst [vmem:[#allocation43_spill] sm:$0xff] %v18434_v28  ;;  %v20370_v34 = vrot.slane %v20369_v52, 3  ;;  %v11222_v63 = vrot.slane %v11194_v46, 4  ;;  %v10913_v62 = vrot.slane %v10882_v29, 1  ;;  %v11019_v3 = vrot.slane %v10988_v56, 2 }
 0xcaa   :  { %v10737_v22 = vsel %vm215_vm1, %v18322_v48, %v10713_v25  ;;  %v10738_v37 = vsel %vm215_vm1, %v10713_v25, %v18303_v14  ;;  %v11125_v60 = vrot.slane %v11094_v35, 3  ;;  %v11231_v4 = vrot.slane %v11200_v5, 4 }
 0xcab   :  { %v18439_v39 = vsel %vm7947_vm10, %v11122_v54, %v20370_v34  ;;  %v10761_v12 = vadd.f32 %v10737_v22, %v10579_v30  ;;  %v10762_v41 = vadd.f32 %v10738_v37, %v10580_v8  ;;  %v20372_v1 = vrot.slane %v17767_v47, 4  ;;  %v18476_v25 = vpop.permute.xlu0 %10702 }
 0xcac   :  { %20371 = vst [vmem:[#allocation91_spill] sm:$0xff] %v18439_v39  ;;  %v20375_v46 = vrot.slane %v17776_v55, 4  ;;  %v20378_v48 = vrot.slane %v17781_v43, 1  ;;  %v20381_v34 = vrot.slane %v17785_v38, 2  ;;  %v20384_v5 = vrot.slane %v20307_v53, 3 }
 0xcad   :  { %v18450_v54 = vsel %vm20373_vm2, %v11225_v21, %v20372_v1  ;;  %v18473_v8 = vmul.f32 %v12720_v33, %v20386_v19  ;;  %v20388_v21 = vld [vmem:[#allocation75_spill] sm:$0xff]  ;;  %v20396_v33 = vld [vmem:[#allocation65_spill] sm:$0xff] }
 0xcae   :  { %20374 = vst [vmem:[#allocation45_spill] sm:$0xff] %v18450_v54  ;;  %v18455_v29 = vsel %vm20376_vm0, %v11228_v27, %v20375_v46  ;;  %v18460_v56 = vsel %vm20379_vm13, %v10904_v32, %v20378_v48  ;;  %v18465_v35 = vsel %vm20382_vm14, %v11010_v61, %v20381_v34  ;;  %v18470_v30 = vsel %vm7947_vm10, %v11116_v20, %v20384_v5  ;;  %v20397_v46 = vld [vmem:[#allocation59_spill] sm:$0xff]  ;;  %v20398_v48 = vld [vmem:[#allocation168_spill] sm:$0xff]  ;;  %v9845_v5 = vpop.permute.xlu1 %9844 }
 0xcaf   :  { %20377 = vst [vmem:[#allocation97_spill] sm:$0xff] %v18455_v29  ;;  %20380 = vst [vmem:[#allocation57_spill] sm:$0xff] %v18460_v56  ;;  %v10825_v27 = vadd.f32 %v20388_v21, %v10761_v12  ;;  %v20389_v32 = vrot.slane %v20311_v0, 4  ;;  %v20392_v61 = vrot.slane %v20320_v44, 1  ;;  %v20394_v20 = vrot.slane %v18320_v49, 2  ;;  %v20432_v56 = vld [vmem:[#allocation166_spill] sm:$0xff] }
 0xcb0   :  { %20383 = vst [vmem:[#allocation98_spill] sm:$0xff] %v18465_v35  ;;  %20385 = vst [vmem:[#allocation68_spill] sm:$0xff] %v18470_v30  ;;  %v10008_v12 = vsel %vm215_vm1, %v20397_v46, %v20396_v33  ;;  %v10826_v34 = vadd.f32 %v20398_v48, %v10762_v41  ;;  %v20406_v41 = vld [vmem:[#allocation101_spill] sm:$0xff]  ;;  %v20407_v33 = vld [vmem:[#allocation90_spill] sm:$0xff] }
 0xcb1   :  { %20387 = vst [vmem:[#allocation107_spill] sm:$0xff] %v18473_v8  ;;  %v18481_v22 = vsel %vm20390_vm3, %v11222_v63, %v20389_v32  ;;  %v18486_v37 = vsel %vm20339_vm4, %v10913_v62, %v20392_v61  ;;  %v18491_v1 = vsel %vm20359_vm6, %v11019_v3, %v20394_v20  ;;  %v20399_v63 = vrot.slane %v18328_v13, 3  ;;  %v20404_v32 = vld [vmem:[#allocation95_spill] sm:$0xff]  ;;  %v20405_v3 = vld [vmem:[#allocation64_spill] sm:$0xff] }
 0xcb2   :  { %20391 = vst [vmem:[#allocation106_spill] sm:$0xff] %v18481_v22  ;;  %20393 = vst [vmem:[#allocation113_spill] sm:$0xff] %v18486_v37  ;;  %v20401_v62 = vrot.slane %v18331_v11, 4  ;;  %v10006_v61 = vsel %vm215_vm1, %v20405_v3, %v20404_v32  ;;  %v10007_v20 = vsel %vm215_vm1, %v20404_v32, %v20397_v46  ;;  %v10015_v48 = vsel %vm215_vm1, %v20407_v33, %v20406_v41  ;;  %v20411_v3 = vld [vmem:[#allocation96_spill] sm:$0xff]  ;;  %v18550_v39 = vpop.permute.xlu1 %9832  ;;  %v20431_v11 = vld [vmem:[#allocation125_spill] sm:$0xff] }
 0xcb3   :  { %20395 = vst [vmem:[#allocation105_spill] sm:$0xff] %v18491_v1  ;;  %v18500_v19 = vsel %vm7947_vm10, %v11125_v60, %v20399_v63  ;;  %vm20408_vm10 = vcmask 523264   ;;  %v20409_v63 = vld [vmem:[#allocation102_spill] sm:$0xff]  ;;  %v20413_v32 = vld [vmem:[#allocation104_spill] sm:$0xff] }
 0xcb4   :  { %20400 = vst [vmem:[#allocation10_spill] sm:$0xff] %v18500_v19  ;;  %v18505_v21 = vsel %vm20402_vm15, %v11231_v4, %v20401_v62  ;;  %v9859_v60 = vsel %vm20408_vm10, %v9845_v5, %v18396_v15  ;;  %v10016_v4 = vsel %vm215_vm1, %v20406_v41, %v20409_v63  ;;  %v20410_v62 = vld [vmem:[#allocation94_spill] sm:$0xff]  ;;  %v20412_v19 = vld [vmem:[#allocation103_spill] sm:$0xff]  ;;  %v20414_v33 = vld [vmem:[#allocation92_spill] sm:$0xff] }
 0xcb5   :  { %20403 = vst [vmem:[#allocation60_spill] sm:$0xff] %v18505_v21  ;;  %v10017_v21 = vsel %vm215_vm1, %v20409_v63, %v20410_v62  ;;  %v18527_v22 = vsel %vm215_vm1, %v20412_v19, %v20411_v3  ;;  %v9883_v46 = vadd.f32 %v9859_v60, %v18247_v24  ;;  %v18533_v30 = vsel %vm215_vm1, %v20414_v33, %v20413_v32  ;;  %vm20415_vm2 = vmmov %vm20408_vm10  ;;  %v20416_v63 = vld [vmem:[#allocation164_spill] sm:$0xff]  ;;  %v9819_v3 = vpop.permute.xlu0 %9818 }
 0xcb6   :  { %v18538_v15 = vsel %vm215_vm1, %v20413_v32, %v20412_v19  ;;  %v9850_v41 = vsel %vm20415_vm2, %v18336_v18, %v9823_v42  ;;  %v20417_v62 = vrot.slane %v20416_v63, 1  ;;  %v20418_v1 = vld [vmem:[#allocation80_spill] sm:$0xff]  ;;  %vm20420_vm0 = vmmov %vm20415_vm2  ;;  %v20422_v19 = vld [vmem:[#allocation141_spill] sm:$0xff]  ;;  %vm20479_vm10 = vcmask 1043456  }
 0xcb7   :  { %v20419_v54 = vrot.slane %v20418_v1, 1  ;;  %v10041_v60 = vadd.f32 %v10017_v21, %v9883_v46  ;;  %v9848_v33 = vsel %vm20420_vm0, %v18386_v17, %v9819_v3  ;;  %vm20421_vm13 = vmmov %vm20420_vm0  ;;  %v20423_v32 = vld [vmem:[#allocation137_spill] sm:$0xff]  ;;  %v20424_v37 = vld [vmem:[#allocation140_spill] sm:$0xff]  ;;  %v9874_v46 = vadd.f32 %v9850_v41, %v18244_v7 }
 0xcb8   :  { %v10931_v29 = vadd.f32 %v20417_v62, %v10825_v27  ;;  %v9849_v35 = vsel %vm20421_vm13, %v9819_v3, %v18336_v18  ;;  %v10190_v42 = vsel %vm215_vm1, %v20423_v32, %v20422_v19  ;;  %v20425_v63 = vld [vmem:[#allocation27_spill] sm:$0xff]  ;;  %v9872_v1 = vadd.f32 %v9848_v33, %v18262_v9  ;;  %v20428_v3 = vld [vmem:[#allocation29_spill] sm:$0xff]  ;;  %v20429_v19 = vld [vmem:[#allocation138_spill] sm:$0xff] }
 0xcb9   :  { %v10932_v24 = vadd.f32 %v20419_v54, %v10826_v34  ;;  %v10199_v27 = vsel %vm215_vm1, %v20425_v63, %v20424_v37  ;;  %v9873_v54 = vadd.f32 %v9849_v35, %v18265_v23  ;;  %v20426_v34 = vld [vmem:[#allocation142_spill] sm:$0xff]  ;;  %v20427_v21 = vld [vmem:[#allocation139_spill] sm:$0xff]  ;;  %v10197_v28 = vsel %vm215_vm1, %v20429_v19, %v20428_v3  ;;  %v20430_v37 = vld [vmem:[#allocation88_spill] sm:$0xff]  ;;  %v10705_v33 = vpop.permute.xlu0 %10704 }
 0xcba   :  { %v10188_v17 = vsel %vm215_vm1, %v20427_v21, %v20426_v34  ;;  %v10189_v18 = vsel %vm215_vm1, %v20426_v34, %v20423_v32  ;;  %v10223_v62 = vadd.f32 %v10199_v27, %v10041_v60  ;;  %v10381_v9 = vsel %vm215_vm1, %v20431_v11, %v20430_v37  ;;  %v20434_v7 = vld [vmem:[#allocation190_spill] sm:$0xff]  ;;  %v9839_v27 = vpop.permute.xlu1 %9838  ;;  %v20436_v19 = vld [vmem:[#allocation143_spill] sm:$0xff]  ;;  %v20437_v0 = vld [vmem:[#allocation144_spill] sm:$0xff] }
 0xcbb   :  { %v10030_v23 = vadd.f32 %v10006_v61, %v9872_v1  ;;  %v10031_v35 = vadd.f32 %v10007_v20, %v9873_v54  ;;  %v10198_v21 = vsel %vm215_vm1, %v20428_v3, %v20425_v63  ;;  %v20433_v32 = vrot.slane %v20432_v56, 2  ;;  %v20438_v61 = vld [vmem:[#allocation145_spill] sm:$0xff]  ;;  %v20439_v20 = vld [vmem:[#allocation31_spill] sm:$0xff]  ;;  %v20440_v3 = vld [vmem:[#allocation72_spill] sm:$0xff] }
 0xcbc   :  { %v20435_v41 = vrot.slane %v20434_v7, 2  ;;  %v10405_v8 = vadd.f32 %v10381_v9, %v10223_v62  ;;  %v18583_v13 = vsel %vm215_vm1, %v20437_v0, %v20436_v19  ;;  %v18588_v1 = vsel %vm215_vm1, %v20439_v20, %v20438_v61  ;;  %v20441_v56 = vld [vmem:[#allocation186_spill] sm:$0xff]  ;;  %v20443_v9 = vld [vmem:[#allocation28_spill] sm:$0xff]  ;;  %vm20450_vm14 = vmmov %vm20420_vm0 }
 0xcbd   :  { %v11037_v34 = vadd.f32 %v20433_v32, %v10931_v29  ;;  %v10212_v54 = vadd.f32 %v10188_v17, %v10030_v23  ;;  %v10213_v63 = vadd.f32 %v10189_v18, %v10031_v35  ;;  %v10370_v29 = vsel %vm215_vm1, %v20441_v56, %v20440_v3  ;;  %v20442_v37 = vld [vmem:[#allocation70_spill] sm:$0xff]  ;;  %v20445_v17 = vld [vmem:[#allocation33_spill] sm:$0xff]  ;;  %v9843_v19 = vpop.permute.xlu0 %9842  ;;  %v20446_v20 = vld [vmem:[#allocation192_spill] sm:$0xff] }
 0xcbe   :  { %v11038_v60 = vadd.f32 %v20435_v41, %v10932_v24  ;;  %v10371_v24 = vsel %vm215_vm1, %v20440_v3, %v20442_v37  ;;  %v10032_v62 = vadd.f32 %v10008_v12, %v9874_v46  ;;  %v18597_v32 = vadd.f32 %v20443_v9, %v10405_v8  ;;  %v20444_v41 = vld [vmem:[#allocation9_spill] sm:$0xff]  ;;  %vm20451_vm3 = vmmov %vm20420_vm0 }
 0xcbf   :  { %v18602_v7 = vsel %vm215_vm1, %v20438_v61, %v20437_v0  ;;  %v10553_v18 = vsel %vm215_vm1, %v20445_v17, %v20444_v41  ;;  %v10394_v23 = vadd.f32 %v10370_v29, %v10212_v54  ;;  %v10395_v35 = vadd.f32 %v10371_v24, %v10213_v63  ;;  %v20448_v3 = vld [vmem:[#allocation193_spill] sm:$0xff]  ;;  %v18614_v0 = vpop.permute.xlu1 %10730  ;;  %v20452_v61 = vld [vmem:[#allocation34_spill] sm:$0xff]  ;;  %v20453_v29 = vld [vmem:[#allocation187_spill] sm:$0xff] }
 0xcc0   :  { %v20447_v56 = vrot.slane %v20446_v20, 3  ;;  %v20449_v12 = vrot.slane %v20448_v3, 3  ;;  %v9857_v8 = vsel %vm20450_vm14, %v18363_v2, %v9843_v19  ;;  %v9858_v9 = vsel %vm20451_vm3, %v9843_v19, %v9845_v5  ;;  %v20456_v20 = vld [vmem:[#allocation197_spill] sm:$0xff]  ;;  %v20458_v3 = vld [vmem:[#allocation198_spill] sm:$0xff]  ;;  %vm20470_vm4 = vmmov %vm20420_vm0 }
 0xcc1   :  { %v10576_v49 = vadd.f32 %v20452_v61, %v10394_v23  ;;  %v10577_v38 = vadd.f32 %v10553_v18, %v10395_v35  ;;  %v9881_v54 = vadd.f32 %v9857_v8, %v18279_v50  ;;  %v9882_v63 = vadd.f32 %v9858_v9, %v18282_v6  ;;  %v10729_v18 = vpop.permute.xlu0 %10728  ;;  %v20454_v35 = vld [vmem:[#allocation39_spill] sm:$0xff]  ;;  %v20455_v50 = vld [vmem:[#allocation184_spill] sm:$0xff]  ;;  %v20463_v61 = vld [vmem:[#allocation169_spill] sm:$0xff] }
 0xcc2   :  { %v11143_v53 = vadd.f32 %v20447_v56, %v11037_v34  ;;  %v11144_v46 = vadd.f32 %v20449_v12, %v11038_v60  ;;  %v10372_v34 = vsel %vm215_vm1, %v20442_v37, %v20453_v29  ;;  %v10734_v60 = vsel %vm215_vm1, %v18476_v25, %v10705_v33  ;;  %v20462_v9 = vld [vmem:[#allocation128_spill] sm:$0xff]  ;;  %v20466_v29 = vld [vmem:[#allocation26_spill] sm:$0xff]  ;;  %vm20475_vm6 = vmmov %vm20420_vm0 }
 0xcc3   :  { %v10735_v2 = vsel %vm215_vm1, %v10705_v33, %v18415_v57  ;;  %v10214_v5 = vadd.f32 %v10190_v42, %v10032_v62  ;;  %v10758_v24 = vadd.f32 %v10734_v60, %v10576_v49  ;;  %v10039_v19 = vadd.f32 %v10015_v48, %v9881_v54  ;;  %v20460_v49 = vld [vmem:[#allocation194_spill] sm:$0xff]  ;;  %v20467_v60 = vld [vmem:[#allocation161_spill] sm:$0xff]  ;;  %vm20476_vm15 = vmmov %vm20420_vm0 }
 0xcc4   :  { %v10759_v17 = vadd.f32 %v10735_v2, %v10577_v38  ;;  %v10040_v23 = vadd.f32 %v10016_v4, %v9882_v63  ;;  %v10379_v6 = vsel %vm215_vm1, %v20455_v50, %v20454_v35  ;;  %v10380_v37 = vsel %vm215_vm1, %v20454_v35, %v20431_v11  ;;  %v18640_v38 = vpop.permute.xlu1 %10718  ;;  %v20461_v4 = vld [vmem:[#allocation195_spill] sm:$0xff]  ;;  %v20464_v54 = vld [vmem:[#allocation170_spill] sm:$0xff]  ;;  %vm20482_vm2 = vmmov %vm20479_vm10 }
 0xcc5   :  { %v20457_v56 = vrot.slane %v20456_v20, 4  ;;  %v20459_v33 = vrot.slane %v20458_v3, 4  ;;  %v10822_v48 = vadd.f32 %v20460_v49, %v10758_v24  ;;  %v10221_v12 = vadd.f32 %v10197_v28, %v10039_v19  ;;  %v20465_v63 = vld [vmem:[#allocation126_spill] sm:$0xff]  ;;  %v9837_v19 = vpop.permute.xlu0 %9836  ;;  %v20472_v49 = vld [vmem:[#allocation200_spill] sm:$0xff]  ;;  %vm20483_vm0 = vmmov %vm20482_vm2 }
 0xcc6   :  { %v10823_v62 = vadd.f32 %v20461_v4, %v10759_v17  ;;  %v10222_v8 = vadd.f32 %v10198_v21, %v10040_v23  ;;  %v10378_v11 = vsel %vm215_vm1, %v20463_v61, %v20462_v9  ;;  %v10396_v2 = vadd.f32 %v10372_v34, %v10214_v5  ;;  %v20468_v35 = vld [vmem:[#allocation82_spill] sm:$0xff]  ;;  %v20471_v5 = vld [vmem:[#allocation199_spill] sm:$0xff]  ;;  %vm20513_vm13 = vmmov %vm20483_vm0 }
 0xcc7   :  { %v18634_v25 = vadd.f32 %v20457_v56, %v11143_v53  ;;  %v18638_v42 = vadd.f32 %v20459_v33, %v11144_v46  ;;  %v10376_v53 = vsel %vm215_vm1, %v20465_v63, %v20464_v54  ;;  %v18653_v46 = vsel %vm215_vm1, %v20467_v60, %v20466_v29  ;;  %v20469_v50 = vld [vmem:[#allocation86_spill] sm:$0xff]  ;;  %vm20526_vm14 = vmmov %vm20483_vm0 }
 0xcc8   :  { %v10928_v24 = vadd.f32 %v20468_v35, %v10822_v48  ;;  %v10929_v17 = vadd.f32 %v20469_v50, %v10823_v62  ;;  %v10403_v28 = vadd.f32 %v10379_v6, %v10221_v12  ;;  %v10404_v21 = vadd.f32 %v10380_v37, %v10222_v8  ;;  %v9835_v34 = vpop.permute.xlu1 %9834  ;;  %v20473_v6 = vld [vmem:[#allocation71_spill] sm:$0xff]  ;;  %v20474_v4 = vld [vmem:[#allocation42_spill] sm:$0xff]  ;;  %vm20531_vm3 = vmmov %vm20483_vm0 }
 0xcc9   :  { %v18659_v23 = vmul.f32 %v18634_v25, %v18634_v25  ;;  %v11312_v20 = vmul.f32 %v18638_v42, %v18638_v42  ;;  %v10743_v56 = vsel %vm215_vm1, %v18445_v58, %v10729_v18  ;;  %v9856_v3 = vsel %vm20470_vm4, %v9837_v19, %v9839_v27  ;;  %v20477_v27 = vld [vmem:[#allocation201_spill] sm:$0xff]  ;;  %v20478_v54 = vld [vmem:[#allocation206_spill] sm:$0xff]  ;;  %vm20532_vm4 = vmmov %vm20483_vm0 }
 0xcca   :  { %v11034_v33 = vadd.f32 %v20471_v5, %v10928_v24  ;;  %v11035_v48 = vadd.f32 %v20472_v49, %v10929_v17  ;;  %v10585_v37 = vadd.f32 %v20473_v6, %v10403_v28  ;;  %v10586_v62 = vadd.f32 %v20474_v4, %v10404_v21  ;;  %v10527_v24 = vpop.permute.xlu0 %10526 }
 0xccb   :  { %v10744_v12 = vsel %vm215_vm1, %v10729_v18, %v18614_v0  ;;  %v9880_v8 = vadd.f32 %v9856_v3, %v18309_v16  ;;  %v9854_v9 = vsel %vm20475_vm6, %v18550_v39, %v9835_v34  ;;  %v9855_v58 = vsel %vm20476_vm15, %v9835_v34, %v9837_v19  ;;  %v20480_v39 = vld [vmem:[#allocation217_spill] sm:$0xff]  ;;  %v20481_v19 = vld [vmem:[#allocation218_spill] sm:$0xff]  ;;  %vm20535_vm6 = vmmov %vm20483_vm0 }
 0xccc   :  { %v11140_v61 = vadd.f32 %v20477_v27, %v11034_v33  ;;  %v11141_v63 = vadd.f32 %v20478_v54, %v11035_v48  ;;  %v10767_v60 = vadd.f32 %v10743_v56, %v10585_v37  ;;  %v10768_v35 = vadd.f32 %v10744_v12, %v10586_v62  ;;  %v10543_v28 = vpop.permute.xlu1 %10542  ;;  %v20484_v33 = vld [vmem:[#allocation213_spill] sm:$0xff]  ;;  %v20485_v48 = vld [vmem:[#allocation214_spill] sm:$0xff]  ;;  %vm20537_vm15 = vmmov %vm20483_vm0 }
 0xccd   :  { %v10038_v50 = vadd.f32 %v18527_v22, %v9880_v8  ;;  %v9878_v17 = vadd.f32 %v9854_v9, %v18316_v26  ;;  %v9879_v18 = vadd.f32 %v9855_v58, %v18325_v45  ;;  %v11268_v16 = vsel %vm20479_vm10, %v18638_v42, 0.0  ;;  %vm20538_vm10 = vmmov %vm20483_vm0 }
 0xcce   :  { %v10831_v21 = vadd.f32 %v20480_v39, %v10767_v60  ;;  %v10832_v3 = vadd.f32 %v20481_v19, %v10768_v35  ;;  %v18686_v34 = vsel %vm20482_vm2, %v11312_v20, 0.0  ;;  %v18690_v56 = vsel %vm20483_vm0, %v18634_v25, 0.0  ;;  %vm20539_vm2 = vmmov %vm20483_vm0 }
 0xccf   :  { %v10036_v22 = vadd.f32 %v18533_v30, %v9878_v17  ;;  %v10037_v26 = vadd.f32 %v18538_v15, %v9879_v18  ;;  %v10554_v45 = vsel %vm215_vm1, %v20444_v41, %v10527_v24  ;;  %v10220_v5 = vadd.f32 %v18583_v13, %v10038_v50  ;;  %v10717_v30 = vpop.permute.xlu0 %10716  ;;  %v20493_v24 = vld [vmem:[#allocation235_spill] sm:$0xff] }
 0xcd0   :  { %v18698_v49 = vadd.f32 %v20484_v33, %v11140_v61  ;;  %v18701_v6 = vadd.f32 %v20485_v48, %v11141_v63  ;;  %v20486_v20 = vrot.slane %v20333_v40, 1  ;;  %v20487_v4 = vrot.slane %v20337_v59, 1  ;;  %v10733_v8 = vpop.permute.xlu1 %10732  ;;  %v20500_v33 = vld [vmem:[#allocation238_spill] sm:$0xff] }
 0xcd1   :  { %v10218_v15 = vadd.f32 %v18588_v1, %v10036_v22  ;;  %v10219_v12 = vadd.f32 %v18602_v7, %v10037_v26  ;;  %v10402_v41 = vadd.f32 %v10378_v11, %v10220_v5  ;;  %v10739_v13 = vsel %vm215_vm1, %v18303_v14, %v10717_v30  ;;  %v20490_v11 = vld [vmem:[#allocation132_spill] sm:$0xff]  ;;  %v20504_v30 = vld [vmem:[#allocation189_spill] sm:$0xff] }
 0xcd2   :  { %v10937_v37 = vadd.f32 %v20486_v20, %v10831_v21  ;;  %v10938_v62 = vadd.f32 %v20487_v4, %v10832_v3  ;;  %v20488_v9 = vrot.slane %v20357_v31, 2  ;;  %v20489_v27 = vrot.slane %v20361_v10, 2  ;;  %v20502_v4 = vld [vmem:[#allocation173_spill] sm:$0xff] }
 0xcd3   :  { %v10763_v61 = vadd.f32 %v10739_v13, %v18378_v36  ;;  %v10745_v59 = vsel %vm215_vm1, %v18614_v0, %v10733_v8  ;;  %v10578_v54 = vadd.f32 %v10554_v45, %v10396_v2  ;;  %v10400_v7 = vadd.f32 %v10376_v53, %v10218_v15  ;;  %v10723_v50 = vpop.permute.xlu0 %10722  ;;  %v20494_v2 = vld [vmem:[#allocation7_spill] sm:$0xff] }
 0xcd4   :  { %v11043_v58 = vadd.f32 %v20488_v9, %v10937_v37  ;;  %v11044_v40 = vadd.f32 %v20489_v27, %v10938_v62  ;;  %v10769_v1 = vadd.f32 %v10745_v59, %v18597_v32  ;;  %v10401_v63 = vadd.f32 %v20490_v11, %v10219_v12  ;;  %v20495_v32 = vld [vmem:[#allocation135_spill] sm:$0xff]  ;;  %v10721_v39 = vpop.permute.xlu1 %10720 }
 0xcd5   :  { %v20491_v14 = vrot.slane %v17694_v51, 3  ;;  %v20492_v31 = vrot.slane %v20369_v52, 3  ;;  %v10827_v10 = vadd.f32 %v20493_v24, %v10763_v61  ;;  %v11269_v36 = vadd.f32 %v11268_v16, %v18701_v6  ;;  %v20505_v13 = vld [vmem:[#allocation239_spill] sm:$0xff]  ;;  %v20508_v61 = vld [vmem:[#allocation69_spill] sm:$0xff] }
 0xcd6   :  { %v10560_v0 = vsel %vm215_vm1, %v20466_v29, %v10543_v28  ;;  %v10833_v17 = vadd.f32 %v20494_v2, %v10769_v1  ;;  %v10582_v53 = vadd.f32 %v20495_v32, %v10400_v7  ;;  %v10583_v18 = vadd.f32 %v18653_v46, %v10401_v63  ;;  %v20507_v9 = vld [vmem:[#allocation191_spill] sm:$0xff]  ;;  %v20510_v7 = vld [vmem:[#allocation54_spill] sm:$0xff]  ;;  %v20516_v2 = vld [vmem:[#allocation48_spill] sm:$0xff] }
 0xcd7   :  { %v11149_v60 = vadd.f32 %v20491_v14, %v11043_v58  ;;  %v11150_v35 = vadd.f32 %v20492_v31, %v11044_v40  ;;  %v10584_v51 = vadd.f32 %v10560_v0, %v10402_v41  ;;  %v20496_v21 = vrot.slane %v17781_v43, 1  ;;  %v10709_v37 = vpop.permute.xlu0 %10708  ;;  %v20517_v32 = vld [vmem:[#allocation107_spill] sm:$0xff] }
 0xcd8   :  { %v10740_v19 = vsel %vm215_vm1, %v18640_v38, %v10721_v39  ;;  %v11309_v16 = vmul.f32 %v18701_v6, %v18701_v6  ;;  %v20497_v3 = vrot.slane %v20320_v44, 1  ;;  %v10741_v28 = vsel %vm215_vm1, %v10721_v39, %v10723_v50  ;;  %v20518_v39 = vld [vmem:[#allocation89_spill] sm:$0xff] }
 0xcd9   :  { %v10933_v52 = vadd.f32 %v20496_v21, %v10827_v10  ;;  %v10764_v22 = vadd.f32 %v10740_v19, %v10582_v53  ;;  %v11270_v26 = vrot.slane %v11269_v36, 4  ;;  %v20498_v46 = vrot.slane %v17767_v47, 4  ;;  %v10725_v47 = vpop.permute.xlu1 %10724  ;;  %v20519_v21 = vld [vmem:[#allocation57_spill] sm:$0xff]  ;;  %v20520_v19 = vld [vmem:[#allocation74_spill] sm:$0xff] }
 0xcda   :  { %v10939_v29 = vadd.f32 %v20497_v3, %v10833_v17  ;;  %v20499_v43 = vrot.slane %v17776_v55, 4  ;;  %v20501_v38 = vrot.slane %v20500_v33, 2  ;;  %v10765_v20 = vadd.f32 %v10741_v28, %v10583_v18  ;;  %v20522_v28 = vld [vmem:[#allocation43_spill] sm:$0xff] }
 0xcdb   :  { %v18742_v45 = vadd.f32 %v20498_v46, %v11149_v60  ;;  %v20503_v44 = vrot.slane %v20502_v4, 2  ;;  %v10828_v15 = vadd.f32 %v20504_v30, %v10764_v22  ;;  %v10736_v12 = vsel %vm215_vm1, %v18415_v57, %v10709_v37  ;;  %v20511_v60 = vld [vmem:[#allocation50_spill] sm:$0xff]  ;;  %v20524_v33 = vld [vmem:[#allocation91_spill] sm:$0xff] }
 0xcdc   :  { %v18746_v5 = vadd.f32 %v20499_v43, %v11150_v35  ;;  %v11039_v48 = vadd.f32 %v20501_v38, %v10933_v52  ;;  %v11271_v41 = vadd.f32 %v11270_v26, %v11269_v36  ;;  %v20506_v8 = vrot.slane %v20505_v13, 3  ;;  %v20512_v35 = vld [vmem:[#allocation53_spill] sm:$0xff] }
 0xcdd   :  { %v11045_v62 = vadd.f32 %v20503_v44, %v10939_v29  ;;  %v10829_v58 = vadd.f32 %v20507_v9, %v10765_v20  ;;  %v10760_v27 = vadd.f32 %v10736_v12, %v10578_v54  ;;  %v10742_v40 = vsel %vm215_vm1, %v10723_v50, %v10725_v47  ;;  %v20514_v50 = vld [vmem:[#allocation240_spill] sm:$0xff]  ;;  %v20523_v26 = vld [vmem:[#allocation113_spill] sm:$0xff] }
 0xcde   :  { %v11145_v55 = vadd.f32 %v20506_v8, %v11039_v48  ;;  %v20509_v59 = vrot.slane %v20508_v61, 3  ;;  %v10934_v11 = vadd.f32 %v20510_v7, %v10828_v15  ;;  %v10766_v63 = vadd.f32 %v10742_v40, %v10584_v51  ;;  %v20525_v48 = vld [vmem:[#allocation98_spill] sm:$0xff]  ;;  %v20529_v12 = vld [vmem:[#allocation97_spill] sm:$0xff] }
 0xcdf   :  { %v11272_v14 = vrot.slane %v11271_v41, 2  ;;  %v11308_v57 = vmul.f32 %v18698_v49, %v18698_v49  ;;  %v10935_v31 = vadd.f32 %v20511_v60, %v10829_v58  ;;  %v10824_v24 = vadd.f32 %v20512_v35, %v10760_v27  ;;  %v20533_v60 = vld [vmem:[#allocation106_spill] sm:$0xff] }
 0xce0   :  { %v11151_v1 = vadd.f32 %v20509_v59, %v11045_v62  ;;  %v11320_v10 = vsel %vm20513_vm13, %v18659_v23, 0.0  ;;  %v11317_v54 = vmul.f32 %v18742_v45, %v18742_v45  ;;  %v20515_v36 = vrot.slane %v20514_v50, 4  ;;  %v20528_v62 = vld [vmem:[#allocation105_spill] sm:$0xff]  ;;  %v20534_v35 = vld [vmem:[#allocation10_spill] sm:$0xff] }
 0xce1   :  { %v11040_v17 = vadd.f32 %v20516_v2, %v10934_v11  ;;  %v10830_v53 = vadd.f32 %v20517_v32, %v10766_v63  ;;  %v11318_v18 = vmul.f32 %v18746_v5, %v18746_v5  ;;  %v11041_v51 = vadd.f32 %v20518_v39, %v10935_v31 }
 0xce2   :  { %v18772_v0 = vadd.f32 %v20515_v36, %v11145_v55  ;;  %v10930_v52 = vadd.f32 %v20519_v21, %v10824_v24  ;;  %v11329_v23 = vadd.f32 %v18686_v34, %v11309_v16  ;;  %v20521_v3 = vrot.slane %v20520_v19, 4  ;;  %v20527_v16 = vld [vmem:[#allocation45_spill] sm:$0xff] }
 0xce3   :  { %v11146_v22 = vadd.f32 %v20522_v28, %v11040_v17  ;;  %v10936_v46 = vadd.f32 %v20523_v26, %v10830_v53  ;;  %v11273_v43 = vadd.f32 %v11272_v14, %v11271_v41  ;;  %v11147_v38 = vadd.f32 %v20524_v33, %v11041_v51  ;;  %v20530_v41 = vld [vmem:[#allocation68_spill] sm:$0xff] }
 0xce4   :  { %v18783_v29 = vadd.f32 %v20521_v3, %v11151_v1  ;;  %v11036_v20 = vadd.f32 %v20525_v48, %v10930_v52  ;;  %v11292_v37 = vsel %vm20526_vm14, %v18746_v5, 0.0  ;;  %v11330_v4 = vrot.slane %v11329_v23, 4  ;;  %v20536_v3 = vld [vmem:[#allocation60_spill] sm:$0xff] }
 0xce5   :  { %v11313_v34 = vmul.f32 %v18772_v0, %v18772_v0  ;;  %v18794_v44 = vadd.f32 %v20527_v16, %v11146_v22  ;;  %v11042_v30 = vadd.f32 %v20528_v62, %v10936_v46  ;;  %v11261_v15 = vadd.f32 %v18690_v56, %v18698_v49 }
 0xce6   :  { %v18800_v47 = vadd.f32 %v20529_v12, %v11147_v38  ;;  %v11142_v13 = vadd.f32 %v20530_v41, %v11036_v20  ;;  %v11331_v8 = vadd.f32 %v11330_v4, %v11329_v23  ;;  %v11284_v55 = vsel %vm20531_vm3, %v18742_v45, 0.0 }
 0xce7   :  { %v18807_v9 = vmul.f32 %v18783_v29, %v18783_v29  ;;  %v11274_v58 = vrot.slane %v11273_v43, 1  ;;  %v11262_v27 = vrot.slane %v11261_v15, 4  ;;  %v11285_v40 = vadd.f32 %v11284_v55, %v18794_v44 }
 0xce8   :  { %v11293_v61 = vadd.f32 %v11292_v37, %v18800_v47  ;;  %v11315_v56 = vmul.f32 %v18800_v47, %v18800_v47  ;;  %v11332_v59 = vrot.slane %v11331_v8, 2  ;;  %v11352_v1 = vsel %vm20532_vm4, %v11318_v18, 0.0 }
 0xce9   :  { %v11314_v7 = vmul.f32 %v18794_v44, %v18794_v44  ;;  %v11263_v11 = vadd.f32 %v11262_v27, %v11261_v15  ;;  %v11286_v63 = vrot.slane %v11285_v40, 4  ;;  %v11321_v14 = vadd.f32 %v11320_v10, %v11308_v57 }
 0xcea   :  { %v18817_v31 = vadd.f32 %v20533_v60, %v11142_v13  ;;  %v11148_v24 = vadd.f32 %v20534_v35, %v11042_v30  ;;  %v11294_v50 = vrot.slane %v11293_v61, 4  ;;  %v11353_v36 = vadd.f32 %v11352_v1, %v11315_v56 }
 0xceb   :  { %v11275_v2 = vadd.f32 %v11274_v58, %v11273_v43  ;;  %v11264_v17 = vrot.slane %v11263_v11, 2  ;;  %v11287_v32 = vadd.f32 %v11286_v63, %v11285_v40  ;;  %v11322_v53 = vrot.slane %v11321_v14, 4 }
 0xcec   :  { %v11295_v39 = vadd.f32 %v11294_v50, %v11293_v61  ;;  %v11333_v51 = vadd.f32 %v11332_v59, %v11331_v8  ;;  %v11354_v18 = vrot.slane %v11353_v36, 4  ;;  %v11344_v21 = vsel %vm20535_vm6, %v11317_v54, 0.0 }
 0xced   :  { %v11265_v52 = vadd.f32 %v11264_v17, %v11263_v11  ;;  %v11288_v23 = vrot.slane %v11287_v32, 2  ;;  %v11323_v19 = vadd.f32 %v11322_v53, %v11321_v14  ;;  %v11345_v57 = vadd.f32 %v11344_v21, %v11314_v7 }
 0xcee   :  { %v11310_v10 = vmul.f32 %v18817_v31, %v18817_v31  ;;  %v18824_v28 = vadd.f32 %v20536_v3, %v11148_v24  ;;  %v11296_v22 = vrot.slane %v11295_v39, 2  ;;  %v11355_v26 = vadd.f32 %v11354_v18, %v11353_v36 }
 0xcef   :  { %v11289_v46 = vadd.f32 %v11288_v23, %v11287_v32  ;;  %v11324_v43 = vrot.slane %v11323_v19, 2  ;;  %v11346_v33 = vrot.slane %v11345_v57, 4  ;;  %v11276_v38 = vsel %vm20537_vm15, %v18772_v0, 0.0 }
 0xcf0   :  { %v11297_v48 = vadd.f32 %v11296_v22, %v11295_v39  ;;  %v11334_v54 = vrot.slane %v11333_v51, 1  ;;  %v11356_v20 = vrot.slane %v11355_v26, 2  ;;  %v11277_v37 = vadd.f32 %v11276_v38, %v18817_v31 }
 0xcf1   :  { %v11266_v4 = vrot.slane %v11265_v52, 1  ;;  %v11325_v16 = vadd.f32 %v11324_v43, %v11323_v19  ;;  %v11347_v62 = vadd.f32 %v11346_v33, %v11345_v57  ;;  %v11300_v30 = vsel %vm20538_vm10, %v18783_v29, 0.0 }
 0xcf2   :  { %v11298_v15 = vrot.slane %v11297_v48, 1  ;;  %v11357_v12 = vadd.f32 %v11356_v20, %v11355_v26  ;;  %v11278_v41 = vrot.slane %v11277_v37, 4  ;;  %v11301_v13 = vadd.f32 %v11300_v30, %v18824_v28 }
 0xcf3   :  { %v11316_v8 = vmul.f32 %v18824_v28, %v18824_v28  ;;  %v11290_v55 = vrot.slane %v11289_v46, 1  ;;  %v11348_v58 = vrot.slane %v11347_v62, 2  ;;  %v11336_v27 = vsel %vm20539_vm2, %v11313_v34, 0.0 }
 0xcf4   :  { %v11299_v40 = vadd.f32 %v11298_v15, %v11297_v48  ;;  %v11358_v61 = vrot.slane %v11357_v12, 1  ;;  %v11279_v56 = vadd.f32 %v11278_v41, %v11277_v37  ;;  %v11302_v59 = vrot.slane %v11301_v13, 4 }
 0xcf5   :  { %v11335_v1 = vadd.f32 %v11334_v54, %v11333_v51  ;;  %v11326_v7 = vrot.slane %v11325_v16, 1  ;;  %v11349_v11 = vadd.f32 %v11348_v58, %v11347_v62  ;;  %v11337_v63 = vadd.f32 %v11336_v27, %v11310_v10 }
 0xcf6   :  { %v11359_v14 = vadd.f32 %v11358_v61, %v11357_v12  ;;  %v11267_v60 = vadd.f32 %v11266_v4, %v11265_v52  ;;  %v11280_v35 = vrot.slane %v11279_v56, 2  ;;  %v11303_v24 = vadd.f32 %v11302_v59, %v11301_v13 }
 0xcf7   :  { %v11291_v50 = vadd.f32 %v11290_v55, %v11289_v46  ;;  %v11350_v36 = vrot.slane %v11349_v11, 1  ;;  %v11338_v17 = vrot.slane %v11337_v63, 4  ;;  %v11360_v32 = vsel %vm20483_vm0, %v18807_v9, 0.0 }
 0xcf8   :  { %vm20540_vm13 = vcmask 1041409   ;;  %vm20541_vm14 = vcmask 1043459   ;;  %v11304_v39 = vrot.slane %v11303_v24, 2  ;;  %v11361_v18 = vadd.f32 %v11360_v32, %v11316_v8 }
 0xcf9   :  { %v11375_v34 = vsel %vm20540_vm13, %v11299_v40, %v11275_v2  ;;  %v11387_v53 = vsel %vm20541_vm14, %v11359_v14, %v11335_v1  ;;  %vm20542_vm3 = vcmask 1041408   ;;  %v11327_v21 = vadd.f32 %v11326_v7, %v11325_v16  ;;  %vm20543_vm4 = vmmov %vm20540_vm13 }
 0xcfa   :  { %v11393_v51 = vsel %vm20542_vm3, %v11375_v34, %v11387_v53  ;;  %v11351_v23 = vadd.f32 %v11350_v36, %v11349_v11  ;;  %v11339_v19 = vadd.f32 %v11338_v17, %v11337_v63  ;;  %v11281_v52 = vadd.f32 %v11280_v35, %v11279_v56  ;;  %vm20544_vm6 = vmmov %vm20541_vm14 }
 0xcfb   :  { %11507 = vmatprep.mubr.f32.mxu0 %v11393_v51  ;;  %v11305_v57 = vadd.f32 %v11304_v39, %v11303_v24  ;;  %v11362_v10 = vrot.slane %v11361_v18, 4  ;;  %v11374_v3 = vsel %vm20543_vm4, %v11291_v50, %v11267_v60  ;;  %vm20545_vm15 = vmmov %vm20542_vm3  ;;  %v20546_v48 = vmov 1.0|1.0  }
 0xcfc   :  { %v11386_v22 = vsel %vm20544_vm6, %v11351_v23, %v11327_v21  ;;  %v11340_v9 = vrot.slane %v11339_v19, 2  ;;  %v11282_v43 = vrot.slane %v11281_v52, 1  ;;  %v20548_v20 = vmov 0.0   ;;  %vm20551_vm10 = vmmov %vm20543_vm4 }
 0xcfd   :  { %v11392_v2 = vsel %vm20545_vm15, %v11374_v3, %v11386_v22  ;;  %v11363_v26 = vadd.f32 %v11362_v10, %v11361_v18  ;;  %v11306_v33 = vrot.slane %v11305_v57, 1  ;;  %vm20553_vm2 = vmmov %vm20542_vm3  ;;  %v20555_v40 = vmov 0.0|0.0  }
 0xcfe   :  { %11508 = vmatmul.mubr.f32.vlgmr.msra.gmra.mrb[60].mxu0 %v11392_v2  ;;  %v11341_v46 = vadd.f32 %v11340_v9, %v11339_v19  ;;  %v11283_v62 = vadd.f32 %v11282_v43, %v11281_v52  ;;  %v11258_v9 = vld [vmem:[%s18934_s3 + $0x22] sm:$0x1] }
 0xcff   :  { %v11364_v38 = vrot.slane %v11363_v26, 2  ;;  %12658 = vmatpush1.bf16.msk.msra.mxu0 %vm14445_vm5, %v20546_v48  ;;  %11681 = vmatprep.mubr.f32.mxu0 %v20548_v20  ;;  %v11307_v30 = vadd.f32 %v11306_v33, %v11305_v57  ;;  %vm20552_vm5 = vmmov %vm20544_vm6 }
 0xd00   :  { %v11342_v37 = vrot.slane %v11341_v46, 1  ;;  %12660 = vmatprep.subr.msk.bf16.mxu0 %vm14480_vm9, %v20546_v48 }
 0xd01   :  { %v11365_v16 = vadd.f32 %v11364_v38, %v11363_v26  ;;  %v11376_v8 = vsel %vm20551_vm10, %v11307_v30, %v11283_v62 }
 0xd02   :  { %v11343_v15 = vadd.f32 %v11342_v37, %v11341_v46  ;;  %v11259_v46 = vld [vmem:[%s18934_s3 + $0x23] sm:$0x1]  ;;  %v20560_v37 = vld [vmem:[#allocation11_spill] sm:$0xff] }
 0xd03   :  { %v11366_v12 = vrot.slane %v11365_v16, 1  ;;  %12662 = vmatpush1.bf16.msk.msra.mxu0 %vm14455_vm8, %v20546_v48  ;;  %vm20557_vm8 = vcmask 254976  }
 0xd05   :  { %v11367_v13 = vadd.f32 %v11366_v12, %v11365_v16 }
 0xd07   :  { %v11388_v55 = vsel %vm20552_vm5, %v11367_v13, %v11343_v15  ;;  %v20561_v15 = vld [vmem:[#allocation12_spill] sm:$0xff] }
 0xd08   :  { %v11394_v58 = vsel %vm20553_vm2, %v11376_v8, %v11388_v55 }
 0xd09   :  { %12392 = vmatmul.mubr.f32.vlgmr.msra.gmra.mrb[64].mxu1 %v11394_v58 }
 0xd0a   :  { %12665 = vmatpush3.bf16.msk.msra.mxu1 %vm14470_vm11, %v20546_v48  ;;  %12402 = vmatprep.mubr.msk.f32.mxu1 %vm12723_vm7, %v20548_v20  ;;  %vm20558_vm11 = vmmov %vm20557_vm8  ;;  %vm20559_vm7 = vcmask 1040384  }
 0xd0b   :  { %12666 = vmatprep.subr.bf16.mxu1 %v20555_v40 }
 0xd0e   :  { %12668 = vmatpush3.bf16.msk.msra.mxu1 %vm14488_vm12, %v20546_v48 }
 0xdd1   :  { %v12186_v56 = vpop.f32.mrb[60].mxu0 }
 0xdd2   :  { %v12187_v59 = vpop.f32.mrb[61].mxu0 }
 0xdd3   :  { %v12188_v1 = vadd.f32 %v12187_v59, %v12186_v56 }
 0xddc   :  { %v11579_v7 = vpop.f32.mrb[64].mxu1 }
 0xddd   :  { %v11580_v11 = vadd.f32 %v12188_v1, %v11579_v7  ;;  %v12393_v63 = vpop.f32.mrb[65].mxu1 }
 0xddf   :  { %v11583_v14 = vsel %vm20557_vm8, %v11580_v11, 0.0  ;;  %v11592_v60 = vrot.slane %v11580_v11, 2 }
 0xde0   :  { %v11584_v35 = vrot.slane %v11583_v14, 4 }
 0xde1   :  { %v11594_v24 = vsel %vm20558_vm11, %v11592_v60, 0.0 }
 0xde2   :  { %v11585_v50 = vadd.f32 %v11584_v35, %v11583_v14  ;;  %v11595_v36 = vrot.slane %v11594_v24, 4 }
 0xde4   :  { %v11586_v17 = vrot.slane %v11585_v50, 2  ;;  %v11596_v32 = vadd.f32 %v11595_v36, %v11594_v24 }
 0xde6   :  { %v11587_v34 = vadd.f32 %v11586_v17, %v11585_v50  ;;  %v11597_v53 = vrot.slane %v11596_v32, 2 }
 0xde8   :  { %v11588_v39 = vrot.slane %v11587_v34, 1  ;;  %v11598_v18 = vadd.f32 %v11597_v53, %v11596_v32 }
 0xdea   :  { %v11589_v51 = vadd.f32 %v11588_v39, %v11587_v34  ;;  %v11599_v21 = vrot.slane %v11598_v18, 1 }
 0xdec   :  { %v11590_v23 = vmul.f32 0.0034722222, %v11589_v51  ;;  %v11600_v19 = vadd.f32 %v11599_v21, %v11598_v18 }
 0xdee   :  { %v11601_v52 = vmul.f32 0.0034722222, %v11600_v19  ;;  %v11602_v57 = vmul.f32 %v11590_v23, %v11590_v23 }
 0xdf0   :  { %v11603_v10 = vsub.f32 %v11601_v52, %v11602_v57 }
 0xdf2   :  { %v11604_v3 = vmax.f32 %v11603_v10, 0.0 }
 0xdf4   :  { %v11605_v22 = vadd.f32 1e-05, %v11604_v3 }
 0xdf6   :  { %12683 = vrsqrt.f32 %v11605_v22 }
 0xe00   :  { %v12684_v2 = vpop.eup %12683 }
 0xe01   :  { %v11607_v26 = vmul.f32 %v12684_v2, %v11258_v9 }
 0xe03   :  { %v11608_v43 = vmul.f32 %v11607_v26, %v11590_v23 }
 0xe05   :  { %v11609_v33 = vsub.f32 %v11259_v46, %v11608_v43 }
 0xe07   :  { %v11611_v38 = vrot.slane %v11609_v33, 7 }
 0xe09   :  { %v11613_v48 = vsel %vm20559_vm7, %v11607_v26, %v11611_v38 }
 0xe0a   :  { %11961 = vmatmul.mubr.msk.f32.vlgmr.msra.gmra.mrb[62].mxu0 %vm215_vm1, %v11613_v48  ;;  %12403 = vmatmul.mubr.msk.f32.vlgmr.msra.gmra.mrb[66].mxu1 %vm215_vm1, %v11613_v48 }
 0xedd   :  { %v11683_v54 = vpop.f32.mrb[62].mxu0  ;;  %v11754_v20 = vpop.f32.mrb[66].mxu1 }
 0xede   :  { %v11761_v4 = vrot.slane %v11683_v54, %v20560_v37  ;;  %v11769_v16 = vrot.slane %v11754_v20, %v20560_v37  ;;  %v11685_v62 = vpop.f32.mrb[63].mxu0  ;;  %v12404_v30 = vpop.f32.mrb[67].mxu1  ;;  %v11785_v12 = vrot.slane %v11683_v54, %v20561_v15  ;;  %v11793_v41 = vrot.slane %v11754_v20, %v20561_v15 }
 0xedf   :  { %v11765_v13 = vrot.slane %v11685_v62, %v20560_v37  ;;  %v11789_v8 = vrot.slane %v11685_v62, %v20561_v15 }
 0xee0   :  { %v11770_v55 = vmul.f32 %v11761_v4, %v18698_v49  ;;  %v11773_v58 = vmul.f32 %v11761_v4, %v18634_v25  ;;  %v11776_v27 = vmul.f32 %v11761_v4, %v18794_v44  ;;  %v11779_v40 = vmul.f32 %v11761_v4, %v18742_v45 }
 0xee1   :  { %v11772_v61 = vmul.f32 %v11769_v16, %v18817_v31  ;;  %v11775_v56 = vmul.f32 %v11769_v16, %v18772_v0  ;;  %v11778_v59 = vmul.f32 %v11769_v16, %v18824_v28  ;;  %v11781_v1 = vmul.f32 %v11769_v16, %v18783_v29 }
 0xee2   :  { %v11794_v7 = vadd.f32 %v11785_v12, %v11770_v55  ;;  %v11797_v11 = vadd.f32 %v11785_v12, %v11773_v58  ;;  %v11800_v63 = vadd.f32 %v11785_v12, %v11776_v27  ;;  %v11803_v14 = vadd.f32 %v11785_v12, %v11779_v40 }
 0xee3   :  { %v11796_v60 = vadd.f32 %v11793_v41, %v11772_v61  ;;  %v11799_v49 = vadd.f32 %v11793_v41, %v11775_v56  ;;  %v11802_v35 = vadd.f32 %v11793_v41, %v11778_v59  ;;  %v11805_v25 = vadd.f32 %v11793_v41, %v11781_v1 }
 0xee4   :  { %v11806_v24 = vmax.f32 %v11794_v7, 0.0  ;;  %v11809_v44 = vmax.f32 %v11797_v11, 0.0  ;;  %v11812_v50 = vmax.f32 %v11800_v63, 0.0  ;;  %v11815_v45 = vmax.f32 %v11803_v14, 0.0 }
 0xee5   :  { %v11808_v36 = vmax.f32 %v11796_v60, 0.0  ;;  %v11811_v31 = vmax.f32 %v11799_v49, 0.0  ;;  %v11814_v17 = vmax.f32 %v11802_v35, 0.0  ;;  %v11817_v0 = vmax.f32 %v11805_v25, 0.0 }
 0xee6   :  { %11967 = vst [vmem:[%s18933_s5 + $0x60] sm:$0xff] %v11806_v24  ;;  %11970 = vst [vmem:[%s18933_s5 + $0x78] sm:$0xf] %v11809_v44  ;;  %v11771_v29 = vmul.f32 %v11765_v13, %v18701_v6  ;;  %v11774_v28 = vmul.f32 %v11765_v13, %v18638_v42  ;;  %v11777_v32 = vmul.f32 %v11765_v13, %v18800_v47 }
 0xee7   :  { %11973 = vst [vmem:[%s18933_s5 + $0x90] sm:$0xff] %v11812_v50  ;;  %11976 = vst [vmem:[%s18933_s5 + $0xa8] sm:$0xf] %v11815_v45  ;;  %v11780_v34 = vmul.f32 %v11765_v13, %v18746_v5 }
 0xee8   :  { %11969 = vst [vmem:[%s18933_s5 + $0x70] sm:$0xff] %v11808_v36  ;;  %11972 = vst [vmem:[%s18933_s5 + $0x88] sm:$0xf] %v11811_v31  ;;  %v11795_v42 = vadd.f32 %v11789_v8, %v11771_v29  ;;  %v11798_v6 = vadd.f32 %v11789_v8, %v11774_v28  ;;  %v11801_v47 = vadd.f32 %v11789_v8, %v11777_v32 }
 0xee9   :  { %11975 = vst [vmem:[%s18933_s5 + $0xa0] sm:$0xff] %v11814_v17  ;;  %11978 = vst [vmem:[%s18933_s5 + $0xb8] sm:$0xf] %v11817_v0  ;;  %v11804_v5 = vadd.f32 %v11789_v8, %v11780_v34 }
 0xeea   :  { %v11807_v53 = vmax.f32 %v11795_v42, 0.0  ;;  %v11810_v39 = vmax.f32 %v11798_v6, 0.0  ;;  %v11813_v18 = vmax.f32 %v11801_v47, 0.0 }
 0xeeb   :  { %v11816_v51 = vmax.f32 %v11804_v5, 0.0 }
 0xeec   :  { %11968 = vst [vmem:[%s18933_s5 + $0x68] sm:$0xff] %v11807_v53  ;;  %11971 = vst [vmem:[%s18933_s5 + $0x80] sm:$0xf] %v11810_v39 }
 0xeed   :  { %11974 = vst [vmem:[%s18933_s5 + $0x98] sm:$0xff] %v11813_v18  ;;  %11977 = vst [vmem:[%s18933_s5 + $0xb0] sm:$0xf] %v11816_v51 }

</bundles_post_ra>
